<compile_context>
chip_gen: v7x
topology: tpu7x:2x2x1
jax: 0.10.0
libtpu: 0.0.40
codegen_flags: <defaults>
</compile_context>

<pallas_src>
import functools

import jax
import jax.numpy as jnp
from jax.experimental import pallas as pl
from jax.experimental.pallas import tpu as pltpu


# v7x has only 64 MiB VMEM per TensorCore -> keep headroom for double buffers
# and compiler internal scratch.
_VMEM_LIMIT_BYTES = 48 * 1024 * 1024


# ----------------------------- Pallas kernels ------------------------------

def _conv_bn_relu_kernel(x_ref, w_ref, shift_ref, o_ref, flat_ref, col_ref, *,
                         k, pad, W, cin):
    """Conv2d(k, stride=1, 'same' pad) + folded-BN shift + ReLU for one image.

    x_ref    : (H, W*cin)            lane-dense input image (f32)
    w_ref    : (k*k*cin, cout)       conv weights, BN scale folded (MXU dtype)
    shift_ref: (1, cout)             folded bias/BN shift (f32)
    o_ref    : (H, W*cout)           lane-dense output image
    flat_ref : (H*W + 2*PR, cin)     VMEM scratch, zero-haloed flat pixel rows
                                     (w-major order: row = w*H + h)
    col_ref  : (H*W, k*k*cin)        VMEM im2col slab (MXU dtype)
    """
    H = x_ref.shape[0]
    HW = H * W
    cout = o_ref.shape[1] // W
    PR = pad * (H + 1)
    mdt = flat_ref.dtype

    # Zero only the halo rows (interior is fully overwritten below).
    if PR > 0:
        flat_ref[0:PR, :] = jnp.zeros((PR, cin), mdt)
        flat_ref[PR + HW:PR + HW + PR, :] = jnp.zeros((PR, cin), mdt)

    # Lane-dense (H, W*cin) -> flat w-major (H*W, cin) rows (contiguous slices).
    for w in range(W):
        flat_ref[PR + w * H:PR + (w + 1) * H, :] = (
            x_ref[:, w * cin:(w + 1) * cin].astype(mdt))

    # im2col: horizontal (w) out-of-range taps fall into the zero halo rows,
    # vertical (h) out-of-range taps are masked with the row-within-column index.
    ho = jax.lax.broadcasted_iota(jnp.int32, (HW, cin), 0) % H
    for kh in range(k):
        for kw in range(k):
            t = kh * k + kw
            start = PR + (kw - pad) * H + (kh - pad)
            patch = flat_ref[start:start + HW, :]
            lo = pad - kh                # need ho + kh - pad >= 0
            hi = H - 1 + pad - kh        # need ho + kh - pad <= H-1
            if lo > 0:
                patch = jnp.where(ho >= lo, patch, jnp.zeros_like(patch))
            if hi < H - 1:
                patch = jnp.where(ho <= hi, patch, jnp.zeros_like(patch))
            col_ref[:, t * cin:(t + 1) * cin] = patch

    # One wide-K MXU dot instead of k*k narrow ones, f32 accumulate + epilogue.
    acc = jnp.dot(col_ref[...], w_ref[...], preferred_element_type=jnp.float32)
    acc = jnp.maximum(acc + shift_ref[...], 0.0)

    # flat w-major (H*W, cout) -> lane-dense (H, W*cout) store.
    for w in range(W):
        o_ref[:, w * cout:(w + 1) * cout] = (
            acc[w * H:(w + 1) * H, :].astype(o_ref.dtype))


def _stage_kernel(y_ref, wp_ref, w1t_ref, w1b_ref, b1_ref, w2_ref, o_ref,
                  act_ref, flat_ref, col_ref, *, W, dc):
    """Whole BasicStage: grid axis 1 iterates the MLPBlocks ("arbitrary"),
    the feature map stays resident in VMEM across blocks.

    y_ref  : (H, W*C)          stage input, lane-dense (f32)
    wp_ref : (9*dc, dc)        Partial_conv3 weights (im2col layout, MXU dtype)
    w1t_ref: (dc, hidden)      1x1 conv #1 weights, rows for the conv'd channels
    w1b_ref: (C-dc, hidden)    1x1 conv #1 weights, rows for untouched channels
    b1_ref : (1, hidden)       folded BN shift (f32)
    w2_ref : (hidden, C)       1x1 conv #2 weights
    o_ref  : (H, W*C)          stage output, lane-dense
    act_ref: (H*W, C) f32      resident activation (w-major pixel rows)
    flat_ref:(H*W + 2*(H+1), dc) zero-haloed partial-conv input scratch
    col_ref: (H*W, 9*dc)       im2col slab for the partial conv
    """
    H = y_ref.shape[0]
    C = act_ref.shape[1]
    HW = H * W
    PR = H + 1
    mdt = flat_ref.dtype
    d = pl.program_id(1)

    @pl.when(d == 0)
    def _():
        # Load stage input once per image: lane-dense -> flat w-major rows.
        for w in range(W):
            act_ref[w * H:(w + 1) * H, :] = (
                y_ref[:, w * C:(w + 1) * C].astype(jnp.float32))
        # Zero only the halo rows of the partial-conv scratch (never overwritten).
        flat_ref[0:PR, :] = jnp.zeros((PR, dc), mdt)
        flat_ref[PR + HW:PR + HW + PR, :] = jnp.zeros((PR, dc), mdt)

    y = act_ref[...]                                    # (HW, C) f32 shortcut

    # ---- Partial_conv3 (split_cat): 3x3 'same' conv on the first dc channels.
    flat_ref[PR:PR + HW, :] = y[:, :dc].astype(mdt)
    ho = jax.lax.broadcasted_iota(jnp.int32, (HW, dc), 0) % H
    for kh in range(3):
        for kw in range(3):
            t = kh * 3 + kw
            start = PR + (kw - 1) * H + (kh - 1)
            patch = flat_ref[start:start + HW, :]
            if kh == 0:
                patch = jnp.where(ho >= 1, patch, jnp.zeros_like(patch))
            elif kh == 2:
                patch = jnp.where(ho <= H - 2, patch, jnp.zeros_like(patch))
            col_ref[:, t * dc:(t + 1) * dc] = patch
    pc = jnp.dot(col_ref[...], wp_ref[...], preferred_element_type=jnp.float32)

    # ---- MLP: 1x1 conv (BN scale folded) -> shift -> ReLU -> 1x1 conv.
    # split-w1 avoids concatenating [pc, y[:, dc:]] on the lane axis.
    h = jnp.dot(pc.astype(mdt), w1t_ref[...], preferred_element_type=jnp.float32)
    h = h + jnp.dot(y[:, dc:].astype(mdt), w1b_ref[...],
                    preferred_element_type=jnp.float32)
    h = jnp.maximum(h + b1_ref[...], 0.0)
    z = jnp.dot(h.astype(mdt), w2_ref[...], preferred_element_type=jnp.float32)

    # ---- residual: block output (= next block's input) stays in VMEM.
    act_ref[...] = y + z

    @pl.when(d == pl.num_programs(1) - 1)
    def _():
        for w in range(W):
            o_ref[:, w * C:(w + 1) * C] = (
                act_ref[w * H:(w + 1) * H, :].astype(o_ref.dtype))


# --------------------------- pallas_call wrappers ---------------------------

def conv_bn_relu(x2d, w_flat, shift, *, H, W, cin, cout, k, padding,
                 mxu_dtype=jnp.bfloat16):
    N = x2d.shape[0]
    PR = padding * (H + 1)
    return pl.pallas_call(
        functools.partial(_conv_bn_relu_kernel, k=k, pad=padding, W=W, cin=cin),
        out_shape=jax.ShapeDtypeStruct((N, H, W * cout), jnp.float32),
        grid=(N,),
        in_specs=[
            pl.BlockSpec((None, H, W * cin), lambda n: (n, 0, 0)),
            pl.BlockSpec((k * k * cin, cout), lambda n: (0, 0)),
            pl.BlockSpec((1, cout), lambda n: (0, 0)),
        ],
        out_specs=pl.BlockSpec((None, H, W * cout), lambda n: (n, 0, 0)),
        scratch_shapes=[
            pltpu.VMEM((H * W + 2 * PR, cin), mxu_dtype),
            pltpu.VMEM((H * W, k * k * cin), mxu_dtype),
        ],
        compiler_params=pltpu.CompilerParams(
            dimension_semantics=("parallel",),
            vmem_limit_bytes=_VMEM_LIMIT_BYTES),
    )(x2d, w_flat.astype(mxu_dtype), shift.astype(jnp.float32))


def basic_stage(y2d, wp, w1t, w1b, b1, w2, *, H, W, dc, mxu_dtype=jnp.bfloat16):
    N = y2d.shape[0]
    depth = wp.shape[0]
    C = y2d.shape[2] // W
    hidden = w1t.shape[2]
    return pl.pallas_call(
        functools.partial(_stage_kernel, W=W, dc=dc),
        out_shape=jax.ShapeDtypeStruct(y2d.shape, y2d.dtype),
        grid=(N, depth),
        in_specs=[
            pl.BlockSpec((None, H, W * C), lambda n, d: (n, 0, 0)),
            pl.BlockSpec((None, 9 * dc, dc), lambda n, d: (d, 0, 0)),
            pl.BlockSpec((None, dc, hidden), lambda n, d: (d, 0, 0)),
            pl.BlockSpec((None, C - dc, hidden), lambda n, d: (d, 0, 0)),
            pl.BlockSpec((None, 1, hidden), lambda n, d: (d, 0, 0)),
            pl.BlockSpec((None, hidden, C), lambda n, d: (d, 0, 0)),
        ],
        out_specs=pl.BlockSpec((None, H, W * C), lambda n, d: (n, 0, 0)),
        scratch_shapes=[
            pltpu.VMEM((H * W, C), jnp.float32),             # resident activation
            pltpu.VMEM((H * W + 2 * (H + 1), dc), mxu_dtype),  # pconv halo scratch
            pltpu.VMEM((H * W, 9 * dc), mxu_dtype),            # pconv im2col slab
        ],
        compiler_params=pltpu.CompilerParams(
            dimension_semantics=("parallel", "arbitrary"),
            vmem_limit_bytes=_VMEM_LIMIT_BYTES),
    )(y2d, wp.astype(mxu_dtype), w1t.astype(mxu_dtype), w1b.astype(mxu_dtype),
      b1.astype(jnp.float32), w2.astype(mxu_dtype))


# ------------------------------ JAX glue ------------------------------------

def init_params(key, in_ch, out_ch, depth, kernel_size, n_div=4, mlp_ratio=2):
    dim_conv3 = out_ch // n_div
    hidden = int(out_ch * mlp_ratio)
    ks = iter(jax.random.split(key, 6 + depth * 7))

    def rnd(shape, scale=0.1):
        return jax.random.normal(next(ks), shape, jnp.float32) * scale

    params = {
        "conv_w": rnd((out_ch, in_ch, kernel_size, kernel_size), 0.2),
        "conv_b": rnd((out_ch,)),
        "bn_gamma": 1.0 + rnd((out_ch,)),
        "bn_beta": rnd((out_ch,)),
        "bn_mean": rnd((out_ch,)),
        "bn_var": 1.0 + jnp.abs(rnd((out_ch,))),
        "blocks": [],
    }
    for _ in range(depth):
        params["blocks"].append({
            "pconv_w": rnd((dim_conv3, dim_conv3, 3, 3), 0.2),
            "w1": rnd((hidden, out_ch, 1, 1), 0.2),
            "bn_gamma": 1.0 + rnd((hidden,)),
            "bn_beta": rnd((hidden,)),
            "bn_mean": rnd((hidden,)),
            "bn_var": 1.0 + jnp.abs(rnd((hidden,))),
            "w2": rnd((out_ch, hidden, 1, 1), 0.2),
        })
    return params


def conv_block_forward(params, x_nchw, *, kernel_size, stride, padding,
                       n_div=4, eps=1e-5, mxu_dtype=jnp.bfloat16):
    N, cin, H, W = x_nchw.shape
    if stride != 1 or 2 * padding != kernel_size - 1:
        # TODO(synk): stride>1 / non-"same" padded stem convs not implemented.
        raise NotImplementedError("only stride=1 'same' convolutions supported")

    # NCHW -> lane-dense (N, H, W*Cin)  (same bytes as NHWC, free reshape)
    x2d = jnp.transpose(x_nchw, (0, 2, 3, 1)).reshape(N, H, W * cin)
    x2d = x2d.astype(jnp.float32)

    # ---- Conv2d + folded BatchNorm2d (inference) + ReLU ----
    w = params["conv_w"]                                        # (Cout,Cin,k,k)
    cout = w.shape[0]
    s = params["bn_gamma"] / jnp.sqrt(params["bn_var"] + eps)
    w_flat = (jnp.transpose(w, (2, 3, 1, 0))
              .reshape(kernel_size * kernel_size * cin, cout) * s[None, :])
    shift = (params["bn_beta"]
             + (params["conv_b"] - params["bn_mean"]) * s).reshape(1, cout)
    y = conv_bn_relu(x2d, w_flat, shift, H=H, W=W, cin=cin, cout=cout,
                     k=kernel_size, padding=padding, mxu_dtype=mxu_dtype)

    # ---- BasicStage: one fused kernel over all depth MLPBlocks ----
    dc = cout // n_div
    hidden = params["blocks"][0]["w1"].shape[0]
    wps, w1ts, w1bs, b1s, w2s = [], [], [], [], []
    for blk in params["blocks"]:
        wps.append(jnp.transpose(blk["pconv_w"], (2, 3, 1, 0)).reshape(9 * dc, dc))
        s1 = blk["bn_gamma"] / jnp.sqrt(blk["bn_var"] + eps)
        w1 = blk["w1"].reshape(hidden, cout).T * s1[None, :]    # (C, hidden)
        w1ts.append(w1[:dc])
        w1bs.append(w1[dc:])
        b1s.append((blk["bn_beta"] - blk["bn_mean"] * s1).reshape(1, hidden))
        w2s.append(blk["w2"].reshape(cout, hidden).T)           # (hidden, C)
    y = basic_stage(y, jnp.stack(wps), jnp.stack(w1ts), jnp.stack(w1bs),
                    jnp.stack(b1s), jnp.stack(w2s), H=H, W=W, dc=dc,
                    mxu_dtype=mxu_dtype)

    # lane-dense (N, H, W*C) -> NCHW
    return jnp.transpose(y.reshape(N, H, W, cout), (0, 3, 1, 2))


# ------------------------------- main ---------------------------------------

if __name__ == "__main__":
    key = jax.random.PRNGKey(0)
    in_ch, out_ch, depth = 4, 8, 2
    kernel_size, stride, padding = 3, 1, 1

    pkey, xkey = jax.random.split(key)
    params = init_params(pkey, in_ch, out_ch, depth, kernel_size)
    x = jax.random.normal(xkey, (2, in_ch, 16, 16), jnp.float32)

    fwd = jax.jit(functools.partial(
        conv_block_forward, kernel_size=kernel_size, stride=stride,
        padding=padding))
    out = fwd(params, x)
    jax.block_until_ready(out)

    assert out.shape == (2, out_ch, 16, 16), out.shape
    assert out.dtype == jnp.float32
    print("KERNEL_OK")
</pallas_src>

<mosaic_0001>
module attributes {stable_mosaic.version = 11 : i64} {
  func.func @_conv_bn_relu_kernel(%arg0: i32, %arg1: memref<1x16x64xf32, #tpu.memory_space<vmem>>, %arg2: memref<36x8xbf16, #tpu.memory_space<vmem>>, %arg3: memref<1x8xf32, #tpu.memory_space<vmem>>, %arg4: memref<1x16x128xf32, #tpu.memory_space<vmem>>, %arg5: memref<290x4xbf16, #tpu.memory_space<vmem>>, %arg6: memref<256x36xbf16, #tpu.memory_space<vmem>>) attributes {dimension_semantics = [#tpu.dimension_semantics<parallel>], iteration_bounds = array<i64: 2>, scalar_prefetch = 0 : i64, scratch_operands = 2 : i64, tpu.core_type = #tpu.core_type<tc>, window_params = [{transform_indices = @transform_0, window_bounds = array<i64: 1, 16, 64>}, {pipeline_mode = #tpu.pipeline_mode<synchronous>, transform_indices = @transform_1, window_bounds = array<i64: 36, 8>}, {pipeline_mode = #tpu.pipeline_mode<synchronous>, transform_indices = @transform_2, window_bounds = array<i64: 1, 8>}, {transform_indices = @transform_3, window_bounds = array<i64: 1, 16, 128>}]} {
    %cst = arith.constant 0.000000e+00 : bf16
    %0 = vector.broadcast %cst : bf16 to vector<17x4xbf16>
    %c0 = arith.constant 0 : index
    %c0_0 = arith.constant 0 : index
    %1 = vector.load %arg5[%c0, %c0_0] : memref<290x4xbf16, #tpu.memory_space<vmem>>, vector<17x4xbf16>
    tpu.vector_store %arg5[%c0, %c0_0], %0 {strides = array<i32>} : memref<290x4xbf16, #tpu.memory_space<vmem>>, vector<17x4xbf16>,
    %cst_1 = arith.constant 0.000000e+00 : bf16
    %2 = vector.broadcast %cst_1 : bf16 to vector<17x4xbf16>
    %c273 = arith.constant 273 : index
    %c0_2 = arith.constant 0 : index
    %3 = vector.load %arg5[%c273, %c0_2] : memref<290x4xbf16, #tpu.memory_space<vmem>>, vector<17x4xbf16>
    tpu.vector_store %arg5[%c273, %c0_2], %2 {strides = array<i32>} : memref<290x4xbf16, #tpu.memory_space<vmem>>, vector<17x4xbf16>,
    %c0_3 = arith.constant 0 : index
    %c0_4 = arith.constant 0 : index
    %c0_5 = arith.constant 0 : index
    %4 = vector.load %arg1[%c0_3, %c0_4, %c0_5] : memref<1x16x64xf32, #tpu.memory_space<vmem>>, vector<1x16x4xf32>
    %5 = vector.shape_cast %4 : vector<1x16x4xf32> to vector<16x4xf32>
    %6 = arith.truncf %5 : vector<16x4xf32> to vector<16x4xbf16>
    %c17 = arith.constant 17 : index
    %c0_6 = arith.constant 0 : index
    %7 = vector.load %arg5[%c17, %c0_6] : memref<290x4xbf16, #tpu.memory_space<vmem>>, vector<16x4xbf16>
    tpu.vector_store %arg5[%c17, %c0_6], %6 {strides = array<i32>} : memref<290x4xbf16, #tpu.memory_space<vmem>>, vector<16x4xbf16>,
    %c0_7 = arith.constant 0 : index
    %c0_8 = arith.constant 0 : index
    %c4 = arith.constant 4 : index
    %8 = vector.load %arg1[%c0_7, %c0_8, %c4] : memref<1x16x64xf32, #tpu.memory_space<vmem>>, vector<1x16x4xf32>
    %9 = vector.shape_cast %8 : vector<1x16x4xf32> to vector<16x4xf32>
    %10 = arith.truncf %9 : vector<16x4xf32> to vector<16x4xbf16>
    %c33 = arith.constant 33 : index
    %c0_9 = arith.constant 0 : index
    %11 = vector.load %arg5[%c33, %c0_9] : memref<290x4xbf16, #tpu.memory_space<vmem>>, vector<16x4xbf16>
    tpu.vector_store %arg5[%c33, %c0_9], %10 {strides = array<i32>} : memref<290x4xbf16, #tpu.memory_space<vmem>>, vector<16x4xbf16>,
    %c0_10 = arith.constant 0 : index
    %c0_11 = arith.constant 0 : index
    %c8 = arith.constant 8 : index
    %12 = vector.load %arg1[%c0_10, %c0_11, %c8] : memref<1x16x64xf32, #tpu.memory_space<vmem>>, vector<1x16x4xf32>
    %13 = vector.shape_cast %12 : vector<1x16x4xf32> to vector<16x4xf32>
    %14 = arith.truncf %13 : vector<16x4xf32> to vector<16x4xbf16>
    %c49 = arith.constant 49 : index
    %c0_12 = arith.constant 0 : index
    %15 = vector.load %arg5[%c49, %c0_12] : memref<290x4xbf16, #tpu.memory_space<vmem>>, vector<16x4xbf16>
    tpu.vector_store %arg5[%c49, %c0_12], %14 {strides = array<i32>} : memref<290x4xbf16, #tpu.memory_space<vmem>>, vector<16x4xbf16>,
    %c0_13 = arith.constant 0 : index
    %c0_14 = arith.constant 0 : index
    %c12 = arith.constant 12 : index
    %16 = vector.load %arg1[%c0_13, %c0_14, %c12] : memref<1x16x64xf32, #tpu.memory_space<vmem>>, vector<1x16x4xf32>
    %17 = vector.shape_cast %16 : vector<1x16x4xf32> to vector<16x4xf32>
    %18 = arith.truncf %17 : vector<16x4xf32> to vector<16x4xbf16>
    %c65 = arith.constant 65 : index
    %c0_15 = arith.constant 0 : index
    %19 = vector.load %arg5[%c65, %c0_15] : memref<290x4xbf16, #tpu.memory_space<vmem>>, vector<16x4xbf16>
    tpu.vector_store %arg5[%c65, %c0_15], %18 {strides = array<i32>} : memref<290x4xbf16, #tpu.memory_space<vmem>>, vector<16x4xbf16>,
    %c0_16 = arith.constant 0 : index
    %c0_17 = arith.constant 0 : index
    %c16 = arith.constant 16 : index
    %20 = vector.load %arg1[%c0_16, %c0_17, %c16] : memref<1x16x64xf32, #tpu.memory_space<vmem>>, vector<1x16x4xf32>
    %21 = vector.shape_cast %20 : vector<1x16x4xf32> to vector<16x4xf32>
    %22 = arith.truncf %21 : vector<16x4xf32> to vector<16x4xbf16>
    %c81 = arith.constant 81 : index
    %c0_18 = arith.constant 0 : index
    %23 = vector.load %arg5[%c81, %c0_18] : memref<290x4xbf16, #tpu.memory_space<vmem>>, vector<16x4xbf16>
    tpu.vector_store %arg5[%c81, %c0_18], %22 {strides = array<i32>} : memref<290x4xbf16, #tpu.memory_space<vmem>>, vector<16x4xbf16>,
    %c0_19 = arith.constant 0 : index
    %c0_20 = arith.constant 0 : index
    %c20 = arith.constant 20 : index
    %24 = vector.load %arg1[%c0_19, %c0_20, %c20] : memref<1x16x64xf32, #tpu.memory_space<vmem>>, vector<1x16x4xf32>
    %25 = vector.shape_cast %24 : vector<1x16x4xf32> to vector<16x4xf32>
    %26 = arith.truncf %25 : vector<16x4xf32> to vector<16x4xbf16>
    %c97 = arith.constant 97 : index
    %c0_21 = arith.constant 0 : index
    %27 = vector.load %arg5[%c97, %c0_21] : memref<290x4xbf16, #tpu.memory_space<vmem>>, vector<16x4xbf16>
    tpu.vector_store %arg5[%c97, %c0_21], %26 {strides = array<i32>} : memref<290x4xbf16, #tpu.memory_space<vmem>>, vector<16x4xbf16>,
    %c0_22 = arith.constant 0 : index
    %c0_23 = arith.constant 0 : index
    %c24 = arith.constant 24 : index
    %28 = vector.load %arg1[%c0_22, %c0_23, %c24] : memref<1x16x64xf32, #tpu.memory_space<vmem>>, vector<1x16x4xf32>
    %29 = vector.shape_cast %28 : vector<1x16x4xf32> to vector<16x4xf32>
    %30 = arith.truncf %29 : vector<16x4xf32> to vector<16x4xbf16>
    %c113 = arith.constant 113 : index
    %c0_24 = arith.constant 0 : index
    %31 = vector.load %arg5[%c113, %c0_24] : memref<290x4xbf16, #tpu.memory_space<vmem>>, vector<16x4xbf16>
    tpu.vector_store %arg5[%c113, %c0_24], %30 {strides = array<i32>} : memref<290x4xbf16, #tpu.memory_space<vmem>>, vector<16x4xbf16>,
    %c0_25 = arith.constant 0 : index
    %c0_26 = arith.constant 0 : index
    %c28 = arith.constant 28 : index
    %32 = vector.load %arg1[%c0_25, %c0_26, %c28] : memref<1x16x64xf32, #tpu.memory_space<vmem>>, vector<1x16x4xf32>
    %33 = vector.shape_cast %32 : vector<1x16x4xf32> to vector<16x4xf32>
    %34 = arith.truncf %33 : vector<16x4xf32> to vector<16x4xbf16>
    %c129 = arith.constant 129 : index
    %c0_27 = arith.constant 0 : index
    %35 = vector.load %arg5[%c129, %c0_27] : memref<290x4xbf16, #tpu.memory_space<vmem>>, vector<16x4xbf16>
    tpu.vector_store %arg5[%c129, %c0_27], %34 {strides = array<i32>} : memref<290x4xbf16, #tpu.memory_space<vmem>>, vector<16x4xbf16>,
    %c0_28 = arith.constant 0 : index
    %c0_29 = arith.constant 0 : index
    %c32 = arith.constant 32 : index
    %36 = vector.load %arg1[%c0_28, %c0_29, %c32] : memref<1x16x64xf32, #tpu.memory_space<vmem>>, vector<1x16x4xf32>
    %37 = vector.shape_cast %36 : vector<1x16x4xf32> to vector<16x4xf32>
    %38 = arith.truncf %37 : vector<16x4xf32> to vector<16x4xbf16>
    %c145 = arith.constant 145 : index
    %c0_30 = arith.constant 0 : index
    %39 = vector.load %arg5[%c145, %c0_30] : memref<290x4xbf16, #tpu.memory_space<vmem>>, vector<16x4xbf16>
    tpu.vector_store %arg5[%c145, %c0_30], %38 {strides = array<i32>} : memref<290x4xbf16, #tpu.memory_space<vmem>>, vector<16x4xbf16>,
    %c0_31 = arith.constant 0 : index
    %c0_32 = arith.constant 0 : index
    %c36 = arith.constant 36 : index
    %40 = vector.load %arg1[%c0_31, %c0_32, %c36] : memref<1x16x64xf32, #tpu.memory_space<vmem>>, vector<1x16x4xf32>
    %41 = vector.shape_cast %40 : vector<1x16x4xf32> to vector<16x4xf32>
    %42 = arith.truncf %41 : vector<16x4xf32> to vector<16x4xbf16>
    %c161 = arith.constant 161 : index
    %c0_33 = arith.constant 0 : index
    %43 = vector.load %arg5[%c161, %c0_33] : memref<290x4xbf16, #tpu.memory_space<vmem>>, vector<16x4xbf16>
    tpu.vector_store %arg5[%c161, %c0_33], %42 {strides = array<i32>} : memref<290x4xbf16, #tpu.memory_space<vmem>>, vector<16x4xbf16>,
    %c0_34 = arith.constant 0 : index
    %c0_35 = arith.constant 0 : index
    %c40 = arith.constant 40 : index
    %44 = vector.load %arg1[%c0_34, %c0_35, %c40] : memref<1x16x64xf32, #tpu.memory_space<vmem>>, vector<1x16x4xf32>
    %45 = vector.shape_cast %44 : vector<1x16x4xf32> to vector<16x4xf32>
    %46 = arith.truncf %45 : vector<16x4xf32> to vector<16x4xbf16>
    %c177 = arith.constant 177 : index
    %c0_36 = arith.constant 0 : index
    %47 = vector.load %arg5[%c177, %c0_36] : memref<290x4xbf16, #tpu.memory_space<vmem>>, vector<16x4xbf16>
    tpu.vector_store %arg5[%c177, %c0_36], %46 {strides = array<i32>} : memref<290x4xbf16, #tpu.memory_space<vmem>>, vector<16x4xbf16>,
    %c0_37 = arith.constant 0 : index
    %c0_38 = arith.constant 0 : index
    %c44 = arith.constant 44 : index
    %48 = vector.load %arg1[%c0_37, %c0_38, %c44] : memref<1x16x64xf32, #tpu.memory_space<vmem>>, vector<1x16x4xf32>
    %49 = vector.shape_cast %48 : vector<1x16x4xf32> to vector<16x4xf32>
    %50 = arith.truncf %49 : vector<16x4xf32> to vector<16x4xbf16>
    %c193 = arith.constant 193 : index
    %c0_39 = arith.constant 0 : index
    %51 = vector.load %arg5[%c193, %c0_39] : memref<290x4xbf16, #tpu.memory_space<vmem>>, vector<16x4xbf16>
    tpu.vector_store %arg5[%c193, %c0_39], %50 {strides = array<i32>} : memref<290x4xbf16, #tpu.memory_space<vmem>>, vector<16x4xbf16>,
    %c0_40 = arith.constant 0 : index
    %c0_41 = arith.constant 0 : index
    %c48 = arith.constant 48 : index
    %52 = vector.load %arg1[%c0_40, %c0_41, %c48] : memref<1x16x64xf32, #tpu.memory_space<vmem>>, vector<1x16x4xf32>
    %53 = vector.shape_cast %52 : vector<1x16x4xf32> to vector<16x4xf32>
    %54 = arith.truncf %53 : vector<16x4xf32> to vector<16x4xbf16>
    %c209 = arith.constant 209 : index
    %c0_42 = arith.constant 0 : index
    %55 = vector.load %arg5[%c209, %c0_42] : memref<290x4xbf16, #tpu.memory_space<vmem>>, vector<16x4xbf16>
    tpu.vector_store %arg5[%c209, %c0_42], %54 {strides = array<i32>} : memref<290x4xbf16, #tpu.memory_space<vmem>>, vector<16x4xbf16>,
    %c0_43 = arith.constant 0 : index
    %c0_44 = arith.constant 0 : index
    %c52 = arith.constant 52 : index
    %56 = vector.load %arg1[%c0_43, %c0_44, %c52] : memref<1x16x64xf32, #tpu.memory_space<vmem>>, vector<1x16x4xf32>
    %57 = vector.shape_cast %56 : vector<1x16x4xf32> to vector<16x4xf32>
    %58 = arith.truncf %57 : vector<16x4xf32> to vector<16x4xbf16>
    %c225 = arith.constant 225 : index
    %c0_45 = arith.constant 0 : index
    %59 = vector.load %arg5[%c225, %c0_45] : memref<290x4xbf16, #tpu.memory_space<vmem>>, vector<16x4xbf16>
    tpu.vector_store %arg5[%c225, %c0_45], %58 {strides = array<i32>} : memref<290x4xbf16, #tpu.memory_space<vmem>>, vector<16x4xbf16>,
    %c0_46 = arith.constant 0 : index
    %c0_47 = arith.constant 0 : index
    %c56 = arith.constant 56 : index
    %60 = vector.load %arg1[%c0_46, %c0_47, %c56] : memref<1x16x64xf32, #tpu.memory_space<vmem>>, vector<1x16x4xf32>
    %61 = vector.shape_cast %60 : vector<1x16x4xf32> to vector<16x4xf32>
    %62 = arith.truncf %61 : vector<16x4xf32> to vector<16x4xbf16>
    %c241 = arith.constant 241 : index
    %c0_48 = arith.constant 0 : index
    %63 = vector.load %arg5[%c241, %c0_48] : memref<290x4xbf16, #tpu.memory_space<vmem>>, vector<16x4xbf16>
    tpu.vector_store %arg5[%c241, %c0_48], %62 {strides = array<i32>} : memref<290x4xbf16, #tpu.memory_space<vmem>>, vector<16x4xbf16>,
    %c0_49 = arith.constant 0 : index
    %c0_50 = arith.constant 0 : index
    %c60 = arith.constant 60 : index
    %64 = vector.load %arg1[%c0_49, %c0_50, %c60] : memref<1x16x64xf32, #tpu.memory_space<vmem>>, vector<1x16x4xf32>
    %65 = vector.shape_cast %64 : vector<1x16x4xf32> to vector<16x4xf32>
    %66 = arith.truncf %65 : vector<16x4xf32> to vector<16x4xbf16>
    %c257 = arith.constant 257 : index
    %c0_51 = arith.constant 0 : index
    %67 = vector.load %arg5[%c257, %c0_51] : memref<290x4xbf16, #tpu.memory_space<vmem>>, vector<16x4xbf16>
    tpu.vector_store %arg5[%c257, %c0_51], %66 {strides = array<i32>} : memref<290x4xbf16, #tpu.memory_space<vmem>>, vector<16x4xbf16>,
    %68 = tpu.iota {dimensions = array<i32: 0>} : vector<256x4xi32>
    %c16_i32 = arith.constant 16 : i32
    %c0_i32 = arith.constant 0 : i32
    %69 = arith.cmpi eq, %c16_i32, %c0_i32 : i32
    %c1_i32 = arith.constant 1 : i32
    %70 = arith.select %69, %c1_i32, %c16_i32 : i32
    %71 = vector.broadcast %70 : i32 to vector<256x4xi32>
    %72 = arith.remsi %68, %71 : vector<256x4xi32>
    %c0_i32_52 = arith.constant 0 : i32
    %73 = vector.broadcast %c0_i32_52 : i32 to vector<256x4xi32>
    %74 = arith.cmpi ne, %72, %73 : vector<256x4xi32>
    %c0_i32_53 = arith.constant 0 : i32
    %75 = vector.broadcast %c0_i32_53 : i32 to vector<256x4xi32>
    %76 = arith.cmpi slt, %72, %75 : vector<256x4xi32>
    %c0_i32_54 = arith.constant 0 : i32
    %77 = arith.cmpi slt, %70, %c0_i32_54 : i32
    %78 = vector.broadcast %77 : i1 to vector<256x4xi1>
    %79 = vector.broadcast %78 : vector<256x4xi1> to vector<256x4xi1>
    %80 = arith.xori %76, %79 : vector<256x4xi1>
    %81 = arith.andi %80, %74 : vector<256x4xi1>
    %82 = vector.broadcast %70 : i32 to vector<256x4xi32>
    %83 = arith.addi %72, %82 : vector<256x4xi32>
    %84 = arith.select %81, %83, %72 : vector<256x4xi1>, vector<256x4xi32>
    %c0_55 = arith.constant 0 : index
    %c0_56 = arith.constant 0 : index
    %85 = vector.load %arg5[%c0_55, %c0_56] : memref<290x4xbf16, #tpu.memory_space<vmem>>, vector<256x4xbf16>
    %c1_i32_57 = arith.constant 1 : i32
    %86 = vector.broadcast %c1_i32_57 : i32 to vector<256x4xi32>
    %87 = arith.cmpi sge, %84, %86 : vector<256x4xi32>
    %cst_58 = arith.constant 0.000000e+00 : bf16
    %88 = vector.broadcast %cst_58 : bf16 to vector<256x4xbf16>
    %89 = arith.select %87, %85, %88 : vector<256x4xi1>, vector<256x4xbf16>
    %c0_59 = arith.constant 0 : index
    %c0_60 = arith.constant 0 : index
    %90 = vector.load %arg6[%c0_59, %c0_60] : memref<256x36xbf16, #tpu.memory_space<vmem>>, vector<256x4xbf16>
    tpu.vector_store %arg6[%c0_59, %c0_60], %89 {strides = array<i32>} : memref<256x36xbf16, #tpu.memory_space<vmem>>, vector<256x4xbf16>,
    %c16_61 = arith.constant 16 : index
    %c0_62 = arith.constant 0 : index
    %91 = vector.load %arg5[%c16_61, %c0_62] : memref<290x4xbf16, #tpu.memory_space<vmem>>, vector<256x4xbf16>
    %c1_i32_63 = arith.constant 1 : i32
    %92 = vector.broadcast %c1_i32_63 : i32 to vector<256x4xi32>
    %93 = arith.cmpi sge, %84, %92 : vector<256x4xi32>
    %cst_64 = arith.constant 0.000000e+00 : bf16
    %94 = vector.broadcast %cst_64 : bf16 to vector<256x4xbf16>
    %95 = arith.select %93, %91, %94 : vector<256x4xi1>, vector<256x4xbf16>
    %c0_65 = arith.constant 0 : index
    %c4_66 = arith.constant 4 : index
    %96 = vector.load %arg6[%c0_65, %c4_66] : memref<256x36xbf16, #tpu.memory_space<vmem>>, vector<256x4xbf16>
    tpu.vector_store %arg6[%c0_65, %c4_66], %95 {strides = array<i32>} : memref<256x36xbf16, #tpu.memory_space<vmem>>, vector<256x4xbf16>,
    %c32_67 = arith.constant 32 : index
    %c0_68 = arith.constant 0 : index
    %97 = vector.load %arg5[%c32_67, %c0_68] : memref<290x4xbf16, #tpu.memory_space<vmem>>, vector<256x4xbf16>
    %c1_i32_69 = arith.constant 1 : i32
    %98 = vector.broadcast %c1_i32_69 : i32 to vector<256x4xi32>
    %99 = arith.cmpi sge, %84, %98 : vector<256x4xi32>
    %cst_70 = arith.constant 0.000000e+00 : bf16
    %100 = vector.broadcast %cst_70 : bf16 to vector<256x4xbf16>
    %101 = arith.select %99, %97, %100 : vector<256x4xi1>, vector<256x4xbf16>
    %c0_71 = arith.constant 0 : index
    %c8_72 = arith.constant 8 : index
    %102 = vector.load %arg6[%c0_71, %c8_72] : memref<256x36xbf16, #tpu.memory_space<vmem>>, vector<256x4xbf16>
    tpu.vector_store %arg6[%c0_71, %c8_72], %101 {strides = array<i32>} : memref<256x36xbf16, #tpu.memory_space<vmem>>, vector<256x4xbf16>,
    %c1 = arith.constant 1 : index
    %c0_73 = arith.constant 0 : index
    %103 = vector.load %arg5[%c1, %c0_73] : memref<290x4xbf16, #tpu.memory_space<vmem>>, vector<256x4xbf16>
    %c0_74 = arith.constant 0 : index
    %c12_75 = arith.constant 12 : index
    %104 = vector.load %arg6[%c0_74, %c12_75] : memref<256x36xbf16, #tpu.memory_space<vmem>>, vector<256x4xbf16>
    tpu.vector_store %arg6[%c0_74, %c12_75], %103 {strides = array<i32>} : memref<256x36xbf16, #tpu.memory_space<vmem>>, vector<256x4xbf16>,
    %c17_76 = arith.constant 17 : index
    %c0_77 = arith.constant 0 : index
    %105 = vector.load %arg5[%c17_76, %c0_77] : memref<290x4xbf16, #tpu.memory_space<vmem>>, vector<256x4xbf16>
    %c0_78 = arith.constant 0 : index
    %c16_79 = arith.constant 16 : index
    %106 = vector.load %arg6[%c0_78, %c16_79] : memref<256x36xbf16, #tpu.memory_space<vmem>>, vector<256x4xbf16>
    tpu.vector_store %arg6[%c0_78, %c16_79], %105 {strides = array<i32>} : memref<256x36xbf16, #tpu.memory_space<vmem>>, vector<256x4xbf16>,
    %c33_80 = arith.constant 33 : index
    %c0_81 = arith.constant 0 : index
    %107 = vector.load %arg5[%c33_80, %c0_81] : memref<290x4xbf16, #tpu.memory_space<vmem>>, vector<256x4xbf16>
    %c0_82 = arith.constant 0 : index
    %c20_83 = arith.constant 20 : index
    %108 = vector.load %arg6[%c0_82, %c20_83] : memref<256x36xbf16, #tpu.memory_space<vmem>>, vector<256x4xbf16>
    tpu.vector_store %arg6[%c0_82, %c20_83], %107 {strides = array<i32>} : memref<256x36xbf16, #tpu.memory_space<vmem>>, vector<256x4xbf16>,
    %c2 = arith.constant 2 : index
    %c0_84 = arith.constant 0 : index
    %109 = vector.load %arg5[%c2, %c0_84] : memref<290x4xbf16, #tpu.memory_space<vmem>>, vector<256x4xbf16>
    %c14_i32 = arith.constant 14 : i32
    %110 = vector.broadcast %c14_i32 : i32 to vector<256x4xi32>
    %111 = arith.cmpi sle, %84, %110 : vector<256x4xi32>
    %cst_85 = arith.constant 0.000000e+00 : bf16
    %112 = vector.broadcast %cst_85 : bf16 to vector<256x4xbf16>
    %113 = arith.select %111, %109, %112 : vector<256x4xi1>, vector<256x4xbf16>
    %c0_86 = arith.constant 0 : index
    %c24_87 = arith.constant 24 : index
    %114 = vector.load %arg6[%c0_86, %c24_87] : memref<256x36xbf16, #tpu.memory_space<vmem>>, vector<256x4xbf16>
    tpu.vector_store %arg6[%c0_86, %c24_87], %113 {strides = array<i32>} : memref<256x36xbf16, #tpu.memory_space<vmem>>, vector<256x4xbf16>,
    %c18 = arith.constant 18 : index
    %c0_88 = arith.constant 0 : index
    %115 = vector.load %arg5[%c18, %c0_88] : memref<290x4xbf16, #tpu.memory_space<vmem>>, vector<256x4xbf16>
    %c14_i32_89 = arith.constant 14 : i32
    %116 = vector.broadcast %c14_i32_89 : i32 to vector<256x4xi32>
    %117 = arith.cmpi sle, %84, %116 : vector<256x4xi32>
    %cst_90 = arith.constant 0.000000e+00 : bf16
    %118 = vector.broadcast %cst_90 : bf16 to vector<256x4xbf16>
    %119 = arith.select %117, %115, %118 : vector<256x4xi1>, vector<256x4xbf16>
    %c0_91 = arith.constant 0 : index
    %c28_92 = arith.constant 28 : index
    %120 = vector.load %arg6[%c0_91, %c28_92] : memref<256x36xbf16, #tpu.memory_space<vmem>>, vector<256x4xbf16>
    tpu.vector_store %arg6[%c0_91, %c28_92], %119 {strides = array<i32>} : memref<256x36xbf16, #tpu.memory_space<vmem>>, vector<256x4xbf16>,
    %c34 = arith.constant 34 : index
    %c0_93 = arith.constant 0 : index
    %121 = vector.load %arg5[%c34, %c0_93] : memref<290x4xbf16, #tpu.memory_space<vmem>>, vector<256x4xbf16>
    %c14_i32_94 = arith.constant 14 : i32
    %122 = vector.broadcast %c14_i32_94 : i32 to vector<256x4xi32>
    %123 = arith.cmpi sle, %84, %122 : vector<256x4xi32>
    %cst_95 = arith.constant 0.000000e+00 : bf16
    %124 = vector.broadcast %cst_95 : bf16 to vector<256x4xbf16>
    %125 = arith.select %123, %121, %124 : vector<256x4xi1>, vector<256x4xbf16>
    %c0_96 = arith.constant 0 : index
    %c32_97 = arith.constant 32 : index
    %126 = vector.load %arg6[%c0_96, %c32_97] : memref<256x36xbf16, #tpu.memory_space<vmem>>, vector<256x4xbf16>
    tpu.vector_store %arg6[%c0_96, %c32_97], %125 {strides = array<i32>} : memref<256x36xbf16, #tpu.memory_space<vmem>>, vector<256x4xbf16>,
    %c0_98 = arith.constant 0 : index
    %c0_99 = arith.constant 0 : index
    %127 = vector.load %arg6[%c0_98, %c0_99] : memref<256x36xbf16, #tpu.memory_space<vmem>>, vector<256x36xbf16>
    %c0_100 = arith.constant 0 : index
    %c0_101 = arith.constant 0 : index
    %128 = vector.load %arg2[%c0_100, %c0_101] : memref<36x8xbf16, #tpu.memory_space<vmem>>, vector<36x8xbf16>
    %cst_102 = arith.constant dense<0.000000e+00> : vector<256x8xf32>
    %129 = tpu.matmul %127, %128, %cst_102 {dimension_numbers = #tpu.dot_dimension_numbers<[1], [0], [0], [1], [0, 0, 1, 1], [], []>} : vector<256x36xbf16>, vector<36x8xbf16>, vector<256x8xf32> -> vector<256x8xf32>
    %c0_103 = arith.constant 0 : index
    %c0_104 = arith.constant 0 : index
    %130 = vector.load %arg3[%c0_103, %c0_104] : memref<1x8xf32, #tpu.memory_space<vmem>>, vector<1x8xf32>
    %131 = vector.broadcast %130 : vector<1x8xf32> to vector<256x8xf32>
    %132 = arith.addf %129, %131 : vector<256x8xf32>
    %cst_105 = arith.constant 0.000000e+00 : f32
    %133 = vector.broadcast %cst_105 : f32 to vector<256x8xf32>
    %134 = arith.maximumf %132, %133 : vector<256x8xf32>
    %135 = vector.extract_strided_slice %134 {offsets = [0, 0], sizes = [16, 8], strides = [1, 1]} : vector<256x8xf32> to vector<16x8xf32>
    %c0_106 = arith.constant 0 : index
    %c0_107 = arith.constant 0 : index
    %c0_108 = arith.constant 0 : index
    %136 = vector.load %arg4[%c0_106, %c0_107, %c0_108] : memref<1x16x128xf32, #tpu.memory_space<vmem>>, vector<1x16x8xf32>
    %137 = vector.shape_cast %136 : vector<1x16x8xf32> to vector<16x8xf32>
    %138 = vector.shape_cast %135 : vector<16x8xf32> to vector<1x16x8xf32>
    tpu.vector_store %arg4[%c0_106, %c0_107, %c0_108], %138 {strides = array<i32>} : memref<1x16x128xf32, #tpu.memory_space<vmem>>, vector<1x16x8xf32>,
    %139 = vector.extract_strided_slice %134 {offsets = [16, 0], sizes = [16, 8], strides = [1, 1]} : vector<256x8xf32> to vector<16x8xf32>
    %c0_109 = arith.constant 0 : index
    %c0_110 = arith.constant 0 : index
    %c8_111 = arith.constant 8 : index
    %140 = vector.load %arg4[%c0_109, %c0_110, %c8_111] : memref<1x16x128xf32, #tpu.memory_space<vmem>>, vector<1x16x8xf32>
    %141 = vector.shape_cast %140 : vector<1x16x8xf32> to vector<16x8xf32>
    %142 = vector.shape_cast %139 : vector<16x8xf32> to vector<1x16x8xf32>
    tpu.vector_store %arg4[%c0_109, %c0_110, %c8_111], %142 {strides = array<i32>} : memref<1x16x128xf32, #tpu.memory_space<vmem>>, vector<1x16x8xf32>,
    %143 = vector.extract_strided_slice %134 {offsets = [32, 0], sizes = [16, 8], strides = [1, 1]} : vector<256x8xf32> to vector<16x8xf32>
    %c0_112 = arith.constant 0 : index
    %c0_113 = arith.constant 0 : index
    %c16_114 = arith.constant 16 : index
    %144 = vector.load %arg4[%c0_112, %c0_113, %c16_114] : memref<1x16x128xf32, #tpu.memory_space<vmem>>, vector<1x16x8xf32>
    %145 = vector.shape_cast %144 : vector<1x16x8xf32> to vector<16x8xf32>
    %146 = vector.shape_cast %143 : vector<16x8xf32> to vector<1x16x8xf32>
    tpu.vector_store %arg4[%c0_112, %c0_113, %c16_114], %146 {strides = array<i32>} : memref<1x16x128xf32, #tpu.memory_space<vmem>>, vector<1x16x8xf32>,
    %147 = vector.extract_strided_slice %134 {offsets = [48, 0], sizes = [16, 8], strides = [1, 1]} : vector<256x8xf32> to vector<16x8xf32>
    %c0_115 = arith.constant 0 : index
    %c0_116 = arith.constant 0 : index
    %c24_117 = arith.constant 24 : index
    %148 = vector.load %arg4[%c0_115, %c0_116, %c24_117] : memref<1x16x128xf32, #tpu.memory_space<vmem>>, vector<1x16x8xf32>
    %149 = vector.shape_cast %148 : vector<1x16x8xf32> to vector<16x8xf32>
    %150 = vector.shape_cast %147 : vector<16x8xf32> to vector<1x16x8xf32>
    tpu.vector_store %arg4[%c0_115, %c0_116, %c24_117], %150 {strides = array<i32>} : memref<1x16x128xf32, #tpu.memory_space<vmem>>, vector<1x16x8xf32>,
    %151 = vector.extract_strided_slice %134 {offsets = [64, 0], sizes = [16, 8], strides = [1, 1]} : vector<256x8xf32> to vector<16x8xf32>
    %c0_118 = arith.constant 0 : index
    %c0_119 = arith.constant 0 : index
    %c32_120 = arith.constant 32 : index
    %152 = vector.load %arg4[%c0_118, %c0_119, %c32_120] : memref<1x16x128xf32, #tpu.memory_space<vmem>>, vector<1x16x8xf32>
    %153 = vector.shape_cast %152 : vector<1x16x8xf32> to vector<16x8xf32>
    %154 = vector.shape_cast %151 : vector<16x8xf32> to vector<1x16x8xf32>
    tpu.vector_store %arg4[%c0_118, %c0_119, %c32_120], %154 {strides = array<i32>} : memref<1x16x128xf32, #tpu.memory_space<vmem>>, vector<1x16x8xf32>,
    %155 = vector.extract_strided_slice %134 {offsets = [80, 0], sizes = [16, 8], strides = [1, 1]} : vector<256x8xf32> to vector<16x8xf32>
    %c0_121 = arith.constant 0 : index
    %c0_122 = arith.constant 0 : index
    %c40_123 = arith.constant 40 : index
    %156 = vector.load %arg4[%c0_121, %c0_122, %c40_123] : memref<1x16x128xf32, #tpu.memory_space<vmem>>, vector<1x16x8xf32>
    %157 = vector.shape_cast %156 : vector<1x16x8xf32> to vector<16x8xf32>
    %158 = vector.shape_cast %155 : vector<16x8xf32> to vector<1x16x8xf32>
    tpu.vector_store %arg4[%c0_121, %c0_122, %c40_123], %158 {strides = array<i32>} : memref<1x16x128xf32, #tpu.memory_space<vmem>>, vector<1x16x8xf32>,
    %159 = vector.extract_strided_slice %134 {offsets = [96, 0], sizes = [16, 8], strides = [1, 1]} : vector<256x8xf32> to vector<16x8xf32>
    %c0_124 = arith.constant 0 : index
    %c0_125 = arith.constant 0 : index
    %c48_126 = arith.constant 48 : index
    %160 = vector.load %arg4[%c0_124, %c0_125, %c48_126] : memref<1x16x128xf32, #tpu.memory_space<vmem>>, vector<1x16x8xf32>
    %161 = vector.shape_cast %160 : vector<1x16x8xf32> to vector<16x8xf32>
    %162 = vector.shape_cast %159 : vector<16x8xf32> to vector<1x16x8xf32>
    tpu.vector_store %arg4[%c0_124, %c0_125, %c48_126], %162 {strides = array<i32>} : memref<1x16x128xf32, #tpu.memory_space<vmem>>, vector<1x16x8xf32>,
    %163 = vector.extract_strided_slice %134 {offsets = [112, 0], sizes = [16, 8], strides = [1, 1]} : vector<256x8xf32> to vector<16x8xf32>
    %c0_127 = arith.constant 0 : index
    %c0_128 = arith.constant 0 : index
    %c56_129 = arith.constant 56 : index
    %164 = vector.load %arg4[%c0_127, %c0_128, %c56_129] : memref<1x16x128xf32, #tpu.memory_space<vmem>>, vector<1x16x8xf32>
    %165 = vector.shape_cast %164 : vector<1x16x8xf32> to vector<16x8xf32>
    %166 = vector.shape_cast %163 : vector<16x8xf32> to vector<1x16x8xf32>
    tpu.vector_store %arg4[%c0_127, %c0_128, %c56_129], %166 {strides = array<i32>} : memref<1x16x128xf32, #tpu.memory_space<vmem>>, vector<1x16x8xf32>,
    %167 = vector.extract_strided_slice %134 {offsets = [128, 0], sizes = [16, 8], strides = [1, 1]} : vector<256x8xf32> to vector<16x8xf32>
    %c0_130 = arith.constant 0 : index
    %c0_131 = arith.constant 0 : index
    %c64 = arith.constant 64 : index
    %168 = vector.load %arg4[%c0_130, %c0_131, %c64] : memref<1x16x128xf32, #tpu.memory_space<vmem>>, vector<1x16x8xf32>
    %169 = vector.shape_cast %168 : vector<1x16x8xf32> to vector<16x8xf32>
    %170 = vector.shape_cast %167 : vector<16x8xf32> to vector<1x16x8xf32>
    tpu.vector_store %arg4[%c0_130, %c0_131, %c64], %170 {strides = array<i32>} : memref<1x16x128xf32, #tpu.memory_space<vmem>>, vector<1x16x8xf32>,
    %171 = vector.extract_strided_slice %134 {offsets = [144, 0], sizes = [16, 8], strides = [1, 1]} : vector<256x8xf32> to vector<16x8xf32>
    %c0_132 = arith.constant 0 : index
    %c0_133 = arith.constant 0 : index
    %c72 = arith.constant 72 : index
    %172 = vector.load %arg4[%c0_132, %c0_133, %c72] : memref<1x16x128xf32, #tpu.memory_space<vmem>>, vector<1x16x8xf32>
    %173 = vector.shape_cast %172 : vector<1x16x8xf32> to vector<16x8xf32>
    %174 = vector.shape_cast %171 : vector<16x8xf32> to vector<1x16x8xf32>
    tpu.vector_store %arg4[%c0_132, %c0_133, %c72], %174 {strides = array<i32>} : memref<1x16x128xf32, #tpu.memory_space<vmem>>, vector<1x16x8xf32>,
    %175 = vector.extract_strided_slice %134 {offsets = [160, 0], sizes = [16, 8], strides = [1, 1]} : vector<256x8xf32> to vector<16x8xf32>
    %c0_134 = arith.constant 0 : index
    %c0_135 = arith.constant 0 : index
    %c80 = arith.constant 80 : index
    %176 = vector.load %arg4[%c0_134, %c0_135, %c80] : memref<1x16x128xf32, #tpu.memory_space<vmem>>, vector<1x16x8xf32>
    %177 = vector.shape_cast %176 : vector<1x16x8xf32> to vector<16x8xf32>
    %178 = vector.shape_cast %175 : vector<16x8xf32> to vector<1x16x8xf32>
    tpu.vector_store %arg4[%c0_134, %c0_135, %c80], %178 {strides = array<i32>} : memref<1x16x128xf32, #tpu.memory_space<vmem>>, vector<1x16x8xf32>,
    %179 = vector.extract_strided_slice %134 {offsets = [176, 0], sizes = [16, 8], strides = [1, 1]} : vector<256x8xf32> to vector<16x8xf32>
    %c0_136 = arith.constant 0 : index
    %c0_137 = arith.constant 0 : index
    %c88 = arith.constant 88 : index
    %180 = vector.load %arg4[%c0_136, %c0_137, %c88] : memref<1x16x128xf32, #tpu.memory_space<vmem>>, vector<1x16x8xf32>
    %181 = vector.shape_cast %180 : vector<1x16x8xf32> to vector<16x8xf32>
    %182 = vector.shape_cast %179 : vector<16x8xf32> to vector<1x16x8xf32>
    tpu.vector_store %arg4[%c0_136, %c0_137, %c88], %182 {strides = array<i32>} : memref<1x16x128xf32, #tpu.memory_space<vmem>>, vector<1x16x8xf32>,
    %183 = vector.extract_strided_slice %134 {offsets = [192, 0], sizes = [16, 8], strides = [1, 1]} : vector<256x8xf32> to vector<16x8xf32>
    %c0_138 = arith.constant 0 : index
    %c0_139 = arith.constant 0 : index
    %c96 = arith.constant 96 : index
    %184 = vector.load %arg4[%c0_138, %c0_139, %c96] : memref<1x16x128xf32, #tpu.memory_space<vmem>>, vector<1x16x8xf32>
    %185 = vector.shape_cast %184 : vector<1x16x8xf32> to vector<16x8xf32>
    %186 = vector.shape_cast %183 : vector<16x8xf32> to vector<1x16x8xf32>
    tpu.vector_store %arg4[%c0_138, %c0_139, %c96], %186 {strides = array<i32>} : memref<1x16x128xf32, #tpu.memory_space<vmem>>, vector<1x16x8xf32>,
    %187 = vector.extract_strided_slice %134 {offsets = [208, 0], sizes = [16, 8], strides = [1, 1]} : vector<256x8xf32> to vector<16x8xf32>
    %c0_140 = arith.constant 0 : index
    %c0_141 = arith.constant 0 : index
    %c104 = arith.constant 104 : index
    %188 = vector.load %arg4[%c0_140, %c0_141, %c104] : memref<1x16x128xf32, #tpu.memory_space<vmem>>, vector<1x16x8xf32>
    %189 = vector.shape_cast %188 : vector<1x16x8xf32> to vector<16x8xf32>
    %190 = vector.shape_cast %187 : vector<16x8xf32> to vector<1x16x8xf32>
    tpu.vector_store %arg4[%c0_140, %c0_141, %c104], %190 {strides = array<i32>} : memref<1x16x128xf32, #tpu.memory_space<vmem>>, vector<1x16x8xf32>,
    %191 = vector.extract_strided_slice %134 {offsets = [224, 0], sizes = [16, 8], strides = [1, 1]} : vector<256x8xf32> to vector<16x8xf32>
    %c0_142 = arith.constant 0 : index
    %c0_143 = arith.constant 0 : index
    %c112 = arith.constant 112 : index
    %192 = vector.load %arg4[%c0_142, %c0_143, %c112] : memref<1x16x128xf32, #tpu.memory_space<vmem>>, vector<1x16x8xf32>
    %193 = vector.shape_cast %192 : vector<1x16x8xf32> to vector<16x8xf32>
    %194 = vector.shape_cast %191 : vector<16x8xf32> to vector<1x16x8xf32>
    tpu.vector_store %arg4[%c0_142, %c0_143, %c112], %194 {strides = array<i32>} : memref<1x16x128xf32, #tpu.memory_space<vmem>>, vector<1x16x8xf32>,
    %195 = vector.extract_strided_slice %134 {offsets = [240, 0], sizes = [16, 8], strides = [1, 1]} : vector<256x8xf32> to vector<16x8xf32>
    %c0_144 = arith.constant 0 : index
    %c0_145 = arith.constant 0 : index
    %c120 = arith.constant 120 : index
    %196 = vector.load %arg4[%c0_144, %c0_145, %c120] : memref<1x16x128xf32, #tpu.memory_space<vmem>>, vector<1x16x8xf32>
    %197 = vector.shape_cast %196 : vector<1x16x8xf32> to vector<16x8xf32>
    %198 = vector.shape_cast %195 : vector<16x8xf32> to vector<1x16x8xf32>
    tpu.vector_store %arg4[%c0_144, %c0_145, %c120], %198 {strides = array<i32>} : memref<1x16x128xf32, #tpu.memory_space<vmem>>, vector<1x16x8xf32>,
    return
  }
  func.func @transform_0(%arg0: i32) -> (i32, i32, i32) {
    %c0_i32 = arith.constant 0 : i32
    %c0_i32_0 = arith.constant 0 : i32
    %c0_i32_1 = arith.constant 0 : i32
    return %arg0, %c0_i32, %c0_i32_0 : i32, i32, i32
  }
  func.func @transform_1(%arg0: i32) -> (i32, i32) {
    %c0_i32 = arith.constant 0 : i32
    %c0_i32_0 = arith.constant 0 : i32
    %c0_i32_1 = arith.constant 0 : i32
    return %c0_i32, %c0_i32_0 : i32, i32
  }
  func.func @transform_2(%arg0: i32) -> (i32, i32) {
    %c0_i32 = arith.constant 0 : i32
    %c0_i32_0 = arith.constant 0 : i32
    %c0_i32_1 = arith.constant 0 : i32
    return %c0_i32, %c0_i32_0 : i32, i32
  }
  func.func @transform_3(%arg0: i32) -> (i32, i32, i32) {
    %c0_i32 = arith.constant 0 : i32
    %c0_i32_0 = arith.constant 0 : i32
    %c0_i32_1 = arith.constant 0 : i32
    return %arg0, %c0_i32, %c0_i32_0 : i32, i32, i32
  }
}

module attributes {stable_mosaic.version = 11 : i64} {
  func.func @_stage_kernel(%arg0: i32, %arg1: i32, %arg2: memref<1x16x128xf32, #tpu.memory_space<vmem>>, %arg3: memref<1x18x2xbf16, #tpu.memory_space<vmem>>, %arg4: memref<1x2x16xbf16, #tpu.memory_space<vmem>>, %arg5: memref<1x6x16xbf16, #tpu.memory_space<vmem>>, %arg6: memref<1x1x16xf32, #tpu.memory_space<vmem>>, %arg7: memref<1x16x8xbf16, #tpu.memory_space<vmem>>, %arg8: memref<1x16x128xf32, #tpu.memory_space<vmem>>, %arg9: memref<256x8xf32, #tpu.memory_space<vmem>>, %arg10: memref<290x2xbf16, #tpu.memory_space<vmem>>, %arg11: memref<256x18xbf16, #tpu.memory_space<vmem>>) attributes {dimension_semantics = [#tpu.dimension_semantics<parallel>, #tpu.dimension_semantics<arbitrary>], iteration_bounds = array<i64: 2, 2>, scalar_prefetch = 0 : i64, scratch_operands = 3 : i64, tpu.core_type = #tpu.core_type<tc>, window_params = [{transform_indices = @transform_0, window_bounds = array<i64: 1, 16, 128>}, {transform_indices = @transform_1, window_bounds = array<i64: 1, 18, 2>}, {transform_indices = @transform_2, window_bounds = array<i64: 1, 2, 16>}, {transform_indices = @transform_3, window_bounds = array<i64: 1, 6, 16>}, {transform_indices = @transform_4, window_bounds = array<i64: 1, 1, 16>}, {transform_indices = @transform_5, window_bounds = array<i64: 1, 16, 8>}, {transform_indices = @transform_6, window_bounds = array<i64: 1, 16, 128>}]} {
    %c0_i32 = arith.constant 0 : i32
    %0 = arith.cmpi eq, %arg1, %c0_i32 : i32
    %1 = arith.extui %0 : i1 to i32
    %c0_i32_0 = arith.constant 0 : i32
    %2 = arith.cmpi ne, %1, %c0_i32_0 : i32
    scf.if %2 {
      %c0_66 = arith.constant 0 : index
      %c0_67 = arith.constant 0 : index
      %c0_68 = arith.constant 0 : index
      %95 = vector.load %arg2[%c0_66, %c0_67, %c0_68] : memref<1x16x128xf32, #tpu.memory_space<vmem>>, vector<1x16x8xf32>
      %96 = vector.shape_cast %95 : vector<1x16x8xf32> to vector<16x8xf32>
      %c0_69 = arith.constant 0 : index
      %c0_70 = arith.constant 0 : index
      %97 = vector.load %arg9[%c0_69, %c0_70] : memref<256x8xf32, #tpu.memory_space<vmem>>, vector<16x8xf32>
      tpu.vector_store %arg9[%c0_69, %c0_70], %96 {strides = array<i32>} : memref<256x8xf32, #tpu.memory_space<vmem>>, vector<16x8xf32>,
      %c0_71 = arith.constant 0 : index
      %c0_72 = arith.constant 0 : index
      %c8_73 = arith.constant 8 : index
      %98 = vector.load %arg2[%c0_71, %c0_72, %c8_73] : memref<1x16x128xf32, #tpu.memory_space<vmem>>, vector<1x16x8xf32>
      %99 = vector.shape_cast %98 : vector<1x16x8xf32> to vector<16x8xf32>
      %c16_74 = arith.constant 16 : index
      %c0_75 = arith.constant 0 : index
      %100 = vector.load %arg9[%c16_74, %c0_75] : memref<256x8xf32, #tpu.memory_space<vmem>>, vector<16x8xf32>
      tpu.vector_store %arg9[%c16_74, %c0_75], %99 {strides = array<i32>} : memref<256x8xf32, #tpu.memory_space<vmem>>, vector<16x8xf32>,
      %c0_76 = arith.constant 0 : index
      %c0_77 = arith.constant 0 : index
      %c16_78 = arith.constant 16 : index
      %101 = vector.load %arg2[%c0_76, %c0_77, %c16_78] : memref<1x16x128xf32, #tpu.memory_space<vmem>>, vector<1x16x8xf32>
      %102 = vector.shape_cast %101 : vector<1x16x8xf32> to vector<16x8xf32>
      %c32_79 = arith.constant 32 : index
      %c0_80 = arith.constant 0 : index
      %103 = vector.load %arg9[%c32_79, %c0_80] : memref<256x8xf32, #tpu.memory_space<vmem>>, vector<16x8xf32>
      tpu.vector_store %arg9[%c32_79, %c0_80], %102 {strides = array<i32>} : memref<256x8xf32, #tpu.memory_space<vmem>>, vector<16x8xf32>,
      %c0_81 = arith.constant 0 : index
      %c0_82 = arith.constant 0 : index
      %c24 = arith.constant 24 : index
      %104 = vector.load %arg2[%c0_81, %c0_82, %c24] : memref<1x16x128xf32, #tpu.memory_space<vmem>>, vector<1x16x8xf32>
      %105 = vector.shape_cast %104 : vector<1x16x8xf32> to vector<16x8xf32>
      %c48 = arith.constant 48 : index
      %c0_83 = arith.constant 0 : index
      %106 = vector.load %arg9[%c48, %c0_83] : memref<256x8xf32, #tpu.memory_space<vmem>>, vector<16x8xf32>
      tpu.vector_store %arg9[%c48, %c0_83], %105 {strides = array<i32>} : memref<256x8xf32, #tpu.memory_space<vmem>>, vector<16x8xf32>,
      %c0_84 = arith.constant 0 : index
      %c0_85 = arith.constant 0 : index
      %c32_86 = arith.constant 32 : index
      %107 = vector.load %arg2[%c0_84, %c0_85, %c32_86] : memref<1x16x128xf32, #tpu.memory_space<vmem>>, vector<1x16x8xf32>
      %108 = vector.shape_cast %107 : vector<1x16x8xf32> to vector<16x8xf32>
      %c64 = arith.constant 64 : index
      %c0_87 = arith.constant 0 : index
      %109 = vector.load %arg9[%c64, %c0_87] : memref<256x8xf32, #tpu.memory_space<vmem>>, vector<16x8xf32>
      tpu.vector_store %arg9[%c64, %c0_87], %108 {strides = array<i32>} : memref<256x8xf32, #tpu.memory_space<vmem>>, vector<16x8xf32>,
      %c0_88 = arith.constant 0 : index
      %c0_89 = arith.constant 0 : index
      %c40 = arith.constant 40 : index
      %110 = vector.load %arg2[%c0_88, %c0_89, %c40] : memref<1x16x128xf32, #tpu.memory_space<vmem>>, vector<1x16x8xf32>
      %111 = vector.shape_cast %110 : vector<1x16x8xf32> to vector<16x8xf32>
      %c80 = arith.constant 80 : index
      %c0_90 = arith.constant 0 : index
      %112 = vector.load %arg9[%c80, %c0_90] : memref<256x8xf32, #tpu.memory_space<vmem>>, vector<16x8xf32>
      tpu.vector_store %arg9[%c80, %c0_90], %111 {strides = array<i32>} : memref<256x8xf32, #tpu.memory_space<vmem>>, vector<16x8xf32>,
      %c0_91 = arith.constant 0 : index
      %c0_92 = arith.constant 0 : index
      %c48_93 = arith.constant 48 : index
      %113 = vector.load %arg2[%c0_91, %c0_92, %c48_93] : memref<1x16x128xf32, #tpu.memory_space<vmem>>, vector<1x16x8xf32>
      %114 = vector.shape_cast %113 : vector<1x16x8xf32> to vector<16x8xf32>
      %c96 = arith.constant 96 : index
      %c0_94 = arith.constant 0 : index
      %115 = vector.load %arg9[%c96, %c0_94] : memref<256x8xf32, #tpu.memory_space<vmem>>, vector<16x8xf32>
      tpu.vector_store %arg9[%c96, %c0_94], %114 {strides = array<i32>} : memref<256x8xf32, #tpu.memory_space<vmem>>, vector<16x8xf32>,
      %c0_95 = arith.constant 0 : index
      %c0_96 = arith.constant 0 : index
      %c56 = arith.constant 56 : index
      %116 = vector.load %arg2[%c0_95, %c0_96, %c56] : memref<1x16x128xf32, #tpu.memory_space<vmem>>, vector<1x16x8xf32>
      %117 = vector.shape_cast %116 : vector<1x16x8xf32> to vector<16x8xf32>
      %c112 = arith.constant 112 : index
      %c0_97 = arith.constant 0 : index
      %118 = vector.load %arg9[%c112, %c0_97] : memref<256x8xf32, #tpu.memory_space<vmem>>, vector<16x8xf32>
      tpu.vector_store %arg9[%c112, %c0_97], %117 {strides = array<i32>} : memref<256x8xf32, #tpu.memory_space<vmem>>, vector<16x8xf32>,
      %c0_98 = arith.constant 0 : index
      %c0_99 = arith.constant 0 : index
      %c64_100 = arith.constant 64 : index
      %119 = vector.load %arg2[%c0_98, %c0_99, %c64_100] : memref<1x16x128xf32, #tpu.memory_space<vmem>>, vector<1x16x8xf32>
      %120 = vector.shape_cast %119 : vector<1x16x8xf32> to vector<16x8xf32>
      %c128 = arith.constant 128 : index
      %c0_101 = arith.constant 0 : index
      %121 = vector.load %arg9[%c128, %c0_101] : memref<256x8xf32, #tpu.memory_space<vmem>>, vector<16x8xf32>
      tpu.vector_store %arg9[%c128, %c0_101], %120 {strides = array<i32>} : memref<256x8xf32, #tpu.memory_space<vmem>>, vector<16x8xf32>,
      %c0_102 = arith.constant 0 : index
      %c0_103 = arith.constant 0 : index
      %c72 = arith.constant 72 : index
      %122 = vector.load %arg2[%c0_102, %c0_103, %c72] : memref<1x16x128xf32, #tpu.memory_space<vmem>>, vector<1x16x8xf32>
      %123 = vector.shape_cast %122 : vector<1x16x8xf32> to vector<16x8xf32>
      %c144 = arith.constant 144 : index
      %c0_104 = arith.constant 0 : index
      %124 = vector.load %arg9[%c144, %c0_104] : memref<256x8xf32, #tpu.memory_space<vmem>>, vector<16x8xf32>
      tpu.vector_store %arg9[%c144, %c0_104], %123 {strides = array<i32>} : memref<256x8xf32, #tpu.memory_space<vmem>>, vector<16x8xf32>,
      %c0_105 = arith.constant 0 : index
      %c0_106 = arith.constant 0 : index
      %c80_107 = arith.constant 80 : index
      %125 = vector.load %arg2[%c0_105, %c0_106, %c80_107] : memref<1x16x128xf32, #tpu.memory_space<vmem>>, vector<1x16x8xf32>
      %126 = vector.shape_cast %125 : vector<1x16x8xf32> to vector<16x8xf32>
      %c160 = arith.constant 160 : index
      %c0_108 = arith.constant 0 : index
      %127 = vector.load %arg9[%c160, %c0_108] : memref<256x8xf32, #tpu.memory_space<vmem>>, vector<16x8xf32>
      tpu.vector_store %arg9[%c160, %c0_108], %126 {strides = array<i32>} : memref<256x8xf32, #tpu.memory_space<vmem>>, vector<16x8xf32>,
      %c0_109 = arith.constant 0 : index
      %c0_110 = arith.constant 0 : index
      %c88 = arith.constant 88 : index
      %128 = vector.load %arg2[%c0_109, %c0_110, %c88] : memref<1x16x128xf32, #tpu.memory_space<vmem>>, vector<1x16x8xf32>
      %129 = vector.shape_cast %128 : vector<1x16x8xf32> to vector<16x8xf32>
      %c176 = arith.constant 176 : index
      %c0_111 = arith.constant 0 : index
      %130 = vector.load %arg9[%c176, %c0_111] : memref<256x8xf32, #tpu.memory_space<vmem>>, vector<16x8xf32>
      tpu.vector_store %arg9[%c176, %c0_111], %129 {strides = array<i32>} : memref<256x8xf32, #tpu.memory_space<vmem>>, vector<16x8xf32>,
      %c0_112 = arith.constant 0 : index
      %c0_113 = arith.constant 0 : index
      %c96_114 = arith.constant 96 : index
      %131 = vector.load %arg2[%c0_112, %c0_113, %c96_114] : memref<1x16x128xf32, #tpu.memory_space<vmem>>, vector<1x16x8xf32>
      %132 = vector.shape_cast %131 : vector<1x16x8xf32> to vector<16x8xf32>
      %c192 = arith.constant 192 : index
      %c0_115 = arith.constant 0 : index
      %133 = vector.load %arg9[%c192, %c0_115] : memref<256x8xf32, #tpu.memory_space<vmem>>, vector<16x8xf32>
      tpu.vector_store %arg9[%c192, %c0_115], %132 {strides = array<i32>} : memref<256x8xf32, #tpu.memory_space<vmem>>, vector<16x8xf32>,
      %c0_116 = arith.constant 0 : index
      %c0_117 = arith.constant 0 : index
      %c104 = arith.constant 104 : index
      %134 = vector.load %arg2[%c0_116, %c0_117, %c104] : memref<1x16x128xf32, #tpu.memory_space<vmem>>, vector<1x16x8xf32>
      %135 = vector.shape_cast %134 : vector<1x16x8xf32> to vector<16x8xf32>
      %c208 = arith.constant 208 : index
      %c0_118 = arith.constant 0 : index
      %136 = vector.load %arg9[%c208, %c0_118] : memref<256x8xf32, #tpu.memory_space<vmem>>, vector<16x8xf32>
      tpu.vector_store %arg9[%c208, %c0_118], %135 {strides = array<i32>} : memref<256x8xf32, #tpu.memory_space<vmem>>, vector<16x8xf32>,
      %c0_119 = arith.constant 0 : index
      %c0_120 = arith.constant 0 : index
      %c112_121 = arith.constant 112 : index
      %137 = vector.load %arg2[%c0_119, %c0_120, %c112_121] : memref<1x16x128xf32, #tpu.memory_space<vmem>>, vector<1x16x8xf32>
      %138 = vector.shape_cast %137 : vector<1x16x8xf32> to vector<16x8xf32>
      %c224 = arith.constant 224 : index
      %c0_122 = arith.constant 0 : index
      %139 = vector.load %arg9[%c224, %c0_122] : memref<256x8xf32, #tpu.memory_space<vmem>>, vector<16x8xf32>
      tpu.vector_store %arg9[%c224, %c0_122], %138 {strides = array<i32>} : memref<256x8xf32, #tpu.memory_space<vmem>>, vector<16x8xf32>,
      %c0_123 = arith.constant 0 : index
      %c0_124 = arith.constant 0 : index
      %c120 = arith.constant 120 : index
      %140 = vector.load %arg2[%c0_123, %c0_124, %c120] : memref<1x16x128xf32, #tpu.memory_space<vmem>>, vector<1x16x8xf32>
      %141 = vector.shape_cast %140 : vector<1x16x8xf32> to vector<16x8xf32>
      %c240 = arith.constant 240 : index
      %c0_125 = arith.constant 0 : index
      %142 = vector.load %arg9[%c240, %c0_125] : memref<256x8xf32, #tpu.memory_space<vmem>>, vector<16x8xf32>
      tpu.vector_store %arg9[%c240, %c0_125], %141 {strides = array<i32>} : memref<256x8xf32, #tpu.memory_space<vmem>>, vector<16x8xf32>,
      %cst_126 = arith.constant 0.000000e+00 : bf16
      %143 = vector.broadcast %cst_126 : bf16 to vector<17x2xbf16>
      %c0_127 = arith.constant 0 : index
      %c0_128 = arith.constant 0 : index
      %144 = vector.load %arg10[%c0_127, %c0_128] : memref<290x2xbf16, #tpu.memory_space<vmem>>, vector<17x2xbf16>
      tpu.vector_store %arg10[%c0_127, %c0_128], %143 {strides = array<i32>} : memref<290x2xbf16, #tpu.memory_space<vmem>>, vector<17x2xbf16>,
      %cst_129 = arith.constant 0.000000e+00 : bf16
      %145 = vector.broadcast %cst_129 : bf16 to vector<17x2xbf16>
      %c273 = arith.constant 273 : index
      %c0_130 = arith.constant 0 : index
      %146 = vector.load %arg10[%c273, %c0_130] : memref<290x2xbf16, #tpu.memory_space<vmem>>, vector<17x2xbf16>
      tpu.vector_store %arg10[%c273, %c0_130], %145 {strides = array<i32>} : memref<290x2xbf16, #tpu.memory_space<vmem>>, vector<17x2xbf16>,
    } else {
    }
    %c0 = arith.constant 0 : index
    %c0_1 = arith.constant 0 : index
    %3 = vector.load %arg9[%c0, %c0_1] : memref<256x8xf32, #tpu.memory_space<vmem>>, vector<256x8xf32>
    %4 = vector.extract_strided_slice %3 {offsets = [0, 0], sizes = [256, 2], strides = [1, 1]} : vector<256x8xf32> to vector<256x2xf32>
    %5 = arith.truncf %4 : vector<256x2xf32> to vector<256x2xbf16>
    %c17 = arith.constant 17 : index
    %c0_2 = arith.constant 0 : index
    %6 = vector.load %arg10[%c17, %c0_2] : memref<290x2xbf16, #tpu.memory_space<vmem>>, vector<256x2xbf16>
    tpu.vector_store %arg10[%c17, %c0_2], %5 {strides = array<i32>} : memref<290x2xbf16, #tpu.memory_space<vmem>>, vector<256x2xbf16>,
    %7 = tpu.iota {dimensions = array<i32: 0>} : vector<256x2xi32>
    %c16_i32 = arith.constant 16 : i32
    %c0_i32_3 = arith.constant 0 : i32
    %8 = arith.cmpi eq, %c16_i32, %c0_i32_3 : i32
    %c1_i32 = arith.constant 1 : i32
    %9 = arith.select %8, %c1_i32, %c16_i32 : i32
    %10 = vector.broadcast %9 : i32 to vector<256x2xi32>
    %11 = arith.remsi %7, %10 : vector<256x2xi32>
    %c0_i32_4 = arith.constant 0 : i32
    %12 = vector.broadcast %c0_i32_4 : i32 to vector<256x2xi32>
    %13 = arith.cmpi ne, %11, %12 : vector<256x2xi32>
    %c0_i32_5 = arith.constant 0 : i32
    %14 = vector.broadcast %c0_i32_5 : i32 to vector<256x2xi32>
    %15 = arith.cmpi slt, %11, %14 : vector<256x2xi32>
    %c0_i32_6 = arith.constant 0 : i32
    %16 = arith.cmpi slt, %9, %c0_i32_6 : i32
    %17 = vector.broadcast %16 : i1 to vector<256x2xi1>
    %18 = vector.broadcast %17 : vector<256x2xi1> to vector<256x2xi1>
    %19 = arith.xori %15, %18 : vector<256x2xi1>
    %20 = arith.andi %19, %13 : vector<256x2xi1>
    %21 = vector.broadcast %9 : i32 to vector<256x2xi32>
    %22 = arith.addi %11, %21 : vector<256x2xi32>
    %23 = arith.select %20, %22, %11 : vector<256x2xi1>, vector<256x2xi32>
    %c0_7 = arith.constant 0 : index
    %c0_8 = arith.constant 0 : index
    %24 = vector.load %arg10[%c0_7, %c0_8] : memref<290x2xbf16, #tpu.memory_space<vmem>>, vector<256x2xbf16>
    %c1_i32_9 = arith.constant 1 : i32
    %25 = vector.broadcast %c1_i32_9 : i32 to vector<256x2xi32>
    %26 = arith.cmpi sge, %23, %25 : vector<256x2xi32>
    %cst = arith.constant 0.000000e+00 : bf16
    %27 = vector.broadcast %cst : bf16 to vector<256x2xbf16>
    %28 = arith.select %26, %24, %27 : vector<256x2xi1>, vector<256x2xbf16>
    %c0_10 = arith.constant 0 : index
    %c0_11 = arith.constant 0 : index
    %29 = vector.load %arg11[%c0_10, %c0_11] : memref<256x18xbf16, #tpu.memory_space<vmem>>, vector<256x2xbf16>
    tpu.vector_store %arg11[%c0_10, %c0_11], %28 {strides = array<i32>} : memref<256x18xbf16, #tpu.memory_space<vmem>>, vector<256x2xbf16>,
    %c16 = arith.constant 16 : index
    %c0_12 = arith.constant 0 : index
    %30 = vector.load %arg10[%c16, %c0_12] : memref<290x2xbf16, #tpu.memory_space<vmem>>, vector<256x2xbf16>
    %c1_i32_13 = arith.constant 1 : i32
    %31 = vector.broadcast %c1_i32_13 : i32 to vector<256x2xi32>
    %32 = arith.cmpi sge, %23, %31 : vector<256x2xi32>
    %cst_14 = arith.constant 0.000000e+00 : bf16
    %33 = vector.broadcast %cst_14 : bf16 to vector<256x2xbf16>
    %34 = arith.select %32, %30, %33 : vector<256x2xi1>, vector<256x2xbf16>
    %c0_15 = arith.constant 0 : index
    %c2 = arith.constant 2 : index
    %35 = vector.load %arg11[%c0_15, %c2] : memref<256x18xbf16, #tpu.memory_space<vmem>>, vector<256x2xbf16>
    tpu.vector_store %arg11[%c0_15, %c2], %34 {strides = array<i32>} : memref<256x18xbf16, #tpu.memory_space<vmem>>, vector<256x2xbf16>,
    %c32 = arith.constant 32 : index
    %c0_16 = arith.constant 0 : index
    %36 = vector.load %arg10[%c32, %c0_16] : memref<290x2xbf16, #tpu.memory_space<vmem>>, vector<256x2xbf16>
    %c1_i32_17 = arith.constant 1 : i32
    %37 = vector.broadcast %c1_i32_17 : i32 to vector<256x2xi32>
    %38 = arith.cmpi sge, %23, %37 : vector<256x2xi32>
    %cst_18 = arith.constant 0.000000e+00 : bf16
    %39 = vector.broadcast %cst_18 : bf16 to vector<256x2xbf16>
    %40 = arith.select %38, %36, %39 : vector<256x2xi1>, vector<256x2xbf16>
    %c0_19 = arith.constant 0 : index
    %c4 = arith.constant 4 : index
    %41 = vector.load %arg11[%c0_19, %c4] : memref<256x18xbf16, #tpu.memory_space<vmem>>, vector<256x2xbf16>
    tpu.vector_store %arg11[%c0_19, %c4], %40 {strides = array<i32>} : memref<256x18xbf16, #tpu.memory_space<vmem>>, vector<256x2xbf16>,
    %c1 = arith.constant 1 : index
    %c0_20 = arith.constant 0 : index
    %42 = vector.load %arg10[%c1, %c0_20] : memref<290x2xbf16, #tpu.memory_space<vmem>>, vector<256x2xbf16>
    %c0_21 = arith.constant 0 : index
    %c6 = arith.constant 6 : index
    %43 = vector.load %arg11[%c0_21, %c6] : memref<256x18xbf16, #tpu.memory_space<vmem>>, vector<256x2xbf16>
    tpu.vector_store %arg11[%c0_21, %c6], %42 {strides = array<i32>} : memref<256x18xbf16, #tpu.memory_space<vmem>>, vector<256x2xbf16>,
    %c17_22 = arith.constant 17 : index
    %c0_23 = arith.constant 0 : index
    %44 = vector.load %arg10[%c17_22, %c0_23] : memref<290x2xbf16, #tpu.memory_space<vmem>>, vector<256x2xbf16>
    %c0_24 = arith.constant 0 : index
    %c8 = arith.constant 8 : index
    %45 = vector.load %arg11[%c0_24, %c8] : memref<256x18xbf16, #tpu.memory_space<vmem>>, vector<256x2xbf16>
    tpu.vector_store %arg11[%c0_24, %c8], %44 {strides = array<i32>} : memref<256x18xbf16, #tpu.memory_space<vmem>>, vector<256x2xbf16>,
    %c33 = arith.constant 33 : index
    %c0_25 = arith.constant 0 : index
    %46 = vector.load %arg10[%c33, %c0_25] : memref<290x2xbf16, #tpu.memory_space<vmem>>, vector<256x2xbf16>
    %c0_26 = arith.constant 0 : index
    %c10 = arith.constant 10 : index
    %47 = vector.load %arg11[%c0_26, %c10] : memref<256x18xbf16, #tpu.memory_space<vmem>>, vector<256x2xbf16>
    tpu.vector_store %arg11[%c0_26, %c10], %46 {strides = array<i32>} : memref<256x18xbf16, #tpu.memory_space<vmem>>, vector<256x2xbf16>,
    %c2_27 = arith.constant 2 : index
    %c0_28 = arith.constant 0 : index
    %48 = vector.load %arg10[%c2_27, %c0_28] : memref<290x2xbf16, #tpu.memory_space<vmem>>, vector<256x2xbf16>
    %c14_i32 = arith.constant 14 : i32
    %49 = vector.broadcast %c14_i32 : i32 to vector<256x2xi32>
    %50 = arith.cmpi sle, %23, %49 : vector<256x2xi32>
    %cst_29 = arith.constant 0.000000e+00 : bf16
    %51 = vector.broadcast %cst_29 : bf16 to vector<256x2xbf16>
    %52 = arith.select %50, %48, %51 : vector<256x2xi1>, vector<256x2xbf16>
    %c0_30 = arith.constant 0 : index
    %c12 = arith.constant 12 : index
    %53 = vector.load %arg11[%c0_30, %c12] : memref<256x18xbf16, #tpu.memory_space<vmem>>, vector<256x2xbf16>
    tpu.vector_store %arg11[%c0_30, %c12], %52 {strides = array<i32>} : memref<256x18xbf16, #tpu.memory_space<vmem>>, vector<256x2xbf16>,
    %c18 = arith.constant 18 : index
    %c0_31 = arith.constant 0 : index
    %54 = vector.load %arg10[%c18, %c0_31] : memref<290x2xbf16, #tpu.memory_space<vmem>>, vector<256x2xbf16>
    %c14_i32_32 = arith.constant 14 : i32
    %55 = vector.broadcast %c14_i32_32 : i32 to vector<256x2xi32>
    %56 = arith.cmpi sle, %23, %55 : vector<256x2xi32>
    %cst_33 = arith.constant 0.000000e+00 : bf16
    %57 = vector.broadcast %cst_33 : bf16 to vector<256x2xbf16>
    %58 = arith.select %56, %54, %57 : vector<256x2xi1>, vector<256x2xbf16>
    %c0_34 = arith.constant 0 : index
    %c14 = arith.constant 14 : index
    %59 = vector.load %arg11[%c0_34, %c14] : memref<256x18xbf16, #tpu.memory_space<vmem>>, vector<256x2xbf16>
    tpu.vector_store %arg11[%c0_34, %c14], %58 {strides = array<i32>} : memref<256x18xbf16, #tpu.memory_space<vmem>>, vector<256x2xbf16>,
    %c34 = arith.constant 34 : index
    %c0_35 = arith.constant 0 : index
    %60 = vector.load %arg10[%c34, %c0_35] : memref<290x2xbf16, #tpu.memory_space<vmem>>, vector<256x2xbf16>
    %c14_i32_36 = arith.constant 14 : i32
    %61 = vector.broadcast %c14_i32_36 : i32 to vector<256x2xi32>
    %62 = arith.cmpi sle, %23, %61 : vector<256x2xi32>
    %cst_37 = arith.constant 0.000000e+00 : bf16
    %63 = vector.broadcast %cst_37 : bf16 to vector<256x2xbf16>
    %64 = arith.select %62, %60, %63 : vector<256x2xi1>, vector<256x2xbf16>
    %c0_38 = arith.constant 0 : index
    %c16_39 = arith.constant 16 : index
    %65 = vector.load %arg11[%c0_38, %c16_39] : memref<256x18xbf16, #tpu.memory_space<vmem>>, vector<256x2xbf16>
    tpu.vector_store %arg11[%c0_38, %c16_39], %64 {strides = array<i32>} : memref<256x18xbf16, #tpu.memory_space<vmem>>, vector<256x2xbf16>,
    %c0_40 = arith.constant 0 : index
    %c0_41 = arith.constant 0 : index
    %66 = vector.load %arg11[%c0_40, %c0_41] : memref<256x18xbf16, #tpu.memory_space<vmem>>, vector<256x18xbf16>
    %c0_42 = arith.constant 0 : index
    %c0_43 = arith.constant 0 : index
    %c0_44 = arith.constant 0 : index
    %67 = vector.load %arg3[%c0_42, %c0_43, %c0_44] : memref<1x18x2xbf16, #tpu.memory_space<vmem>>, vector<1x18x2xbf16>
    %68 = vector.shape_cast %67 : vector<1x18x2xbf16> to vector<18x2xbf16>
    %cst_45 = arith.constant dense<0.000000e+00> : vector<256x2xf32>
    %69 = tpu.matmul %66, %68, %cst_45 {dimension_numbers = #tpu.dot_dimension_numbers<[1], [0], [0], [1], [0, 0, 1, 1], [], []>} : vector<256x18xbf16>, vector<18x2xbf16>, vector<256x2xf32> -> vector<256x2xf32>
    %70 = arith.truncf %69 : vector<256x2xf32> to vector<256x2xbf16>
    %c0_46 = arith.constant 0 : index
    %c0_47 = arith.constant 0 : index
    %c0_48 = arith.constant 0 : index
    %71 = vector.load %arg4[%c0_46, %c0_47, %c0_48] : memref<1x2x16xbf16, #tpu.memory_space<vmem>>, vector<1x2x16xbf16>
    %72 = vector.shape_cast %71 : vector<1x2x16xbf16> to vector<2x16xbf16>
    %cst_49 = arith.constant dense<0.000000e+00> : vector<256x16xf32>
    %73 = tpu.matmul %70, %72, %cst_49 {dimension_numbers = #tpu.dot_dimension_numbers<[1], [0], [0], [1], [0, 0, 1, 1], [], []>} : vector<256x2xbf16>, vector<2x16xbf16>, vector<256x16xf32> -> vector<256x16xf32>
    %74 = vector.extract_strided_slice %3 {offsets = [0, 2], sizes = [256, 6], strides = [1, 1]} : vector<256x8xf32> to vector<256x6xf32>
    %75 = arith.truncf %74 : vector<256x6xf32> to vector<256x6xbf16>
    %c0_50 = arith.constant 0 : index
    %c0_51 = arith.constant 0 : index
    %c0_52 = arith.constant 0 : index
    %76 = vector.load %arg5[%c0_50, %c0_51, %c0_52] : memref<1x6x16xbf16, #tpu.memory_space<vmem>>, vector<1x6x16xbf16>
    %77 = vector.shape_cast %76 : vector<1x6x16xbf16> to vector<6x16xbf16>
    %cst_53 = arith.constant dense<0.000000e+00> : vector<256x16xf32>
    %78 = tpu.matmul %75, %77, %cst_53 {dimension_numbers = #tpu.dot_dimension_numbers<[1], [0], [0], [1], [0, 0, 1, 1], [], []>} : vector<256x6xbf16>, vector<6x16xbf16>, vector<256x16xf32> -> vector<256x16xf32>
    %79 = arith.addf %73, %78 : vector<256x16xf32>
    %c0_54 = arith.constant 0 : index
    %c0_55 = arith.constant 0 : index
    %c0_56 = arith.constant 0 : index
    %80 = vector.load %arg6[%c0_54, %c0_55, %c0_56] : memref<1x1x16xf32, #tpu.memory_space<vmem>>, vector<1x1x16xf32>
    %81 = vector.shape_cast %80 : vector<1x1x16xf32> to vector<1x16xf32>
    %82 = vector.broadcast %81 : vector<1x16xf32> to vector<256x16xf32>
    %83 = arith.addf %79, %82 : vector<256x16xf32>
    %cst_57 = arith.constant 0.000000e+00 : f32
    %84 = vector.broadcast %cst_57 : f32 to vector<256x16xf32>
    %85 = arith.maximumf %83, %84 : vector<256x16xf32>
    %86 = arith.truncf %85 : vector<256x16xf32> to vector<256x16xbf16>
    %c0_58 = arith.constant 0 : index
    %c0_59 = arith.constant 0 : index
    %c0_60 = arith.constant 0 : index
    %87 = vector.load %arg7[%c0_58, %c0_59, %c0_60] : memref<1x16x8xbf16, #tpu.memory_space<vmem>>, vector<1x16x8xbf16>
    %88 = vector.shape_cast %87 : vector<1x16x8xbf16> to vector<16x8xbf16>
    %cst_61 = arith.constant dense<0.000000e+00> : vector<256x8xf32>
    %89 = tpu.matmul %86, %88, %cst_61 {dimension_numbers = #tpu.dot_dimension_numbers<[1], [0], [0], [1], [0, 0, 1, 1], [], []>} : vector<256x16xbf16>, vector<16x8xbf16>, vector<256x8xf32> -> vector<256x8xf32>
    %90 = arith.addf %3, %89 : vector<256x8xf32>
    %c0_62 = arith.constant 0 : index
    %c0_63 = arith.constant 0 : index
    %91 = vector.load %arg9[%c0_62, %c0_63] : memref<256x8xf32, #tpu.memory_space<vmem>>, vector<256x8xf32>
    tpu.vector_store %arg9[%c0_62, %c0_63], %90 {strides = array<i32>} : memref<256x8xf32, #tpu.memory_space<vmem>>, vector<256x8xf32>,
    %c1_i32_64 = arith.constant 1 : i32
    %92 = arith.cmpi eq, %arg1, %c1_i32_64 : i32
    %93 = arith.extui %92 : i1 to i32
    %c0_i32_65 = arith.constant 0 : i32
    %94 = arith.cmpi ne, %93, %c0_i32_65 : i32
    scf.if %94 {
      %c0_66 = arith.constant 0 : index
      %c0_67 = arith.constant 0 : index
      %95 = vector.load %arg9[%c0_66, %c0_67] : memref<256x8xf32, #tpu.memory_space<vmem>>, vector<16x8xf32>
      %c0_68 = arith.constant 0 : index
      %c0_69 = arith.constant 0 : index
      %c0_70 = arith.constant 0 : index
      %96 = vector.load %arg8[%c0_68, %c0_69, %c0_70] : memref<1x16x128xf32, #tpu.memory_space<vmem>>, vector<1x16x8xf32>
      %97 = vector.shape_cast %96 : vector<1x16x8xf32> to vector<16x8xf32>
      %98 = vector.shape_cast %95 : vector<16x8xf32> to vector<1x16x8xf32>
      tpu.vector_store %arg8[%c0_68, %c0_69, %c0_70], %98 {strides = array<i32>} : memref<1x16x128xf32, #tpu.memory_space<vmem>>, vector<1x16x8xf32>,
      %c16_71 = arith.constant 16 : index
      %c0_72 = arith.constant 0 : index
      %99 = vector.load %arg9[%c16_71, %c0_72] : memref<256x8xf32, #tpu.memory_space<vmem>>, vector<16x8xf32>
      %c0_73 = arith.constant 0 : index
      %c0_74 = arith.constant 0 : index
      %c8_75 = arith.constant 8 : index
      %100 = vector.load %arg8[%c0_73, %c0_74, %c8_75] : memref<1x16x128xf32, #tpu.memory_space<vmem>>, vector<1x16x8xf32>
      %101 = vector.shape_cast %100 : vector<1x16x8xf32> to vector<16x8xf32>
      %102 = vector.shape_cast %99 : vector<16x8xf32> to vector<1x16x8xf32>
      tpu.vector_store %arg8[%c0_73, %c0_74, %c8_75], %102 {strides = array<i32>} : memref<1x16x128xf32, #tpu.memory_space<vmem>>, vector<1x16x8xf32>,
      %c32_76 = arith.constant 32 : index
      %c0_77 = arith.constant 0 : index
      %103 = vector.load %arg9[%c32_76, %c0_77] : memref<256x8xf32, #tpu.memory_space<vmem>>, vector<16x8xf32>
      %c0_78 = arith.constant 0 : index
      %c0_79 = arith.constant 0 : index
      %c16_80 = arith.constant 16 : index
      %104 = vector.load %arg8[%c0_78, %c0_79, %c16_80] : memref<1x16x128xf32, #tpu.memory_space<vmem>>, vector<1x16x8xf32>
      %105 = vector.shape_cast %104 : vector<1x16x8xf32> to vector<16x8xf32>
      %106 = vector.shape_cast %103 : vector<16x8xf32> to vector<1x16x8xf32>
      tpu.vector_store %arg8[%c0_78, %c0_79, %c16_80], %106 {strides = array<i32>} : memref<1x16x128xf32, #tpu.memory_space<vmem>>, vector<1x16x8xf32>,
      %c48 = arith.constant 48 : index
      %c0_81 = arith.constant 0 : index
      %107 = vector.load %arg9[%c48, %c0_81] : memref<256x8xf32, #tpu.memory_space<vmem>>, vector<16x8xf32>
      %c0_82 = arith.constant 0 : index
      %c0_83 = arith.constant 0 : index
      %c24 = arith.constant 24 : index
      %108 = vector.load %arg8[%c0_82, %c0_83, %c24] : memref<1x16x128xf32, #tpu.memory_space<vmem>>, vector<1x16x8xf32>
      %109 = vector.shape_cast %108 : vector<1x16x8xf32> to vector<16x8xf32>
      %110 = vector.shape_cast %107 : vector<16x8xf32> to vector<1x16x8xf32>
      tpu.vector_store %arg8[%c0_82, %c0_83, %c24], %110 {strides = array<i32>} : memref<1x16x128xf32, #tpu.memory_space<vmem>>, vector<1x16x8xf32>,
      %c64 = arith.constant 64 : index
      %c0_84 = arith.constant 0 : index
      %111 = vector.load %arg9[%c64, %c0_84] : memref<256x8xf32, #tpu.memory_space<vmem>>, vector<16x8xf32>
      %c0_85 = arith.constant 0 : index
      %c0_86 = arith.constant 0 : index
      %c32_87 = arith.constant 32 : index
      %112 = vector.load %arg8[%c0_85, %c0_86, %c32_87] : memref<1x16x128xf32, #tpu.memory_space<vmem>>, vector<1x16x8xf32>
      %113 = vector.shape_cast %112 : vector<1x16x8xf32> to vector<16x8xf32>
      %114 = vector.shape_cast %111 : vector<16x8xf32> to vector<1x16x8xf32>
      tpu.vector_store %arg8[%c0_85, %c0_86, %c32_87], %114 {strides = array<i32>} : memref<1x16x128xf32, #tpu.memory_space<vmem>>, vector<1x16x8xf32>,
      %c80 = arith.constant 80 : index
      %c0_88 = arith.constant 0 : index
      %115 = vector.load %arg9[%c80, %c0_88] : memref<256x8xf32, #tpu.memory_space<vmem>>, vector<16x8xf32>
      %c0_89 = arith.constant 0 : index
      %c0_90 = arith.constant 0 : index
      %c40 = arith.constant 40 : index
      %116 = vector.load %arg8[%c0_89, %c0_90, %c40] : memref<1x16x128xf32, #tpu.memory_space<vmem>>, vector<1x16x8xf32>
      %117 = vector.shape_cast %116 : vector<1x16x8xf32> to vector<16x8xf32>
      %118 = vector.shape_cast %115 : vector<16x8xf32> to vector<1x16x8xf32>
      tpu.vector_store %arg8[%c0_89, %c0_90, %c40], %118 {strides = array<i32>} : memref<1x16x128xf32, #tpu.memory_space<vmem>>, vector<1x16x8xf32>,
      %c96 = arith.constant 96 : index
      %c0_91 = arith.constant 0 : index
      %119 = vector.load %arg9[%c96, %c0_91] : memref<256x8xf32, #tpu.memory_space<vmem>>, vector<16x8xf32>
      %c0_92 = arith.constant 0 : index
      %c0_93 = arith.constant 0 : index
      %c48_94 = arith.constant 48 : index
      %120 = vector.load %arg8[%c0_92, %c0_93, %c48_94] : memref<1x16x128xf32, #tpu.memory_space<vmem>>, vector<1x16x8xf32>
      %121 = vector.shape_cast %120 : vector<1x16x8xf32> to vector<16x8xf32>
      %122 = vector.shape_cast %119 : vector<16x8xf32> to vector<1x16x8xf32>
      tpu.vector_store %arg8[%c0_92, %c0_93, %c48_94], %122 {strides = array<i32>} : memref<1x16x128xf32, #tpu.memory_space<vmem>>, vector<1x16x8xf32>,
      %c112 = arith.constant 112 : index
      %c0_95 = arith.constant 0 : index
      %123 = vector.load %arg9[%c112, %c0_95] : memref<256x8xf32, #tpu.memory_space<vmem>>, vector<16x8xf32>
      %c0_96 = arith.constant 0 : index
      %c0_97 = arith.constant 0 : index
      %c56 = arith.constant 56 : index
      %124 = vector.load %arg8[%c0_96, %c0_97, %c56] : memref<1x16x128xf32, #tpu.memory_space<vmem>>, vector<1x16x8xf32>
      %125 = vector.shape_cast %124 : vector<1x16x8xf32> to vector<16x8xf32>
      %126 = vector.shape_cast %123 : vector<16x8xf32> to vector<1x16x8xf32>
      tpu.vector_store %arg8[%c0_96, %c0_97, %c56], %126 {strides = array<i32>} : memref<1x16x128xf32, #tpu.memory_space<vmem>>, vector<1x16x8xf32>,
      %c128 = arith.constant 128 : index
      %c0_98 = arith.constant 0 : index
      %127 = vector.load %arg9[%c128, %c0_98] : memref<256x8xf32, #tpu.memory_space<vmem>>, vector<16x8xf32>
      %c0_99 = arith.constant 0 : index
      %c0_100 = arith.constant 0 : index
      %c64_101 = arith.constant 64 : index
      %128 = vector.load %arg8[%c0_99, %c0_100, %c64_101] : memref<1x16x128xf32, #tpu.memory_space<vmem>>, vector<1x16x8xf32>
      %129 = vector.shape_cast %128 : vector<1x16x8xf32> to vector<16x8xf32>
      %130 = vector.shape_cast %127 : vector<16x8xf32> to vector<1x16x8xf32>
      tpu.vector_store %arg8[%c0_99, %c0_100, %c64_101], %130 {strides = array<i32>} : memref<1x16x128xf32, #tpu.memory_space<vmem>>, vector<1x16x8xf32>,
      %c144 = arith.constant 144 : index
      %c0_102 = arith.constant 0 : index
      %131 = vector.load %arg9[%c144, %c0_102] : memref<256x8xf32, #tpu.memory_space<vmem>>, vector<16x8xf32>
      %c0_103 = arith.constant 0 : index
      %c0_104 = arith.constant 0 : index
      %c72 = arith.constant 72 : index
      %132 = vector.load %arg8[%c0_103, %c0_104, %c72] : memref<1x16x128xf32, #tpu.memory_space<vmem>>, vector<1x16x8xf32>
      %133 = vector.shape_cast %132 : vector<1x16x8xf32> to vector<16x8xf32>
      %134 = vector.shape_cast %131 : vector<16x8xf32> to vector<1x16x8xf32>
      tpu.vector_store %arg8[%c0_103, %c0_104, %c72], %134 {strides = array<i32>} : memref<1x16x128xf32, #tpu.memory_space<vmem>>, vector<1x16x8xf32>,
      %c160 = arith.constant 160 : index
      %c0_105 = arith.constant 0 : index
      %135 = vector.load %arg9[%c160, %c0_105] : memref<256x8xf32, #tpu.memory_space<vmem>>, vector<16x8xf32>
      %c0_106 = arith.constant 0 : index
      %c0_107 = arith.constant 0 : index
      %c80_108 = arith.constant 80 : index
      %136 = vector.load %arg8[%c0_106, %c0_107, %c80_108] : memref<1x16x128xf32, #tpu.memory_space<vmem>>, vector<1x16x8xf32>
      %137 = vector.shape_cast %136 : vector<1x16x8xf32> to vector<16x8xf32>
      %138 = vector.shape_cast %135 : vector<16x8xf32> to vector<1x16x8xf32>
      tpu.vector_store %arg8[%c0_106, %c0_107, %c80_108], %138 {strides = array<i32>} : memref<1x16x128xf32, #tpu.memory_space<vmem>>, vector<1x16x8xf32>,
      %c176 = arith.constant 176 : index
      %c0_109 = arith.constant 0 : index
      %139 = vector.load %arg9[%c176, %c0_109] : memref<256x8xf32, #tpu.memory_space<vmem>>, vector<16x8xf32>
      %c0_110 = arith.constant 0 : index
      %c0_111 = arith.constant 0 : index
      %c88 = arith.constant 88 : index
      %140 = vector.load %arg8[%c0_110, %c0_111, %c88] : memref<1x16x128xf32, #tpu.memory_space<vmem>>, vector<1x16x8xf32>
      %141 = vector.shape_cast %140 : vector<1x16x8xf32> to vector<16x8xf32>
      %142 = vector.shape_cast %139 : vector<16x8xf32> to vector<1x16x8xf32>
      tpu.vector_store %arg8[%c0_110, %c0_111, %c88], %142 {strides = array<i32>} : memref<1x16x128xf32, #tpu.memory_space<vmem>>, vector<1x16x8xf32>,
      %c192 = arith.constant 192 : index
      %c0_112 = arith.constant 0 : index
      %143 = vector.load %arg9[%c192, %c0_112] : memref<256x8xf32, #tpu.memory_space<vmem>>, vector<16x8xf32>
      %c0_113 = arith.constant 0 : index
      %c0_114 = arith.constant 0 : index
      %c96_115 = arith.constant 96 : index
      %144 = vector.load %arg8[%c0_113, %c0_114, %c96_115] : memref<1x16x128xf32, #tpu.memory_space<vmem>>, vector<1x16x8xf32>
      %145 = vector.shape_cast %144 : vector<1x16x8xf32> to vector<16x8xf32>
      %146 = vector.shape_cast %143 : vector<16x8xf32> to vector<1x16x8xf32>
      tpu.vector_store %arg8[%c0_113, %c0_114, %c96_115], %146 {strides = array<i32>} : memref<1x16x128xf32, #tpu.memory_space<vmem>>, vector<1x16x8xf32>,
      %c208 = arith.constant 208 : index
      %c0_116 = arith.constant 0 : index
      %147 = vector.load %arg9[%c208, %c0_116] : memref<256x8xf32, #tpu.memory_space<vmem>>, vector<16x8xf32>
      %c0_117 = arith.constant 0 : index
      %c0_118 = arith.constant 0 : index
      %c104 = arith.constant 104 : index
      %148 = vector.load %arg8[%c0_117, %c0_118, %c104] : memref<1x16x128xf32, #tpu.memory_space<vmem>>, vector<1x16x8xf32>
      %149 = vector.shape_cast %148 : vector<1x16x8xf32> to vector<16x8xf32>
      %150 = vector.shape_cast %147 : vector<16x8xf32> to vector<1x16x8xf32>
      tpu.vector_store %arg8[%c0_117, %c0_118, %c104], %150 {strides = array<i32>} : memref<1x16x128xf32, #tpu.memory_space<vmem>>, vector<1x16x8xf32>,
      %c224 = arith.constant 224 : index
      %c0_119 = arith.constant 0 : index
      %151 = vector.load %arg9[%c224, %c0_119] : memref<256x8xf32, #tpu.memory_space<vmem>>, vector<16x8xf32>
      %c0_120 = arith.constant 0 : index
      %c0_121 = arith.constant 0 : index
      %c112_122 = arith.constant 112 : index
      %152 = vector.load %arg8[%c0_120, %c0_121, %c112_122] : memref<1x16x128xf32, #tpu.memory_space<vmem>>, vector<1x16x8xf32>
      %153 = vector.shape_cast %152 : vector<1x16x8xf32> to vector<16x8xf32>
      %154 = vector.shape_cast %151 : vector<16x8xf32> to vector<1x16x8xf32>
      tpu.vector_store %arg8[%c0_120, %c0_121, %c112_122], %154 {strides = array<i32>} : memref<1x16x128xf32, #tpu.memory_space<vmem>>, vector<1x16x8xf32>,
      %c240 = arith.constant 240 : index
      %c0_123 = arith.constant 0 : index
      %155 = vector.load %arg9[%c240, %c0_123] : memref<256x8xf32, #tpu.memory_space<vmem>>, vector<16x8xf32>
      %c0_124 = arith.constant 0 : index
      %c0_125 = arith.constant 0 : index
      %c120 = arith.constant 120 : index
      %156 = vector.load %arg8[%c0_124, %c0_125, %c120] : memref<1x16x128xf32, #tpu.memory_space<vmem>>, vector<1x16x8xf32>
      %157 = vector.shape_cast %156 : vector<1x16x8xf32> to vector<16x8xf32>
      %158 = vector.shape_cast %155 : vector<16x8xf32> to vector<1x16x8xf32>
      tpu.vector_store %arg8[%c0_124, %c0_125, %c120], %158 {strides = array<i32>} : memref<1x16x128xf32, #tpu.memory_space<vmem>>, vector<1x16x8xf32>,
    } else {
    }
    return
  }
  func.func @transform_0(%arg0: i32, %arg1: i32) -> (i32, i32, i32) {
    %c0_i32 = arith.constant 0 : i32
    %c0_i32_0 = arith.constant 0 : i32
    %c0_i32_1 = arith.constant 0 : i32
    return %arg0, %c0_i32, %c0_i32_0 : i32, i32, i32
  }
  func.func @transform_1(%arg0: i32, %arg1: i32) -> (i32, i32, i32) {
    %c0_i32 = arith.constant 0 : i32
    %c0_i32_0 = arith.constant 0 : i32
    %c0_i32_1 = arith.constant 0 : i32
    return %arg1, %c0_i32, %c0_i32_0 : i32, i32, i32
  }
  func.func @transform_2(%arg0: i32, %arg1: i32) -> (i32, i32, i32) {
    %c0_i32 = arith.constant 0 : i32
    %c0_i32_0 = arith.constant 0 : i32
    %c0_i32_1 = arith.constant 0 : i32
    return %arg1, %c0_i32, %c0_i32_0 : i32, i32, i32
  }
  func.func @transform_3(%arg0: i32, %arg1: i32) -> (i32, i32, i32) {
    %c0_i32 = arith.constant 0 : i32
    %c0_i32_0 = arith.constant 0 : i32
    %c0_i32_1 = arith.constant 0 : i32
    return %arg1, %c0_i32, %c0_i32_0 : i32, i32, i32
  }
  func.func @transform_4(%arg0: i32, %arg1: i32) -> (i32, i32, i32) {
    %c0_i32 = arith.constant 0 : i32
    %c0_i32_0 = arith.constant 0 : i32
    %c0_i32_1 = arith.constant 0 : i32
    return %arg1, %c0_i32, %c0_i32_0 : i32, i32, i32
  }
  func.func @transform_5(%arg0: i32, %arg1: i32) -> (i32, i32, i32) {
    %c0_i32 = arith.constant 0 : i32
    %c0_i32_0 = arith.constant 0 : i32
    %c0_i32_1 = arith.constant 0 : i32
    return %arg1, %c0_i32, %c0_i32_0 : i32, i32, i32
  }
  func.func @transform_6(%arg0: i32, %arg1: i32) -> (i32, i32, i32) {
    %c0_i32 = arith.constant 0 : i32
    %c0_i32_0 = arith.constant 0 : i32
    %c0_i32_1 = arith.constant 0 : i32
    return %arg0, %c0_i32, %c0_i32_0 : i32, i32, i32
  }
}

</mosaic_0001>

<bundles_post_ra>
// kernel: conv_block_forward.2
= control target key start
LH: loop header
LB: loop body
LE: loop exit
PB: predicated region body
PF: predicated region fallthrough
CT: control target
= control target key end

     0   :  { %s4801_s12 = smov 0   ;;  %s7187_s0 = inlined_call_operand.vmem [shape: f32[2,16,64], index: 0, kind: input, shape index: {}]   ;;  %s7188_s1 = inlined_call_operand.vmem [shape: bf16[36,8], index: 1, kind: input, shape index: {}]   ;;  %s7189_s2 = inlined_call_operand.vmem [shape: f32[1,8], index: 2, kind: input, shape index: {}]   ;;  %s7190_s3 = inlined_call_operand.vmem [shape: f32[2,16,128], index: 3, kind: output, shape index: {}]  }
   0x1 LB: > { %s4341_s13 = sadd.s32 4294967295, %s4750_s12   ;;  %p4345_p0 = scmp.ge.s32.totalorder %s4750_s12, 1  ;;  %s4750_s12 = sphi %s4801_s12, %s13_s12  }
   0x2   : > { %p137_p1 = scmp.lt.s32.totalorder %s4750_s12, 3 }
   0x4   : > { %p138_p2 = pnand %p4345_p0, %p137_p1 }
   0x6   : > { %141 = sbr.rel (%p138_p2) target bundleno = 893 (0x37d), region = 32 }
   0xd   : > { %p161_p3 = scmp.lt.s32.totalorder %s4341_s13, 1  ;;  %vm177_vm0 = vcmask 24576   ;;  %vm178_vm1 = vsmask.f32 256  ;;  %v180_v1 = vld [vmem:[#allocation2 + $0x8] sm:$0x1]  ;;  %v844_v24 = vlaneseq }
   0xe   : > { %vm4811_vm2 = vmand %vm177_vm0, %vm178_vm1  ;;  %vm7198_vm3 = vcmask 27648   ;;  %v7202_v5 = vmov 0   ;;  %vm200_vm4 = vsmask.f32 4368  ;;  %vm184_vm5 = vsmask.f32 7938 }
   0xf   : > { %s7612_s13 = smov (!%p161_p3, %s4341_s13), 1  ;;  %v181_v2 = vsel %vm4811_vm2, 0, %v180_v1  ;;  %175 = vst.msk [vmem:[#allocation2] sm:$0xf] %vm7198_vm3, %v7202_v5  ;;  %176 = vst.msk [vmem:[#allocation2 + $0x4] sm:$0xf] %vm7198_vm3, %v7202_v5 }
  0x10   : > { %s4554_s14 = sshll.u32 %s7612_s13, 4  ;;  %182 = vst [vmem:[#allocation2 + $0x8] sm:$0x1] %v181_v2  ;;  %189 = vst.msk [vmem:[#allocation2 + $0x8c] sm:$0xf] %vm7198_vm3, %v7202_v5  ;;  %s4753_s18 = smov 104  }
  0x11   : > { %s165_s17 = scalar_lea.vmem %s7187_s0, %s4554_s14  ;;  %191 = vst.msk [vmem:[#allocation2 + $0x90] sm:$0x1] %vm177_vm0, %v7202_v5  ;;  %vm201_vm6 = vmor %vm178_vm1, %vm200_vm4  ;;  %v226_v16 = vld [vmem:[#allocation2 + $0x10] sm:$0x1]  ;;  %s4754_s19 = smov 124   ;;  %v4887_v25 = vshrl.u32 %v844_v24, 7 }
  0x12   : > { %v435_v3 = vld [vmem:[%s165_s17 + $0x8] sm:$0xff]  ;;  %v229_v4 = vld [vmem:[%s165_s17] sm:$0xff]  ;;  %vm4835_vm7 = vmand %vm7198_vm3, %vm184_vm5  ;;  %s4755_s20 = smov 100   ;;  %s4756_s21 = smov 120   ;;  %vm4765_vm9 = vmmov 1   ;;  %vm2989_vm14 = vcmask 1040384  }
  0x13   : > { %v4569_v6 = vpack.c.bf16 %v435_v3, %v435_v3  ;;  %v4558_v7 = vpack.c.bf16 %v229_v4, %v229_v4  ;;  %s4757_s22 = smov 96   ;;  %s4758_s23 = smov 116   ;;  %v846_v26 = vadd.s32 8, %v4887_v25  ;;  %v848_v28 = vadd.s32 24, %v4887_v25  ;;  %vm4903_vm10 = vmpackc.low %vm4765_vm9, %vm4765_vm9  ;;  %v513_v24 = vld [vmem:[#allocation2 + $0x48] sm:$0x1] }
  0x14   : > { %s4759_s24 = smov 92   ;;  %s4760_s25 = smov 112   ;;  %v2957_v31 = vsel %vm4903_vm10, 65537, %v7202_v5  ;;  %vm2990_vm15 = vcmask 1044484   ;;  %v881_v35 = vand.u32 15, %v4887_v25  ;;  %v7247_v38 = vmov 0 }
  0x15   : > { %v451_v8 = vshrl.u32 %v4569_v6, 16  ;;  %v454_v9 = vshll.u32 %v4569_v6, 16  ;;  %v238_v10 = vshrl.u32 %v4558_v7, 16  ;;  %v241_v11 = vshll.u32 %v4558_v7, 16  ;;  %s4761_s26 = smov 88   ;;  %s4762_s27 = smov 108   ;;  %vm4931_vm0 = vmor %vm2989_vm14, %vm2990_vm15 }
  0x16   : > { %s4763_s28 = smov 84   ;;  %s4764_s29 = smov 80   ;;  %v888_v27 = vand.u32 15, %v846_v26  ;;  %v902_v30 = vand.u32 15, %v848_v28  ;;  %v4914_v33 = vrot.slane %v2957_v31, 7  ;;  %v7248_v38 = vsel %vm4931_vm0, 4294967295, %v7247_v38 }
  0x17   : > { %v453_v12 = vrot.slane %v451_v8, 7  ;;  %v240_v13 = vrot.slane %v238_v10, 7  ;;  %v222_v15 = vld [vmem:[#allocation2 + $0x8] sm:$0xf]  ;;  %s4766_s30 = smov 76   ;;  %s4767_s4 = smov 72  }
  0x18   : > { %vm2894_vm8 = vcmp.le.s32.totalorder %v888_v27, 14  ;;  %vm2896_vm12 = vcmp.le.s32.totalorder %v902_v30, 14  ;;  %v4925_v37 = vrot.slane %v4914_v33, 4  ;;  %v4690_v40 = vld [vmem:[#allocation2] sm:$0xff]   ;;  %vm1293_vm1 = vcmp.ge.s32.totalorder %v881_v35, 1  ;;  %s4768_s5 = smov 68  }
  0x19   : > { %v4839_v17 = vrot.slane %v453_v12, 4  ;;  %v456_v18 = vor.u32 %v454_v9, %v453_v12  ;;  %v4841_v19 = vor.u32 %v241_v11, %v240_v13  ;;  %v244_v20 = vrot.slane %v240_v13, 4  ;;  %vm2926_vm11 = vmpackc.low %vm2894_vm8, %vm2894_vm8  ;;  %v2860_v47 = vld [vmem:[#allocation2] sm:$0xe]  ;;  %v2861_v48 = vld [vmem:[#allocation2 + $0x4] sm:$0xf] }
  0x1a   : > { %v2958_v32 = vsel %vm2926_vm11, 65537, %v7202_v5  ;;  %vm2928_vm13 = vmpackc.low %vm2896_vm12, %vm2896_vm12  ;;  %v2040_v46 = vshll.u32 %v4690_v40, 16  ;;  %vm7195_vm5 = vcmp.ne.s16.totalorder %v4914_v33, 0  ;;  %v2038_v55 = vshrl.u32 %v4690_v40, 16  ;;  %s4769_s6 = smov 4   ;;  %s4770_s7 = smov 12  }
  0x1b   : > { %463 = vrot.lane.b32.xlu1 %v4839_v17, %s4753_s18  ;;  %258 = vrot.lane.b32.xlu0 %v4839_v17, %s4754_s19  ;;  %v4846_v21 = vsel %vm201_vm6, %v244_v20, %v456_v18  ;;  %v223_v22 = vsel %vm4835_vm7, %v4841_v19, %v222_v15  ;;  %v227_v23 = vsel %vm4811_vm2, %v4839_v17, %v226_v16  ;;  %v2994_v34 = vrot.slane %v2958_v32, 7  ;;  %vm4955_vm4 = vmpackc.low %vm1293_vm1, %vm1293_vm1  ;;  %s4771_s8 = smov 24   ;;  %v472_v12 = vld [vmem:[#allocation2 + $0x40] sm:$0x1]  ;;  %v267_v13 = vld [vmem:[#allocation2 + $0x18] sm:$0x1] }
  0x1c   : > { %225 = vst.msk [vmem:[#allocation2 + $0xc] sm:$0xf] %vm7198_vm3, %v4846_v21  ;;  %228 = vst [vmem:[#allocation2 + $0x10] sm:$0x1] %v227_v23  ;;  %v4922_v36 = vsel %vm2928_vm13, 65537, %v7202_v5  ;;  %v2042_v58 = vrot.slane %v2040_v46, 1 }
  0x1d   : > { %224 = vst [vmem:[#allocation2 + $0x8] sm:$0xf] %v223_v22  ;;  %v2996_v39 = vrot.slane %v2994_v34, 4  ;;  %v3000_v41 = vrot.slane %v4922_v36, 7  ;;  %v4939_v42 = vsel %vm4931_vm0, %v4925_v37, %v2994_v34  ;;  %v3120_v60 = vsel %vm7195_vm5, %v2860_v47, 0  ;;  %s4772_s9 = smov 8  }
  0x1e   : > { %vm7191_vm6 = vcmp.ne.s16.totalorder %v4939_v42, 0  ;;  %v2043_v2 = vor.u32 %v2042_v58, %v2038_v55  ;;  %vm7196_vm11 = vsmask.f32 7424  ;;  %vm7197_vm12 = vcmask 1046528   ;;  %v1261_v18 = vld [vmem:[#allocation2] sm:$0xf] }
  0x1f   : > { %504 = vrot.lane.b32.xlu1 %v4839_v17, %s4755_s20  ;;  %299 = vrot.lane.b32.xlu0 %v4839_v17, %s4756_s21  ;;  %v2998_v43 = vsel %vm4931_vm0, %v2996_v39, %v4914_v33  ;;  %v4951_v44 = vsel %vm4931_vm0, %v4925_v37, %v3000_v41  ;;  %v3121_v61 = vsel %vm7191_vm6, %v2861_v48, 0  ;;  %v850_v11 = vadd.s32 40, %v4887_v25  ;;  %v308_v26 = vld [vmem:[#allocation2 + $0x20] sm:$0x1]  ;;  %v554_v39 = vld [vmem:[#allocation2 + $0x50] sm:$0x1] }
  0x20   : > { %vm4961_vm8 = vcmp.ne.s16.totalorder %v2998_v43, 0  ;;  %vm7194_vm9 = vcmp.ne.s16.totalorder %v4951_v44, 0  ;;  %v4481_v4 = vcombine.low %v3120_v60, %v3121_v61  ;;  %v1357_v22 = vsel %vm4955_vm4, %v1261_v18, 0  ;;  %v349_v36 = vld [vmem:[#allocation2 + $0x28] sm:$0x1]  ;;  %s4773_s10 = smov 28  }
  0x21   : > { %v916_v15 = vand.u32 15, %v850_v11  ;;  %v847_v30 = vadd.s32 16, %v4887_v25  ;;  %vm7192_vm14 = vcmask 31744   ;;  %v3002_v43 = vrot.slane %v3000_v41, 4  ;;  %v595_v41 = vld [vmem:[#allocation2 + $0x58] sm:$0x1] }
  0x22   : > { %v3237_v8 = vrot.slane %v4481_v4, 1  ;;  %v860_v11 = vadd.s32 120, %v4887_v25  ;;  %s4774_s11 = smov 16   ;;  %s4775_s15 = smov 32  }
  0x23   : > { %545 = vrot.lane.b32.xlu0 %v4839_v17, %s4757_s22  ;;  %254 = vrot.lane.b32.xlu1 %v4841_v19, %s4754_s19  ;;  %v1503_v51 = vld [vmem:[#allocation2 + $0xc] sm:$0xf]  ;;  %vm5008_vm13 = vcmp.le.s32.totalorder %v916_v15, 14  ;;  %v263_v40 = vld [vmem:[#allocation2 + $0x10] sm:$0xf]  ;;  %v895_v46 = vand.u32 15, %v847_v30 }
  0x24   : > { %v4953_v45 = vld [vmem:[#allocation2 + $0x8] sm:$0xff]   ;;  %v1535_v57 = vsel %vm4903_vm10, %v1503_v51, 0  ;;  %vm2930_vm15 = vmpackc.low %vm5008_vm13, %vm5008_vm13  ;;  %s4777_s13 = smov 64  }
  0x25   : > { %v1502_v50 = vld [vmem:[#allocation2 + $0x8] sm:$0xf]  ;;  %v2863_v53 = vld [vmem:[#allocation2 + $0xc] sm:$0xf]  ;;  %v2045_v59 = vshll.u32 %v4953_v45, 16  ;;  %vm1295_vm1 = vcmp.ge.s32.totalorder %v895_v46, 1 }
  0x26   : > { %v2862_v52 = vld [vmem:[#allocation2 + $0x8] sm:$0xf]  ;;  %v1534_v56 = vsel %vm4955_vm4, %v1502_v50, 0  ;;  %v3123_v63 = vsel %vm7194_vm9, %v2863_v53, 0  ;;  %v5024_v50 = vsel %vm2930_vm15, 65537, %v7202_v5  ;;  %vm5050_vm15 = vmpackc.low %vm1295_vm1, %vm1295_vm1 }
  0x27   : > { %340 = vrot.lane.b32.xlu0 %v4839_v17, %s4758_s23  ;;  %586 = vrot.lane.b32.xlu1 %v4839_v17, %s4759_s24  ;;  %v3122_v62 = vsel %vm4961_vm8, %v2862_v52, 0  ;;  %v4398_v1 = vcombine.low %v1534_v56, %v1535_v57  ;;  %v4985_v3 = vrot.slane %v2045_v59, 1  ;;  %v186_v51 = vld [vmem:[#allocation2 + $0x88] sm:$0xf]  ;;  %v3004_v56 = vsel %vm4931_vm0, %v3002_v43, %v4914_v33  ;;  %v3336_v61 = vld [vmem:[#allocation2 + $0xc] sm:$0xf] }
  0x28   : > { %v4987_v6 = vcombine.low %v3122_v62, %v3123_v63  ;;  %v187_v55 = vsel %vm4835_vm7, 0, %v186_v51  ;;  %v3006_v57 = vrot.slane %v5024_v50, 7  ;;  %v3335_v58 = vld [vmem:[#allocation2 + $0x8] sm:$0xe]  ;;  %v5037_v62 = vadd.s32 32, %v4887_v25 }
  0x29   : > { %v2048_v7 = vsel %vm7196_vm11, %v2043_v2, %v4985_v3  ;;  %188 = vst [vmem:[#allocation2 + $0x88] sm:$0xf] %v187_v55  ;;  %vm5043_vm13 = vcmp.ne.s16.totalorder %v3004_v56, 0  ;;  %v5047_v4 = vld [vmem:[#allocation2 + $0x8] sm:$0xff]  }
  0x2a   : > { %v3238_v9 = vrot.slane %v4987_v6, 1  ;;  %v5064_v15 = vsel %vm4931_vm0, %v4925_v37, %v3006_v57  ;;  %v2351_v30 = vshrl.u32 %v5047_v4, 16 }
  0x2b   : > { %256 = vrot.lane.b32.xlu0 %v4846_v21, %s4754_s19  ;;  %295 = vrot.lane.b32.xlu1 %v4841_v19, %s4756_s21  ;;  %vm7193_vm1 = vcmp.ne.s16.totalorder %v5064_v15, 0  ;;  %s4776_s19 = smov 20  }
  0x2c   : > { %v3239_v10 = vsel %vm7197_vm12, %v3237_v8, %v3238_v9 }
  0x2f   : > { %297 = vrot.lane.b32.xlu0 %v4846_v21, %s4756_s21  ;;  %381 = vrot.lane.b32.xlu1 %v4839_v17, %s4760_s25 }
  0x33   : > { %627 = vrot.lane.b32.xlu0 %v4839_v17, %s4761_s26  ;;  %336 = vrot.lane.b32.xlu1 %v4841_v19, %s4758_s23 }
  0x37   : > { %338 = vrot.lane.b32.xlu0 %v4846_v21, %s4758_s23  ;;  %500 = vrot.lane.b32.xlu1 %v4841_v19, %s4755_s20 }
  0x3b   : > { %502 = vrot.lane.b32.xlu0 %v4846_v21, %s4755_s20  ;;  %541 = vrot.lane.b32.xlu1 %v4841_v19, %s4757_s22 }
  0x3f   : > { %422 = vrot.lane.b32.xlu0 %v4839_v17, %s4762_s27  ;;  %543 = vrot.lane.b32.xlu1 %v4846_v21, %s4757_s22 }
  0x43   : > { %582 = vrot.lane.b32.xlu0 %v4841_v19, %s4759_s24  ;;  %668 = vrot.lane.b32.xlu1 %v4839_v17, %s4763_s28 }
  0x47   : > { %377 = vrot.lane.b32.xlu0 %v4841_v19, %s4760_s25  ;;  %584 = vrot.lane.b32.xlu1 %v4846_v21, %s4759_s24 }
  0x4b   : > { %623 = vrot.lane.b32.xlu0 %v4841_v19, %s4761_s26  ;;  %379 = vrot.lane.b32.xlu1 %v4846_v21, %s4760_s25 }
  0x4f   : > { %625 = vrot.lane.b32.xlu0 %v4846_v21, %s4761_s26  ;;  %709 = vrot.lane.b32.xlu1 %v4839_v17, %s4764_s29 }
  0x53   : > { %418 = vrot.lane.b32.xlu0 %v4841_v19, %s4762_s27  ;;  %664 = vrot.lane.b32.xlu1 %v4841_v19, %s4763_s28 }
  0x57   : > { %420 = vrot.lane.b32.xlu0 %v4846_v21, %s4762_s27  ;;  %666 = vrot.lane.b32.xlu1 %v4846_v21, %s4763_s28 }
  0x5b   : > { %750 = vrot.lane.b32.xlu0 %v4839_v17, %s4766_s30  ;;  %459 = vrot.lane.b32.xlu1 %v4841_v19, %s4753_s18 }
  0x5f   : > { %705 = vrot.lane.b32.xlu0 %v4841_v19, %s4764_s29  ;;  %461 = vrot.lane.b32.xlu1 %v4846_v21, %s4753_s18 }
  0x63   : > { %707 = vrot.lane.b32.xlu0 %v4846_v21, %s4764_s29  ;;  %791 = vrot.lane.b32.xlu1 %v4839_v17, %s4767_s4 }
  0x67   : > { %746 = vrot.lane.b32.xlu0 %v4841_v19, %s4766_s30  ;;  %748 = vrot.lane.b32.xlu1 %v4846_v21, %s4766_s30 }
  0x6b   : > { %787 = vrot.lane.b32.xlu0 %v4841_v19, %s4767_s4  ;;  %789 = vrot.lane.b32.xlu1 %v4846_v21, %s4767_s4 }
  0x6f   : > { %830 = vrot.lane.b32.xlu1 %v4846_v21, %s4768_s5  ;;  %828 = vrot.lane.b32.xlu0 %v4841_v19, %s4768_s5  ;;  %v1262_v19 = vld [vmem:[#allocation2 + $0x4] sm:$0xf] }
  0x70   : > { %v1358_v23 = vsel %vm4903_vm10, %v1262_v19, 0 }
  0x71   : > { %v4382_v28 = vcombine.low %v1357_v22, %v1358_v23  ;;  %v2049_v22 = vshrl.u32 %v4953_v45, 16  ;;  %v909_v23 = vand.u32 15, %v5037_v62  ;;  %v5086_v45 = vadd.s32 72, %v4887_v25 }
  0x73   : > { %1646 = vrot.lane.b32.xlu1 %v4398_v1, %s4769_s6  ;;  %832 = vrot.lane.b32.xlu0 %v4839_v17, %s4768_s5  ;;  %1486 = vst.msk [vmem:[#allocation3] sm:$0xff] %vm7192_vm14, %v4382_v28  ;;  %v390_v28 = vld [vmem:[#allocation2 + $0x30] sm:$0x1]  ;;  %v944_v56 = vand.u32 15, %v5086_v45 }
  0x75   : > { %vm5177_vm11 = vcmp.le.s32.totalorder %v944_v56, 14 }
  0x77   : > { %2169 = vrot.lane.b32.xlu1 %v2048_v7, %s4770_s7  ;;  %v852_v7 = vadd.s32 56, %v4887_v25 }
  0x7b   : > { %3270 = vrot.lane.b32.xlu1 %v3239_v10, %s4771_s8  ;;  %v5056_v10 = vsel %vm7195_vm5, %v3335_v58, 0  ;;  %v5104_v58 = vadd.s32 152, %v4887_v25 }
  0x7d   : > { %v1014_v62 = vand.u32 15, %v5104_v58 }
  0x8d   : > { %v464_v16 = vpop.permute.xlu1 %463  ;;  %v259_v17 = vpop.permute.xlu0 %258 }
  0x8e   : > { %v473_v20 = vsel %vm4811_vm2, %v464_v16, %v472_v12  ;;  %v268_v21 = vsel %vm4811_vm2, %v259_v17, %v267_v13  ;;  %v1263_v12 = vld [vmem:[#allocation2 + $0x8] sm:$0xf]  ;;  %v1264_v13 = vld [vmem:[#allocation2 + $0xc] sm:$0xf]  ;;  %v5068_v16 = vsel %vm7191_vm6, %v3336_v61, 0 }
  0x8f   : > { %474 = vst [vmem:[#allocation2 + $0x40] sm:$0x1] %v473_v20  ;;  %269 = vst [vmem:[#allocation2 + $0x18] sm:$0x1] %v268_v21  ;;  %v1359_v17 = vsel %vm5050_vm15, %v1263_v12, 0  ;;  %v1360_v18 = vsel %vm4903_vm10, %v1264_v13, 0  ;;  %v4498_v51 = vcombine.low %v5056_v10, %v5068_v16 }
  0x91   : > { %v505_v31 = vpop.permute.xlu1 %504  ;;  %v300_v32 = vpop.permute.xlu0 %299 }
  0x92   : > { %v514_v34 = vsel %vm4811_vm2, %v505_v31, %v513_v24  ;;  %v309_v35 = vsel %vm4811_vm2, %v300_v32, %v308_v26  ;;  %v5077_v24 = vadd.s32 48, %v4887_v25  ;;  %v4383_v26 = vcombine.low %v1359_v17, %v1360_v18 }
  0x93   : > { %515 = vst [vmem:[#allocation2 + $0x48] sm:$0x1] %v514_v34  ;;  %310 = vst [vmem:[#allocation2 + $0x20] sm:$0x1] %v309_v35  ;;  %v2353_v31 = vshll.u32 %v5047_v4, 16  ;;  %v930_v32 = vand.u32 15, %v852_v7 }
  0x94   : > { %v862_v35 = vadd.s32 136, %v4887_v25  ;;  %1487 = vst.msk [vmem:[#allocation3 + $0x8] sm:$0xff] %vm7192_vm14, %v4383_v26 }
  0x95   : > { %v546_v47 = vpop.permute.xlu0 %545  ;;  %v255_v48 = vpop.permute.xlu1 %254  ;;  %v2355_v55 = vrot.slane %v2353_v31, 1  ;;  %vm5098_vm6 = vcmp.le.s32.totalorder %v930_v32, 14 }
  0x96   : > { %v555_v52 = vsel %vm4811_vm2, %v546_v47, %v554_v39  ;;  %v264_v53 = vsel %vm4835_vm7, %v255_v48, %v263_v40  ;;  %v304_v20 = vld [vmem:[#allocation2 + $0x18] sm:$0xf]  ;;  %v986_v39 = vand.u32 15, %v860_v11 }
  0x97   : > { %556 = vst [vmem:[#allocation2 + $0x50] sm:$0x1] %v555_v52  ;;  %265 = vst [vmem:[#allocation2 + $0x10] sm:$0xf] %v264_v53  ;;  %v636_v53 = vld [vmem:[#allocation2 + $0x60] sm:$0x1] }
  0x98   : > { %vm5106_vm14 = vcmp.le.s32.totalorder %v986_v39, 14  ;;  %v3484_v39 = vrot.slane %v4498_v51, 1 }
  0x99   : > { %v341_v59 = vpop.permute.xlu0 %340  ;;  %v587_v60 = vpop.permute.xlu1 %586  ;;  %vm2940_vm5 = vmpackc.low %vm5106_vm14, %vm5106_vm14  ;;  %vm7275_vm14 = vsmask.f32 7424 }
  0x9a   : > { %v350_v63 = vsel %vm4811_vm2, %v341_v59, %v349_v36  ;;  %v596_v1 = vsel %vm4811_vm2, %v587_v60, %v595_v41  ;;  %v5096_v36 = vadd.s32 128, %v4887_v25  ;;  %v1000_v59 = vand.u32 15, %v862_v35  ;;  %v345_v61 = vld [vmem:[#allocation2 + $0x20] sm:$0xf]  ;;  %v550_v56 = vld [vmem:[#allocation2 + $0x48] sm:$0xf] }
  0x9b   : > { %351 = vst [vmem:[#allocation2 + $0x28] sm:$0x1] %v350_v63  ;;  %597 = vst [vmem:[#allocation2 + $0x58] sm:$0x1] %v596_v1  ;;  %v5222_v60 = vadd.s32 64, %v4887_v25 }
  0x9d   : > { %v257_v19 = vpop.permute.xlu0 %256  ;;  %v296_v21 = vpop.permute.xlu1 %295 }
  0x9e   : > { %266 = vst.msk [vmem:[#allocation2 + $0x14] sm:$0xf] %vm7198_vm3, %v257_v19  ;;  %v305_v27 = vsel %vm4835_vm7, %v296_v21, %v304_v20  ;;  %v1504_v34 = vld [vmem:[#allocation2 + $0x10] sm:$0xf] }
  0x9f   : > { %306 = vst [vmem:[#allocation2 + $0x18] sm:$0xf] %v305_v27  ;;  %v1711_v40 = vld [vmem:[#allocation2 + $0x10] sm:$0xf]  ;;  %v1536_v63 = vsel %vm5050_vm15, %v1504_v34, 0 }
  0xa0   : > { %v2864_v47 = vld [vmem:[#allocation2 + $0x10] sm:$0xf]  ;;  %v1743_v1 = vsel %vm4955_vm4, %v1711_v40, 0  ;;  %v2051_v40 = vor.u32 %v2049_v22, %v4985_v3  ;;  %vm2932_vm4 = vmpackc.low %vm5098_vm6, %vm5098_vm6  ;;  %v993_v22 = vand.u32 15, %v5096_v36  ;;  %v923_v36 = vand.u32 15, %v5077_v24 }
  0xa1   : > { %v298_v43 = vpop.permute.xlu0 %297  ;;  %v382_v46 = vpop.permute.xlu1 %381  ;;  %v3337_v48 = vld [vmem:[#allocation2 + $0x10] sm:$0xf]  ;;  %v3124_v7 = vsel %vm5043_vm13, %v2864_v47, 0  ;;  %vm5217_vm6 = vcmp.le.s32.totalorder %v1014_v62, 14 }
  0xa2   : > { %307 = vst.msk [vmem:[#allocation2 + $0x1c] sm:$0xf] %vm7198_vm3, %v298_v43  ;;  %v391_v52 = vsel %vm4811_vm2, %v382_v46, %v390_v28  ;;  %v3370_v10 = vsel %vm4961_vm8, %v3337_v48, 0  ;;  %v509_v46 = vld [vmem:[#allocation2 + $0x40] sm:$0xf] }
  0xa3   : > { %392 = vst [vmem:[#allocation2 + $0x30] sm:$0x1] %v391_v52  ;;  %v591_v58 = vld [vmem:[#allocation2 + $0x50] sm:$0xf] }
  0xa5   : > { %v628_v11 = vpop.permute.xlu0 %627  ;;  %v337_v12 = vpop.permute.xlu1 %336  ;;  %v1505_v13 = vld [vmem:[#allocation2 + $0x14] sm:$0xf] }
  0xa6   : > { %v1712_v16 = vld [vmem:[#allocation2 + $0x14] sm:$0xf]  ;;  %v637_v18 = vsel %vm4811_vm2, %v628_v11, %v636_v53  ;;  %v346_v19 = vsel %vm4835_vm7, %v337_v12, %v345_v61  ;;  %v1537_v49 = vsel %vm4903_vm10, %v1505_v13, 0  ;;  %v431_v11 = vld [vmem:[#allocation2 + $0x38] sm:$0x1] }
  0xa7   : > { %v2865_v17 = vld [vmem:[#allocation2 + $0x14] sm:$0xf]  ;;  %v1744_v20 = vsel %vm4903_vm10, %v1712_v16, 0  ;;  %638 = vst [vmem:[#allocation2 + $0x60] sm:$0x1] %v637_v18  ;;  %v4399_v26 = vcombine.low %v1536_v63, %v1537_v49 }
  0xa8   : > { %v3338_v21 = vld [vmem:[#allocation2 + $0x14] sm:$0xf]  ;;  %347 = vst [vmem:[#allocation2 + $0x20] sm:$0xf] %v346_v19  ;;  %v4414_v27 = vcombine.low %v1743_v1, %v1744_v20  ;;  %v3125_v28 = vsel %vm7193_vm1, %v2865_v17, 0  ;;  %vm5148_vm1 = vcmp.ge.s32.totalorder %v909_v23, 1  ;;  %v2356_v23 = vor.u32 %v2355_v55, %v2351_v30 }
  0xa9   : > { %v3371_v31 = vsel %vm7194_vm9, %v3338_v21, 0  ;;  %v5130_v32 = vld [vmem:[#allocation2 + $0x10] sm:$0xff]   ;;  %v5134_v45 = vcombine.low %v3124_v7, %v3125_v28  ;;  %v339_v43 = vpop.permute.xlu0 %338  ;;  %v501_v47 = vpop.permute.xlu1 %500  ;;  %1648 = vrot.lane.b32.xlu0 %v4399_v26, %s4769_s6  ;;  %vm5153_vm9 = vcmp.le.s32.totalorder %v1000_v59, 14  ;;  %v5175_v59 = vsel %vm2932_vm4, 65537, %v7202_v5  ;;  %v1714_v6 = vld [vmem:[#allocation2 + $0x1c] sm:$0xf] }
  0xaa   : > { %v5132_v34 = vld [vmem:[#allocation2 + $0x10] sm:$0xff]   ;;  %v5136_v35 = vcombine.low %v3370_v10, %v3371_v31  ;;  %1855 = vrot.lane.b32.xlu1 %v4414_v27, %s4772_s9  ;;  %v2053_v48 = vshll.u32 %v5130_v32, 16  ;;  %348 = vst.msk [vmem:[#allocation2 + $0x24] sm:$0xf] %vm7198_vm3, %v339_v43  ;;  %v510_v53 = vsel %vm4835_vm7, %v501_v47, %v509_v46  ;;  %v5205_v7 = vsel %vm2940_vm5, 65537, %v7202_v5  ;;  %vm7274_vm5 = vmpackc.low %vm5153_vm9, %vm5153_vm9 }
  0xab   : > { %v2358_v52 = vshll.u32 %v5132_v34, 16  ;;  %v7200_v61 = vrot.slane %v5134_v45, 1  ;;  %511 = vst [vmem:[#allocation2 + $0x40] sm:$0xf] %v510_v53  ;;  %7269 = vst [vmem:[#allocation4_spill] sm:$0xff] %v5205_v7  ;;  %vm5210_vm4 = vcmp.ge.s32.totalorder %v993_v22, 1 }
  0xac   : > { %v3485_v63 = vrot.slane %v5136_v35, 1  ;;  %v5189_v30 = vrot.slane %v2053_v48, 1  ;;  %v1713_v16 = vld [vmem:[#allocation2 + $0x18] sm:$0xf]  ;;  %v3012_v17 = vrot.slane %v5175_v59, 7  ;;  %v5231_v18 = vsel %vm7274_vm5, 65537, %v7202_v5 }
  0xad   : > { %v3241_v4 = vsel %vm7197_vm12, %v3238_v9, %v7200_v61  ;;  %v5191_v55 = vrot.slane %v2358_v52, 1  ;;  %v503_v41 = vpop.permute.xlu0 %502  ;;  %v542_v1 = vpop.permute.xlu1 %541  ;;  %v863_v9 = vadd.s32 144, %v4887_v25  ;;  %v1746_v20 = vsel %vm4903_vm10, %v1714_v6, 0  ;;  %v1507_v28 = vld [vmem:[#allocation2 + $0x1c] sm:$0xf] }
  0xae   : > { %v3486_v24 = vsel %vm7197_vm12, %v3484_v39, %v3485_v63  ;;  %3272 = vrot.lane.b32.xlu0 %v3241_v4, %s4771_s8  ;;  %512 = vst.msk [vmem:[#allocation2 + $0x44] sm:$0xf] %vm7198_vm3, %v503_v41  ;;  %v551_v10 = vsel %vm4835_vm7, %v542_v1, %v550_v56  ;;  %vm2934_vm12 = vmpackc.low %vm5177_vm11, %vm5177_vm11  ;;  %v2056_v19 = vsel %vm7275_vm14, %v2051_v40, %v5189_v30  ;;  %v7199_v21 = vrot.slane %v5205_v7, 7  ;;  %v1506_v51 = vld [vmem:[#allocation2 + $0x18] sm:$0xf] }
  0xaf   : > { %3517 = vrot.lane.b32.xlu1 %v3486_v24, %s4773_s10  ;;  %552 = vst [vmem:[#allocation2 + $0x48] sm:$0xf] %v551_v10  ;;  %vm7276_vm3 = vmmov %vm7275_vm14  ;;  %v1007_v31 = vand.u32 15, %v863_v9  ;;  %v5244_v39 = vrot.slane %v3006_v57, 4  ;;  %v5252_v40 = vsel %vm2934_vm12, 65537, %v7202_v5  ;;  %v5256_v43 = vrot.slane %v3012_v17, 4 }
  0xb0   : > { %v2361_v49 = vsel %vm7276_vm3, %v2356_v23, %v5191_v55  ;;  %vm2944_vm3 = vmpackc.low %vm5217_vm6, %vm5217_vm6  ;;  %vm7277_vm9 = vcmask 27648   ;;  %v677_v57 = vld [vmem:[#allocation2 + $0x68] sm:$0x1]  ;;  %v1745_v46 = vsel %vm5050_vm15, %v1713_v16, 0  ;;  %vm5266_vm11 = vcmp.ge.s32.totalorder %v923_v36, 1 }
  0xb1   : > { %v423_v26 = vpop.permute.xlu0 %422  ;;  %v544_v27 = vpop.permute.xlu1 %543  ;;  %v3042_v48 = vrot.slane %v5231_v18, 7  ;;  %v4415_v22 = vcombine.low %v1745_v46, %v1746_v20  ;;  %vm5275_vm12 = vmpackc.low %vm5148_vm1, %vm5148_vm1  ;;  %v1539_v8 = vsel %vm4903_vm10, %v1507_v28, 0  ;;  %v7201_v62 = vrot.slane %v5252_v40, 7  ;;  %v3583_v20 = vld [vmem:[#allocation2 + $0x14] sm:$0xf] }
  0xb2   : > { %2171 = vrot.lane.b32.xlu0 %v2056_v19, %s4770_s7  ;;  %v432_v50 = vsel %vm4811_vm2, %v423_v26, %v431_v11  ;;  %553 = vst.msk [vmem:[#allocation2 + $0x4c] sm:$0xf] %vm7277_vm9, %v544_v27  ;;  %v5283_v23 = vsel %vm2944_vm3, 65537, %v7202_v5  ;;  %v5287_v36 = vrot.slane %v7199_v21, 4  ;;  %vm5290_vm15 = vcmp.ge.s32.totalorder %v1007_v31, 1  ;;  %vm5307_vm1 = vmpackc.low %vm5210_vm4, %vm5210_vm4 }
  0xb3   : > { %2482 = vrot.lane.b32.xlu1 %v2361_v49, %s4774_s11  ;;  %433 = vst [vmem:[#allocation2 + $0x38] sm:$0x1] %v432_v50  ;;  %v1538_v1 = vsel %vm5275_vm12, %v1506_v51, 0  ;;  %v5302_v6 = vrot.slane %v3042_v48, 4  ;;  %v3048_v13 = vrot.slane %v5283_v23, 7  ;;  %v5313_v16 = vadd.s32 168, %v4887_v25  ;;  %vm7286_vm6 = vmmov %vm7277_vm9 }
  0xb4   : > { %v4400_v9 = vcombine.low %v1538_v1, %v1539_v8  ;;  %v386_v19 = vld [vmem:[#allocation2 + $0x28] sm:$0xf]  ;;  %v3582_v49 = vld [vmem:[#allocation2 + $0x10] sm:$0xe]  ;;  %v1509_v12 = vld [vmem:[#allocation2 + $0x24] sm:$0xf]  ;;  %v3010_v2 = vsel %vm4931_vm0, %v5244_v39, %v4914_v33 }
  0xb5   : > { %v583_v4 = vpop.permute.xlu0 %582  ;;  %v669_v3 = vpop.permute.xlu1 %668  ;;  %v3584_v31 = vld [vmem:[#allocation2 + $0x18] sm:$0xf]  ;;  %vm5330_vm4 = vmpackc.low %vm5266_vm11, %vm5266_vm11  ;;  %vm7289_vm5 = vcmp.ne.s16.totalorder %v4914_v33, 0  ;;  %vm7290_vm14 = vcmp.ne.s16.totalorder %v4939_v42, 0  ;;  %v718_v47 = vld [vmem:[#allocation2 + $0x70] sm:$0x1] }
  0xb6   : > { %1857 = vrot.lane.b32.xlu0 %v4415_v22, %s4772_s9  ;;  %v592_v41 = vsel %vm4835_vm7, %v583_v4, %v591_v58  ;;  %v678_v56 = vsel %vm4811_vm2, %v669_v3, %v677_v57  ;;  %v1518_v11 = vld [vmem:[#allocation2 + $0x48] sm:$0xf]  ;;  %v3585_v22 = vld [vmem:[#allocation2 + $0x1c] sm:$0xf]  ;;  %v632_v51 = vld [vmem:[#allocation2 + $0x58] sm:$0xf] }
  0xb7   : > { %593 = vst [vmem:[#allocation2 + $0x50] sm:$0xf] %v592_v41  ;;  %679 = vst [vmem:[#allocation2 + $0x68] sm:$0x1] %v678_v56  ;;  %v1550_v57 = vsel %vm5307_vm1, %v1518_v11, 0  ;;  %v1541_v4 = vsel %vm4903_vm10, %v1509_v12, 0 }
  0xb8   : > { %v1508_v58 = vld [vmem:[#allocation2 + $0x20] sm:$0xf]  ;;  %v1028_v3 = vand.u32 15, %v5313_v16  ;;  %v1716_v11 = vld [vmem:[#allocation2 + $0x24] sm:$0xf]  ;;  %vm7291_vm3 = vmmov %vm7286_vm6  ;;  %v3617_v12 = vsel %vm4961_vm8, %v3584_v31, 0 }
  0xb9   : > { %v378_v26 = vpop.permute.xlu0 %377  ;;  %v585_v27 = vpop.permute.xlu1 %584  ;;  %v1519_v28 = vld [vmem:[#allocation2 + $0x4c] sm:$0xf]  ;;  %vm7292_vm9 = vcmp.ne.s16.totalorder %v4951_v44, 0  ;;  %vm5356_vm11 = vmpackc.low %vm5290_vm15, %vm5290_vm15  ;;  %v1748_v44 = vsel %vm4903_vm10, %v1716_v11, 0  ;;  %v3340_v31 = vld [vmem:[#allocation2 + $0x1c] sm:$0xf] }
  0xba   : > { %1650 = vrot.lane.b32.xlu0 %v4400_v9, %s4769_s6  ;;  %v387_v50 = vsel %vm4835_vm7, %v378_v26, %v386_v19  ;;  %594 = vst.msk [vmem:[#allocation2 + $0x54] sm:$0xf] %vm7286_vm6, %v585_v27  ;;  %v1551_v46 = vsel %vm4903_vm10, %v1519_v28, 0  ;;  %v1715_v9 = vld [vmem:[#allocation2 + $0x20] sm:$0xf]  ;;  %v5336_v19 = vsel %vm7289_vm5, %v3582_v49, 0  ;;  %vm7295_vm8 = vmmov %vm7291_vm3 }
  0xbb   : > { %388 = vst [vmem:[#allocation2 + $0x28] sm:$0xf] %v387_v50  ;;  %v4406_v8 = vcombine.low %v1550_v57, %v1551_v46  ;;  %v5340_v26 = vsel %vm7290_vm14, %v3583_v20, 0  ;;  %v1540_v28 = vsel %vm5330_vm4, %v1508_v58, 0  ;;  %v3618_v49 = vsel %vm7292_vm9, %v3585_v22, 0  ;;  %v5351_v57 = vld [vmem:[#allocation2 + $0x10] sm:$0xff]   ;;  %vm7300_vm14 = vmmov %vm7291_vm3 }
  0xbc   : > { %v4401_v50 = vcombine.low %v1540_v28, %v1541_v4  ;;  %v3339_v20 = vld [vmem:[#allocation2 + $0x18] sm:$0xf]  ;;  %v7293_v46 = vmov 0  ;;  %v1747_v54 = vsel %vm5275_vm12, %v1715_v9, 0  ;;  %v673_v28 = vld [vmem:[#allocation2 + $0x60] sm:$0xf] }
  0xbd   : > { %v624_v41 = vpop.permute.xlu0 %623  ;;  %v380_v56 = vpop.permute.xlu1 %379  ;;  %1662 = vrot.lane.b32.xlu1 %v4406_v8, %s4769_s6  ;;  %v7294_v46 = vsel %vm5356_vm11, 4294967295, %v7293_v46  ;;  %v3372_v9 = vsel %vm5043_vm13, %v3339_v20, 0  ;;  %v5374_v11 = vld [vmem:[#allocation2 + $0x18] sm:$0xff]   ;;  %v3587_v52 = vld [vmem:[#allocation2 + $0x24] sm:$0xf]  ;;  %vm7296_vm15 = vcmp.ne.s16.totalorder %v5064_v15, 0 }
  0xbe   : > { %v633_v27 = vsel %vm4835_vm7, %v624_v41, %v632_v51  ;;  %389 = vst.msk [vmem:[#allocation2 + $0x2c] sm:$0xf] %vm7291_vm3, %v380_v56  ;;  %v1520_v42 = vld [vmem:[#allocation2 + $0x50] sm:$0xf]  ;;  %vm7297_vm6 = vmmov %vm7296_vm15  ;;  %vm5407_vm5 = vcmp.le.s32.totalorder %v1028_v3, 14  ;;  %vm7301_vm9 = vcmask 1046528  }
  0xbf   : > { %634 = vst [vmem:[#allocation2 + $0x58] sm:$0xf] %v633_v27  ;;  %v1552_v4 = vsel %vm5356_vm11, %v1520_v42, 0  ;;  %v1727_v56 = vld [vmem:[#allocation2 + $0x50] sm:$0xf]  ;;  %v5378_v42 = vcombine.low %v3617_v12, %v3618_v49  ;;  %v5493_v35 = vld [vmem:[#allocation2 + $0x40] sm:$0xff]  }
  0xc0   : > { %v427_v27 = vld [vmem:[#allocation2 + $0x30] sm:$0xf]  ;;  %v1759_v20 = vsel %vm5307_vm1, %v1727_v56, 0  ;;  %v5568_v39 = vadd.s32 88, %v4887_v25 }
  0xc1   : > { %v626_v22 = vpop.permute.xlu0 %625  ;;  %v710_v51 = vpop.permute.xlu1 %709  ;;  %1652 = vrot.lane.b32.xlu1 %v4401_v50, %s4769_s6  ;;  %v1521_v8 = vld [vmem:[#allocation2 + $0x54] sm:$0xf] }
  0xc2   : > { %v1728_v58 = vld [vmem:[#allocation2 + $0x54] sm:$0xf]  ;;  %635 = vst.msk [vmem:[#allocation2 + $0x5c] sm:$0xf] %vm7295_vm8, %v626_v22  ;;  %v719_v24 = vsel %vm4811_vm2, %v710_v51, %v718_v47  ;;  %v1553_v41 = vsel %vm4903_vm10, %v1521_v8, 0  ;;  %v4416_v22 = vcombine.low %v1747_v54, %v1748_v44  ;;  %v3373_v51 = vsel %vm7296_vm15, %v3340_v31, 0  ;;  %vm7302_vm8 = vmmov %vm7301_vm9 }
  0xc3   : > { %720 = vst [vmem:[#allocation2 + $0x70] sm:$0x1] %v719_v24  ;;  %v4407_v50 = vcombine.low %v1552_v4, %v1553_v41  ;;  %v1717_v21 = vld [vmem:[#allocation2 + $0x28] sm:$0xf]  ;;  %v1760_v47 = vsel %vm4903_vm10, %v1728_v58, 0  ;;  %v4515_v44 = vcombine.low %v5336_v19, %v5340_v26  ;;  %v2666_v58 = vshll.u32 %v5351_v57, 16 }
  0xc4   : > { %v1749_v31 = vsel %vm5330_vm4, %v1717_v21, 0  ;;  %v5397_v4 = vld [vmem:[#allocation2 + $0x18] sm:$0xff]   ;;  %v4422_v41 = vcombine.low %v1759_v20, %v1760_v47  ;;  %v5399_v56 = vcombine.low %v3372_v9, %v3373_v51  ;;  %v3620_v21 = vsel %vm7297_vm6, %v3587_v52, 0  ;;  %vm7304_vm6 = vmmov %vm7291_vm3 }
  0xc5   : > { %v419_v8 = vpop.permute.xlu0 %418  ;;  %v665_v61 = vpop.permute.xlu1 %664  ;;  %1664 = vrot.lane.b32.xlu0 %v4407_v50, %s4769_s6  ;;  %1859 = vrot.lane.b32.xlu1 %v4416_v22, %s4772_s9  ;;  %v1718_v54 = vld [vmem:[#allocation2 + $0x2c] sm:$0xf]  ;;  %v3586_v50 = vld [vmem:[#allocation2 + $0x20] sm:$0xf]  ;;  %v3731_v51 = vrot.slane %v4515_v44, 1  ;;  %v2668_v16 = vrot.slane %v2666_v58, 1 }
  0xc6   : > { %v428_v12 = vsel %vm4835_vm7, %v419_v8, %v427_v27  ;;  %v674_v49 = vsel %vm4835_vm7, %v665_v61, %v673_v28  ;;  %v1750_v24 = vsel %vm4903_vm10, %v1718_v54, 0  ;;  %v1729_v26 = vld [vmem:[#allocation2 + $0x58] sm:$0xf]  ;;  %v3732_v27 = vrot.slane %v5378_v42, 1  ;;  %v5433_v58 = vld [vmem:[#allocation2 + $0x20] sm:$0xff]  }
  0xc7   : > { %429 = vst [vmem:[#allocation2 + $0x30] sm:$0xf] %v428_v12  ;;  %675 = vst [vmem:[#allocation2 + $0x60] sm:$0xf] %v674_v49  ;;  %v4417_v19 = vcombine.low %v1749_v31, %v1750_v24  ;;  %v2671_v61 = vshll.u32 %v5374_v11, 16  ;;  %v2664_v8 = vshrl.u32 %v5351_v57, 16 }
  0xc8   : > { %v1761_v15 = vsel %vm5356_vm11, %v1729_v26, 0  ;;  %v3619_v3 = vsel %vm5043_vm13, %v3586_v50, 0  ;;  %v759_v20 = vld [vmem:[#allocation2 + $0x78] sm:$0x1]  ;;  %v7205_v44 = vrot.slane %v5399_v56, 1  ;;  %v2061_v57 = vshll.u32 %v5397_v4, 16  ;;  %vm2946_vm13 = vmpackc.low %vm5407_vm5, %vm5407_vm5 }
  0xc9   : > { %v421_v22 = vpop.permute.xlu0 %420  ;;  %v667_v47 = vpop.permute.xlu1 %666  ;;  %1871 = vrot.lane.b32.xlu0 %v4422_v41, %s4772_s9  ;;  %1861 = vrot.lane.b32.xlu1 %v4417_v19, %s4772_s9  ;;  %v1730_v9 = vld [vmem:[#allocation2 + $0x5c] sm:$0xf]  ;;  %v5423_v12 = vcombine.low %v3619_v3, %v3620_v21  ;;  %v3733_v31 = vsel %vm7301_vm9, %v3731_v51, %v3732_v27  ;;  %v5431_v24 = vrot.slane %v2671_v61, 1  ;;  %v468_v19 = vld [vmem:[#allocation2 + $0x38] sm:$0xf]  ;;  %v5446_v50 = vsel %vm4931_vm0, %v4925_v37, %v3012_v17 }
  0xca   : > { %430 = vst.msk [vmem:[#allocation2 + $0x34] sm:$0xf] %vm7300_vm14, %v421_v22  ;;  %v1762_v52 = vsel %vm4903_vm10, %v1730_v9, 0  ;;  %v5426_v49 = vld [vmem:[#allocation2 + $0x18] sm:$0xff]   ;;  %v3016_v61 = vsel %vm4931_vm0, %v5256_v43, %v4914_v33  ;;  %v5457_v21 = vsel %vm4931_vm0, %v4925_v37, %v7201_v62  ;;  %v2669_v17 = vor.u32 %v2668_v16, %v2664_v8  ;;  %vm7306_vm14 = vmmov %vm7302_vm8 }
  0xcb   : > { %676 = vst.msk [vmem:[#allocation2 + $0x64] sm:$0xf] %vm7291_vm3, %v667_v47  ;;  %v4423_v54 = vcombine.low %v1761_v15, %v1762_v52  ;;  %v5464_v47 = vadd.s32 160, %v4887_v25  ;;  %v7204_v9 = vrot.slane %v5423_v12, 1  ;;  %v2057_v51 = vshrl.u32 %v5130_v32, 16  ;;  %v5469_v52 = vld [vmem:[#allocation2 + $0x20] sm:$0xff]  }
  0xcc   : > { %v2366_v15 = vshll.u32 %v5426_v49, 16  ;;  %v5476_v8 = vrot.slane %v3048_v13, 4  ;;  %v3488_v16 = vsel %vm7302_vm8, %v3485_v63, %v7205_v44  ;;  %vm7303_vm15 = vsmask.f32 7424 }
  0xcd   : > { %v751_v41 = vpop.permute.xlu0 %750  ;;  %v460_v26 = vpop.permute.xlu1 %459  ;;  %1873 = vrot.lane.b32.xlu0 %v4423_v54, %s4772_s9  ;;  %3764 = vrot.lane.b32.xlu1 %v3733_v31, %s4775_s15  ;;  %v2674_v32 = vsel %vm7303_vm15, %v2669_v17, %v5431_v24  ;;  %v2063_v3 = vrot.slane %v2061_v57, 1  ;;  %v5486_v54 = vld [vmem:[#allocation2 + $0x20] sm:$0xff]   ;;  %v5504_v57 = vsel %vm4931_vm0, %v4925_v37, %v3042_v48  ;;  %v2059_v18 = vor.u32 %v2057_v51, %v5189_v30  ;;  %vm7307_vm3 = vmmov %vm7303_vm15 }
  0xce   : > { %v760_v59 = vsel %vm4811_vm2, %v751_v41, %v759_v20  ;;  %v469_v22 = vsel %vm4835_vm7, %v460_v26, %v468_v19  ;;  %v2069_v20 = vshll.u32 %v5433_v58, 16  ;;  %v4726_v31 = vld [vmem:[%s7188_s1] sm:$0xff]   ;;  %v714_v19 = vld [vmem:[#allocation2 + $0x68] sm:$0xf]  ;;  %v5528_v48 = vsel %vm2946_vm13, 65537, %v7202_v5  ;;  %vm7311_vm13 = vmmov %vm7304_vm6 }
  0xcf   : > { %761 = vst [vmem:[#allocation2 + $0x78] sm:$0x1] %v760_v59  ;;  %470 = vst [vmem:[#allocation2 + $0x38] sm:$0xf] %v469_v22  ;;  %v5511_v59 = vsel %vm4931_vm0, %v4925_v37, %v3048_v13  ;;  %v5514_v22 = vadd.s32 80, %v4887_v25  ;;  %4607 = vmatprep.subr.bf16.mxu0 %v4726_v31  ;;  %4645 = vmatprep.subr.bf16.mxu1 %v4726_v31  ;;  %v3735_v30 = vsel %vm7306_vm14, %v3732_v27, %v7204_v9  ;;  %v5583_v9 = vld [vmem:[#allocation2 + $0x28] sm:$0xff]  }
  0xd0   : > { %7305 = vst [vmem:[#allocation5_spill] sm:$0xff] %v5528_v48  ;;  %v800_v13 = vld [vmem:[#allocation2 + $0x80] sm:$0x1]  ;;  %v2362_v51 = vshrl.u32 %v5132_v34, 16  ;;  %v2065_v28 = vshrl.u32 %v5397_v4, 16  ;;  %vm7211_vm5 = vcmp.ne.s16.totalorder %v5446_v50, 0  ;;  %4608 = vmatpush3.bf16.msra.mxu0 %v4726_v31  ;;  %4648 = vmatpush3.bf16.msra.mxu1 %v4726_v31  ;;  %vm7313_vm8 = vmmov %vm7307_vm3  ;;  %v3052_v43 = vsel %vm4931_vm0, %v5476_v8, %v4914_v33 }
  0xd1   : > { %v706_v41 = vpop.permute.xlu0 %705  ;;  %v462_v26 = vpop.permute.xlu1 %461  ;;  %3519 = vrot.lane.b32.xlu0 %v3488_v16, %s4773_s10  ;;  %2795 = vrot.lane.b32.xlu1 %v2674_v32, %s4776_s19  ;;  %v5520_v16 = vld [vmem:[#allocation2 + $0x48] sm:$0xff]   ;;  %v2368_v32 = vrot.slane %v2366_v15, 1  ;;  %v2374_v42 = vshll.u32 %v5486_v54, 16  ;;  %v2101_v15 = vshll.u32 %v5493_v35, 16  ;;  %vm5555_vm9 = vcmp.ne.s16.totalorder %v3010_v2, 0  ;;  %vm7314_vm15 = vmmov %vm7307_vm3  ;;  %v5597_v31 = vld [vmem:[#allocation2 + $0x50] sm:$0xff]  }
  0xd2   : > { %v715_v17 = vsel %vm4835_vm7, %v706_v41, %v714_v19  ;;  %471 = vst.msk [vmem:[#allocation2 + $0x3c] sm:$0xf] %vm7304_vm6, %v462_v26  ;;  %v2064_v41 = vsel %vm7307_vm3, %v2059_v18, %v2063_v3  ;;  %v5540_v19 = vrot.slane %v2069_v20, 1  ;;  %v2679_v26 = vshll.u32 %v5469_v52, 16  ;;  %v755_v2 = vld [vmem:[#allocation2 + $0x70] sm:$0xf]  ;;  %vm7316_vm14 = vmmov %vm7311_vm13 }
  0xd3   : > { %716 = vst [vmem:[#allocation2 + $0x68] sm:$0xf] %v715_v17  ;;  %v5544_v17 = vld [vmem:[#allocation2 + $0x28] sm:$0xff]   ;;  %v2364_v4 = vor.u32 %v2362_v51, %v5191_v55  ;;  %v2109_v51 = vshll.u32 %v5520_v16, 16  ;;  %v2675_v5 = vshrl.u32 %v5374_v11, 16  ;;  %v2370_v23 = vshrl.u32 %v5426_v49, 16 }
  0xd4   : > { %7308 = vst [vmem:[#allocation6_spill] sm:$0xff] %v5544_v17  ;;  %vm7217_vm6 = vcmp.ne.s16.totalorder %v5457_v21, 0  ;;  %v5589_v44 = vrot.slane %v2101_v15, 1  ;;  %vm5604_vm3 = vcmp.ne.s16.totalorder %v3016_v61, 0  ;;  %v7320_v61 = vrot.slane %v5528_v48, 7 }
  0xd5   : > { %v708_v27 = vpop.permute.xlu0 %707  ;;  %3766 = vrot.lane.b32.xlu0 %v3735_v30, %s4775_s15  ;;  %2173 = vrot.lane.b32.xlu1 %v2064_v41, %s4770_s7  ;;  %v792_v34 = vpop.permute.xlu1 %791  ;;  %v2067_v30 = vor.u32 %v2065_v28, %v2063_v3  ;;  %v5565_v41 = vld [vmem:[#allocation2 + $0x50] sm:$0xff]   ;;  %v2369_v62 = vsel %vm7313_vm8, %v2364_v4, %v2368_v32  ;;  %v5580_v28 = vrot.slane %v2679_v26, 1  ;;  %v2677_v4 = vor.u32 %v2675_v5, %v5431_v24 }
  0xd6   : > { %717 = vst.msk [vmem:[#allocation2 + $0x6c] sm:$0xf] %vm7311_vm13, %v708_v27  ;;  %v801_v55 = vsel %vm4811_vm2, %v792_v34, %v800_v13  ;;  %7312 = vst [vmem:[#allocation7_spill] sm:$0xff] %v5565_v41  ;;  %v5573_v27 = vld [vmem:[#allocation2 + $0x48] sm:$0xff]   ;;  %v5576_v13 = vadd.s32 104, %v4887_v25  ;;  %v2376_v34 = vrot.slane %v2374_v42, 1  ;;  %v2372_v18 = vor.u32 %v2370_v23, %v2368_v32 }
  0xd7   : > { %802 = vst [vmem:[#allocation2 + $0x80] sm:$0x1] %v801_v55  ;;  %v2072_v3 = vsel %vm7314_vm15, %v2067_v30, %v5540_v19  ;;  %v2382_v55 = vshll.u32 %v5544_v17, 16  ;;  %7315 = vst [vmem:[#allocation8_spill] sm:$0xff] %v5589_v44  ;;  %v2378_v26 = vshrl.u32 %v5486_v54, 16  ;;  %v2105_v30 = vshrl.u32 %v5493_v35, 16 }
  0xd8   : > { %v2111_v63 = vrot.slane %v2109_v51, 1  ;;  %v796_v24 = vld [vmem:[#allocation2 + $0x78] sm:$0xf]  ;;  %v2414_v54 = vshll.u32 %v5573_v27, 16  ;;  %v2867_v35 = vld [vmem:[#allocation2 + $0x1c] sm:$0xf]  ;;  %v3046_v32 = vsel %vm4931_vm0, %v5302_v6, %v4914_v33  ;;  %v5625_v15 = vsel %vm4931_vm0, %v4925_v37, %v7320_v61  ;;  %vm7321_vm15 = vmmov %vm7313_vm8 }
  0xd9   : > { %v747_v11 = vpop.permute.xlu0 %746  ;;  %2484 = vrot.lane.b32.xlu0 %v2369_v62, %s4774_s11  ;;  %2175 = vrot.lane.b32.xlu1 %v2072_v3, %s4770_s7  ;;  %v749_v49 = vpop.permute.xlu1 %748  ;;  %v2117_v62 = vshll.u32 %v5565_v41, 16  ;;  %v5609_v23 = vld [vmem:[#allocation2 + $0x58] sm:$0xff]   ;;  %v2682_v51 = vsel %vm7313_vm8, %v2677_v4, %v5580_v28  ;;  %v5630_v6 = vrot.slane %v2382_v55, 1  ;;  %v2687_v3 = vshll.u32 %v5583_v9, 16  ;;  %v1513_v1 = vld [vmem:[#allocation2 + $0x34] sm:$0xf] }
  0xda   : > { %v756_v42 = vsel %vm4835_vm7, %v747_v11, %v755_v2  ;;  %758 = vst.msk [vmem:[#allocation2 + $0x74] sm:$0xf] %vm7316_vm14, %v749_v49  ;;  %7319 = vst [vmem:[#allocation9_spill] sm:$0xff] %v5609_v23  ;;  %v2377_v2 = vsel %vm7321_vm15, %v2372_v18, %v2376_v34  ;;  %v5633_v11 = vld [vmem:[#allocation2 + $0x30] sm:$0xff]   ;;  %v2107_v8 = vor.u32 %v2105_v30, %v5589_v44  ;;  %v2113_v49 = vshrl.u32 %v5520_v16, 16 }
  0xdb   : > { %757 = vst [vmem:[#allocation2 + $0x70] sm:$0xf] %v756_v42  ;;  %7322 = vst [vmem:[#allocation10_spill] sm:$0xff] %v5630_v6  ;;  %v2683_v4 = vshrl.u32 %v5469_v52, 16  ;;  %v2866_v55 = vld [vmem:[#allocation2 + $0x18] sm:$0xf]  ;;  %v7324_v61 = vsel %vm4931_vm0, %v5287_v36, %v4914_v33 }
  0xdc   : > { %7323 = vst [vmem:[#allocation11_spill] sm:$0xff] %v5633_v11  ;;  %vm5646_vm8 = vcmp.ne.s16.totalorder %v7324_v61, 0  ;;  %vm7327_vm15 = vmmov %vm7311_vm13  ;;  %v2422_v52 = vshll.u32 %v5597_v31, 16  ;;  %v3127_v30 = vsel %vm7211_vm5, %v2867_v35, 0  ;;  %vm5657_vm14 = vcmp.ne.s16.totalorder %v3046_v32, 0 }
  0xdd   : > { %2797 = vrot.lane.b32.xlu0 %v2682_v51, %s4776_s19  ;;  %2486 = vrot.lane.b32.xlu1 %v2377_v2, %s4774_s11  ;;  %v788_v42 = vpop.permute.xlu0 %787  ;;  %v790_v18 = vpop.permute.xlu1 %789  ;;  %v2380_v2 = vor.u32 %v2378_v26, %v2376_v34  ;;  %vm7330_vm13 = vsmask.f32 7424  ;;  %v5662_v61 = vrot.slane %v2117_v62, 1  ;;  %v5664_v34 = vrot.slane %v2414_v54, 1  ;;  %v2869_v51 = vld [vmem:[#allocation2 + $0x24] sm:$0xf] }
  0xde   : > { %v797_v16 = vsel %vm4835_vm7, %v788_v42, %v796_v24  ;;  %799 = vst.msk [vmem:[#allocation2 + $0x7c] sm:$0xf] %vm7327_vm15, %v790_v18  ;;  %v2112_v36 = vsel %vm7330_vm13, %v2107_v8, %v2111_v63  ;;  %v2430_v26 = vshll.u32 %v5609_v23, 16  ;;  %v5667_v24 = vld [vmem:[#allocation2 + $0x50] sm:$0xff]   ;;  %vm7333_vm15 = vmmov %vm7330_vm13  ;;  %v2689_v18 = vrot.slane %v2687_v3, 1 }
  0xdf   : > { %7331 = vst [vmem:[#allocation12_spill] sm:$0xff] %v5662_v61  ;;  %798 = vst [vmem:[#allocation2 + $0x78] sm:$0xf] %v797_v16  ;;  %v2385_v42 = vsel %vm7333_vm15, %v2380_v2, %v5630_v6  ;;  %v2695_v35 = vshll.u32 %v5633_v11, 16  ;;  %v3126_v32 = vsel %vm5555_vm9, %v2866_v55, 0  ;;  %v2418_v62 = vshrl.u32 %v5573_v27, 16 }
  0xe0   : > { %7332 = vst [vmem:[#allocation13_spill] sm:$0xff] %v5664_v34  ;;  %v2691_v54 = vshrl.u32 %v5583_v9, 16  ;;  %v5678_v8 = vcombine.low %v3126_v32, %v3127_v30  ;;  %v5680_v16 = vld [vmem:[#allocation2 + $0x58] sm:$0xff]   ;;  %v2115_v3 = vor.u32 %v2113_v49, %v2111_v63  ;;  %v2685_v23 = vor.u32 %v2683_v4, %v5580_v28  ;;  %v2868_v6 = vld [vmem:[#allocation2 + $0x20] sm:$0xf]  ;;  %v5971_v63 = vld [vmem:[#allocation2 + $0x28] sm:$0xff]  }
  0xe1   : > { %2185 = vrot.lane.b32.xlu0 %v2112_v36, %s4770_s7  ;;  %2488 = vrot.lane.b32.xlu1 %v2385_v42, %s4774_s11  ;;  %v831_v2 = vpop.permute.xlu1 %830  ;;  %v2424_v11 = vrot.slane %v2422_v52, 1  ;;  %v2426_v55 = vshrl.u32 %v5597_v31, 16  ;;  %v3342_v36 = vld [vmem:[#allocation2 + $0x24] sm:$0xf]  ;;  %vm7334_vm15 = vcmask 27648   ;;  %v5685_v42 = vrot.slane %v2430_v26, 1  ;;  %v829_v27 = vpop.permute.xlu0 %828 }
  0xe2   : > { %840 = vst.msk [vmem:[#allocation2 + $0x84] sm:$0xf] %vm7334_vm15, %v831_v2  ;;  %v2727_v9 = vshll.u32 %v5667_v24, 16  ;;  %v3129_v30 = vsel %vm7217_vm6, %v2869_v51, 0  ;;  %v2877_v32 = vld [vmem:[#allocation2 + $0x44] sm:$0xf]  ;;  %v2420_v49 = vor.u32 %v2418_v62, %v5664_v34  ;;  %v2693_v41 = vor.u32 %v2691_v54, %v2689_v18 }
  0xe3   : > { %vm5691_vm13 = vcmp.ne.s16.totalorder %v3052_v43, 0  ;;  %vm7337_vm5 = vsmask.f32 7424  ;;  %v5699_v4 = vrot.slane %v2695_v35, 1  ;;  %v5701_v52 = vld [vmem:[#allocation2 + $0x60] sm:$0xff]   ;;  %vm7341_vm6 = vcmp.ne.s16.totalorder %v5504_v57, 0 }
  0xe4   : > { %v2120_v31 = vsel %vm7337_vm5, %v2115_v3, %v5662_v61  ;;  %vm7338_vm0 = vmmov %vm7337_vm5  ;;  %v3341_v26 = vld [vmem:[#allocation2 + $0x20] sm:$0xf]  ;;  %v2879_v2 = vld [vmem:[#allocation2 + $0x4c] sm:$0xf]  ;;  %v2735_v3 = vshll.u32 %v5680_v16, 16  ;;  %vm3108_vm5 = vcmp.ne.s16.totalorder %v5625_v15, 0 }
  0xe5   : > { %v2690_v28 = vsel %vm7338_vm0, %v2685_v23, %v2689_v18  ;;  %v841_v51 = vld [vmem:[#allocation2 + $0x88] sm:$0x1]  ;;  %2187 = vrot.lane.b32.xlu0 %v2120_v31, %s4770_s7  ;;  %v3128_v23 = vsel %vm5604_vm3, %v2868_v6, 0  ;;  %vm7339_vm0 = vcmp.ne.s16.totalorder %v5446_v50, 0  ;;  %v2876_v62 = vld [vmem:[#allocation2 + $0x40] sm:$0xf]  ;;  %v1647_v34 = vpop.permute.xlu1 %1646 }
  0xe6   : > { %2799 = vrot.lane.b32.xlu1 %v2690_v28, %s4776_s19  ;;  %v3375_v35 = vsel %vm7339_vm0, %v3342_v36, 0  ;;  %vm7340_vm15 = vsmask.f32 7424  ;;  %v2739_v31 = vshrl.u32 %v5680_v16, 16  ;;  %v2878_v28 = vld [vmem:[#allocation2 + $0x48] sm:$0xf]  ;;  %v5717_v6 = vcombine.low %v3128_v23, %v3129_v30 }
  0xe7   : > { %v2425_v61 = vsel %vm7340_vm15, %v2420_v49, %v2424_v11  ;;  %v3137_v43 = vsel %vm7341_vm6, %v2877_v32, 0  ;;  %vm7342_vm11 = vcmask 64544   ;;  %v837_v17 = vld [vmem:[#allocation2 + $0x80] sm:$0xf]  ;;  %v3374_v36 = vsel %vm5555_vm9, %v3341_v26, 0  ;;  %v833_v49 = vpop.permute.xlu0 %832 }
  0xe8   : > { %1695 = vst.msk [vmem:[#allocation3] sm:$0xff] %vm7342_vm11, %v1647_v34  ;;  %vm7343_vm0 = vcmp.ne.s16.totalorder %v5511_v59, 0  ;;  %v838_v18 = vsel %vm4835_vm7, %v829_v27, %v837_v17  ;;  %v2698_v54 = vsel %vm7340_vm15, %v2693_v41, %v5699_v4  ;;  %v2743_v16 = vshll.u32 %v5701_v52, 16  ;;  %v3344_v30 = vld [vmem:[#allocation2 + $0x2c] sm:$0xf]  ;;  %vm7347_vm11 = vmmov %vm7340_vm15 }
  0xe9   : > { %v3139_v48 = vsel %vm7343_vm0, %v2879_v2, 0  ;;  %v5728_v32 = vcombine.low %v3374_v36, %v3375_v35  ;;  %v3136_v34 = vsel %vm5646_vm8, %v2876_v62, 0  ;;  %839 = vst [vmem:[#allocation2 + $0x80] sm:$0xf] %v838_v18  ;;  %2498 = vrot.lane.b32.xlu0 %v2425_v61, %s4774_s11  ;;  %v5734_v26 = vrot.slane %v2727_v9, 1  ;;  %vm7352_vm6 = vmmov %vm7347_vm11 }
  0xea   : > { %2801 = vrot.lane.b32.xlu1 %v2698_v54, %s4776_s19  ;;  %v3138_v14 = vsel %vm5657_vm14, %v2878_v28, 0  ;;  %v5738_v17 = vcombine.low %v3136_v34, %v3137_v43  ;;  %v842_v41 = vsel %vm4811_vm2, %v833_v49, %v841_v51  ;;  %v2428_v27 = vor.u32 %v2426_v55, %v2424_v11  ;;  %v3343_v23 = vld [vmem:[#allocation2 + $0x28] sm:$0xf]  ;;  %v2880_v62 = vld [vmem:[#allocation2 + $0x50] sm:$0xf] }
  0xeb   : > { %7344 = vst [vmem:[#allocation14_spill] sm:$0xff] %v5734_v26  ;;  %v5742_v2 = vcombine.low %v3138_v14, %v3139_v48  ;;  %843 = vst [vmem:[#allocation2 + $0x88] sm:$0x1] %v842_v41  ;;  %v2737_v35 = vrot.slane %v2735_v3, 1  ;;  %v7230_v61 = vrot.slane %v5717_v6, 1  ;;  %vm7346_vm7 = vcmp.ne.s16.totalorder %v5457_v21, 0 }
  0xec   : > { %7345 = vst [vmem:[#allocation15_spill] sm:$0xff] %v5738_v17  ;;  %v3377_v9 = vsel %vm7346_vm7, %v3344_v30, 0  ;;  %v4727_v43 = vld [vmem:[%s7188_s1 + $0x8] sm:$0xff]   ;;  %v2433_v0 = vsel %vm7347_vm11, %v2428_v27, %v5685_v42  ;;  %v7348_v11 = vrot.slane %v5678_v8, 1  ;;  %v7349_v48 = vrot.slane %v5134_v45, 1 }
  0xed   : > { %vm7350_vm2 = vcmask 1046528   ;;  %v5757_v51 = vrot.slane %v2743_v16, 1  ;;  %v3489_v3 = vrot.slane %v5728_v32, 1  ;;  %v2881_v28 = vld [vmem:[#allocation2 + $0x54] sm:$0xf]  ;;  %2500 = vrot.lane.b32.xlu0 %v2433_v0, %s4774_s11  ;;  %v7223_v36 = vrot.slane %v5738_v17, 1  ;;  %4609 = vmatprep.subr.bf16.mxu0 %v4727_v43 }
  0xee   : > { %v3243_v55 = vsel %vm7350_vm2, %v7349_v48, %v7348_v11  ;;  %v3376_v18 = vsel %vm5604_vm3, %v3343_v23, 0  ;;  %v3588_v54 = vld [vmem:[#allocation2 + $0x28] sm:$0xf]  ;;  %v3589_v34 = vld [vmem:[#allocation2 + $0x2c] sm:$0xf]  ;;  %v7351_v45 = vshrl.u32 %v5667_v24, 16  ;;  %4646 = vmatprep.subr.bf16.mxu1 %v4727_v43  ;;  %4610 = vmatpush3.bf16.msra.mxu0 %v4727_v43  ;;  %v7353_v24 = vmov %v7348_v11  ;;  %vm7354_vm0 = vmmov %vm7350_vm2 }
  0xef   : > { %3274 = vrot.lane.b32.xlu1 %v3243_v55, %s4771_s8  ;;  %v3254_v16 = vrot.slane %v5742_v2, 1  ;;  %v5769_v49 = vcombine.low %v3376_v18, %v3377_v9  ;;  %v3140_v32 = vsel %vm5691_vm13, %v2880_v62, 0  ;;  %v3351_v14 = vld [vmem:[#allocation2 + $0x48] sm:$0xf]  ;;  %v3352_v41 = vld [vmem:[#allocation2 + $0x4c] sm:$0xf]  ;;  %4649 = vmatpush3.bf16.msra.mxu1 %v4727_v43  ;;  %v3245_v23 = vsel %vm7354_vm0, %v7353_v24, %v7230_v61  ;;  %vm7360_vm2 = vmmov %vm7352_vm6 }
  0xf0   : > { %v2733_v30 = vor.u32 %v7351_v45, %v5734_v26  ;;  %v3141_v2 = vsel %vm3108_vm5, %v2881_v28, 0  ;;  %vm7355_vm15 = vcmp.ne.s16.totalorder %v5446_v50, 0  ;;  %v3354_v62 = vld [vmem:[#allocation2 + $0x54] sm:$0xf]  ;;  %v3353_v43 = vld [vmem:[#allocation2 + $0x50] sm:$0xf]  ;;  %v2741_v8 = vor.u32 %v2739_v31, %v2737_v35 }
  0xf1   : > { %v3622_v9 = vsel %vm7355_vm15, %v3589_v34, 0  ;;  %v7356_v0 = vand.u32 15, %v5222_v60  ;;  %v7229_v48 = vrot.slane %v5769_v49, 1  ;;  %v3621_v55 = vsel %vm5555_vm9, %v3588_v54, 0  ;;  %v1265_v34 = vld [vmem:[#allocation2 + $0x10] sm:$0xf]  ;;  %vm7365_vm15 = vmmov %vm7354_vm0 }
  0xf2   : > { %v2738_v27 = vsel %vm7352_vm6, %v2733_v30, %v2737_v35  ;;  %v5794_v50 = vcombine.low %v3140_v32, %v3141_v2  ;;  %v5796_v28 = vcombine.low %v3621_v55, %v3622_v9  ;;  %v3384_v18 = vsel %vm5646_vm8, %v3351_v14, 0  ;;  %vm7362_vm6 = vmmov %vm7354_vm0  ;;  %v1511_v30 = vld [vmem:[#allocation2 + $0x2c] sm:$0xf]  ;;  %v3355_v32 = vld [vmem:[#allocation2 + $0x58] sm:$0xf] }
  0xf3   : > { %2811 = vrot.lane.b32.xlu0 %v2738_v27, %s4776_s19  ;;  %3276 = vrot.lane.b32.xlu1 %v3245_v23, %s4771_s8  ;;  %vm5787_vm7 = vcmp.ge.s32.totalorder %v7356_v0, 1  ;;  %vm7359_vm11 = vcmp.ne.s16.totalorder %v5511_v59, 0  ;;  %v2746_v45 = vsel %vm7360_vm2, %v2741_v8, %v5757_v51  ;;  %v7361_v31 = vrot.slane %v5399_v56, 1  ;;  %v3356_v27 = vld [vmem:[#allocation2 + $0x5c] sm:$0xf]  ;;  %vm7370_vm2 = vmmov %vm7354_vm0 }
  0xf4   : > { %v3387_v60 = vsel %vm7359_vm11, %v3354_v62, 0  ;;  %vm7363_vm9 = vcmp.ne.s16.totalorder %v5504_v57, 0  ;;  %v3386_v54 = vsel %vm5657_vm14, %v3353_v43, 0  ;;  %v3591_v24 = vld [vmem:[#allocation2 + $0x34] sm:$0xf]  ;;  %v7228_v56 = vrot.slane %v5794_v50, 1 }
  0xf5   : > { %v3490_v35 = vsel %vm7362_vm6, %v7361_v31, %v3489_v3  ;;  %v3385_v20 = vsel %vm7363_vm9, %v3352_v41, 0  ;;  %v5813_v14 = vcombine.low %v3386_v54, %v3387_v60  ;;  %v3736_v23 = vrot.slane %v5796_v28, 1  ;;  %v1266_v41 = vld [vmem:[#allocation2 + $0x14] sm:$0xf]  ;;  %v1510_v43 = vld [vmem:[#allocation2 + $0x28] sm:$0xf]  ;;  %vm7372_vm6 = vmmov %vm7354_vm0 }
  0xf6   : > { %v5817_v2 = vcombine.low %v3384_v18, %v3385_v20  ;;  %v3255_v9 = vsel %vm7354_vm0, %v7223_v36, %v3254_v16  ;;  %v3492_v62 = vsel %vm7365_vm15, %v3489_v3, %v7229_v48  ;;  %v3590_v0 = vld [vmem:[#allocation2 + $0x30] sm:$0xf]  ;;  %v1361_v8 = vsel %vm5275_vm12, %v1265_v34, 0  ;;  %v1277_v31 = vld [vmem:[#allocation2 + $0x40] sm:$0xf]  ;;  %vm5861_vm0 = vmpackc.low %vm5787_vm7, %vm5787_vm7 }
  0xf7   : > { %2813 = vrot.lane.b32.xlu0 %v2746_v45, %s4776_s19  ;;  %3521 = vrot.lane.b32.xlu1 %v3490_v35, %s4773_s10  ;;  %v1362_v55 = vsel %vm4903_vm10, %v1266_v41, 0  ;;  %v1543_v18 = vsel %vm4903_vm10, %v1511_v30, 0  ;;  %v3389_v60 = vsel %vm3108_vm5, %v3356_v27, 0  ;;  %vm7366_vm11 = vcmp.ne.s16.totalorder %v5457_v21, 0  ;;  %v3601_v35 = vld [vmem:[#allocation2 + $0x5c] sm:$0xf] }
  0xf8   : > { %7364 = vst [vmem:[#allocation16_spill] sm:$0xff] %v5817_v2  ;;  %v3624_v3 = vsel %vm7366_vm11, %v3591_v24, 0  ;;  %v4384_v45 = vcombine.low %v1361_v8, %v1362_v55  ;;  %v3501_v53 = vrot.slane %v5813_v14, 1  ;;  %v3388_v34 = vsel %vm5691_vm13, %v3355_v32, 0  ;;  %v1278_v30 = vld [vmem:[#allocation2 + $0x44] sm:$0xf] }
  0xf9   : > { %v7367_v20 = vand.u32 15, %v5514_v22  ;;  %v3257_v21 = vsel %vm7370_vm2, %v3254_v16, %v7228_v56  ;;  %v7371_v27 = vrot.slane %v5423_v12, 1  ;;  %v7222_v32 = vrot.slane %v5817_v2, 1  ;;  %v3599_v12 = vld [vmem:[#allocation2 + $0x54] sm:$0xf]  ;;  %v7415_v36 = vld [vmem:[#allocation6_spill] sm:$0xff] }
  0xfa   : > { %v3623_v22 = vsel %vm5604_vm3, %v3590_v0, 0  ;;  %vm7373_vm9 = vcmask 31744   ;;  %v5865_v16 = vcombine.low %v3388_v34, %v3389_v60  ;;  %v1374_v5 = vsel %vm4903_vm10, %v1278_v30, 0  ;;  %v1267_v60 = vld [vmem:[#allocation2 + $0x18] sm:$0xf]  ;;  %v6124_v48 = vld [vmem:[#allocation2 + $0x68] sm:$0xff]  }
  0xfb   : > { %3286 = vrot.lane.b32.xlu0 %v3255_v9, %s4771_s8  ;;  %3523 = vrot.lane.b32.xlu1 %v3492_v62, %s4773_s10  ;;  %vm5842_vm12 = vcmp.ge.s32.totalorder %v7367_v20, 1  ;;  %v3737_v14 = vsel %vm7372_vm6, %v7371_v27, %v3736_v23  ;;  %1488 = vst.msk [vmem:[#allocation3 + $0x10] sm:$0xff] %vm7373_vm9, %v4384_v45  ;;  %v5867_v41 = vcombine.low %v3623_v22, %v3624_v3  ;;  %v3600_v9 = vld [vmem:[#allocation2 + $0x58] sm:$0xf]  ;;  %v1373_v62 = vsel %vm5307_vm1, %v1277_v31, 0  ;;  %vm7380_vm1 = vmmov %vm7370_vm2 }
  0xfc   : > { %v1542_v11 = vsel %vm5861_vm0, %v1510_v43, 0  ;;  %vm7376_vm3 = vcmp.ne.s16.totalorder %v5511_v59, 0  ;;  %v7377_v8 = vand.u32 15, %v5568_v39  ;;  %v4390_v10 = vcombine.low %v1373_v62, %v1374_v5  ;;  %v3598_v31 = vld [vmem:[#allocation2 + $0x50] sm:$0xf]  ;;  %vm7382_vm11 = vmmov %vm7373_vm9 }
  0xfd   : > { %v3634_v0 = vsel %vm7376_vm3, %v3601_v35, 0  ;;  %v3502_v3 = vsel %vm7380_vm1, %v7222_v32, %v3501_v53  ;;  %v4402_v45 = vcombine.low %v1542_v11, %v1543_v18  ;;  %v1268_v34 = vld [vmem:[#allocation2 + $0x1c] sm:$0xf]  ;;  %vm7381_vm15 = vcmp.ne.s16.totalorder %v5504_v57, 0  ;;  %v1279_v57 = vld [vmem:[#allocation2 + $0x48] sm:$0xf]  ;;  %vm7389_vm2 = vmmov %vm7380_vm1 }
  0xfe   : > { %vm5881_vm7 = vcmp.le.s32.totalorder %v7377_v8, 14  ;;  %v3632_v43 = vsel %vm7381_vm15, %v3599_v12, 0  ;;  %v3633_v59 = vsel %vm5657_vm14, %v3600_v9, 0  ;;  %1494 = vst.msk [vmem:[#allocation3 + $0x40] sm:$0xff] %vm7382_vm11, %v4390_v10  ;;  %v1363_v39 = vsel %vm5330_vm4, %v1267_v60, 0  ;;  %vm7384_vm4 = vmmov %vm7373_vm9 }
  0xff   : > { %3288 = vrot.lane.b32.xlu0 %v3257_v21, %s4771_s8  ;;  %3768 = vrot.lane.b32.xlu1 %v3737_v14, %s4775_s15  ;;  %v1364_v35 = vsel %vm4903_vm10, %v1268_v34, 0  ;;  %v7226_v20 = vrot.slane %v5865_v16, 1  ;;  %v7227_v18 = vrot.slane %v5867_v41, 1  ;;  %v5899_v30 = vcombine.low %v3633_v59, %v3634_v0  ;;  %v1280_v27 = vld [vmem:[#allocation2 + $0x4c] sm:$0xf]  ;;  %vm7390_vm6 = vmmov %vm7380_vm1 }
 0x100   : > { %v4385_v21 = vcombine.low %v1363_v39, %v1364_v35  ;;  %v3631_v44 = vsel %vm5646_vm8, %v3598_v31, 0  ;;  %v868_v14 = vadd.s32 184, %v4887_v25  ;;  %v3603_v12 = vld [vmem:[#allocation2 + $0x64] sm:$0xf]  ;;  %v972_v9 = vand.u32 15, %v5576_v13  ;;  %vm2936_vm9 = vmpackc.low %vm5881_vm7, %vm5881_vm7 }
 0x101   : > { %v5906_v22 = vcombine.low %v3631_v44, %v3632_v43  ;;  %vm7385_vm14 = vnez %v7294_v46  ;;  %v1376_v5 = vsel %vm4903_vm10, %v1280_v27, 0  ;;  %v1512_v11 = vld [vmem:[#allocation2 + $0x30] sm:$0xf]  ;;  %v7386_v7 = vand.u32 15, %v5464_v47  ;;  %v3602_v60 = vld [vmem:[#allocation2 + $0x60] sm:$0xf]  ;;  %vm5939_vm3 = vmpackc.low %vm5842_vm12, %vm5842_vm12 }
 0x102   : > { %1489 = vst.msk [vmem:[#allocation3 + $0x18] sm:$0xff] %vm7384_vm4, %v4385_v21  ;;  %v1375_v62 = vsel %vm7385_vm14, %v1279_v57, 0  ;;  %v3504_v13 = vsel %vm7389_vm2, %v3501_v53, %v7226_v20  ;;  %v3739_v46 = vsel %vm7390_vm6, %v3736_v23, %v7227_v18  ;;  %v3748_v10 = vrot.slane %v5899_v30, 1  ;;  %v1523_v23 = vld [vmem:[#allocation2 + $0x5c] sm:$0xf]  ;;  %vm7393_vm1 = vmmov %vm7384_vm4  ;;  %v6117_v20 = vld [vmem:[#allocation2 + $0x60] sm:$0xff]  }
 0x103   : > { %3533 = vrot.lane.b32.xlu0 %v3502_v3, %s4773_s10  ;;  %1654 = vrot.lane.b32.xlu1 %v4402_v45, %s4769_s6  ;;  %7383 = vst [vmem:[#allocation17_spill] sm:$0xff] %v5906_v22  ;;  %vm5916_vm8 = vcmp.ge.s32.totalorder %v7386_v7, 1  ;;  %v4391_v8 = vcombine.low %v1375_v62, %v1376_v5  ;;  %v1545_v47 = vsel %vm4903_vm10, %v1513_v1, 0  ;;  %v1720_v53 = vld [vmem:[#allocation2 + $0x34] sm:$0xf]  ;;  %v3636_v3 = vsel %vm3108_vm5, %v3603_v12, 0  ;;  %vm7397_vm5 = vmmov %vm7389_vm2 }
 0x104   : > { %v1042_v45 = vand.u32 15, %v868_v14  ;;  %v7221_v31 = vrot.slane %v5906_v22, 1  ;;  %v1544_v34 = vsel %vm5939_vm3, %v1512_v11, 0  ;;  %v867_v54 = vadd.s32 176, %v4887_v25  ;;  %v1522_v39 = vld [vmem:[#allocation2 + $0x58] sm:$0xf]  ;;  %vm7405_vm14 = vmmov %vm7389_vm2 }
 0x105   : > { %1495 = vst.msk [vmem:[#allocation3 + $0x48] sm:$0xff] %vm7393_vm1, %v4391_v8  ;;  %vm5950_vm15 = vcmp.le.s32.totalorder %v972_v9, 14  ;;  %v4403_v59 = vcombine.low %v1544_v34, %v1545_v47  ;;  %v1719_v35 = vld [vmem:[#allocation2 + $0x30] sm:$0xf]  ;;  %v3635_v15 = vsel %vm5691_vm13, %v3602_v60, 0  ;;  %v7396_v30 = vmov 0   ;;  %vm5978_vm13 = vmpackc.low %vm5916_vm8, %vm5916_vm8 }
 0x106   : > { %v2968_v21 = vsel %vm2936_vm9, 65537, %v7396_v30  ;;  %v3749_v57 = vsel %vm7397_vm5, %v7221_v31, %v3748_v10  ;;  %v1555_v44 = vsel %vm4903_vm10, %v1523_v23, 0  ;;  %v1752_v1 = vsel %vm4903_vm10, %v1720_v53, 0  ;;  %v1722_v14 = vld [vmem:[#allocation2 + $0x3c] sm:$0xf]  ;;  %vm2938_vm7 = vmpackc.low %vm5950_vm15, %vm5950_vm15  ;;  %v5997_v23 = vld [vmem:[#allocation2 + $0x30] sm:$0xff]  }
 0x107   : > { %3535 = vrot.lane.b32.xlu0 %v3504_v13, %s4773_s10  ;;  %3770 = vrot.lane.b32.xlu1 %v3739_v46, %s4775_s15  ;;  %v5969_v27 = vcombine.low %v3635_v15, %v3636_v3  ;;  %vm5982_vm12 = vcmp.le.s32.totalorder %v1042_v45, 14  ;;  %v1554_v9 = vsel %vm5978_vm13, %v1522_v39, 0  ;;  %v1751_v62 = vsel %vm5861_vm0, %v1719_v35, 0  ;;  %v1721_v0 = vld [vmem:[#allocation2 + $0x38] sm:$0xf]  ;;  %v6029_v12 = vld [vmem:[#allocation2 + $0x30] sm:$0xff]  }
 0x108   : > { %v1035_v5 = vand.u32 15, %v867_v54  ;;  %v4408_v11 = vcombine.low %v1554_v9, %v1555_v44  ;;  %v4418_v7 = vcombine.low %v1751_v62, %v1752_v1  ;;  %v3024_v8 = vrot.slane %v2968_v21, 7  ;;  %v1525_v47 = vld [vmem:[#allocation2 + $0x64] sm:$0xf]  ;;  %vm2948_vm11 = vmpackc.low %vm5982_vm12, %vm5982_vm12  ;;  %v1524_v39 = vld [vmem:[#allocation2 + $0x60] sm:$0xf] }
 0x109   : > { %v7224_v13 = vrot.slane %v5969_v27, 1  ;;  %v1754_v46 = vsel %vm4903_vm10, %v1722_v14, 0  ;;  %v2077_v60 = vshll.u32 %v5971_v63, 16  ;;  %v1753_v53 = vsel %vm5939_vm3, %v1721_v0, 0  ;;  %v1732_v1 = vld [vmem:[#allocation2 + $0x64] sm:$0xf] }
 0x10a   : > { %vm6006_vm4 = vcmp.ge.s32.totalorder %v1035_v5, 1  ;;  %v7404_v45 = vrot.slane %v5252_v40, 7  ;;  %v6013_v54 = vsel %vm2938_vm7, 65537, %v7396_v30  ;;  %v4419_v43 = vcombine.low %v1753_v53, %v1754_v46  ;;  %v7409_v46 = vld [vmem:[#allocation5_spill] sm:$0xff]  ;;  %v2871_v26 = vld [vmem:[#allocation2 + $0x2c] sm:$0xf] }
 0x10b   : > { %3780 = vrot.lane.b32.xlu0 %v3749_v57, %s4775_s15  ;;  %1656 = vrot.lane.b32.xlu1 %v4403_v59, %s4769_s6  ;;  %v6015_v59 = vpop.permute.xlu1 %2169  ;;  %v1557_v35 = vsel %vm4903_vm10, %v1525_v47, 0  ;;  %v6019_v15 = vrot.slane %v3024_v8, 4  ;;  %v6022_v21 = vsel %vm2948_vm11, 65537, %v7396_v30  ;;  %v3751_v40 = vsel %vm7405_vm14, %v3748_v10, %v7224_v13  ;;  %vm6036_vm8 = vmpackc.low %vm6006_vm4, %vm6006_vm4  ;;  %v1731_v53 = vld [vmem:[#allocation2 + $0x60] sm:$0xf]  ;;  %7418 = vst [vmem:[#allocation5_spill] sm:$0xff] %v6124_v48 }
 0x10c   : > { %v3020_v34 = vrot.slane %v7404_v45, 4  ;;  %v2073_v57 = vshrl.u32 %v5433_v58, 16  ;;  %v2079_v44 = vrot.slane %v2077_v60, 1  ;;  %v2085_v14 = vshll.u32 %v5997_v23, 16  ;;  %v6119_v18 = vld [vmem:[#allocation2 + $0x40] sm:$0xff]  }
 0x10d   : > { %vm7408_vm2 = vnez %v7248_v38  ;;  %v7225_v10 = vrot.slane %v6013_v54, 7  ;;  %v6047_v62 = vadd.s32 96, %v4887_v25  ;;  %v1556_v5 = vsel %vm6036_vm8, %v1524_v39, 0  ;;  %v1742_v38 = vld [vmem:[#allocation2 + $0x8c] sm:$0xf] }
 0x10e   : > { %v6043_v58 = vsel %vm7408_vm2, %v4925_v37, %v3024_v8  ;;  %v3022_v0 = vsel %vm7408_vm2, %v3020_v34, %v4914_v33  ;;  %v7410_v47 = vrot.slane %v7409_v46, 7  ;;  %v4409_v60 = vcombine.low %v1556_v5, %v1557_v35  ;;  %v1733_v34 = vld [vmem:[#allocation2 + $0x68] sm:$0xf] }
 0x10f   : > { %1666 = vrot.lane.b32.xlu0 %v4408_v11, %s4769_s6  ;;  %1863 = vrot.lane.b32.xlu1 %v4418_v7, %s4772_s9  ;;  %v2075_v11 = vor.u32 %v2073_v57, %v5540_v19  ;;  %v6052_v7 = vld [vmem:[#allocation2 + $0x58] sm:$0xff]   ;;  %v1764_v3 = vsel %vm4903_vm10, %v1732_v1, 0  ;;  %v2081_v45 = vshrl.u32 %v5971_v63, 16  ;;  %v3060_v19 = vrot.slane %v6022_v21, 7  ;;  %v1734_v57 = vld [vmem:[#allocation2 + $0x6c] sm:$0xf]  ;;  %v6078_v63 = vpop.permute.xlu1 %3270 }
 0x110   : > { %v6059_v8 = vrot.slane %v7410_v47, 4  ;;  %vm7411_vm6 = vsmask.f32 7424  ;;  %v2390_v46 = vshll.u32 %v6029_v12, 16  ;;  %vm3098_vm9 = vcmp.ne.s16.totalorder %v6043_v58, 0  ;;  %v6080_v21 = vld [vmem:[#allocation2 + $0x60] sm:$0xff]  }
 0x111   : > { %v2080_v39 = vsel %vm7411_vm6, %v2075_v11, %v2079_v44  ;;  %v3028_v35 = vsel %vm7408_vm2, %v6019_v15, %v4914_v33  ;;  %vm7237_vm1 = vcmask 97344   ;;  %vm7236_vm15 = vcmask 130144   ;;  %v6082_v1 = vld [vmem:[#allocation2 + $0x38] sm:$0xff]   ;;  %vm7414_vm12 = vmmov %vm7411_vm6 }
 0x112   : > { %v6085_v5 = vrot.slane %v3060_v19, 4  ;;  %v1763_v11 = vsel %vm5978_vm13, %v1731_v53, 0  ;;  %v2083_v15 = vor.u32 %v2081_v45, %v2079_v44  ;;  %v2125_v47 = vshll.u32 %v6052_v7, 16 }
 0x113   : > { %3782 = vrot.lane.b32.xlu0 %v3751_v40, %s4775_s15  ;;  %1865 = vrot.lane.b32.xlu1 %v4419_v43, %s4772_s9  ;;  %v6064_v43 = vld [vmem:[#allocation2 + $0x38] sm:$0xff]   ;;  %v6068_v40 = vrot.slane %v2085_v14, 1  ;;  %v870_v14 = vadd.s32 200, %v4887_v25  ;;  %vm6090_vm5 = vcmp.ne.s16.totalorder %v3022_v0, 0  ;;  %v4424_v31 = vcombine.low %v1763_v11, %v1764_v3  ;;  %v7416_v3 = vld [vmem:[#allocation7_spill] sm:$0xff] }
 0x114   : > { %v1765_v32 = vsel %vm6036_vm8, %v1733_v34, 0  ;;  %v1766_v44 = vsel %vm4903_vm10, %v1734_v57, 0  ;;  %v2398_v53 = vshll.u32 %v6064_v43, 16  ;;  %v4729_v0 = vld [vmem:[%s7188_s1 + $0x10] ss:$0 sps:$4 sm:$0x33]  }
 0x115   : > { %v2088_v45 = vsel %vm7414_vm12, %v2083_v15, %v6068_v40  ;;  %v2386_v13 = vshrl.u32 %v7415_v36, 16  ;;  %vm3921_vm7 = vcmask 1041408   ;;  %v2121_v34 = vshrl.u32 %v7416_v3, 16  ;;  %v7417_v36 = vld [vmem:[#allocation10_spill] sm:$0xff] }
 0x116   : > { %vm7240_vm11 = vcmask 162944   ;;  %v2133_v57 = vshll.u32 %v6080_v21, 16  ;;  %v2703_v11 = vshll.u32 %v6082_v1, 16  ;;  %v3923_v15 = vsel %vm3921_vm7, %v4729_v0, 0  ;;  %4651 = vmatprep.subr.msk.bf16.mxu0 %vm3921_vm7, %v4729_v0  ;;  %4652 = vmatprep.subr.msk.bf16.mxu1 %vm3921_vm7, %v4729_v0 }
 0x117   : > { %1668 = vrot.lane.b32.xlu0 %v4409_v60, %s4769_s6  ;;  %2177 = vrot.lane.b32.xlu1 %v2080_v39, %s4770_s7  ;;  %v6099_v39 = vsel %vm7408_vm2, %v4925_v37, %v7225_v10  ;;  %v2392_v10 = vrot.slane %v2390_v46, 1  ;;  %v2388_v46 = vor.u32 %v2386_v13, %v7417_v36  ;;  %v2127_v56 = vrot.slane %v2125_v47, 1  ;;  %v2870_v36 = vld [vmem:[#allocation2 + $0x28] sm:$0xf] }
 0x118   : > { %v4425_v22 = vcombine.low %v1765_v32, %v1766_v44  ;;  %v6128_v2 = vrot.slane %v2398_v53, 1  ;;  %v2129_v17 = vshrl.u32 %v6052_v7, 16  ;;  %vm3100_vm4 = vcmp.ne.s16.totalorder %v6099_v39, 0  ;;  %4612 = vmatpush3.bf16.msra.mxu0 %v3923_v15  ;;  %4650 = vmatpush3.bf16.msra.mxu1 %v3923_v15  ;;  %v7420_v7 = vld [vmem:[#allocation11_spill] sm:$0xff] }
 0x119   : > { %vm7419_vm14 = vcmask 64544   ;;  %v2393_v13 = vsel %vm7411_vm6, %v2388_v46, %v2392_v10  ;;  %v3058_v32 = vsel %vm7408_vm2, %v6059_v8, %v4914_v33  ;;  %v2705_v47 = vrot.slane %v2703_v11, 1  ;;  %v6152_v8 = vld [vmem:[#allocation2 + $0x68] sm:$0xff]  }
 0x11a   : > { %v2438_v44 = vshll.u32 %v6117_v20, 16  ;;  %vm6154_vm12 = vcmp.ne.s16.totalorder %v3028_v35, 0  ;;  %v2711_v15 = vshll.u32 %v6119_v18, 16  ;;  %v2446_v46 = vshll.u32 %v6124_v48, 16 }
 0x11b   : > { %1875 = vrot.lane.b32.xlu0 %v4424_v31, %s4772_s9  ;;  %2179 = vrot.lane.b32.xlu1 %v2088_v45, %s4770_s7  ;;  %v2394_v31 = vshrl.u32 %v6029_v12, 16  ;;  %v1056_v45 = vand.u32 15, %v870_v14  ;;  %v1649_v3 = vpop.permute.xlu0 %1648  ;;  %v6142_v12 = vsel %vm7408_vm2, %v4925_v37, %v3060_v19  ;;  %v2699_v14 = vshrl.u32 %v7420_v7, 16  ;;  %v7423_v19 = vld [vmem:[#allocation12_spill] sm:$0xff] }
 0x11c   : > { %v1856_v61 = vpop.permute.xlu1 %1855  ;;  %1696 = vst.msk [vmem:[#allocation3 + $0x8] sm:$0xff] %vm7419_vm14, %v1649_v3  ;;  %v3131_v35 = vsel %vm3098_vm9, %v2871_v26, 0  ;;  %vm7426_vm14 = vmmov %vm7411_vm6  ;;  %v2131_v7 = vor.u32 %v2129_v17, %v2127_v56  ;;  %v2440_v48 = vrot.slane %v2438_v44, 1  ;;  %v3130_v26 = vsel %vm6090_vm5, %v2870_v36, 0 }
 0x11d   : > { %1904 = vst.msk [vmem:[#allocation3] sm:$0xff] %vm7237_vm1, %v1856_v61  ;;  %v6148_v61 = vrot.slane %v2133_v57, 1  ;;  %v2396_v0 = vor.u32 %v2394_v31, %v2392_v10  ;;  %vm6160_vm7 = vcmp.le.s32.totalorder %v1056_v45, 14  ;;  %v2707_v45 = vshrl.u32 %v6082_v1, 16  ;;  %vm7430_vm1 = vmmov %vm7411_vm6 }
 0x11e   : > { %2218 = vst.msk [vmem:[#allocation3] sm:$0xff] %vm7236_vm15, %v6015_v59  ;;  %vm2950_vm15 = vmpackc.low %vm6160_vm7, %vm6160_vm7  ;;  %v2442_v17 = vshrl.u32 %v6117_v20, 16  ;;  %v6198_v36 = vrot.slane %v2446_v46, 1  ;;  %v3345_v59 = vld [vmem:[#allocation2 + $0x30] sm:$0xf]  ;;  %vm7434_vm7 = vcmask 130144  }
 0x11f   : > { %1877 = vrot.lane.b32.xlu0 %v4425_v22, %s4772_s9  ;;  %2490 = vrot.lane.b32.xlu1 %v2393_v13, %s4774_s11  ;;  %v2123_v22 = vor.u32 %v2121_v34, %v7423_v19  ;;  %v2401_v10 = vsel %vm7411_vm6, %v2396_v0, %v6128_v2  ;;  %v7427_v34 = vld [vmem:[#allocation9_spill] sm:$0xff]  ;;  %v2873_v13 = vld [vmem:[#allocation2 + $0x34] sm:$0xf]  ;;  %v2701_v19 = vor.u32 %v2699_v14, %v5699_v4  ;;  %v6189_v0 = vrot.slane %v2711_v15, 1  ;;  %vm7431_vm6 = vmmov %vm7430_vm1 }
 0x120   : > { %v6164_v57 = vpop.permute.xlu0 %3272  ;;  %v2434_v31 = vshrl.u32 %v7427_v34, 16  ;;  %v2709_v1 = vor.u32 %v2707_v45, %v2705_v47  ;;  %v6192_v4 = vcombine.low %v3130_v26, %v3131_v35  ;;  %v2136_v44 = vsel %vm7430_vm1, %v2131_v7, %v6148_v61  ;;  %v3346_v34 = vld [vmem:[#allocation2 + $0x34] sm:$0xf]  ;;  %v1269_v45 = vld [vmem:[#allocation2 + $0x20] sm:$0xf] }
 0x121   : > { %v6166_v11 = vpop.permute.xlu1 %3517  ;;  %v2128_v3 = vsel %vm7426_vm14, %v2123_v22, %v2127_v56  ;;  %vm6181_vm14 = vcmp.ne.s16.totalorder %v3058_v32, 0  ;;  %v6194_v56 = vld [vmem:[#allocation2 + $0x70] sm:$0xff]   ;;  %v2706_v15 = vsel %vm7431_vm6, %v2701_v19, %v2705_v47  ;;  %v3133_v35 = vsel %vm3100_vm4, %v2873_v13, 0  ;;  %v1270_v47 = vld [vmem:[#allocation2 + $0x24] sm:$0xf]  ;;  %vm7432_vm6 = vmmov %vm7430_vm1 }
 0x122   : > { %v2436_v20 = vor.u32 %v2434_v31, %v5685_v42  ;;  %v6212_v46 = vsel %vm2950_vm15, 65537, %v7396_v30  ;;  %v2714_v31 = vsel %vm7432_vm6, %v2709_v1, %v6189_v0  ;;  %v3246_v13 = vrot.slane %v6192_v4, 1 }
 0x123   : > { %2189 = vrot.lane.b32.xlu0 %v2128_v3, %s4770_s7  ;;  %2492 = vrot.lane.b32.xlu1 %v2401_v10, %s4774_s11  ;;  %v2751_v3 = vshll.u32 %v6152_v8, 16  ;;  %v2872_v10 = vld [vmem:[#allocation2 + $0x30] sm:$0xf]  ;;  %vm7433_vm15 = vcmask 97344   ;;  %v2444_v1 = vor.u32 %v2442_v17, %v2440_v48  ;;  %v2747_v4 = vshrl.u32 %v5701_v52, 16 }
 0x124   : > { %v2172_v14 = vpop.permute.xlu0 %2171  ;;  %v2441_v42 = vsel %vm7430_vm1, %v2436_v20, %v2440_v48  ;;  %v3132_v7 = vsel %vm6154_vm12, %v2872_v10, 0  ;;  %v2759_v20 = vshll.u32 %v6194_v56, 16  ;;  %v1365_v10 = vsel %vm5861_vm0, %v1269_v45, 0  ;;  %v3348_v45 = vld [vmem:[#allocation2 + $0x3c] sm:$0xf] }
 0x125   : > { %v2483_v32 = vpop.permute.xlu1 %2482  ;;  %v6222_v26 = vcombine.low %v3132_v7, %v3133_v35  ;;  %v2753_v35 = vrot.slane %v2751_v3, 1  ;;  %v2883_v7 = vld [vmem:[#allocation2 + $0x5c] sm:$0xf]  ;;  %v2449_v52 = vsel %vm7430_vm1, %v2444_v1, %v6198_v36  ;;  %v2749_v17 = vor.u32 %v2747_v4, %v5757_v51  ;;  %v1271_v3 = vld [vmem:[#allocation2 + $0x28] sm:$0xf] }
 0x126   : > { %2531 = vst.msk [vmem:[#allocation3] sm:$0xff] %vm7240_vm11, %v2483_v32  ;;  %v3379_v32 = vsel %vm3098_vm9, %v3346_v34, 0  ;;  %v3378_v34 = vsel %vm6090_vm5, %v3345_v59, 0  ;;  %v7435_v59 = vrot.slane %v5717_v6, 1  ;;  %vm7436_vm0 = vcmask 1046528  }
 0x127   : > { %2191 = vrot.lane.b32.xlu0 %v2136_v44, %s4770_s7  ;;  %2803 = vrot.lane.b32.xlu1 %v2706_v15, %s4776_s19  ;;  %v7238_v44 = vrot.slane %v6212_v46, 7  ;;  %v1366_v15 = vsel %vm4903_vm10, %v1270_v47, 0  ;;  %v2882_v47 = vld [vmem:[#allocation2 + $0x58] sm:$0xf]  ;;  %v6242_v24 = vcombine.low %v3378_v34, %v3379_v32  ;;  %v2755_v1 = vshrl.u32 %v6152_v8, 16 }
 0x128   : > { %v1858_v19 = vpop.permute.xlu0 %1857  ;;  %v4386_v48 = vcombine.low %v1365_v10, %v1366_v15  ;;  %v3248_v15 = vrot.slane %v6222_v26, 1  ;;  %vm7437_vm6 = vcmask 31744   ;;  %v3142_v6 = vsel %vm6181_vm14, %v2882_v47, 0  ;;  %v3347_v8 = vld [vmem:[#allocation2 + $0x38] sm:$0xf] }
 0x129   : > { %1905 = vst.msk [vmem:[#allocation3 + $0x8] sm:$0xff] %vm7433_vm15, %v1858_v19  ;;  %v3247_v19 = vsel %vm7436_vm0, %v7435_v59, %v3246_v13  ;;  %v6258_v51 = vsel %vm7408_vm2, %v4925_v37, %v7238_v44  ;;  %vm7438_vm15 = vcmask 64544   ;;  %v3381_v10 = vsel %vm3100_vm4, %v3348_v45, 0  ;;  %v3593_v34 = vld [vmem:[#allocation2 + $0x3c] sm:$0xf] }
 0x12a   : > { %2219 = vst.msk [vmem:[#allocation3 + $0x8] sm:$0xff] %vm7434_vm7, %v2172_v14  ;;  %v3064_v14 = vsel %vm7408_vm2, %v6085_v5, %v4914_v33  ;;  %v6262_v5 = vrot.slane %v2759_v20, 1  ;;  %vm7439_vm7 = vcmp.ne.s16.totalorder %v6142_v12, 0  ;;  %v1367_v20 = vsel %vm5939_vm3, %v1271_v3, 0  ;;  %v1282_v59 = vld [vmem:[#allocation2 + $0x54] sm:$0xf] }
 0x12b   : > { %2502 = vrot.lane.b32.xlu0 %v2441_v42, %s4774_s11  ;;  %2805 = vrot.lane.b32.xlu1 %v2714_v31, %s4776_s19  ;;  %v1272_v42 = vld [vmem:[#allocation2 + $0x2c] sm:$0xf]  ;;  %1490 = vst.msk [vmem:[#allocation3 + $0x20] sm:$0xff] %vm7437_vm6, %v4386_v48  ;;  %v3143_v32 = vsel %vm7439_vm7, %v2883_v7, 0  ;;  %v1281_v48 = vld [vmem:[#allocation2 + $0x50] sm:$0xf]  ;;  %v2754_v47 = vsel %vm7430_vm1, %v2749_v17, %v2753_v35 }
 0x12c   : > { %v1651_v31 = vpop.permute.xlu0 %1650  ;;  %v1368_v4 = vsel %vm4903_vm10, %v1272_v42, 0  ;;  %v3493_v7 = vrot.slane %v6242_v24, 1  ;;  %vm3112_vm0 = vcmp.ne.s16.totalorder %v6258_v51, 0  ;;  %vm7440_vm6 = vcmask 1046528   ;;  %v2884_v3 = vld [vmem:[#allocation2 + $0x60] sm:$0xf] }
 0x12d   : > { %1697 = vst.msk [vmem:[#allocation3 + $0x10] sm:$0xff] %vm7438_vm15, %v1651_v31  ;;  %v2885_v31 = vld [vmem:[#allocation2 + $0x64] sm:$0xf]  ;;  %v4387_v42 = vcombine.low %v1367_v20, %v1368_v4  ;;  %v6282_v45 = vcombine.low %v3142_v6, %v3143_v32  ;;  %v3380_v28 = vsel %vm6154_vm12, %v3347_v8, 0  ;;  %vm6286_vm3 = vcmp.ne.s16.totalorder %v3064_v14, 0 }
 0x12e   : > { %v3592_v24 = vld [vmem:[#allocation2 + $0x38] sm:$0xf]  ;;  %v6291_v4 = vcombine.low %v3380_v28, %v3381_v10  ;;  %v3626_v20 = vsel %vm3098_vm9, %v3593_v34, 0  ;;  %v3358_v44 = vld [vmem:[#allocation2 + $0x64] sm:$0xf]  ;;  %vm7443_vm7 = vcmask 31744   ;;  %v2757_v6 = vor.u32 %v2755_v1, %v2753_v35 }
 0x12f   : > { %2504 = vrot.lane.b32.xlu0 %v2449_v52, %s4774_s11  ;;  %3278 = vrot.lane.b32.xlu1 %v3247_v19, %s4771_s8  ;;  %v1663_v52 = vpop.permute.xlu1 %1662  ;;  %v3249_v19 = vsel %vm7440_vm6, %v3246_v13, %v3248_v15  ;;  %1491 = vst.msk [vmem:[#allocation3 + $0x28] sm:$0xff] %vm7443_vm7, %v4387_v42  ;;  %v1377_v13 = vsel %vm5978_vm13, %v1281_v48, 0  ;;  %v1378_v14 = vsel %vm4903_vm10, %v1282_v59, 0  ;;  %v3145_v32 = vsel %vm3112_vm0, %v2885_v31, 0  ;;  %v3357_v10 = vld [vmem:[#allocation2 + $0x60] sm:$0xf]  ;;  %vm7444_vm13 = vmmov %vm7430_vm1 }
 0x130   : > { %1703 = vst.msk [vmem:[#allocation3 + $0x40] sm:$0xff] %vm7438_vm15, %v1663_v52  ;;  %v4392_v8 = vcombine.low %v1377_v13, %v1378_v14  ;;  %v3625_v58 = vsel %vm6090_vm5, %v3592_v24, 0  ;;  %v965_v34 = vand.u32 15, %v6047_v62  ;;  %v6308_v55 = vadd.s32 112, %v4887_v25  ;;  %vm7446_vm1 = vmmov %vm7443_vm7  ;;  %v1515_v28 = vld [vmem:[#allocation2 + $0x3c] sm:$0xf] }
 0x131   : > { %v3144_v35 = vsel %vm6286_vm3, %v2884_v3, 0  ;;  %v6314_v1 = vcombine.low %v3625_v58, %v3626_v20  ;;  %vm7445_vm9 = vcmp.ne.s16.totalorder %v6142_v12, 0  ;;  %vm7447_vm5 = vmmov %vm7438_vm15  ;;  %v7448_v62 = vrot.slane %v5769_v49, 1  ;;  %v3359_v3 = vld [vmem:[#allocation2 + $0x68] sm:$0xf] }
 0x132   : > { %v3391_v31 = vsel %vm7445_vm9, %v3358_v44, 0  ;;  %1496 = vst.msk [vmem:[#allocation3 + $0x50] sm:$0xff] %vm7446_vm1, %v4392_v8  ;;  %v3258_v42 = vrot.slane %v6282_v45, 1  ;;  %v3495_v59 = vrot.slane %v6291_v4, 1  ;;  %v6325_v52 = vcombine.low %v3144_v35, %v3145_v32  ;;  %v3360_v49 = vld [vmem:[#allocation2 + $0x6c] sm:$0xf]  ;;  %vm7449_vm15 = vmmov %vm7447_vm5 }
 0x133   : > { %2815 = vrot.lane.b32.xlu0 %v2754_v47, %s4776_s19  ;;  %3280 = vrot.lane.b32.xlu1 %v3249_v19, %s4771_s8  ;;  %v1653_v48 = vpop.permute.xlu1 %1652  ;;  %v2762_v47 = vsel %vm7444_vm13, %v2757_v6, %v6262_v5  ;;  %v3494_v60 = vsel %vm7440_vm6, %v7448_v62, %v3493_v7  ;;  %v3390_v44 = vsel %vm6181_vm14, %v3357_v10, 0  ;;  %v3740_v45 = vrot.slane %v6314_v1, 1  ;;  %v3595_v13 = vld [vmem:[#allocation2 + $0x44] sm:$0xf]  ;;  %vm7452_vm13 = vmmov %vm7440_vm6  ;;  %v1283_v35 = vld [vmem:[#allocation2 + $0x58] sm:$0xf] }
 0x134   : > { %1698 = vst.msk [vmem:[#allocation3 + $0x18] sm:$0xff] %vm7447_vm5, %v1653_v48  ;;  %v6331_v19 = vcombine.low %v3390_v44, %v3391_v31  ;;  %v979_v14 = vand.u32 15, %v6308_v55  ;;  %vm7450_vm7 = vcmask 97344   ;;  %v7451_v6 = vrot.slane %v5794_v50, 1  ;;  %vm7453_vm9 = vmmov %vm7440_vm6  ;;  %v3605_v48 = vld [vmem:[#allocation2 + $0x6c] sm:$0xf] }
 0x135   : > { %v3496_v8 = vsel %vm7453_vm9, %v3493_v7, %v3495_v59  ;;  %v3260_v58 = vrot.slane %v6325_v52, 1  ;;  %vm6344_vm1 = vcmp.ge.s32.totalorder %v965_v34, 1  ;;  %v1514_v55 = vld [vmem:[#allocation2 + $0x38] sm:$0xf]  ;;  %v1547_v50 = vsel %vm4903_vm10, %v1515_v28, 0  ;;  %vm7457_vm5 = vmmov %vm7440_vm6 }
 0x136   : > { %v3259_v32 = vsel %vm7452_vm13, %v7451_v6, %v3258_v42  ;;  %v1284_v7 = vld [vmem:[#allocation2 + $0x5c] sm:$0xf]  ;;  %v3505_v31 = vrot.slane %v6331_v19, 1  ;;  %v3392_v34 = vsel %vm6286_vm3, %v3359_v3, 0  ;;  %v3594_v62 = vld [vmem:[#allocation2 + $0x40] sm:$0xf]  ;;  %vm7460_vm13 = vmmov %vm7457_vm5 }
 0x137   : > { %2817 = vrot.lane.b32.xlu0 %v2762_v47, %s4776_s19  ;;  %3525 = vrot.lane.b32.xlu1 %v3494_v60, %s4773_s10  ;;  %v1665_v24 = vpop.permute.xlu0 %1664  ;;  %v1860_v20 = vpop.permute.xlu1 %1859  ;;  %v3393_v47 = vsel %vm3112_vm0, %v3360_v49, 0  ;;  %v3628_v28 = vsel %vm3100_vm4, %v3595_v13, 0  ;;  %v3604_v49 = vld [vmem:[#allocation2 + $0x68] sm:$0xf]  ;;  %vm7458_vm6 = vcmp.ne.s16.totalorder %v6142_v12, 0  ;;  %v3261_v19 = vsel %vm7460_vm13, %v3258_v42, %v3260_v58  ;;  %vm6382_vm4 = vmpackc.low %vm6344_vm1, %vm6344_vm1 }
 0x138   : > { %1704 = vst.msk [vmem:[#allocation3 + $0x48] sm:$0xff] %vm7449_vm15, %v1665_v24  ;;  %v7456_v24 = vrot.slane %v5867_v41, 1  ;;  %v3638_v6 = vsel %vm7458_vm6, %v3605_v48, 0  ;;  %vm7459_vm15 = vmmov %vm7450_vm7  ;;  %v6371_v3 = vcombine.low %v3392_v34, %v3393_v47  ;;  %v1379_v41 = vsel %vm6036_vm8, %v1283_v35, 0  ;;  %v1526_v51 = vld [vmem:[#allocation2 + $0x68] sm:$0xf] }
 0x139   : > { %1906 = vst.msk [vmem:[#allocation3 + $0x10] sm:$0xff] %vm7450_vm7, %v1860_v20  ;;  %v1380_v39 = vsel %vm4903_vm10, %v1284_v7, 0  ;;  %v3627_v42 = vsel %vm6154_vm12, %v3594_v62, 0  ;;  %v869_v9 = vadd.s32 192, %v4887_v25  ;;  %v3637_v48 = vsel %vm6181_vm14, %v3604_v49, 0  ;;  %vm7464_vm12 = vmmov %vm7450_vm7 }
 0x13a   : > { %v3741_v20 = vsel %vm7457_vm5, %v7456_v24, %v3740_v45  ;;  %v4393_v13 = vcombine.low %v1379_v41, %v1380_v39  ;;  %v6395_v7 = vcombine.low %v3637_v48, %v3638_v6  ;;  %vm1307_vm8 = vcmp.ge.s32.totalorder %v979_v14, 1  ;;  %vm7466_vm1 = vmmov %vm7457_vm5  ;;  %v1517_v62 = vld [vmem:[#allocation2 + $0x44] sm:$0xf]  ;;  %v1527_v6 = vld [vmem:[#allocation2 + $0x6c] sm:$0xf] }
 0x13b   : > { %3290 = vrot.lane.b32.xlu0 %v3259_v32, %s4771_s8  ;;  %3527 = vrot.lane.b32.xlu1 %v3496_v8, %s4773_s10  ;;  %v1872_v60 = vpop.permute.xlu0 %1871  ;;  %v1862_v44 = vpop.permute.xlu1 %1861  ;;  %v1546_v32 = vsel %vm6382_vm4, %v1514_v55, 0  ;;  %v6391_v8 = vcombine.low %v3627_v42, %v3628_v28  ;;  %vm7463_vm9 = vcmask 31744   ;;  %v7465_v53 = vrot.slane %v5865_v16, 1  ;;  %v1516_v16 = vld [vmem:[#allocation2 + $0x40] sm:$0xf]  ;;  %vm7469_vm13 = vmmov %vm7466_vm1 }
 0x13c   : > { %1912 = vst.msk [vmem:[#allocation3 + $0x40] sm:$0xff] %vm7459_vm15, %v1872_v60  ;;  %v4404_v35 = vcombine.low %v1546_v32, %v1547_v50  ;;  %v3507_v55 = vrot.slane %v6371_v3, 1  ;;  %vm7239_vm14 = vcmask 195744   ;;  %v1049_v22 = vand.u32 15, %v869_v9  ;;  %v3606_v50 = vld [vmem:[#allocation2 + $0x70] sm:$0xf]  ;;  %vm6406_vm15 = vmpackc.low %vm1307_vm8, %vm1307_vm8 }
 0x13d   : > { %1907 = vst.msk [vmem:[#allocation3 + $0x18] sm:$0xff] %vm7450_vm7, %v1862_v44  ;;  %v3506_v34 = vsel %vm7466_vm1, %v7465_v53, %v3505_v31  ;;  %v3607_v60 = vld [vmem:[#allocation2 + $0x74] sm:$0xf]  ;;  %vm3318_vm5 = vcmask 228544   ;;  %vm3565_vm6 = vcmask 261344   ;;  %v3742_v14 = vrot.slane %v6391_v8, 1  ;;  %vm7470_vm8 = vmmov %vm7466_vm1 }
 0x13e   : > { %1497 = vst.msk [vmem:[#allocation3 + $0x58] sm:$0xff] %vm7463_vm9, %v4393_v13  ;;  %vm3812_vm7 = vcmask 294144   ;;  %v3752_v28 = vrot.slane %v6395_v7, 1  ;;  %v1549_v49 = vsel %vm4903_vm10, %v1517_v62, 0  ;;  %v3508_v41 = vsel %vm7469_vm13, %v3505_v31, %v3507_v55  ;;  %v1724_v42 = vld [vmem:[#allocation2 + $0x44] sm:$0xf] }
 0x13f   : > { %3292 = vrot.lane.b32.xlu0 %v3261_v19, %s4771_s8  ;;  %3772 = vrot.lane.b32.xlu1 %v3741_v20, %s4775_s15  ;;  %v1874_v10 = vpop.permute.xlu0 %1873  ;;  %v3765_v47 = vpop.permute.xlu1 %3764  ;;  %v871_v19 = vadd.s32 208, %v4887_v25  ;;  %v3743_v39 = vsel %vm7470_vm8, %v3740_v45, %v3742_v14  ;;  %v3639_v9 = vsel %vm6286_vm3, %v3606_v50, 0  ;;  %v3640_v13 = vsel %vm3112_vm0, %v3607_v60, 0  ;;  %v1726_v53 = vld [vmem:[#allocation2 + $0x4c] sm:$0xf]  ;;  %v6450_v62 = vld [vmem:[#allocation2 + $0x38] sm:$0xff]   ;;  %vm7475_vm3 = vmmov %vm7466_vm1 }
 0x140   : > { %1913 = vst.msk [vmem:[#allocation3 + $0x48] sm:$0xff] %vm7464_vm12, %v1874_v10  ;;  %v1548_v31 = vsel %vm6406_vm15, %v1516_v16, 0  ;;  %vm6435_vm9 = vcmp.ge.s32.totalorder %v1049_v22, 1  ;;  %v1559_v45 = vsel %vm4903_vm10, %v1527_v6, 0  ;;  %v1756_v10 = vsel %vm4903_vm10, %v1724_v42, 0 }
 0x141   : > { %v4405_v17 = vcombine.low %v1548_v31, %v1549_v49  ;;  %vm7473_vm0 = vcmask 130144   ;;  %vm6462_vm12 = vmpackc.low %vm6435_vm9, %vm6435_vm9  ;;  %v1725_v60 = vld [vmem:[#allocation2 + $0x48] sm:$0xf]  ;;  %v875_v16 = vadd.s32 240, %v4887_v25  ;;  %v1273_v49 = vld [vmem:[#allocation2 + $0x30] sm:$0xf] }
 0x142   : > { %v1274_v6 = vld [vmem:[#allocation2 + $0x34] sm:$0xf]  ;;  %vm3872_vm1 = vcmask 293888   ;;  %v1275_v42 = vld [vmem:[#allocation2 + $0x38] sm:$0xf]  ;;  %vm7480_vm8 = vmmov %vm7473_vm0 }
 0x143   : > { %3537 = vrot.lane.b32.xlu0 %v3506_v34, %s4773_s10  ;;  %1658 = vrot.lane.b32.xlu1 %v4404_v35, %s4769_s6  ;;  %v6410_v24 = vpop.permute.xlu0 %3519  ;;  %v2796_v20 = vpop.permute.xlu1 %2795  ;;  %v6448_v35 = vcombine.low %v3639_v9, %v3640_v13  ;;  %v1063_v34 = vand.u32 15, %v871_v19  ;;  %v1276_v9 = vld [vmem:[#allocation2 + $0x3c] sm:$0xf]  ;;  %v1371_v12 = vsel %vm6406_vm15, %v1275_v42, 0  ;;  %v2089_v42 = vshrl.u32 %v5997_v23, 16 }
 0x144   : > { %2844 = vst.msk [vmem:[#allocation3] sm:$0xff] %vm7239_vm14, %v2796_v20  ;;  %v1558_v20 = vsel %vm6462_vm12, %v1526_v51, 0  ;;  %v1529_v51 = vld [vmem:[#allocation2 + $0x74] sm:$0xf]  ;;  %v1289_v50 = vld [vmem:[#allocation2 + $0x70] sm:$0xf] }
 0x145   : > { %3319 = vst.msk [vmem:[#allocation3] sm:$0xff] %vm3318_vm5, %v6078_v63  ;;  %v1723_v63 = vld [vmem:[#allocation2 + $0x40] sm:$0xf]  ;;  %v4410_v19 = vcombine.low %v1558_v20, %v1559_v45  ;;  %v3754_v1 = vrot.slane %v6448_v35, 1  ;;  %vm6476_vm13 = vcmp.ge.s32.totalorder %v1063_v34, 1  ;;  %v1091_v45 = vand.u32 15, %v875_v16 }
 0x146   : > { %3566 = vst.msk [vmem:[#allocation3] sm:$0xff] %vm3565_vm6, %v6166_v11  ;;  %v873_v11 = vadd.s32 224, %v4887_v25  ;;  %v1372_v34 = vsel %vm4903_vm10, %v1276_v9, 0  ;;  %v1285_v16 = vld [vmem:[#allocation2 + $0x60] sm:$0xf] }
 0x147   : > { %3539 = vrot.lane.b32.xlu0 %v3508_v41, %s4773_s10  ;;  %3774 = vrot.lane.b32.xlu1 %v3743_v39, %s4775_s15  ;;  %3813 = vst.msk [vmem:[#allocation3] sm:$0xff] %vm3812_vm7, %v3765_v47  ;;  %v6444_v32 = vpop.permute.xlu0 %3766  ;;  %v2174_v48 = vpop.permute.xlu1 %2173  ;;  %v7474_v47 = vrot.slane %v5969_v27, 1  ;;  %v1755_v27 = vsel %vm6382_vm4, %v1723_v63, 0  ;;  %v1758_v39 = vsel %vm4903_vm10, %v1726_v53, 0  ;;  %v2093_v63 = vshll.u32 %v6450_v62, 16 }
 0x148   : > { %2220 = vst.msk [vmem:[#allocation3 + $0x10] sm:$0xff] %vm7473_vm0, %v2174_v48  ;;  %v4420_v41 = vcombine.low %v1755_v27, %v1756_v10  ;;  %v1077_v48 = vand.u32 15, %v873_v11  ;;  %v1369_v10 = vsel %vm6382_vm4, %v1273_v49, 0  ;;  %v1370_v53 = vsel %vm4903_vm10, %v1274_v6, 0  ;;  %v6495_v6 = vld [vmem:[#allocation2 + $0x70] sm:$0xf]  ;;  %vm7481_vm4 = vmmov %vm7475_vm3 }
 0x149   : > { %v3753_v22 = vsel %vm7475_vm3, %v7474_v47, %v3752_v28  ;;  %v1286_v47 = vld [vmem:[#allocation2 + $0x64] sm:$0xf]  ;;  %v1757_v11 = vsel %vm6406_vm15, %v1725_v60, 0  ;;  %v4388_v20 = vcombine.low %v1369_v10, %v1370_v53  ;;  %v3755_v44 = vsel %vm7481_vm4, %v3752_v28, %v3754_v1  ;;  %vm6508_vm15 = vmpackc.low %vm6476_vm13, %vm6476_vm13  ;;  %v1287_v53 = vld [vmem:[#allocation2 + $0x68] sm:$0xf] }
 0x14a   : > { %v4421_v49 = vcombine.low %v1757_v11, %v1758_v39  ;;  %v1382_v9 = vsel %vm4903_vm10, %v1286_v47, 0  ;;  %v1561_v39 = vsel %vm4903_vm10, %v1529_v51, 0  ;;  %vm6515_vm9 = vcmp.ge.s32.totalorder %v1077_v48, 1  ;;  %v1288_v51 = vld [vmem:[#allocation2 + $0x6c] sm:$0xf]  ;;  %v6538_v48 = vld [vmem:[#allocation2 + $0x40] sm:$0xff]  }
 0x14b   : > { %3784 = vrot.lane.b32.xlu0 %v3753_v22, %s4775_s15  ;;  %1660 = vrot.lane.b32.xlu1 %v4405_v17, %s4769_s6  ;;  %v2485_v13 = vpop.permute.xlu0 %2484  ;;  %v2176_v31 = vpop.permute.xlu1 %2175  ;;  %v1528_v22 = vld [vmem:[#allocation2 + $0x70] sm:$0xf]  ;;  %vm7486_vm0 = vcmask 31744   ;;  %v2095_v28 = vrot.slane %v2093_v63, 1  ;;  %vm6524_vm3 = vcmp.ge.s32.totalorder %v1091_v45, 1  ;;  %v1381_v23 = vsel %vm6462_vm12, %v1285_v16, 0 }
 0x14c   : > { %2532 = vst.msk [vmem:[#allocation3 + $0x8] sm:$0xff] %vm7240_vm11, %v2485_v13  ;;  %v4389_v13 = vcombine.low %v1371_v12, %v1372_v34  ;;  %v1560_v7 = vsel %vm6508_vm15, %v1528_v22, 0  ;;  %vm7489_vm13 = vmmov %vm7486_vm0  ;;  %v1767_v63 = vsel %vm6462_vm12, %v6495_v6, 0  ;;  %v4394_v45 = vcombine.low %v1381_v23, %v1382_v9  ;;  %v1290_v22 = vld [vmem:[#allocation2 + $0x74] sm:$0xf] }
 0x14d   : > { %2221 = vst.msk [vmem:[#allocation3 + $0x18] sm:$0xff] %vm7480_vm8, %v2176_v31  ;;  %v1736_v31 = vld [vmem:[#allocation2 + $0x74] sm:$0xf]  ;;  %v2091_v34 = vor.u32 %v2089_v42, %v6068_v40  ;;  %v2097_v47 = vshrl.u32 %v6450_v62, 16  ;;  %vm6548_vm8 = vmpackc.low %vm6515_vm9, %vm6515_vm9  ;;  %v4411_v12 = vcombine.low %v1560_v7, %v1561_v39  ;;  %v1384_v16 = vsel %vm4903_vm10, %v1288_v51, 0 }
 0x14e   : > { %v3829_v27 = vld [vmem:[#allocation3] sm:$0xff]  ;;  %1492 = vst.msk [vmem:[#allocation3 + $0x30] sm:$0xff] %vm7486_vm0, %v4388_v20  ;;  %v1768_v40 = vsel %vm4903_vm10, %v1736_v31, 0  ;;  %vm6559_vm12 = vmpackc.low %vm6524_vm3, %vm6524_vm3  ;;  %vm7495_vm9 = vcmask 130144   ;;  %v2402_v9 = vshrl.u32 %v6064_v43, 16  ;;  %v2406_v39 = vshll.u32 %v6538_v48, 16 }
 0x14f   : > { %1670 = vrot.lane.b32.xlu0 %v4410_v19, %s4769_s6  ;;  %1867 = vrot.lane.b32.xlu1 %v4420_v41, %s4772_s9  ;;  %v2798_v19 = vpop.permute.xlu0 %2797  ;;  %v2487_v41 = vpop.permute.xlu1 %2486  ;;  %1493 = vst.msk [vmem:[#allocation3 + $0x38] sm:$0xff] %vm7489_vm13, %v4389_v13  ;;  %vm7494_vm4 = vmmov %vm7486_vm0  ;;  %vm7496_vm0 = vsmask.f32 7424  ;;  %v2099_v6 = vor.u32 %v2097_v47, %v2095_v28  ;;  %v1737_v13 = vld [vmem:[#allocation2 + $0x78] sm:$0xf]  ;;  %v874_v42 = vadd.s32 232, %v4887_v25 }
 0x150   : > { %4613 = vmatprep.mubr.msk.bf16.mxu0 %vm3872_vm1, %v3829_v27  ;;  %2845 = vst.msk [vmem:[#allocation3 + $0x8] sm:$0xff] %vm7239_vm14, %v2798_v19  ;;  %v1291_v27 = vld [vmem:[#allocation2 + $0x78] sm:$0xf]  ;;  %v6570_v19 = vld [vmem:[#allocation2 + $0x68] sm:$0xff]   ;;  %v1385_v10 = vsel %vm6548_vm8, %v1289_v50, 0  ;;  %v1386_v43 = vsel %vm4903_vm10, %v1290_v22, 0  ;;  %vm7497_vm3 = vmmov %vm7494_vm4 }
 0x151   : > { %2533 = vst.msk [vmem:[#allocation3 + $0x10] sm:$0xff] %vm7240_vm11, %v2487_v41  ;;  %v1383_v41 = vsel %vm6508_vm15, %v1287_v53, 0  ;;  %v1769_v53 = vsel %vm6508_vm15, %v1737_v13, 0  ;;  %v4396_v47 = vcombine.low %v1385_v10, %v1386_v43  ;;  %vm7498_vm13 = vmmov %vm7495_vm9  ;;  %v7499_v50 = vld [vmem:[#allocation8_spill] sm:$0xff]  ;;  %v2141_v60 = vshll.u32 %v6570_v19, 16 }
 0x152   : > { %3320 = vst.msk [vmem:[#allocation3 + $0x8] sm:$0xff] %vm3318_vm5, %v6164_v57  ;;  %v872_v57 = vadd.s32 216, %v4887_v25  ;;  %v4395_v31 = vcombine.low %v1383_v41, %v1384_v16  ;;  %vm7502_vm15 = vmmov %vm7497_vm3  ;;  %v3363_v4 = vld [vmem:[#allocation2 + $0x78] sm:$0xf] }
 0x153   : > { %3786 = vrot.lane.b32.xlu0 %v3755_v44, %s4775_s15  ;;  %1869 = vrot.lane.b32.xlu1 %v4421_v49, %s4772_s9  ;;  %3567 = vst.msk [vmem:[#allocation3 + $0x8] sm:$0xff] %vm3565_vm6, %v6410_v24  ;;  %v2186_v20 = vpop.permute.xlu0 %2185  ;;  %v2489_v24 = vpop.permute.xlu1 %2488  ;;  %v2096_v49 = vsel %vm7496_vm0, %v2091_v34, %v2095_v28  ;;  %v1738_v44 = vld [vmem:[#allocation2 + $0x7c] sm:$0xf]  ;;  %v1387_v28 = vsel %vm6559_vm12, %v1291_v27, 0  ;;  %v6588_v34 = vld [vmem:[#allocation2 + $0x70] sm:$0xff]   ;;  %v2408_v27 = vrot.slane %v2406_v39, 1 }
 0x154   : > { %3814 = vst.msk [vmem:[#allocation3 + $0x8] sm:$0xff] %vm3812_vm7, %v6444_v32  ;;  %v1292_v32 = vld [vmem:[#allocation2 + $0x7c] sm:$0xf]  ;;  %v1070_v7 = vand.u32 15, %v872_v57  ;;  %v2149_v41 = vshll.u32 %v6588_v34, 16  ;;  %v2143_v10 = vrot.slane %v2141_v60, 1 }
 0x155   : > { %1498 = vst.msk [vmem:[#allocation3 + $0x60] sm:$0xff] %vm7494_vm4, %v4394_v45  ;;  %v1388_v17 = vsel %vm4903_vm10, %v1292_v32, 0  ;;  %v4426_v45 = vcombine.low %v1767_v63, %v1768_v40  ;;  %vm7500_vm4 = vmmov %vm7496_vm0  ;;  %v2404_v63 = vor.u32 %v2402_v9, %v6128_v2  ;;  %v6607_v32 = vld [vmem:[#allocation2 + $0x70] sm:$0xff]   ;;  %v6652_v60 = vld [vmem:[#allocation2 + $0x78] sm:$0xff]   ;;  %v2153_v11 = vshrl.u32 %v6588_v34, 16 }
 0x156   : > { %2226 = vst.msk [vmem:[#allocation3 + $0x40] sm:$0xff] %vm7495_vm9, %v2186_v20  ;;  %v4397_v57 = vcombine.low %v1387_v28, %v1388_v17  ;;  %v2104_v22 = vsel %vm7500_vm4, %v2099_v6, %v7499_v50  ;;  %v1770_v20 = vsel %vm4903_vm10, %v1738_v44, 0  ;;  %vm7503_vm9 = vmmov %vm7497_vm3  ;;  %vm6609_vm0 = vcmp.le.s32.totalorder %v1070_v7, 14  ;;  %v7506_v44 = vld [vmem:[#allocation4_spill] sm:$0xff]  ;;  %v7515_v2 = vld [vmem:[#allocation5_spill] sm:$0xff] }
 0x157   : > { %2534 = vst.msk [vmem:[#allocation3 + $0x18] sm:$0xff] %vm7240_vm11, %v2489_v24  ;;  %1672 = vrot.lane.b32.xlu0 %v4411_v12, %s4769_s6  ;;  %2181 = vrot.lane.b32.xlu1 %v2096_v49, %s4770_s7  ;;  %v2188_v23 = vpop.permute.xlu0 %2187  ;;  %v6599_v24 = vld [vmem:[#allocation2 + $0x48] sm:$0xff]   ;;  %v7501_v12 = vrot.slane %v6013_v54, 7  ;;  %v1084_v49 = vand.u32 15, %v874_v42  ;;  %v4427_v9 = vcombine.low %v1769_v53, %v1770_v20  ;;  %v2137_v54 = vshrl.u32 %v6080_v21, 16 }
 0x158   : > { %v2800_v51 = vpop.permute.xlu1 %2799  ;;  %1499 = vst.msk [vmem:[#allocation3 + $0x68] sm:$0xff] %vm7497_vm3, %v4395_v31  ;;  %v7507_v31 = vrot.slane %v7506_v44, 7  ;;  %vm7508_vm3 = vmmov %vm7500_vm4  ;;  %v2410_v7 = vshrl.u32 %v6538_v48, 16  ;;  %v2719_v21 = vshll.u32 %v6599_v24, 16  ;;  %v2875_v48 = vld [vmem:[#allocation2 + $0x3c] sm:$0xf] }
 0x159   : > { %2227 = vst.msk [vmem:[#allocation3 + $0x48] sm:$0xff] %vm7498_vm13, %v2188_v23  ;;  %v3032_v40 = vrot.slane %v7501_v12, 4  ;;  %v2409_v42 = vsel %vm7508_vm3, %v2404_v63, %v2408_v27  ;;  %vm2952_vm13 = vmpackc.low %vm6609_vm0, %vm6609_vm0  ;;  %v2139_v28 = vor.u32 %v2137_v54, %v6148_v61  ;;  %v2454_v23 = vshll.u32 %v6607_v32, 16  ;;  %v2874_v12 = vld [vmem:[#allocation2 + $0x38] sm:$0xf] }
 0x15a   : > { %2846 = vst.msk [vmem:[#allocation3 + $0x10] sm:$0xff] %vm7239_vm14, %v2800_v51  ;;  %v6621_v39 = vsel %vm7408_vm2, %v4925_v37, %v7507_v31  ;;  %v2412_v17 = vor.u32 %v2410_v7, %v2408_v27  ;;  %vm6638_vm4 = vcmp.le.s32.totalorder %v1084_v49, 14  ;;  %v2715_v50 = vshrl.u32 %v6119_v18, 16 }
 0x15b   : > { %1879 = vrot.lane.b32.xlu0 %v4426_v45, %s4772_s9  ;;  %2183 = vrot.lane.b32.xlu1 %v2104_v22, %s4770_s7  ;;  %1500 = vst.msk [vmem:[#allocation3 + $0x70] sm:$0xff] %vm7502_vm15, %v4396_v47  ;;  %v3830_v16 = vld [vmem:[#allocation3 + $0x8] sm:$0xff]  ;;  %v2499_v6 = vpop.permute.xlu0 %2498  ;;  %v3034_v43 = vsel %vm7408_vm2, %v3032_v40, %v4914_v33  ;;  %v2145_v47 = vshrl.u32 %v6570_v19, 16  ;;  %vm3102_vm15 = vcmp.ne.s16.totalorder %v6621_v39, 0  ;;  %v2721_v63 = vrot.slane %v2719_v21, 1 }
 0x15c   : > { %1501 = vst.msk [vmem:[#allocation3 + $0x78] sm:$0xff] %vm7503_vm9, %v4397_v57  ;;  %v2802_v13 = vpop.permute.xlu1 %2801  ;;  %4614 = vmatmul.mubr.msk.bf16.vlgmr.msra.gmra.mrb[0].mxu0 %vm3872_vm1, %v3830_v16  ;;  %v6643_v57 = vrot.slane %v2149_v41, 1  ;;  %vm7511_vm9 = vmmov %vm7508_vm3  ;;  %v7512_v22 = vld [vmem:[#allocation13_spill] sm:$0xff]  ;;  %v2984_v18 = vsel %vm2952_vm13, 65537, %v7396_v30  ;;  %v3135_v16 = vsel %vm3102_vm15, %v2875_v48, 0  ;;  %v2717_v27 = vor.u32 %v2715_v50, %v6189_v0 }
 0x15d   : > { %2539 = vst.msk [vmem:[#allocation3 + $0x40] sm:$0xff] %vm7240_vm11, %v2499_v6  ;;  %v2144_v61 = vsel %vm7511_vm9, %v2139_v28, %v2143_v10  ;;  %v2417_v20 = vsel %vm7508_vm3, %v2412_v17, %v7512_v22  ;;  %v2147_v19 = vor.u32 %v2145_v47, %v2143_v10  ;;  %vm6662_vm9 = vcmp.ne.s16.totalorder %v3034_v43, 0  ;;  %vm2954_vm3 = vmpackc.low %vm6638_vm4, %vm6638_vm4  ;;  %v6703_v50 = vld [vmem:[#allocation2 + $0x80] sm:$0xff]  }
 0x15e   : > { %2847 = vst.msk [vmem:[#allocation3 + $0x18] sm:$0xff] %vm7239_vm14, %v2802_v13  ;;  %v2450_v49 = vshrl.u32 %v7515_v2, 16  ;;  %v2456_v6 = vrot.slane %v2454_v23, 1  ;;  %v2723_v13 = vshrl.u32 %v6599_v24, 16  ;;  %vm7516_vm0 = vsmask.f32 7424 }
 0x15f   : > { %1881 = vrot.lane.b32.xlu0 %v4427_v9, %s4772_s9  ;;  %2494 = vrot.lane.b32.xlu1 %v2409_v42, %s4774_s11  ;;  %v2501_v45 = vpop.permute.xlu0 %2500  ;;  %v6674_v9 = vld [vmem:[#allocation2 + $0x78] sm:$0xff]   ;;  %v2152_v44 = vsel %vm7516_vm0, %v2147_v19, %v6643_v57  ;;  %v2458_v31 = vshrl.u32 %v6607_v32, 16  ;;  %v3134_v42 = vsel %vm6662_vm9, %v2874_v12, 0  ;;  %v3072_v10 = vrot.slane %v2984_v18, 7  ;;  %vm7517_vm13 = vmmov %vm7516_vm0  ;;  %v3349_v18 = vld [vmem:[#allocation2 + $0x40] sm:$0xf] }
 0x160   : > { %2540 = vst.msk [vmem:[#allocation3 + $0x48] sm:$0xff] %vm7240_vm11, %v2501_v45  ;;  %v2722_v0 = vsel %vm7517_vm13, %v2717_v27, %v2721_v63  ;;  %v2462_v24 = vshll.u32 %v6652_v60, 16  ;;  %v6685_v7 = vcombine.low %v3134_v42, %v3135_v16  ;;  %v6693_v32 = vsel %vm2954_vm3, 65537, %v7396_v30  ;;  %v3350_v45 = vld [vmem:[#allocation2 + $0x44] sm:$0xf]  ;;  %vm7519_vm4 = vmmov %vm7516_vm0 }
 0x161   : > { %v3275_v53 = vpop.permute.xlu1 %3274  ;;  %v2452_v21 = vor.u32 %v2450_v49, %v6198_v36  ;;  %v7518_v43 = vrot.slane %v6212_v46, 7  ;;  %v2725_v17 = vor.u32 %v2723_v13, %v2721_v63  ;;  %v2763_v23 = vshrl.u32 %v6194_v56, 16  ;;  %v7520_v56 = vld [vmem:[#allocation14_spill] sm:$0xff]  ;;  %vm7521_vm3 = vmmov %vm7516_vm0 }
 0x162   : > { %3321 = vst.msk [vmem:[#allocation3 + $0x10] sm:$0xff] %vm3318_vm5, %v3275_v53  ;;  %v2767_v48 = vshll.u32 %v6674_v9, 16  ;;  %v3074_v36 = vrot.slane %v3072_v10, 4  ;;  %v3078_v46 = vrot.slane %v6693_v32, 7  ;;  %v6715_v63 = vrot.slane %v2462_v24, 1  ;;  %vm7522_vm13 = vmmov %vm7521_vm3 }
 0x163   : > { %2193 = vrot.lane.b32.xlu0 %v2144_v61, %s4770_s7  ;;  %2496 = vrot.lane.b32.xlu1 %v2417_v20, %s4774_s11  ;;  %v3068_v28 = vrot.slane %v7518_v43, 4  ;;  %v2457_v47 = vsel %vm7519_vm4, %v2452_v21, %v2456_v6  ;;  %v6708_v61 = vsel %vm7408_vm2, %v4925_v37, %v3072_v10  ;;  %v2730_v22 = vsel %vm7521_vm3, %v2725_v17, %v7520_v56  ;;  %v3597_v21 = vld [vmem:[#allocation2 + $0x4c] sm:$0xf]  ;;  %v2888_v43 = vld [vmem:[#allocation2 + $0x70] sm:$0xf] }
 0x164   : > { %v2460_v20 = vor.u32 %v2458_v31, %v2456_v6  ;;  %v3250_v12 = vrot.slane %v6685_v7, 1  ;;  %v3383_v19 = vsel %vm3102_vm15, %v3350_v45, 0  ;;  %v2765_v27 = vor.u32 %v2763_v23, %v6262_v5  ;;  %v2887_v6 = vld [vmem:[#allocation2 + $0x6c] sm:$0xf] }
 0x165   : > { %v2812_v54 = vpop.permute.xlu0 %2811  ;;  %v3277_v41 = vpop.permute.xlu1 %3276  ;;  %v3070_v16 = vsel %vm7408_vm2, %v3068_v28, %v4914_v33  ;;  %v2769_v2 = vrot.slane %v2767_v48, 1  ;;  %v2771_v49 = vshrl.u32 %v6674_v9, 16  ;;  %vm3114_vm0 = vcmp.ne.s16.totalorder %v6708_v61, 0  ;;  %v2889_v28 = vld [vmem:[#allocation2 + $0x74] sm:$0xf] }
 0x166   : > { %2852 = vst.msk [vmem:[#allocation3 + $0x40] sm:$0xff] %vm7239_vm14, %v2812_v54  ;;  %v3076_v31 = vsel %vm7408_vm2, %v3074_v36, %v4914_v33  ;;  %v6739_v5 = vsel %vm7408_vm2, %v4925_v37, %v3078_v46  ;;  %v2465_v9 = vsel %vm7522_vm13, %v2460_v20, %v6715_v63  ;;  %vm7523_vm4 = vcmask 1046528  }
 0x167   : > { %3322 = vst.msk [vmem:[#allocation3 + $0x18] sm:$0xff] %vm3318_vm5, %v3277_v41  ;;  %2195 = vrot.lane.b32.xlu0 %v2152_v44, %s4770_s7  ;;  %2807 = vrot.lane.b32.xlu1 %v2722_v0, %s4776_s19  ;;  %v2775_v41 = vshll.u32 %v6703_v50, 16  ;;  %v3382_v44 = vsel %vm6662_vm9, %v3349_v18, 0  ;;  %v3251_v42 = vsel %vm7523_vm4, %v3248_v15, %v3250_v12  ;;  %v2886_v0 = vld [vmem:[#allocation2 + $0x68] sm:$0xf]  ;;  %vm6748_vm3 = vcmp.ne.s16.totalorder %v3070_v16, 0 }
 0x168   : > { %v4505_v10 = vcombine.low %v3382_v44, %v3383_v19  ;;  %v3147_v7 = vsel %vm3114_vm0, %v2887_v6, 0  ;;  %vm6756_vm13 = vcmp.ne.s16.totalorder %v3076_v31, 0  ;;  %vm3116_vm4 = vcmp.ne.s16.totalorder %v6739_v5, 0 }
 0x169   : > { %v2814_v53 = vpop.permute.xlu0 %2813  ;;  %v3522_v51 = vpop.permute.xlu1 %3521  ;;  %v2773_v48 = vor.u32 %v2771_v49, %v2769_v2  ;;  %v6762_v45 = vrot.slane %v2775_v41, 1  ;;  %vm7531_vm11 = vcmask 1046528   ;;  %v3630_v18 = vsel %vm3102_vm15, %v3597_v21, 0 }
 0x16a   : > { %2853 = vst.msk [vmem:[#allocation3 + $0x48] sm:$0xff] %vm7239_vm14, %v2814_v53  ;;  %vm7528_vm14 = vsmask.f32 7424  ;;  %v3146_v53 = vsel %vm6748_vm3, %v2886_v0, 0  ;;  %v3148_v19 = vsel %vm6756_vm13, %v2888_v43, 0  ;;  %v3149_v16 = vsel %vm3116_vm4, %v2889_v28, 0 }
 0x16b   : > { %3568 = vst.msk [vmem:[#allocation3 + $0x10] sm:$0xff] %vm3565_vm6, %v3522_v51  ;;  %2506 = vrot.lane.b32.xlu0 %v2457_v47, %s4774_s11  ;;  %2809 = vrot.lane.b32.xlu1 %v2730_v22, %s4776_s19  ;;  %v2770_v23 = vsel %vm7528_vm14, %v2765_v27, %v2769_v2  ;;  %v3596_v51 = vld [vmem:[#allocation2 + $0x48] sm:$0xf]  ;;  %v7529_v47 = vld [vmem:[#allocation15_spill] sm:$0xff]  ;;  %v3497_v22 = vrot.slane %v4505_v10, 1  ;;  %v4494_v20 = vcombine.low %v3146_v53, %v3147_v7  ;;  %v876_v49 = vadd.s32 248, %v4887_v25 }
 0x16c   : > { %v7530_v36 = vrot.slane %v7529_v47, 1  ;;  %v3361_v27 = vld [vmem:[#allocation2 + $0x70] sm:$0xf]  ;;  %v3362_v2 = vld [vmem:[#allocation2 + $0x74] sm:$0xf]  ;;  %vm7534_vm15 = vcmask 64544   ;;  %v6791_v40 = vcombine.low %v3148_v19, %v3149_v16 }
 0x16d   : > { %v3287_v13 = vpop.permute.xlu0 %3286  ;;  %v3524_v54 = vpop.permute.xlu1 %3523  ;;  %v3262_v44 = vrot.slane %v4494_v20, 1  ;;  %v3394_v25 = vsel %vm6748_vm3, %v3361_v27, 0  ;;  %v3395_v31 = vsel %vm3114_vm0, %v3362_v2, 0  ;;  %v1098_v10 = vand.u32 15, %v876_v49  ;;  %v7535_v43 = vld [vmem:[#allocation16_spill] sm:$0xff] }
 0x16e   : > { %3327 = vst.msk [vmem:[#allocation3 + $0x40] sm:$0xff] %vm3318_vm5, %v3287_v13  ;;  %v3253_v56 = vsel %vm7531_vm11, %v3250_v12, %v7530_v36  ;;  %v3629_v12 = vsel %vm6662_vm9, %v3596_v51, 0  ;;  %vm7532_vm11 = vmmov %vm7528_vm14  ;;  %vm7533_vm14 = vcmask 1046528   ;;  %v7536_v28 = vrot.slane %v7535_v43, 1  ;;  %v3608_v53 = vld [vmem:[#allocation2 + $0x78] sm:$0xf] }
 0x16f   : > { %3569 = vst.msk [vmem:[#allocation3 + $0x18] sm:$0xff] %vm3565_vm6, %v3524_v54  ;;  %2508 = vrot.lane.b32.xlu0 %v2465_v9, %s4774_s11  ;;  %3282 = vrot.lane.b32.xlu1 %v3251_v42, %s4771_s8  ;;  %v2778_v13 = vsel %vm7532_vm11, %v2773_v48, %v6762_v45  ;;  %v3498_v54 = vsel %vm7533_vm14, %v3495_v59, %v3497_v22  ;;  %v3364_v59 = vld [vmem:[#allocation2 + $0x7c] sm:$0xf]  ;;  %v3610_v9 = vld [vmem:[#allocation2 + $0x80] sm:$0xf]  ;;  %vm7537_vm9 = vmmov %vm7533_vm14  ;;  %v3264_v47 = vrot.slane %v6791_v40, 1 }
 0x170   : > { %v6787_v41 = vcombine.low %v3629_v12, %v3630_v18  ;;  %v3611_v42 = vld [vmem:[#allocation2 + $0x84] sm:$0xf]  ;;  %v1531_v48 = vld [vmem:[#allocation2 + $0x7c] sm:$0xf]  ;;  %vm7538_vm11 = vmmov %vm7537_vm9  ;;  %v3396_v36 = vsel %vm6756_vm13, %v3363_v4, 0  ;;  %v3643_v18 = vsel %vm6756_vm13, %v3610_v9, 0 }
 0x171   : > { %v3289_v15 = vpop.permute.xlu0 %3288  ;;  %v3769_v17 = vpop.permute.xlu1 %3768  ;;  %v3263_v51 = vsel %vm7538_vm11, %v3260_v58, %v3262_v44  ;;  %v1530_v20 = vld [vmem:[#allocation2 + $0x78] sm:$0xf]  ;;  %v3644_v52 = vsel %vm3116_vm4, %v3611_v42, 0  ;;  %v1563_v58 = vsel %vm4903_vm10, %v1531_v48, 0  ;;  %vm6822_vm14 = vcmp.le.s32.totalorder %v1098_v10, 14 }
 0x172   : > { %3328 = vst.msk [vmem:[#allocation3 + $0x48] sm:$0xff] %vm3318_vm5, %v3289_v15  ;;  %v3500_v15 = vsel %vm7537_vm9, %v3497_v22, %v7536_v28  ;;  %v3609_v22 = vld [vmem:[#allocation2 + $0x7c] sm:$0xf]  ;;  %v3641_v5 = vsel %vm6748_vm3, %v3608_v53, 0  ;;  %vm7542_vm13 = vcmask 64544   ;;  %v1562_v8 = vsel %vm6548_vm8, %v1530_v20, 0 }
 0x173   : > { %3815 = vst.msk [vmem:[#allocation3 + $0x10] sm:$0xff] %vm3812_vm7, %v3769_v17  ;;  %2819 = vrot.lane.b32.xlu0 %v2770_v23, %s4776_s19  ;;  %3284 = vrot.lane.b32.xlu1 %v3253_v56, %s4771_s8  ;;  %v3744_v17 = vrot.slane %v6787_v41, 1  ;;  %v4511_v23 = vcombine.low %v3394_v25, %v3395_v31  ;;  %v3397_v56 = vsel %vm3116_vm4, %v3364_v59, 0  ;;  %v3642_v12 = vsel %vm3114_vm0, %v3609_v22, 0  ;;  %vm7543_vm4 = vmmov %vm7537_vm9  ;;  %v1739_v4 = vld [vmem:[#allocation2 + $0x80] sm:$0xf] }
 0x174   : > { %v6831_v26 = vcombine.low %v3396_v36, %v3397_v56  ;;  %v3265_v49 = vsel %vm7543_vm4, %v3262_v44, %v3264_v47  ;;  %vm2956_vm0 = vmpackc.low %vm6822_vm14, %vm6822_vm14  ;;  %v4528_v61 = vcombine.low %v3641_v5, %v3642_v12  ;;  %v6859_v59 = vld [vmem:[#allocation2 + $0x78] sm:$0xff]   ;;  %v1740_v42 = vld [vmem:[#allocation2 + $0x84] sm:$0xf] }
 0x175   : > { %v3534_v6 = vpop.permute.xlu0 %3533  ;;  %v1655_v39 = vpop.permute.xlu1 %1654  ;;  %vm7544_vm3 = vmmov %vm7542_vm13  ;;  %v6862_v9 = vsel %vm2956_vm0, 65537, %v7396_v30  ;;  %v3080_v30 = vrot.slane %v3078_v46, 4  ;;  %v2157_v32 = vshll.u32 %v6859_v59, 16  ;;  %v6884_v46 = vld [vmem:[#allocation2 + $0x80] sm:$0xff]  }
 0x176   : > { %3574 = vst.msk [vmem:[#allocation3 + $0x40] sm:$0xff] %vm3565_vm6, %v3534_v6  ;;  %v3509_v6 = vrot.slane %v4511_v23, 1  ;;  %v3511_v44 = vrot.slane %v6831_v26, 1  ;;  %vm7546_vm11 = vmmov %vm7543_vm4  ;;  %v3756_v10 = vrot.slane %v4528_v61, 1  ;;  %v3084_v43 = vrot.slane %v6862_v9, 7 }
 0x177   : > { %1699 = vst.msk [vmem:[#allocation3 + $0x20] sm:$0xff] %vm7534_vm15, %v1655_v39  ;;  %2821 = vrot.lane.b32.xlu0 %v2778_v13, %s4776_s19  ;;  %3529 = vrot.lane.b32.xlu1 %v3498_v54, %s4773_s10  ;;  %vm7541_vm15 = vmmov %vm7537_vm9  ;;  %v4412_v54 = vcombine.low %v1562_v8, %v1563_v58  ;;  %vm7545_vm9 = vcmask 97344   ;;  %v3082_v36 = vsel %vm7408_vm2, %v3080_v30, %v4914_v33  ;;  %v2159_v22 = vrot.slane %v2157_v32, 1  ;;  %v1533_v20 = vld [vmem:[#allocation2 + $0x84] sm:$0xf] }
 0x178   : > { %v3745_v2 = vsel %vm7541_vm15, %v3742_v14, %v3744_v17  ;;  %v6844_v14 = vcombine.low %v3643_v18, %v3644_v52  ;;  %v3510_v25 = vsel %vm7546_vm11, %v3507_v55, %v3509_v6  ;;  %vm7547_vm14 = vmmov %vm7543_vm4  ;;  %v1771_v55 = vsel %vm6548_vm8, %v1739_v4, 0  ;;  %v6906_v18 = vld [vmem:[#allocation2 + $0x88] sm:$0xff]   ;;  %v2890_v52 = vld [vmem:[#allocation2 + $0x78] sm:$0xf] }
 0x179   : > { %v3536_v0 = vpop.permute.xlu0 %3535  ;;  %v3771_v7 = vpop.permute.xlu1 %3770  ;;  %v3512_v3 = vsel %vm7547_vm14, %v3509_v6, %v3511_v44  ;;  %vm7548_vm15 = vmmov %vm7545_vm9  ;;  %v6897_v34 = vsel %vm7408_vm2, %v4925_v37, %v3084_v43  ;;  %v2470_v33 = vshll.u32 %v6884_v46, 16  ;;  %v1532_v37 = vld [vmem:[#allocation2 + $0x80] sm:$0xf]  ;;  %v2891_v58 = vld [vmem:[#allocation2 + $0x7c] sm:$0xf]  ;;  %vm6910_vm2 = vcmp.ne.s16.totalorder %v3082_v36, 0 }
 0x17a   : > { %v3831_v21 = vld [vmem:[#allocation3 + $0x10] sm:$0xff]  ;;  %3575 = vst.msk [vmem:[#allocation3 + $0x48] sm:$0xff] %vm3565_vm6, %v3536_v0  ;;  %v3758_v31 = vrot.slane %v6844_v14, 1  ;;  %vm7550_vm8 = vmmov %vm7544_vm3  ;;  %v1565_v5 = vsel %vm4903_vm10, %v1533_v20, 0  ;;  %v1564_v41 = vsel %vm6559_vm12, %v1532_v37, 0  ;;  %v2783_v61 = vshll.u32 %v6906_v18, 16 }
 0x17b   : > { %3816 = vst.msk [vmem:[#allocation3 + $0x18] sm:$0xff] %vm3812_vm7, %v3771_v7  ;;  %4617 = vmatprep.mubr.msk.bf16.mxu0 %vm3872_vm1, %v3831_v21  ;;  %3294 = vrot.lane.b32.xlu0 %v3263_v51, %s4771_s8  ;;  %v2466_v51 = vshrl.u32 %v6652_v60, 16  ;;  %vm7552_vm0 = vmmov %vm7546_vm11  ;;  %v2155_v60 = vor.u32 %v2153_v11, %v6643_v57  ;;  %v4741_v6 = vld [vmem:[#allocation2 + $0x80] ss:$0 sps:$4 sm:$0x11]   ;;  %v3086_v62 = vrot.slane %v3084_v43, 4 }
 0x17c   : > { %3531 = vrot.lane.b32.xlu1 %v3500_v15, %s4773_s10  ;;  %v1772_v15 = vsel %vm4903_vm10, %v1740_v42, 0  ;;  %v3757_v56 = vsel %vm7552_vm0, %v3754_v1, %v3756_v10  ;;  %vm7558_vm11 = vmmov %vm7548_vm15  ;;  %v4413_v42 = vcombine.low %v1564_v41, %v1565_v5  ;;  %v4742_v30 = vld [vmem:[#allocation2 + $0x88] ss:$0 sps:$4 sm:$0x11]   ;;  %v3614_v41 = vld [vmem:[#allocation2 + $0x90] sm:$0x1] }
 0x17d   : > { %v3781_v16 = vpop.permute.xlu0 %3780  ;;  %v1657_v27 = vpop.permute.xlu1 %1656  ;;  %v4428_v53 = vcombine.low %v1771_v55, %v1772_v15  ;;  %v2468_v12 = vor.u32 %v2466_v51, %v6715_v63  ;;  %v3150_v63 = vsel %vm6910_vm2, %v2890_v52, 0  ;;  %v3613_v15 = vld [vmem:[#allocation2 + $0x8c] sm:$0xf]  ;;  %v2474_v51 = vshrl.u32 %v6884_v46, 16  ;;  %v2892_v46 = vld [vmem:[#allocation2 + $0x80] sm:$0x1] }
 0x17e   : > { %3821 = vst.msk [vmem:[#allocation3 + $0x40] sm:$0xff] %vm3812_vm7, %v3781_v16  ;;  %v7555_v16 = vld [vmem:[#allocation17_spill] sm:$0xff]  ;;  %v4743_v36 = vld [vmem:[#allocation2 + $0x90] ss:$0 sps:$4 sm:$0x11]   ;;  %v2478_v20 = vshll.u32 %v4742_v30, 16 }
 0x17f   : > { %1700 = vst.msk [vmem:[#allocation3 + $0x28] sm:$0xff] %vm7542_vm13, %v1657_v27  ;;  %3296 = vrot.lane.b32.xlu0 %v3265_v49, %s4771_s8  ;;  %vm7549_vm13 = vmmov %vm7543_vm4  ;;  %vm7551_vm4 = vcmask 130144   ;;  %v7556_v27 = vrot.slane %v7555_v16, 1  ;;  %v2779_v49 = vshrl.u32 %v6703_v50, 16  ;;  %v1741_v50 = vld [vmem:[#allocation2 + $0x88] sm:$0xf] }
 0x180   : > { %3776 = vrot.lane.b32.xlu1 %v3745_v2, %s4775_s15  ;;  %v3759_v28 = vsel %vm7549_vm13, %v3756_v10, %v3758_v31  ;;  %vm7559_vm14 = vmmov %vm7551_vm4  ;;  %v1773_v29 = vsel %vm6559_vm12, %v1741_v50, 0 }
 0x181   : > { %v1667_v24 = vpop.permute.xlu0 %1666  ;;  %v1864_v39 = vpop.permute.xlu1 %1863  ;;  %v2781_v10 = vor.u32 %v2779_v49, %v6762_v45  ;;  %vm7561_vm13 = vmmov %vm7558_vm11 }
 0x182   : > { %v3832_v13 = vld [vmem:[#allocation3 + $0x18] sm:$0xff]  ;;  %1705 = vst.msk [vmem:[#allocation3 + $0x50] sm:$0xff] %vm7544_vm3, %v1667_v24  ;;  %vm3118_vm3 = vcmp.ne.s16.totalorder %v6897_v34, 0  ;;  %v2480_v34 = vrot.slane %v2478_v20, 1 }
 0x183   : > { %1908 = vst.msk [vmem:[#allocation3 + $0x20] sm:$0xff] %vm7545_vm9, %v1864_v39  ;;  %4618 = vmatmul.mubr.msk.bf16.gmra.mrb[4].mxu0 %vm3872_vm1, %v3832_v13  ;;  %3541 = vrot.lane.b32.xlu0 %v3510_v25, %s4773_s10  ;;  %vm7557_vm9 = vmmov %vm7552_vm0  ;;  %v3151_v24 = vsel %vm3118_vm3, %v2891_v58, 0  ;;  %v1774_v39 = vsel %vm4903_vm10, %v1742_v38, 0  ;;  %v3365_v13 = vld [vmem:[#allocation2 + $0x80] sm:$0xf]  ;;  %v3646_v43 = vsel %vm3118_vm3, %v3613_v15, 0 }
 0x184   : > { %1674 = vrot.lane.b32.xlu1 %v4412_v54, %s4769_s6  ;;  %v3747_v2 = vsel %vm7557_vm9, %v3744_v17, %v7556_v27  ;;  %v2472_v17 = vrot.slane %v2470_v33, 1  ;;  %v3366_v54 = vld [vmem:[#allocation2 + $0x84] sm:$0xf]  ;;  %v6946_v55 = vcombine.low %v3150_v63, %v3151_v24  ;;  %v3398_v45 = vsel %vm6910_vm2, %v3365_v13, 0  ;;  %vm7564_vm10 = vmmov %vm7559_vm14  ;;  %v3367_v27 = vld [vmem:[#allocation2 + $0x88] sm:$0x1] }
 0x185   : > { %v3783_v0 = vpop.permute.xlu0 %3782  ;;  %v1866_v7 = vpop.permute.xlu1 %1865  ;;  %v3837_v21 = vld [vmem:[#allocation3 + $0x40] sm:$0xff]  ;;  %vm3119_vm9 = vcmp.ne.s16.totalorder %v3086_v62, 0  ;;  %v2787_v58 = vshrl.u32 %v6906_v18, 16 }
 0x186   : > { %3822 = vst.msk [vmem:[#allocation3 + $0x48] sm:$0xff] %vm3812_vm7, %v3783_v0  ;;  %4629 = vmatprep.mubr.msk.bf16.mxu1 %vm3872_vm1, %v3837_v21  ;;  %v2161_v0 = vshrl.u32 %v6859_v59, 16  ;;  %v3399_v59 = vsel %vm3118_vm3, %v3366_v54, 0  ;;  %v2476_v52 = vor.u32 %v2474_v51, %v2472_v17  ;;  %v3152_v16 = vsel %vm3119_vm9, %v2892_v46, 0 }
 0x187   : > { %1909 = vst.msk [vmem:[#allocation3 + $0x28] sm:$0xff] %vm7548_vm15, %v1866_v7  ;;  %3543 = vrot.lane.b32.xlu0 %v3512_v3, %s4773_s10  ;;  %vm7560_vm15 = vsmask.f32 7424  ;;  %v2165_v7 = vshll.u32 %v4741_v6, 16  ;;  %v2785_v3 = vrot.slane %v2783_v61, 1  ;;  %v4513_v33 = vcombine.low %v3398_v45, %v3399_v59 }
 0x188   : > { %3790 = vrot.lane.b32.xlu1 %v3759_v28, %s4775_s15  ;;  %v2160_v8 = vsel %vm7560_vm15, %v2155_v60, %v2159_v22  ;;  %v3612_v28 = vld [vmem:[#allocation2 + $0x88] sm:$0xf]  ;;  %v3266_v60 = vrot.slane %v6946_v55, 1  ;;  %v4497_v6 = vcombine.low %v3152_v16, %v3152_v16  ;;  %v3647_v24 = vsel %vm3119_vm9, %v3614_v41, 0 }
 0x189   : > { %v1669_v23 = vpop.permute.xlu0 %1668  ;;  %v2178_v48 = vpop.permute.xlu1 %2177  ;;  %v3645_v9 = vsel %vm6910_vm2, %v3612_v28, 0  ;;  %vm7570_vm2 = vcmask 1046528   ;;  %v2789_v5 = vor.u32 %v2787_v58, %v2785_v3  ;;  %v4531_v14 = vcombine.low %v3647_v24, %v3647_v24 }
 0x18a   : > { %1706 = vst.msk [vmem:[#allocation3 + $0x58] sm:$0xff] %vm7550_vm8, %v1669_v23  ;;  %vm7562_vm8 = vcmask 162944   ;;  %v4429_v23 = vcombine.low %v1773_v29, %v1774_v39  ;;  %v3267_v35 = vsel %vm7570_vm2, %v3264_v47, %v3266_v60 }
 0x18b   : > { %2222 = vst.msk [vmem:[#allocation3 + $0x20] sm:$0xff] %vm7551_vm4, %v2178_v48  ;;  %3788 = vrot.lane.b32.xlu0 %v3757_v56, %s4775_s15  ;;  %vm7563_vm4 = vmmov %vm7560_vm15  ;;  %v2163_v48 = vor.u32 %v2161_v0, %v2159_v22  ;;  %vm7569_vm15 = vcmask 195744  }
 0x18c   : > { %1883 = vrot.lane.b32.xlu1 %v4428_v53, %s4772_s9  ;;  %v2473_v21 = vsel %vm7563_vm4, %v2468_v12, %v2472_v17  ;;  %v2167_v53 = vrot.slane %v2165_v7, 1  ;;  %vm7565_vm12 = vmmov %vm7562_vm8 }
 0x18d   : > { %v1876_v1 = vpop.permute.xlu0 %1875  ;;  %v2180_v57 = vpop.permute.xlu1 %2179  ;;  %v3838_v19 = vld [vmem:[#allocation3 + $0x48] sm:$0xff]  ;;  %vm7566_vm0 = vmmov %vm7563_vm4 }
 0x18e   : > { %1914 = vst.msk [vmem:[#allocation3 + $0x50] sm:$0xff] %vm7558_vm11, %v1876_v1  ;;  %4630 = vmatmul.mubr.msk.bf16.vlgmr.msra.gmra.mrb[0].mxu1 %vm3872_vm1, %v3838_v19  ;;  %v2786_v56 = vsel %vm7566_vm0, %v2781_v10, %v2785_v3  ;;  %vm7567_vm11 = vmmov %vm7566_vm0  ;;  %v2791_v1 = vshll.u32 %v4743_v36, 16  ;;  %v4530_v19 = vcombine.low %v3645_v9, %v3646_v43  ;;  %v3762_v10 = vrot.slane %v4531_v14, 1 }
 0x18f   : > { %2223 = vst.msk [vmem:[#allocation3 + $0x28] sm:$0xff] %vm7559_vm14, %v2180_v57  ;;  %3778 = vrot.lane.b32.xlu0 %v3747_v2, %s4775_s15  ;;  %v2168_v38 = vsel %vm7567_vm11, %v2163_v48, %v2167_v53  ;;  %vm7568_vm14 = vmmov %vm7564_vm10  ;;  %v3513_v57 = vrot.slane %v4513_v33, 1 }
 0x190   : > { %2197 = vrot.lane.b32.xlu1 %v2160_v8, %s4770_s7  ;;  %v2793_v12 = vrot.slane %v2791_v1, 1  ;;  %vm7571_vm3 = vmmov %vm7562_vm8  ;;  %v3760_v49 = vrot.slane %v4530_v19, 1  ;;  %v3400_v8 = vsel %vm3119_vm9, %v3367_v27, 0 }
 0x191   : > { %v1878_v25 = vpop.permute.xlu0 %1877  ;;  %v2491_v4 = vpop.permute.xlu1 %2490  ;;  %vm7574_vm4 = vmmov %vm7570_vm2  ;;  %v4514_v63 = vcombine.low %v3400_v8, %v3400_v8 }
 0x192   : > { %1915 = vst.msk [vmem:[#allocation3 + $0x58] sm:$0xff] %vm7561_vm13, %v1878_v25  ;;  %vm7572_vm13 = vmmov %vm7569_vm15  ;;  %v3514_v47 = vsel %vm7574_vm4, %v3511_v44, %v3513_v57  ;;  %v3268_v44 = vrot.slane %v4497_v6, 1  ;;  %vm7586_vm4 = vcmask 97344  }
 0x193   : > { %2535 = vst.msk [vmem:[#allocation3 + $0x20] sm:$0xff] %vm7562_vm8, %v2491_v4  ;;  %1676 = vrot.lane.b32.xlu0 %v4413_v42, %s4769_s6  ;;  %vm7573_vm8 = vmmov %vm7566_vm0  ;;  %v3515_v25 = vrot.slane %v4514_v63, 1 }
 0x194   : > { %2510 = vrot.lane.b32.xlu1 %v2473_v21, %s4774_s11  ;;  %v2481_v40 = vsel %vm7573_vm8, %v2476_v52, %v2480_v34  ;;  %vm7578_vm11 = vmmov %vm7572_vm13 }
 0x195   : > { %v2190_v11 = vpop.permute.xlu0 %2189  ;;  %v2493_v32 = vpop.permute.xlu1 %2492 }
 0x196   : > { %2228 = vst.msk [vmem:[#allocation3 + $0x50] sm:$0xff] %vm7564_vm10, %v2190_v11  ;;  %vm7575_vm10 = vmmov %vm7571_vm3 }
 0x197   : > { %2536 = vst.msk [vmem:[#allocation3 + $0x28] sm:$0xff] %vm7565_vm12, %v2493_v32  ;;  %1885 = vrot.lane.b32.xlu0 %v4429_v23, %s4772_s9  ;;  %vm7576_vm12 = vmmov %vm7566_vm0 }
 0x198   : > { %2823 = vrot.lane.b32.xlu1 %v2786_v56, %s4776_s19  ;;  %v2794_v50 = vsel %vm7576_vm12, %v2789_v5, %v2793_v12  ;;  %vm7577_vm0 = vmmov %vm7570_vm2 }
 0x199   : > { %v2192_v22 = vpop.permute.xlu0 %2191  ;;  %v2804_v37 = vpop.permute.xlu1 %2803  ;;  %v3761_v26 = vsel %vm7577_vm0, %v3758_v31, %v3760_v49  ;;  %vm7581_vm2 = vmmov %vm7577_vm0 }
 0x19a   : > { %2229 = vst.msk [vmem:[#allocation3 + $0x58] sm:$0xff] %vm7568_vm14, %v2192_v22  ;;  %vm7579_vm14 = vmmov %vm7577_vm0  ;;  %v3516_v42 = vsel %vm7581_vm2, %v3513_v57, %v3515_v25  ;;  %vm7593_vm2 = vcmask 162944  }
 0x19b   : > { %2848 = vst.msk [vmem:[#allocation3 + $0x20] sm:$0xff] %vm7569_vm15, %v2804_v37  ;;  %2199 = vrot.lane.b32.xlu0 %v2168_v38, %s4770_s7  ;;  %v3269_v54 = vsel %vm7579_vm14, %v3266_v60, %v3268_v44  ;;  %vm7580_vm15 = vmmov %vm7578_vm11  ;;  %s7084_s7 = scalar_lea.vmem %s7190_s3, %s4554_s14  ;;  %s4778_s14 = smov 40  }
 0x19c   : > { %3298 = vrot.lane.b32.xlu1 %v3267_v35, %s4771_s8  ;;  %vm7582_vm9 = vmmov %vm7577_vm0  ;;  %vm7589_vm0 = vcmask 130144  }
 0x19d   : > { %v2503_v18 = vpop.permute.xlu0 %2502  ;;  %v2806_v2 = vpop.permute.xlu1 %2805  ;;  %v3763_v21 = vsel %vm7582_vm9, %v3760_v49, %v3762_v10  ;;  %vm7591_vm14 = vmmov %vm7589_vm0 }
 0x19e   : > { %2541 = vst.msk [vmem:[#allocation3 + $0x50] sm:$0xff] %vm7571_vm3, %v2503_v18  ;;  %vm7583_vm3 = vcmask 64544   ;;  %vm7594_vm9 = vmmov %vm7589_vm0 }
 0x19f   : > { %2849 = vst.msk [vmem:[#allocation3 + $0x28] sm:$0xff] %vm7572_vm13, %v2806_v2  ;;  %2512 = vrot.lane.b32.xlu0 %v2481_v40, %s4774_s11  ;;  %vm7584_vm13 = vmmov %vm7583_vm3 }
 0x1a0   : > { %3545 = vrot.lane.b32.xlu1 %v3514_v47, %s4773_s10  ;;  %vm7585_vm8 = vmmov %vm7583_vm3 }
 0x1a1   : > { %v2505_v17 = vpop.permute.xlu0 %2504  ;;  %v3279_v61 = vpop.permute.xlu1 %3278  ;;  %vm7588_vm12 = vmmov %vm7583_vm3 }
 0x1a2   : > { %2542 = vst.msk [vmem:[#allocation3 + $0x58] sm:$0xff] %vm7575_vm10, %v2505_v17  ;;  %vm7587_vm10 = vmmov %vm7586_vm4 }
 0x1a3   : > { %3323 = vst.msk [vmem:[#allocation3 + $0x20] sm:$0xff] %vm3318_vm5, %v3279_v61  ;;  %2825 = vrot.lane.b32.xlu0 %v2794_v50, %s4776_s19 }
 0x1a4   : > { %3792 = vrot.lane.b32.xlu1 %v3761_v26, %s4775_s15 }
 0x1a5   : > { %v2816_v39 = vpop.permute.xlu0 %2815  ;;  %v3281_v13 = vpop.permute.xlu1 %3280 }
 0x1a6   : > { %2854 = vst.msk [vmem:[#allocation3 + $0x50] sm:$0xff] %vm7578_vm11, %v2816_v39  ;;  %vm7590_vm11 = vmmov %vm7586_vm4 }
 0x1a7   : > { %3324 = vst.msk [vmem:[#allocation3 + $0x28] sm:$0xff] %vm3318_vm5, %v3281_v13  ;;  %3300 = vrot.lane.b32.xlu0 %v3269_v54, %s4771_s8 }
 0x1a9   : > { %v2818_v31 = vpop.permute.xlu0 %2817  ;;  %v3526_v4 = vpop.permute.xlu1 %3525 }
 0x1aa   : > { %2855 = vst.msk [vmem:[#allocation3 + $0x58] sm:$0xff] %vm7580_vm15, %v2818_v31  ;;  %vm7592_vm15 = vmmov %vm7586_vm4 }
 0x1ab   : > { %3570 = vst.msk [vmem:[#allocation3 + $0x20] sm:$0xff] %vm3565_vm6, %v3526_v4  ;;  %3547 = vrot.lane.b32.xlu0 %v3516_v42, %s4773_s10 }
 0x1ad   : > { %v3291_v0 = vpop.permute.xlu0 %3290  ;;  %v3528_v7 = vpop.permute.xlu1 %3527 }
 0x1ae   : > { %3329 = vst.msk [vmem:[#allocation3 + $0x50] sm:$0xff] %vm3318_vm5, %v3291_v0 }
 0x1af   : > { %3571 = vst.msk [vmem:[#allocation3 + $0x28] sm:$0xff] %vm3565_vm6, %v3528_v7  ;;  %3794 = vrot.lane.b32.xlu0 %v3763_v21, %s4775_s15 }
 0x1b1   : > { %v3293_v29 = vpop.permute.xlu0 %3292  ;;  %v3773_v3 = vpop.permute.xlu1 %3772 }
 0x1b2   : > { %3330 = vst.msk [vmem:[#allocation3 + $0x58] sm:$0xff] %vm3318_vm5, %v3293_v29 }
 0x1b3   : > { %3817 = vst.msk [vmem:[#allocation3 + $0x20] sm:$0xff] %vm3812_vm7, %v3773_v3  ;;  %v7075_v3 = vld [vmem:[%s7189_s2] ss:$0 sm:$0xff] }
 0x1b5   : > { %v3538_v55 = vpop.permute.xlu0 %3537  ;;  %v1659_v30 = vpop.permute.xlu1 %1658 }
 0x1b6   : > { %3576 = vst.msk [vmem:[#allocation3 + $0x50] sm:$0xff] %vm3565_vm6, %v3538_v55 }
 0x1b7   : > { %1701 = vst.msk [vmem:[#allocation3 + $0x30] sm:$0xff] %vm7583_vm3, %v1659_v30  ;;  %vm7595_vm3 = vmmov %vm7593_vm2 }
 0x1b9   : > { %v3540_v45 = vpop.permute.xlu0 %3539  ;;  %v3775_v59 = vpop.permute.xlu1 %3774 }
 0x1ba   : > { %v3833_v28 = vld [vmem:[#allocation3 + $0x20] sm:$0xff]  ;;  %3577 = vst.msk [vmem:[#allocation3 + $0x58] sm:$0xff] %vm3565_vm6, %v3540_v45 }
 0x1bb   : > { %3818 = vst.msk [vmem:[#allocation3 + $0x28] sm:$0xff] %vm3812_vm7, %v3775_v59  ;;  %4621 = vmatprep.mubr.msk.bf16.mxu0 %vm3872_vm1, %v3833_v28 }
 0x1bd   : > { %v3785_v15 = vpop.permute.xlu0 %3784  ;;  %v1661_v62 = vpop.permute.xlu1 %1660 }
 0x1be   : > { %3823 = vst.msk [vmem:[#allocation3 + $0x50] sm:$0xff] %vm3812_vm7, %v3785_v15 }
 0x1bf   : > { %1702 = vst.msk [vmem:[#allocation3 + $0x38] sm:$0xff] %vm7584_vm13, %v1661_v62  ;;  %vm7596_vm13 = vmmov %vm7589_vm0 }
 0x1c1   : > { %v1671_v11 = vpop.permute.xlu0 %1670  ;;  %v1868_v32 = vpop.permute.xlu1 %1867 }
 0x1c2   : > { %v3834_v23 = vld [vmem:[#allocation3 + $0x28] sm:$0xff]  ;;  %1707 = vst.msk [vmem:[#allocation3 + $0x60] sm:$0xff] %vm7585_vm8, %v1671_v11  ;;  %vm7597_vm8 = vcmask 195744  }
 0x1c3   : > { %1910 = vst.msk [vmem:[#allocation3 + $0x30] sm:$0xff] %vm7586_vm4, %v1868_v32  ;;  %4622 = vmatmul.mubr.msk.bf16.gmra.mrb[8].mxu0 %vm3872_vm1, %v3834_v23  ;;  %vm7598_vm4 = vmmov %vm7593_vm2 }
 0x1c5   : > { %v3787_v48 = vpop.permute.xlu0 %3786  ;;  %v1870_v53 = vpop.permute.xlu1 %1869  ;;  %v3839_v51 = vld [vmem:[#allocation3 + $0x50] sm:$0xff] }
 0x1c6   : > { %3824 = vst.msk [vmem:[#allocation3 + $0x58] sm:$0xff] %vm3812_vm7, %v3787_v48  ;;  %4633 = vmatprep.mubr.msk.bf16.mxu1 %vm3872_vm1, %v3839_v51 }
 0x1c7   : > { %1911 = vst.msk [vmem:[#allocation3 + $0x38] sm:$0xff] %vm7587_vm10, %v1870_v53  ;;  %vm7599_vm10 = vmmov %vm7597_vm8 }
 0x1c9   : > { %v1673_v36 = vpop.permute.xlu0 %1672  ;;  %v2182_v56 = vpop.permute.xlu1 %2181 }
 0x1ca   : > { %1708 = vst.msk [vmem:[#allocation3 + $0x68] sm:$0xff] %vm7588_vm12, %v1673_v36  ;;  %vm7600_vm12 = vmmov %vm7593_vm2 }
 0x1cb   : > { %2224 = vst.msk [vmem:[#allocation3 + $0x30] sm:$0xff] %vm7589_vm0, %v2182_v56  ;;  %vm7601_vm0 = vmmov %vm7597_vm8 }
 0x1cd   : > { %v1880_v60 = vpop.permute.xlu0 %1879  ;;  %v2184_v20 = vpop.permute.xlu1 %2183  ;;  %v3840_v33 = vld [vmem:[#allocation3 + $0x58] sm:$0xff] }
 0x1ce   : > { %1916 = vst.msk [vmem:[#allocation3 + $0x60] sm:$0xff] %vm7590_vm11, %v1880_v60  ;;  %4634 = vmatmul.mubr.msk.bf16.gmra.mrb[4].mxu1 %vm3872_vm1, %v3840_v33  ;;  %vm7602_vm11 = vmmov %vm7601_vm0 }
 0x1cf   : > { %2225 = vst.msk [vmem:[#allocation3 + $0x38] sm:$0xff] %vm7591_vm14, %v2184_v20  ;;  %vm7603_vm14 = vcmask 64544  }
 0x1d1   : > { %v1882_v9 = vpop.permute.xlu0 %1881  ;;  %v2495_v43 = vpop.permute.xlu1 %2494 }
 0x1d2   : > { %1917 = vst.msk [vmem:[#allocation3 + $0x68] sm:$0xff] %vm7592_vm15, %v1882_v9 }
 0x1d3   : > { %2537 = vst.msk [vmem:[#allocation3 + $0x30] sm:$0xff] %vm7593_vm2, %v2495_v43  ;;  %vm7604_vm2 = vmmov %vm7594_vm9 }
 0x1d5   : > { %v2194_v46 = vpop.permute.xlu0 %2193  ;;  %v2497_v22 = vpop.permute.xlu1 %2496 }
 0x1d6   : > { %2230 = vst.msk [vmem:[#allocation3 + $0x60] sm:$0xff] %vm7594_vm9, %v2194_v46  ;;  %vm7605_vm9 = vmmov %vm7603_vm14 }
 0x1d7   : > { %2538 = vst.msk [vmem:[#allocation3 + $0x38] sm:$0xff] %vm7595_vm3, %v2497_v22 }
 0x1d9   : > { %v2196_v37 = vpop.permute.xlu0 %2195  ;;  %v2808_v38 = vpop.permute.xlu1 %2807 }
 0x1da   : > { %2231 = vst.msk [vmem:[#allocation3 + $0x68] sm:$0xff] %vm7596_vm13, %v2196_v37  ;;  %vm7606_vm13 = vmmov %vm7592_vm15 }
 0x1db   : > { %2850 = vst.msk [vmem:[#allocation3 + $0x30] sm:$0xff] %vm7597_vm8, %v2808_v38  ;;  %vm7607_vm8 = vmmov %vm7601_vm0 }
 0x1dd   : > { %v2507_v52 = vpop.permute.xlu0 %2506  ;;  %v2810_v58 = vpop.permute.xlu1 %2809 }
 0x1de   : > { %2543 = vst.msk [vmem:[#allocation3 + $0x60] sm:$0xff] %vm7598_vm4, %v2507_v52  ;;  %vm7608_vm4 = vmmov %vm7604_vm2 }
 0x1df   : > { %2851 = vst.msk [vmem:[#allocation3 + $0x38] sm:$0xff] %vm7599_vm10, %v2810_v58  ;;  %vm7609_vm10 = vmmov %vm7595_vm3 }
 0x1e1   : > { %v2509_v1 = vpop.permute.xlu0 %2508  ;;  %v3283_v35 = vpop.permute.xlu1 %3282 }
 0x1e2   : > { %2544 = vst.msk [vmem:[#allocation3 + $0x68] sm:$0xff] %vm7600_vm12, %v2509_v1  ;;  %vm7610_vm12 = vmmov %vm7601_vm0 }
 0x1e3   : > { %3325 = vst.msk [vmem:[#allocation3 + $0x30] sm:$0xff] %vm3318_vm5, %v3283_v35 }
 0x1e5   : > { %v2820_v34 = vpop.permute.xlu0 %2819  ;;  %v3285_v57 = vpop.permute.xlu1 %3284 }
 0x1e6   : > { %2856 = vst.msk [vmem:[#allocation3 + $0x60] sm:$0xff] %vm7601_vm0, %v2820_v34  ;;  %vm4162_vm0 = vcmask 326912  }
 0x1e7   : > { %3326 = vst.msk [vmem:[#allocation3 + $0x38] sm:$0xff] %vm3318_vm5, %v3285_v57 }
 0x1e9   : > { %v2822_v19 = vpop.permute.xlu0 %2821  ;;  %v3530_v16 = vpop.permute.xlu1 %3529 }
 0x1ea   : > { %2857 = vst.msk [vmem:[#allocation3 + $0x68] sm:$0xff] %vm7602_vm11, %v2822_v19  ;;  %vm4173_vm11 = vcmask 392512  }
 0x1eb   : > { %3572 = vst.msk [vmem:[#allocation3 + $0x30] sm:$0xff] %vm3565_vm6, %v3530_v16 }
 0x1ed   : > { %v3295_v27 = vpop.permute.xlu0 %3294 }
 0x1ee   : > { %v3532_v18 = vpop.permute.xlu1 %3531  ;;  %3331 = vst.msk [vmem:[#allocation3 + $0x60] sm:$0xff] %vm3318_vm5, %v3295_v27 }
 0x1ef   : > { %3573 = vst.msk [vmem:[#allocation3 + $0x38] sm:$0xff] %vm3565_vm6, %v3532_v18 }
 0x1f1   : > { %v3297_v2 = vpop.permute.xlu0 %3296 }
 0x1f2   : > { %v3777_v5 = vpop.permute.xlu1 %3776  ;;  %3332 = vst.msk [vmem:[#allocation3 + $0x68] sm:$0xff] %vm3318_vm5, %v3297_v2 }
 0x1f3   : > { %3819 = vst.msk [vmem:[#allocation3 + $0x30] sm:$0xff] %vm3812_vm7, %v3777_v5 }
 0x1f5   : > { %v3542_v12 = vpop.permute.xlu0 %3541 }
 0x1f6   : > { %v1675_v40 = vpop.permute.xlu1 %1674  ;;  %3578 = vst.msk [vmem:[#allocation3 + $0x60] sm:$0xff] %vm3565_vm6, %v3542_v12 }
 0x1f7   : > { %1709 = vst.msk [vmem:[#allocation3 + $0x70] sm:$0xff] %vm7603_vm14, %v1675_v40  ;;  %vm4184_vm14 = vcmask 458112  }
 0x1f9   : > { %v3544_v47 = vpop.permute.xlu0 %3543 }
 0x1fa   : > { %v3791_v49 = vpop.permute.xlu1 %3790  ;;  %v3835_v6 = vld [vmem:[#allocation3 + $0x30] sm:$0xff]  ;;  %3579 = vst.msk [vmem:[#allocation3 + $0x68] sm:$0xff] %vm3565_vm6, %v3544_v47 }
 0x1fb   : > { %4625 = vmatprep.mubr.msk.bf16.mxu0 %vm3872_vm1, %v3835_v6  ;;  %3826 = vst.msk [vmem:[#allocation3 + $0x68] sm:$0xff] %vm3812_vm7, %v3791_v49 }
 0x1fd   : > { %v3789_v8 = vpop.permute.xlu0 %3788 }
 0x1fe   : > { %v1884_v41 = vpop.permute.xlu1 %1883  ;;  %3825 = vst.msk [vmem:[#allocation3 + $0x60] sm:$0xff] %vm3812_vm7, %v3789_v8 }
 0x1ff   : > { %1918 = vst.msk [vmem:[#allocation3 + $0x70] sm:$0xff] %vm7592_vm15, %v1884_v41  ;;  %vm4195_vm15 = vcmask 523712  }
 0x201   : > { %v3779_v17 = vpop.permute.xlu0 %3778 }
 0x202   : > { %v2198_v61 = vpop.permute.xlu1 %2197  ;;  %3820 = vst.msk [vmem:[#allocation3 + $0x38] sm:$0xff] %vm3812_vm7, %v3779_v17  ;;  %v3842_v63 = vld [vmem:[#allocation3 + $0x68] sm:$0xff] }
 0x203   : > { %2232 = vst.msk [vmem:[#allocation3 + $0x70] sm:$0xff] %vm7604_vm2, %v2198_v61  ;;  %vm4206_vm2 = vcmask 589312  }
 0x205   : > { %v1677_v50 = vpop.permute.xlu0 %1676  ;;  %v3841_v44 = vld [vmem:[#allocation3 + $0x60] sm:$0xff] }
 0x206   : > { %v2511_v26 = vpop.permute.xlu1 %2510  ;;  %1710 = vst.msk [vmem:[#allocation3 + $0x78] sm:$0xff] %vm7605_vm9, %v1677_v50  ;;  %4637 = vmatprep.mubr.msk.bf16.mxu1 %vm3872_vm1, %v3841_v44  ;;  %vm4217_vm9 = vcmask 654912  }
 0x207   : > { %2545 = vst.msk [vmem:[#allocation3 + $0x70] sm:$0xff] %vm7595_vm3, %v2511_v26  ;;  %4638 = vmatmul.mubr.msk.bf16.gmra.mrb[8].mxu1 %vm3872_vm1, %v3842_v63  ;;  %vm4228_vm3 = vcmask 720512  }
 0x209   : > { %v1886_v24 = vpop.permute.xlu0 %1885  ;;  %v3836_v13 = vld [vmem:[#allocation3 + $0x38] sm:$0xff] }
 0x20a   : > { %v2824_v39 = vpop.permute.xlu1 %2823  ;;  %1919 = vst.msk [vmem:[#allocation3 + $0x78] sm:$0xff] %vm7606_vm13, %v1886_v24  ;;  %4626 = vmatmul.mubr.msk.bf16.gmra.mrb[12].mxu0 %vm3872_vm1, %v3836_v13  ;;  %vm4239_vm13 = vcmask 786112  }
 0x20b   : > { %2858 = vst.msk [vmem:[#allocation3 + $0x70] sm:$0xff] %vm7607_vm8, %v2824_v39  ;;  %vm4250_vm8 = vcmask 851712  }
 0x20d   : > { %v2200_v54 = vpop.permute.xlu0 %2199 }
 0x20e   : > { %v3299_v25 = vpop.permute.xlu1 %3298  ;;  %2233 = vst.msk [vmem:[#allocation3 + $0x78] sm:$0xff] %vm7608_vm4, %v2200_v54  ;;  %vm4261_vm4 = vcmask 917312  }
 0x20f   : > { %3333 = vst.msk [vmem:[#allocation3 + $0x70] sm:$0xff] %vm3318_vm5, %v3299_v25 }
 0x211   : > { %v2513_v14 = vpop.permute.xlu0 %2512 }
 0x212   : > { %v3546_v31 = vpop.permute.xlu1 %3545  ;;  %2546 = vst.msk [vmem:[#allocation3 + $0x78] sm:$0xff] %vm7609_vm10, %v2513_v14  ;;  %vm4272_vm10 = vcmask 982912  }
 0x213   : > { %3580 = vst.msk [vmem:[#allocation3 + $0x70] sm:$0xff] %vm3565_vm6, %v3546_v31 }
 0x215   : > { %v2826_v4 = vpop.permute.xlu0 %2825 }
 0x216   : > { %v3793_v42 = vpop.permute.xlu1 %3792  ;;  %2859 = vst.msk [vmem:[#allocation3 + $0x78] sm:$0xff] %vm7610_vm12, %v2826_v4  ;;  %vm4283_vm12 = vcmask 1048512  }
 0x217   : > { %3827 = vst.msk [vmem:[#allocation3 + $0x70] sm:$0xff] %vm3812_vm7, %v3793_v42 }
 0x219   : > { %v3301_v10 = vpop.permute.xlu0 %3300 }
 0x21a   : > { %3334 = vst.msk [vmem:[#allocation3 + $0x78] sm:$0xff] %vm3318_vm5, %v3301_v10  ;;  %vm4118_vm5 = vcmask 64512  }
 0x21d   : > { %v3548_v0 = vpop.permute.xlu0 %3547 }
 0x21e   : > { %v3843_v7 = vld [vmem:[#allocation3 + $0x70] sm:$0xff]  ;;  %3581 = vst.msk [vmem:[#allocation3 + $0x78] sm:$0xff] %vm3565_vm6, %v3548_v0  ;;  %vm4129_vm6 = vcmask 130112  }
 0x21f   : > { %4641 = vmatprep.mubr.msk.bf16.mxu1 %vm3872_vm1, %v3843_v7 }
 0x221   : > { %v3795_v21 = vpop.permute.xlu0 %3794 }
 0x222   : > { %3828 = vst.msk [vmem:[#allocation3 + $0x78] sm:$0xff] %vm3812_vm7, %v3795_v21  ;;  %vm4140_vm7 = vcmask 195712  }
 0x229   : > { %v3844_v29 = vld [vmem:[#allocation3 + $0x78] sm:$0xff] }
 0x22a   : > { %4642 = vmatmul.mubr.msk.bf16.gmra.mrb[12].mxu1 %vm3872_vm1, %v3844_v29  ;;  %vm4151_vm1 = vcmask 261312  }
 0x22f   : > { %v4615_v55 = vpop.f32.mrb[0].mxu0 }
 0x230   : > { %v3968_v30 = vadd.f32 %v4615_v55, %v7075_v3  ;;  %v3959_v45 = vpop.f32.mrb[1].mxu0 }
 0x231   : > { %v3960_v59 = vadd.f32 %v7075_v3, %v3959_v45  ;;  %v4616_v28 = vpop.f32.mrb[2].mxu0 }
 0x232   : > { %v4088_v15 = vmax.f32 %v3968_v30, 0.0  ;;  %v3971_v62 = vadd.f32 %v4616_v28, %v7075_v3  ;;  %v3962_v11 = vpop.f32.mrb[3].mxu0 }
 0x233   : > { %v4086_v32 = vmax.f32 %v3960_v59, 0.0  ;;  %v3963_v23 = vadd.f32 %v7075_v3, %v3962_v11 }
 0x234   : > { %v4089_v48 = vmax.f32 %v3971_v62, 0.0  ;;  %4123 = vrot.lane.b32.xlu1 %v4088_v15, %s4772_s9 }
 0x235   : > { %4119 = vst.msk [vmem:[%s7084_s7] sm:$0xff] %vm4118_vm5, %v4086_v32  ;;  %v4087_v53 = vmax.f32 %v3963_v23, 0.0 }
 0x236   : > { %4125 = vrot.lane.b32.xlu0 %v4089_v48, %s4772_s9 }
 0x237   : > { %4120 = vst.msk [vmem:[%s7084_s7 + $0x8] sm:$0xff] %vm4118_vm5, %v4087_v53 }
 0x256   : > { %v4619_v51 = vpop.f32.mrb[4].mxu0 }
 0x257   : > { %v3975_v36 = vpop.f32.mrb[5].mxu0  ;;  %v3984_v1 = vadd.f32 %v4619_v51, %v7075_v3 }
 0x258   : > { %v4620_v56 = vpop.f32.mrb[6].mxu0  ;;  %v3976_v16 = vadd.f32 %v7075_v3, %v3975_v36 }
 0x259   : > { %v3978_v60 = vpop.f32.mrb[7].mxu0  ;;  %v3987_v34 = vadd.f32 %v4620_v56, %v7075_v3  ;;  %v4092_v19 = vmax.f32 %v3984_v1, 0.0 }
 0x25a   : > { %v3979_v18 = vadd.f32 %v7075_v3, %v3978_v60  ;;  %v4090_v2 = vmax.f32 %v3976_v16, 0.0 }
 0x25b   : > { %v4093_v27 = vmax.f32 %v3987_v34, 0.0 }
 0x25c   : > { %v4091_v5 = vmax.f32 %v3979_v18, 0.0 }
 0x261   : > { %v4631_v20 = vpop.f32.mrb[0].mxu1 }
 0x262   : > { %v4032_v33 = vadd.f32 %v4631_v20, %v7075_v3  ;;  %v4023_v9 = vpop.f32.mrb[1].mxu1 }
 0x263   : > { %v4632_v43 = vpop.f32.mrb[2].mxu1  ;;  %v4024_v22 = vadd.f32 %v7075_v3, %v4023_v9 }
 0x264   : > { %v4104_v46 = vmax.f32 %v4032_v33, 0.0  ;;  %v4035_v37 = vadd.f32 %v4632_v43, %v7075_v3  ;;  %v4026_v38 = vpop.f32.mrb[3].mxu1 }
 0x265   : > { %v4027_v58 = vadd.f32 %v7075_v3, %v4026_v38  ;;  %v4102_v35 = vmax.f32 %v4024_v22, 0.0 }
 0x266   : > { %v4105_v52 = vmax.f32 %v4035_v37, 0.0  ;;  %4211 = vrot.lane.b32.xlu1 %v4104_v46, %s4767_s4 }
 0x267   : > { %v4103_v57 = vmax.f32 %v4027_v58, 0.0 }
 0x268   : > { %4213 = vrot.lane.b32.xlu0 %v4105_v52, %s4767_s4 }
 0x26a   : > { %4200 = vrot.lane.b32.xlu1 %v4102_v35, %s4777_s13 }
 0x26c   : > { %4202 = vrot.lane.b32.xlu0 %v4103_v57, %s4777_s13 }
 0x26e   : > { %4145 = vrot.lane.b32.xlu1 %v4092_v19, %s4771_s8 }
 0x270   : > { %4147 = vrot.lane.b32.xlu0 %v4093_v27, %s4771_s8 }
 0x272   : > { %4134 = vrot.lane.b32.xlu1 %v4090_v2, %s4774_s11 }
 0x274   : > { %4136 = vrot.lane.b32.xlu0 %v4091_v5, %s4774_s11 }
 0x296   : > { %v4623_v12 = vpop.f32.mrb[8].mxu0 }
 0x297   : > { %v3991_v40 = vpop.f32.mrb[9].mxu0  ;;  %v4000_v13 = vadd.f32 %v4623_v12, %v7075_v3 }
 0x298   : > { %v4624_v47 = vpop.f32.mrb[10].mxu0  ;;  %v3992_v42 = vadd.f32 %v7075_v3, %v3991_v40 }
 0x299   : > { %v3994_v49 = vpop.f32.mrb[11].mxu0  ;;  %v4003_v14 = vadd.f32 %v4624_v47, %v7075_v3  ;;  %v4096_v4 = vmax.f32 %v4000_v13, 0.0 }
 0x29a   : > { %v3995_v0 = vadd.f32 %v7075_v3, %v3994_v49  ;;  %v4094_v7 = vmax.f32 %v3992_v42, 0.0 }
 0x29b   : > { %v4097_v10 = vmax.f32 %v4003_v14, 0.0 }
 0x29c   : > { %v4095_v21 = vmax.f32 %v3995_v0, 0.0 }
 0x2a1   : > { %v4635_v6 = vpop.f32.mrb[4].mxu1 }
 0x2a2   : > { %v4048_v8 = vadd.f32 %v4635_v6, %v7075_v3  ;;  %v4039_v41 = vpop.f32.mrb[5].mxu1 }
 0x2a3   : > { %v4636_v17 = vpop.f32.mrb[6].mxu1  ;;  %v4040_v50 = vadd.f32 %v7075_v3, %v4039_v41 }
 0x2a4   : > { %v4108_v61 = vmax.f32 %v4048_v8, 0.0  ;;  %v4051_v26 = vadd.f32 %v4636_v17, %v7075_v3  ;;  %v4042_v44 = vpop.f32.mrb[7].mxu1 }
 0x2a5   : > { %v4043_v24 = vadd.f32 %v7075_v3, %v4042_v44  ;;  %v4106_v54 = vmax.f32 %v4040_v50, 0.0 }
 0x2a6   : > { %v4109_v63 = vmax.f32 %v4051_v26, 0.0  ;;  %4233 = vrot.lane.b32.xlu1 %v4108_v61, %s4761_s26  ;;  %v4124_v39 = vpop.permute.xlu1 %4123 }
 0x2a7   : > { %4130 = vst.msk [vmem:[%s7084_s7] sm:$0xff] %vm4129_vm6, %v4124_v39  ;;  %v4107_v31 = vmax.f32 %v4043_v24, 0.0 }
 0x2a8   : > { %4235 = vrot.lane.b32.xlu0 %v4109_v63, %s4761_s26  ;;  %v4126_v25 = vpop.permute.xlu0 %4125  ;;  %s4779_s26 = smov 56  }
 0x2a9   : > { %4131 = vst.msk [vmem:[%s7084_s7 + $0x8] sm:$0xff] %vm4129_vm6, %v4126_v25 }
 0x2aa   : > { %4222 = vrot.lane.b32.xlu1 %v4106_v54, %s4764_s29 }
 0x2ac   : > { %4224 = vrot.lane.b32.xlu0 %v4107_v31, %s4764_s29 }
 0x2ae   : > { %4167 = vrot.lane.b32.xlu1 %v4096_v4, %s4778_s14 }
 0x2b0   : > { %4169 = vrot.lane.b32.xlu0 %v4097_v10, %s4778_s14 }
 0x2b2   : > { %4156 = vrot.lane.b32.xlu1 %v4094_v7, %s4775_s15 }
 0x2b4   : > { %4158 = vrot.lane.b32.xlu0 %v4095_v21, %s4775_s15 }
 0x2d8   : > { %v7122_v29 = vpop.permute.xlu1 %4211 }
 0x2da   : > { %v4639_v55 = vpop.f32.mrb[8].mxu1  ;;  %v7124_v30 = vpop.permute.xlu0 %4213 }
 0x2db   : > { %v4055_v45 = vpop.f32.mrb[9].mxu1  ;;  %v4064_v52 = vadd.f32 %v4639_v55, %v7075_v3 }
 0x2dc   : > { %v4056_v59 = vadd.f32 %v7075_v3, %v4055_v45  ;;  %v4640_v28 = vpop.f32.mrb[10].mxu1  ;;  %v7127_v15 = vpop.permute.xlu1 %4200 }
 0x2dd   : > { %v4627_v62 = vpop.f32.mrb[12].mxu0  ;;  %v4058_v11 = vpop.f32.mrb[11].mxu1  ;;  %v4067_v35 = vadd.f32 %v4640_v28, %v7075_v3  ;;  %v4112_v57 = vmax.f32 %v4064_v52, 0.0 }
 0x2de   : > { %v4110_v32 = vmax.f32 %v4056_v59, 0.0  ;;  %v4016_v23 = vadd.f32 %v4627_v62, %v7075_v3  ;;  %v4059_v48 = vadd.f32 %v7075_v3, %v4058_v11  ;;  %v7131_v53 = vpop.permute.xlu0 %4202  ;;  %v4007_v51 = vpop.f32.mrb[13].mxu0 }
 0x2df   : > { %v4628_v36 = vpop.f32.mrb[14].mxu0  ;;  %v4008_v43 = vadd.f32 %v7075_v3, %v4007_v51  ;;  %v4113_v19 = vmax.f32 %v4067_v35, 0.0 }
 0x2e0   : > { %v4111_v56 = vmax.f32 %v4059_v48, 0.0  ;;  %v4019_v60 = vadd.f32 %v4628_v36, %v7075_v3  ;;  %v4146_v20 = vpop.permute.xlu1 %4145  ;;  %v4010_v33 = vpop.f32.mrb[15].mxu0  ;;  %4244 = vrot.lane.b32.xlu1 %v4110_v32, %s4757_s22  ;;  %v4100_v9 = vmax.f32 %v4016_v23, 0.0 }
 0x2e1   : > { %v4011_v37 = vadd.f32 %v7075_v3, %v4010_v33  ;;  %v4098_v58 = vmax.f32 %v4008_v43, 0.0 }
 0x2e2   : > { %v4148_v46 = vpop.permute.xlu0 %4147  ;;  %4246 = vrot.lane.b32.xlu0 %v4111_v56, %s4757_s22  ;;  %v4101_v22 = vmax.f32 %v4019_v60, 0.0  ;;  %s4780_s22 = smov 48  }
 0x2e3   : > { %v4099_v34 = vmax.f32 %v4011_v37, 0.0 }
 0x2e4   : > { %4189 = vrot.lane.b32.xlu1 %v4100_v9, %s4779_s26  ;;  %v4135_v38 = vpop.permute.xlu1 %4134 }
 0x2e5   : > { %4141 = vst.msk [vmem:[%s7084_s7] sm:$0xff] %vm4140_vm7, %v4135_v38 }
 0x2e6   : > { %4191 = vrot.lane.b32.xlu0 %v4101_v22, %s4779_s26  ;;  %v4137_v1 = vpop.permute.xlu0 %4136  ;;  %4152 = vst.msk [vmem:[%s7084_s7] sm:$0xff] %vm4151_vm1, %v4146_v20 }
 0x2e7   : > { %4142 = vst.msk [vmem:[%s7084_s7 + $0x8] sm:$0xff] %vm4140_vm7, %v4137_v1 }
 0x2e8   : > { %4178 = vrot.lane.b32.xlu1 %v4098_v58, %s4780_s22  ;;  %4153 = vst.msk [vmem:[%s7084_s7 + $0x8] sm:$0xff] %vm4151_vm1, %v4148_v46 }
 0x2ea   : > { %4180 = vrot.lane.b32.xlu0 %v4099_v34, %s4780_s22 }
 0x2ec   : > { %4255 = vrot.lane.b32.xlu1 %v4112_v57, %s4753_s18 }
 0x2ee   : > { %4257 = vrot.lane.b32.xlu0 %v4113_v19, %s4753_s18 }
 0x2fd   : > { %v4643_v16 = vpop.f32.mrb[12].mxu1 }
 0x2fe   : > { %v4071_v27 = vpop.f32.mrb[13].mxu1  ;;  %v4080_v12 = vadd.f32 %v4643_v16, %v7075_v3 }
 0x2ff   : > { %v4072_v18 = vadd.f32 %v7075_v3, %v4071_v27  ;;  %v4644_v2 = vpop.f32.mrb[14].mxu1 }
 0x300   : > { %v4074_v5 = vpop.f32.mrb[15].mxu1  ;;  %v4083_v49 = vadd.f32 %v4644_v2, %v7075_v3  ;;  %v4116_v8 = vmax.f32 %v4080_v12, 0.0 }
 0x301   : > { %v4114_v40 = vmax.f32 %v4072_v18, 0.0  ;;  %v4075_v47 = vadd.f32 %v7075_v3, %v4074_v5 }
 0x302   : > { %v4117_v41 = vmax.f32 %v4083_v49, 0.0 }
 0x303   : > { %v4115_v6 = vmax.f32 %v4075_v47, 0.0  ;;  %4266 = vrot.lane.b32.xlu1 %v4114_v40, %s4760_s25 }
 0x305   : > { %4268 = vrot.lane.b32.xlu0 %v4115_v6, %s4760_s25 }
 0x307   : > { %4277 = vrot.lane.b32.xlu1 %v4116_v8, %s4756_s21 }
 0x309   : > { %4279 = vrot.lane.b32.xlu0 %v4117_v41, %s4756_s21 }
 0x318   : > { %v4234_v17 = vpop.permute.xlu1 %4233 }
 0x31a   : > { %v4236_v61 = vpop.permute.xlu0 %4235 }
 0x31c   : > { %v4223_v50 = vpop.permute.xlu1 %4222 }
 0x31e   : > { %v4225_v26 = vpop.permute.xlu0 %4224 }
 0x320   : > { %v4168_v3 = vpop.permute.xlu1 %4167 }
 0x322   : > { %v4170_v44 = vpop.permute.xlu0 %4169 }
 0x324   : > { %v4157_v63 = vpop.permute.xlu1 %4156 }
 0x325   : > { %4163 = vst.msk [vmem:[%s7084_s7] sm:$0xff] %vm4162_vm0, %v4157_v63 }
 0x326   : > { %v4159_v24 = vpop.permute.xlu0 %4158  ;;  %4174 = vst.msk [vmem:[%s7084_s7] sm:$0xff] %vm4173_vm11, %v4168_v3 }
 0x327   : > { %4164 = vst.msk [vmem:[%s7084_s7 + $0x8] sm:$0xff] %vm4162_vm0, %v4159_v24 }
 0x328   : > { %4175 = vst.msk [vmem:[%s7084_s7 + $0x8] sm:$0xff] %vm4173_vm11, %v4170_v44 }
 0x352   : > { %v4245_v39 = vpop.permute.xlu1 %4244 }
 0x354   : > { %v4247_v13 = vpop.permute.xlu0 %4246 }
 0x356   : > { %v4190_v54 = vpop.permute.xlu1 %4189 }
 0x358   : > { %v4192_v25 = vpop.permute.xlu0 %4191 }
 0x35a   : > { %v4179_v14 = vpop.permute.xlu1 %4178 }
 0x35b   : > { %4185 = vst.msk [vmem:[%s7084_s7] sm:$0xff] %vm4184_vm14, %v4179_v14 }
 0x35c   : > { %4196 = vst.msk [vmem:[%s7084_s7] sm:$0xff] %vm4195_vm15, %v4190_v54  ;;  %v4181_v31 = vpop.permute.xlu0 %4180 }
 0x35d   : > { %4207 = vst.msk [vmem:[%s7084_s7] sm:$0xff] %vm4206_vm2, %v7127_v15 }
 0x35e   : > { %4186 = vst.msk [vmem:[%s7084_s7 + $0x8] sm:$0xff] %vm4184_vm14, %v4181_v31  ;;  %v4256_v4 = vpop.permute.xlu1 %4255 }
 0x35f   : > { %4218 = vst.msk [vmem:[%s7084_s7] sm:$0xff] %vm4217_vm9, %v7122_v29 }
 0x360   : > { %4197 = vst.msk [vmem:[%s7084_s7 + $0x8] sm:$0xff] %vm4195_vm15, %v4192_v25  ;;  %v4258_v42 = vpop.permute.xlu0 %4257 }
 0x361   : > { %4208 = vst.msk [vmem:[%s7084_s7 + $0x8] sm:$0xff] %vm4206_vm2, %v7131_v53 }
 0x362   : > { %4229 = vst.msk [vmem:[%s7084_s7] sm:$0xff] %vm4228_vm3, %v4223_v50 }
 0x363   : > { %4219 = vst.msk [vmem:[%s7084_s7 + $0x8] sm:$0xff] %vm4217_vm9, %v7124_v30 }
 0x364   : > { %4240 = vst.msk [vmem:[%s7084_s7] sm:$0xff] %vm4239_vm13, %v4234_v17 }
 0x365   : > { %4251 = vst.msk [vmem:[%s7084_s7] sm:$0xff] %vm4250_vm8, %v4245_v39 }
 0x366   : > { %4230 = vst.msk [vmem:[%s7084_s7 + $0x8] sm:$0xff] %vm4228_vm3, %v4225_v26 }
 0x367   : > { %4262 = vst.msk [vmem:[%s7084_s7] sm:$0xff] %vm4261_vm4, %v4256_v4 }
 0x368   : > { %4241 = vst.msk [vmem:[%s7084_s7 + $0x8] sm:$0xff] %vm4239_vm13, %v4236_v61 }
 0x369   : > { %4252 = vst.msk [vmem:[%s7084_s7 + $0x8] sm:$0xff] %vm4250_vm8, %v4247_v13 }
 0x36a   : > { %4263 = vst.msk [vmem:[%s7084_s7 + $0x8] sm:$0xff] %vm4261_vm4, %v4258_v42 }
 0x375   : > { %v4267_v10 = vpop.permute.xlu1 %4266 }
 0x376   : > { %4273 = vst.msk [vmem:[%s7084_s7] sm:$0xff] %vm4272_vm10, %v4267_v10 }
 0x377   : > { %v4269_v0 = vpop.permute.xlu0 %4268 }
 0x378   : > { %4274 = vst.msk [vmem:[%s7084_s7 + $0x8] sm:$0xff] %vm4272_vm10, %v4269_v0 }
 0x379   : > { %v4278_v7 = vpop.permute.xlu1 %4277 }
 0x37a   : > { %4284 = vst.msk [vmem:[%s7084_s7] sm:$0xff] %vm4283_vm12, %v4278_v7 }
 0x37b   : > { %v4280_v21 = vpop.permute.xlu0 %4279 }
 0x37c   : > { %4285 = vst.msk [vmem:[%s7084_s7 + $0x8] sm:$0xff] %vm4283_vm12, %v4280_v21 }
 0x37d PF: > { %s13_s12 = sadd.s32 1, %s4750_s12  }
 0x37e   : > { %p10_p4 = scmp.ge.s32.totalorder %s13_s12, 4  }
 0x380   :  { %12 = sbr.rel (!%p10_p4) target bundleno = 1 (0x1), region = 62 }

// kernel: conv_block_forward.3
= control target key start
LH: loop header
LB: loop body
LE: loop exit
PB: predicated region body
PF: predicated region fallthrough
CT: control target
= control target key end

     0   :  { %s6280_s21 = smov 0   ;;  %s6282_s22 = smov 0   ;;  %s8642_s0 = inlined_call_operand.vmem [shape: f32[2,16,128], index: 0, kind: input, shape index: {}]   ;;  %s8643_s1 = inlined_call_operand.vmem [shape: bf16[2,18,2], index: 1, kind: input, shape index: {}]   ;;  %s8644_s2 = inlined_call_operand.vmem [shape: bf16[2,2,16], index: 2, kind: input, shape index: {}]   ;;  %s8645_s3 = inlined_call_operand.vmem [shape: bf16[2,6,16], index: 3, kind: input, shape index: {}]   ;;  %s8646_s4 = inlined_call_operand.vmem [shape: f32[2,1,16], index: 4, kind: input, shape index: {}]   ;;  %s8647_s5 = inlined_call_operand.vmem [shape: bf16[2,16,8], index: 5, kind: input, shape index: {}]   ;;  %s8648_s6 = inlined_call_operand.vmem [shape: f32[2,16,128], index: 6, kind: output, shape index: {}]  }
   0x1   :  { %8661 = sst [smem:[#allocation6_spill]] %s8642_s0  ;;  %s6284_s23 = smov 0  }
   0x2   :  { %s6286_s24 = smov 0   ;;  %s6288_s25 = smov 0  }
   0x3 LB: > { %s25_s26 = sadd.s32 1, %s6193_s23  ;;  %s28_s27 = sadd.s32 1, %s6197_s24  ;;  %s6201_s25 = sphi %s6288_s25, %s16_s25   ;;  %s6197_s24 = sphi %s6286_s24, %s8998_s24   ;;  %s6193_s23 = sphi %s6284_s23, %s8997_s23   ;;  %s6189_s22 = sphi %s6282_s22, %s8996_s22   ;;  %s6185_s21 = sphi %s6280_s21, %s8995_s21  }
   0x4   : > { %p26_p0 = scmp.ge.s32.totalorder %s25_s26, 2  ;;  %p5453_p1 = scmp.ge.s32.totalorder %s6201_s25, 1 }
   0x5   : > { %p269_p2 = scmp.lt.s32.totalorder %s6201_s25, 5 }
   0x6   : > { %s9000_s26 = smov (%p26_p0, %s25_s26), 0  ;;  %s9002_s27 = smov (!%p26_p0, %s28_s27), %s6197_s24 }
   0x7   : > { %p270_p3 = pnand %p5453_p1, %p269_p2  ;;  %p30_p4 = scmp.ge.s32.totalorder %s9002_s27, 2 }
   0x8   : > { %p319_p5 = scmp.lt.s32.totalorder (!%p270_p3), %s6189_s22, 1  ;;  %p324_p6 = scmp.lt.s32.totalorder (!%p270_p3), %s6185_s21, 1 }
   0x9   : > { %s9004_s27 = smov (%p30_p4, %s9002_s27), 0  ;;  %273 = sbr.rel (%p270_p3) target bundleno = 1453 (0x5ad), region = 44 }
   0xa   : > { %8662 = sst [smem:[#allocation5_spill]] %s9004_s27  ;;  %s8663_s0 = sld [smem:[#allocation6_spill]] (!%p270_p3) }
   0xb   : > { %p5462_p7 = scmp.ne.s32.totalorder (!%p270_p3), %s6185_s21, 0 }
  0x10   : > { %s9006_s22 = smov (!%p319_p5, %s6189_s22), 1  ;;  %vm358_vm0 = vcmask (!%p5462_p7), 64512   ;;  %s6204_s14 = smov (!%p5462_p7), 120   ;;  %vm541_vm1 = vcmask (!%p5462_p7), 11264   ;;  %vm544_vm2 = vcmask (!%p5462_p7), 8192   ;;  %v6214_v5 = vmov (!%p5462_p7), 0  }
  0x11   : > { %s6314_s28 = scalar_select %p324_p6, %s6185_s21, 1 }
  0x12   : > { %s5716_s29 = sshll.u32 %s9006_s22, 4  ;;  %355 = sbr.rel (%p5462_p7) target bundleno = 196 (0xc4), region = 48  ;;  %vm545_vm3 = vsmask.f32 (!%p5462_p7), 256  ;;  %vm551_vm4 = vsmask.f32 (!%p5462_p7), 7938 }
  0x13   : > { %s323_s8 = scalar_lea.vmem %s8663_s0, %s5716_s29  ;;  %s5993_s9 = smul.u32 12, %s6314_s28  ;;  %vm546_vm5 = vmand (!%p5462_p7), %vm544_vm2, %vm545_vm3  ;;  %v547_v2 = vld [vmem:[#allocation3 + $0x8] sm:$0x1] (!%p5462_p7)  ;;  %542 = vst.msk [vmem:[#allocation3] sm:$0xf] (!%p5462_p7), %vm541_vm1, %v6214_v5 }
  0x14   : > { %s5457_s13 = sshll.u32 %s6314_s28, 2  ;;  %s338_s30 = scalar_lea.vmem %s8646_s4, %s6314_s28  ;;  %v6351_v0 = vld [vmem:[%s323_s8] sm:$0xff] (!%p5462_p7)  ;;  %v6353_v1 = vld [vmem:[%s323_s8 + $0x8] sm:$0xff] (!%p5462_p7)  ;;  %v548_v4 = vsel (!%p5462_p7), %vm546_vm5, 0, %v547_v2  ;;  %vm552_vm6 = vmand (!%p5462_p7), %vm541_vm1, %vm551_vm4  ;;  %543 = vst.msk [vmem:[#allocation3 + $0x4] sm:$0xf] (!%p5462_p7), %vm541_vm1, %v6214_v5 }
  0x15   : > { %s6328_s16 = scalar_lea.vmem %s8643_s1, %s5993_s9  ;;  %s6333_s19 = scalar_lea.vmem %s8645_s3, %s5457_s13  ;;  %365 = vrot.lane.b32.xlu0 (!%p5462_p7), %v6351_v0, %s6204_s14  ;;  %359 = vst.msk [vmem:[#allocation2] sm:$0xff] (!%p5462_p7), %vm358_vm0, %v6351_v0  ;;  %360 = vst.msk [vmem:[#allocation2 + $0x8] sm:$0xff] (!%p5462_p7), %vm358_vm0, %v6353_v1  ;;  %v553_v3 = vld [vmem:[#allocation3 + $0x88] sm:$0xf] (!%p5462_p7) }
  0x16   : > { %s5717_s7 = sshll.u32 %s6314_s28, 3  ;;  %s6348_s9 = scalar_lea.vmem %s8648_s6, %s5716_s29  ;;  %549 = vst [vmem:[#allocation3 + $0x8] sm:$0x1] (!%p5462_p7), %v548_v4  ;;  %v554_v6 = vsel (!%p5462_p7), %vm552_vm6, 0, %v553_v3  ;;  %556 = vst.msk [vmem:[#allocation3 + $0x8c] sm:$0xf] (!%p5462_p7), %vm541_vm1, %v6214_v5 }
  0x17   : > { %s6343_s10 = scalar_lea.vmem %s8647_s5, %s5717_s7  ;;  %s6203_s13 = smov (!%p5462_p7), 112   ;;  %558 = vst.msk [vmem:[#allocation3 + $0x90] sm:$0x1] (!%p5462_p7), %vm544_vm2, %v6214_v5  ;;  %555 = vst [vmem:[#allocation3 + $0x88] sm:$0xf] (!%p5462_p7), %v554_v6 }
  0x18   : > { %377 = vrot.lane.b32.xlu1 (!%p5462_p7), %v6351_v0, %s6203_s13  ;;  %s6205_s0 = smov (!%p5462_p7), 104   ;;  %s6206_s27 = smov (!%p5462_p7), 96  }
  0x19   : > { %367 = vrot.lane.b32.xlu0 %v6353_v1, %s6204_s14  ;;  %s6207_s29 = smov 88   ;;  %s6208_s8 = smov 80  }
  0x1a   : > { %s6209_s12 = smov 72   ;;  %s6210_s15 = smov 64  }
  0x1b   : > { %s6211_s17 = smov 56   ;;  %s6212_s18 = smov 48  }
  0x1c   : > { %379 = vrot.lane.b32.xlu1 %v6353_v1, %s6203_s13  ;;  %s6213_s20 = smov 40   ;;  %s6215_s22 = smov 32  }
  0x1d   : > { %389 = vrot.lane.b32.xlu0 %v6351_v0, %s6205_s0  ;;  %s6216_s7 = smov 24   ;;  %s6217_s11 = smov 16  }
  0x1e   : > { %s6218_s13 = smov 8  }
  0x20   : > { %391 = vrot.lane.b32.xlu1 %v6353_v1, %s6205_s0 }
  0x21   : > { %401 = vrot.lane.b32.xlu0 %v6351_v0, %s6206_s27 }
  0x24   : > { %403 = vrot.lane.b32.xlu1 %v6353_v1, %s6206_s27 }
  0x25   : > { %413 = vrot.lane.b32.xlu0 %v6351_v0, %s6207_s29 }
  0x28   : > { %415 = vrot.lane.b32.xlu1 %v6353_v1, %s6207_s29 }
  0x29   : > { %425 = vrot.lane.b32.xlu0 %v6351_v0, %s6208_s8 }
  0x2c   : > { %427 = vrot.lane.b32.xlu1 %v6353_v1, %s6208_s8 }
  0x2d   : > { %437 = vrot.lane.b32.xlu0 %v6351_v0, %s6209_s12 }
  0x30   : > { %439 = vrot.lane.b32.xlu1 %v6353_v1, %s6209_s12 }
  0x31   : > { %449 = vrot.lane.b32.xlu0 %v6351_v0, %s6210_s15 }
  0x34   : > { %451 = vrot.lane.b32.xlu1 %v6353_v1, %s6210_s15 }
  0x35   : > { %461 = vrot.lane.b32.xlu0 %v6351_v0, %s6211_s17 }
  0x38   : > { %463 = vrot.lane.b32.xlu1 %v6353_v1, %s6211_s17 }
  0x39   : > { %473 = vrot.lane.b32.xlu0 %v6351_v0, %s6212_s18 }
  0x3c   : > { %475 = vrot.lane.b32.xlu1 %v6353_v1, %s6212_s18 }
  0x3d   : > { %485 = vrot.lane.b32.xlu0 %v6351_v0, %s6213_s20 }
  0x40   : > { %487 = vrot.lane.b32.xlu1 %v6353_v1, %s6213_s20 }
  0x41   : > { %497 = vrot.lane.b32.xlu0 %v6351_v0, %s6215_s22 }
  0x44   : > { %499 = vrot.lane.b32.xlu1 %v6353_v1, %s6215_s22 }
  0x45   : > { %509 = vrot.lane.b32.xlu0 %v6351_v0, %s6216_s7 }
  0x48   : > { %511 = vrot.lane.b32.xlu1 %v6353_v1, %s6216_s7 }
  0x49   : > { %521 = vrot.lane.b32.xlu0 %v6351_v0, %s6217_s11 }
  0x4c   : > { %523 = vrot.lane.b32.xlu1 %v6353_v1, %s6217_s11 }
  0x4d   : > { %533 = vrot.lane.b32.xlu0 %v6351_v0, %s6218_s13 }
  0x50   : > { %535 = vrot.lane.b32.xlu1 %v6353_v1, %s6218_s13 }
  0x87   : > { %v366_v8 = vpop.permute.xlu0 %365 }
  0x88   : > { %371 = vst.msk [vmem:[#allocation2 + $0x10] sm:$0xff] %vm358_vm0, %v366_v8 }
  0x8a   : > { %v378_v7 = vpop.permute.xlu1 %377 }
  0x8b   : > { %383 = vst.msk [vmem:[#allocation2 + $0x20] sm:$0xff] %vm358_vm0, %v378_v7  ;;  %v368_v10 = vpop.permute.xlu0 %367 }
  0x8c   : > { %372 = vst.msk [vmem:[#allocation2 + $0x18] sm:$0xff] %vm358_vm0, %v368_v10 }
  0x8e   : > { %v380_v9 = vpop.permute.xlu1 %379 }
  0x8f   : > { %384 = vst.msk [vmem:[#allocation2 + $0x28] sm:$0xff] %vm358_vm0, %v380_v9  ;;  %v390_v12 = vpop.permute.xlu0 %389 }
  0x90   : > { %395 = vst.msk [vmem:[#allocation2 + $0x30] sm:$0xff] %vm358_vm0, %v390_v12 }
  0x92   : > { %v392_v11 = vpop.permute.xlu1 %391 }
  0x93   : > { %396 = vst.msk [vmem:[#allocation2 + $0x38] sm:$0xff] %vm358_vm0, %v392_v11  ;;  %v402_v14 = vpop.permute.xlu0 %401 }
  0x94   : > { %407 = vst.msk [vmem:[#allocation2 + $0x40] sm:$0xff] %vm358_vm0, %v402_v14 }
  0x96   : > { %v404_v13 = vpop.permute.xlu1 %403 }
  0x97   : > { %408 = vst.msk [vmem:[#allocation2 + $0x48] sm:$0xff] %vm358_vm0, %v404_v13  ;;  %v414_v16 = vpop.permute.xlu0 %413 }
  0x98   : > { %419 = vst.msk [vmem:[#allocation2 + $0x50] sm:$0xff] %vm358_vm0, %v414_v16 }
  0x9a   : > { %v416_v15 = vpop.permute.xlu1 %415 }
  0x9b   : > { %420 = vst.msk [vmem:[#allocation2 + $0x58] sm:$0xff] %vm358_vm0, %v416_v15  ;;  %v426_v18 = vpop.permute.xlu0 %425 }
  0x9c   : > { %431 = vst.msk [vmem:[#allocation2 + $0x60] sm:$0xff] %vm358_vm0, %v426_v18 }
  0x9e   : > { %v428_v17 = vpop.permute.xlu1 %427 }
  0x9f   : > { %432 = vst.msk [vmem:[#allocation2 + $0x68] sm:$0xff] %vm358_vm0, %v428_v17  ;;  %v438_v20 = vpop.permute.xlu0 %437 }
  0xa0   : > { %443 = vst.msk [vmem:[#allocation2 + $0x70] sm:$0xff] %vm358_vm0, %v438_v20 }
  0xa2   : > { %v440_v19 = vpop.permute.xlu1 %439 }
  0xa3   : > { %444 = vst.msk [vmem:[#allocation2 + $0x78] sm:$0xff] %vm358_vm0, %v440_v19  ;;  %v450_v22 = vpop.permute.xlu0 %449 }
  0xa4   : > { %455 = vst.msk [vmem:[#allocation2 + $0x80] sm:$0xff] %vm358_vm0, %v450_v22 }
  0xa6   : > { %v452_v21 = vpop.permute.xlu1 %451 }
  0xa7   : > { %456 = vst.msk [vmem:[#allocation2 + $0x88] sm:$0xff] %vm358_vm0, %v452_v21  ;;  %v462_v24 = vpop.permute.xlu0 %461 }
  0xa8   : > { %467 = vst.msk [vmem:[#allocation2 + $0x90] sm:$0xff] %vm358_vm0, %v462_v24 }
  0xaa   : > { %v464_v23 = vpop.permute.xlu1 %463 }
  0xab   : > { %468 = vst.msk [vmem:[#allocation2 + $0x98] sm:$0xff] %vm358_vm0, %v464_v23  ;;  %v474_v26 = vpop.permute.xlu0 %473 }
  0xac   : > { %479 = vst.msk [vmem:[#allocation2 + $0xa0] sm:$0xff] %vm358_vm0, %v474_v26 }
  0xae   : > { %v476_v25 = vpop.permute.xlu1 %475 }
  0xaf   : > { %480 = vst.msk [vmem:[#allocation2 + $0xa8] sm:$0xff] %vm358_vm0, %v476_v25  ;;  %v486_v28 = vpop.permute.xlu0 %485 }
  0xb0   : > { %491 = vst.msk [vmem:[#allocation2 + $0xb0] sm:$0xff] %vm358_vm0, %v486_v28 }
  0xb2   : > { %v488_v27 = vpop.permute.xlu1 %487 }
  0xb3   : > { %492 = vst.msk [vmem:[#allocation2 + $0xb8] sm:$0xff] %vm358_vm0, %v488_v27  ;;  %v498_v30 = vpop.permute.xlu0 %497 }
  0xb4   : > { %503 = vst.msk [vmem:[#allocation2 + $0xc0] sm:$0xff] %vm358_vm0, %v498_v30 }
  0xb6   : > { %v500_v29 = vpop.permute.xlu1 %499 }
  0xb7   : > { %504 = vst.msk [vmem:[#allocation2 + $0xc8] sm:$0xff] %vm358_vm0, %v500_v29  ;;  %v510_v32 = vpop.permute.xlu0 %509 }
  0xb8   : > { %515 = vst.msk [vmem:[#allocation2 + $0xd0] sm:$0xff] %vm358_vm0, %v510_v32 }
  0xba   : > { %v512_v31 = vpop.permute.xlu1 %511 }
  0xbb   : > { %516 = vst.msk [vmem:[#allocation2 + $0xd8] sm:$0xff] %vm358_vm0, %v512_v31  ;;  %v522_v34 = vpop.permute.xlu0 %521 }
  0xbc   : > { %527 = vst.msk [vmem:[#allocation2 + $0xe0] sm:$0xff] %vm358_vm0, %v522_v34 }
  0xbe   : > { %v524_v33 = vpop.permute.xlu1 %523 }
  0xbf   : > { %528 = vst.msk [vmem:[#allocation2 + $0xe8] sm:$0xff] %vm358_vm0, %v524_v33  ;;  %v534_v36 = vpop.permute.xlu0 %533 }
  0xc0   : > { %539 = vst.msk [vmem:[#allocation2 + $0xf0] sm:$0xff] %vm358_vm0, %v534_v36 }
  0xc2   : > { %v536_v35 = vpop.permute.xlu1 %535 }
  0xc3   : > { %540 = vst.msk [vmem:[#allocation2 + $0xf8] sm:$0xff] %vm358_vm0, %v536_v35 }
  0xc4 PF: > { %v561_v38 = vld [vmem:[#allocation2 + $0x10] sm:$0xff]  ;;  %v562_v39 = vld [vmem:[#allocation2 + $0x18] sm:$0xff]  ;;  %vm8649_vm7 = vsmask.f32 256  ;;  %vm8653_vm8 = vcmask 11264   ;;  %v1053_v40 = vlaneseq  ;;  %v563_v51 = vld [vmem:[#allocation2 + $0x20] sm:$0xff]  ;;  %s8943_s20 = scalar_lea.vmem %s8644_s2, %s6314_s28 }
  0xc5   : > { %v5721_v42 = vpack.c.bf16 %v561_v38, %v561_v38  ;;  %v5722_v43 = vpack.c.bf16 %v562_v39, %v562_v39  ;;  %vm688_vm9 = vsmask.f32 4368  ;;  %vm1011_vm10 = vsmask.f32 7938  ;;  %v564_v52 = vld [vmem:[#allocation2 + $0x28] sm:$0xff]  ;;  %v566_v62 = vld [vmem:[#allocation2 + $0x38] sm:$0xff] }
  0xc6   : > { %v6419_v45 = vshrl.u32 %v1053_v40, 7  ;;  %vm6424_vm11 = vmor %vm8649_vm7, %vm688_vm9  ;;  %v5723_v0 = vpack.c.bf16 %v563_v51, %v563_v51  ;;  %v5724_v1 = vpack.c.bf16 %v564_v52, %v564_v52  ;;  %vm6219_vm14 = vmmov 1   ;;  %s6221_s14 = smov 4   ;;  %s6222_s0 = smov 2   ;;  %v4297_v20 = vld [vmem:[%s6333_s19] sm:$0x7] }
  0xc7   : > { %v560_v37 = vld [vmem:[#allocation2 + $0x8] sm:$0xff]  ;;  %v559_v44 = vld [vmem:[#allocation2] sm:$0xff]  ;;  %v708_v48 = vshrl.u32 %v5721_v42, 16  ;;  %v711_v49 = vshll.u32 %v5721_v42, 16  ;;  %v717_v50 = vshrl.u32 %v5722_v43, 16  ;;  %v720_v53 = vshll.u32 %v5722_v43, 16  ;;  %vm6434_vm13 = vmand %vm8653_vm8, %vm1011_vm10 }
  0xc8   : > { %v5720_v41 = vpack.c.bf16 %v560_v37, %v560_v37  ;;  %v5719_v46 = vpack.c.bf16 %v559_v44, %v559_v44  ;;  %v1090_v54 = vand.u32 15, %v6419_v45  ;;  %v1013_v7 = vld [vmem:[#allocation3 + $0x8] sm:$0xf]  ;;  %v726_v14 = vshrl.u32 %v5723_v0, 16  ;;  %vm6448_vm15 = vmpackc.low %vm6219_vm14, %vm6219_vm14  ;;  %v565_v44 = vld [vmem:[#allocation2 + $0x30] sm:$0xff]  ;;  %s6223_s27 = smov 12  }
  0xc9   : > { %v710_v58 = vrot.slane %v708_v48, 7  ;;  %v719_v59 = vrot.slane %v717_v50, 7  ;;  %v729_v15 = vshll.u32 %v5723_v0, 16  ;;  %v735_v18 = vshrl.u32 %v5724_v1, 16  ;;  %s6224_s29 = smov 14   ;;  %s6225_s8 = smov 6  }
  0xca   : > { %v699_v47 = vshrl.u32 %v5720_v41, 16  ;;  %v691_v55 = vshrl.u32 %v5719_v46, 16  ;;  %v694_v56 = vshll.u32 %v5719_v46, 16  ;;  %v702_v60 = vshll.u32 %v5720_v41, 16  ;;  %s6226_s12 = smov 8   ;;  %s6227_s15 = smov 10  }
  0xcb   : > { %vm6428_vm12 = vcmp.ge.s32.totalorder %v1090_v54, 1  ;;  %v713_v3 = vor.u32 %v711_v49, %v710_v58  ;;  %v715_v4 = vrot.slane %v710_v58, 4  ;;  %v722_v5 = vor.u32 %v720_v53, %v719_v59  ;;  %s6228_s17 = smov 16   ;;  %p5713_p8 = scmp.ne.s32.totalorder %s6185_s21, 1 }
  0xcc   : > { %v701_v57 = vrot.slane %v699_v47, 7  ;;  %v693_v63 = vrot.slane %v691_v55, 7  ;;  %v724_v11 = vrot.slane %v719_v59, 4  ;;  %v738_v19 = vshll.u32 %v5724_v1, 16  ;;  %vm6466_vm1 = vmpackc.low %vm6428_vm12, %vm6428_vm12  ;;  %s6230_s28 = smov (!%p5713_p8), 16   ;;  %s6232_s7 = smov (!%p5713_p8), 24  }
  0xcd   : > { %v723_v13 = vsel %vm6424_vm11, %v715_v4, %v722_v5  ;;  %v728_v21 = vrot.slane %v726_v14, 7  ;;  %v1056_v22 = vadd.s32 16, %v6419_v45  ;;  %v1055_v23 = vadd.s32 8, %v6419_v45  ;;  %v3069_v14 = vld [vmem:[#allocation3] sm:$0xe]  ;;  %s6233_s21 = smov (!%p5713_p8), 32  }
  0xce   : > { %v706_v2 = vrot.slane %v701_v57, 4  ;;  %v696_v8 = vor.u32 %v694_v56, %v693_v63  ;;  %v697_v9 = vrot.slane %v693_v63, 4  ;;  %v704_v10 = vor.u32 %v702_v60, %v701_v57  ;;  %1019 = vst.msk [vmem:[#allocation3 + $0x14] sm:$0xf] %vm8653_vm8, %v723_v13  ;;  %v567_v63 = vld [vmem:[#allocation2 + $0x40] sm:$0xff]  ;;  %s6234_s11 = smov (!%p5713_p8), 40  }
  0xcf   : > { %v1057_v24 = vadd.s32 24, %v6419_v45  ;;  %v6456_v25 = vrot.slane %v735_v18, 7  ;;  %v1059_v26 = vadd.s32 40, %v6419_v45  ;;  %vm8650_vm0 = vcmask 1040384   ;;  %s6235_s13 = smov (!%p5713_p8), 48  }
  0xd0   : > { %v714_v12 = vsel %vm6424_vm11, %v706_v2, %v713_v3  ;;  %v705_v16 = vsel %vm6424_vm11, %v697_v9, %v704_v10  ;;  %v1014_v17 = vsel %vm6434_vm13, %v696_v8, %v1013_v7  ;;  %v731_v27 = vor.u32 %v729_v15, %v728_v21 }
  0xd1   : > { %1018 = vst.msk [vmem:[#allocation3 + $0x10] sm:$0xf] %vm8653_vm8, %v714_v12  ;;  %1015 = vst [vmem:[#allocation3 + $0x8] sm:$0xf] %v1014_v17  ;;  %v733_v28 = vrot.slane %v728_v21, 4  ;;  %v1104_v29 = vand.u32 15, %v1056_v22  ;;  %v740_v31 = vor.u32 %v738_v19, %v6456_v25  ;;  %v6527_v4 = vpack.c.bf16 %v565_v44, %v565_v44 }
  0xd2   : > { %1017 = vst.msk [vmem:[#allocation3 + $0xc] sm:$0xf] %vm8653_vm8, %v705_v16  ;;  %v1097_v30 = vand.u32 15, %v1055_v23  ;;  %v1111_v32 = vand.u32 15, %v1057_v24  ;;  %v1125_v33 = vand.u32 15, %v1059_v26  ;;  %v6220_v34 = vmov 0  }
  0xd3   : > { %v3166_v35 = vsel %vm6448_vm15, 65537, %v6220_v34  ;;  %v732_v37 = vsel %vm6424_vm11, %v724_v11, %v731_v27  ;;  %vm1504_vm2 = vcmp.ge.s32.totalorder %v1104_v29, 1  ;;  %vm3199_vm4 = vcmask 1044484   ;;  %v3070_v23 = vld [vmem:[#allocation3 + $0x4] sm:$0xf] }
  0xd4   : > { %vm6472_vm3 = vcmp.le.s32.totalorder %v1097_v30, 14  ;;  %v741_v39 = vsel %vm6424_vm11, %v733_v28, %v740_v31  ;;  %1020 = vst.msk [vmem:[#allocation3 + $0x18] sm:$0xf] %vm8653_vm8, %v732_v37  ;;  %vm6479_vm5 = vmpackc.low %vm1504_vm2, %vm1504_vm2  ;;  %vm6483_vm6 = vcmp.le.s32.totalorder %v1111_v32, 14  ;;  %vm6487_vm9 = vcmp.le.s32.totalorder %v1125_v33, 14 }
  0xd5   : > { %v6491_v43 = vrot.slane %v3166_v35, 7  ;;  %v1921_v47 = vld [vmem:[#allocation3 + $0x14] sm:$0xf]  ;;  %1021 = vst.msk [vmem:[#allocation3 + $0x1c] sm:$0xf] %vm8653_vm8, %v741_v39  ;;  %vm3135_vm10 = vmpackc.low %vm6472_vm3, %vm6472_vm3  ;;  %vm8651_vm2 = vcmask 1046528   ;;  %v6535_v15 = vpack.c.bf16 %v566_v62, %v566_v62  ;;  %v6537_v16 = vpack.c.bf16 %v567_v63, %v567_v63 }
  0xd6   : > { %v1953_v50 = vsel %vm6448_vm15, %v1921_v47, 0  ;;  %v1714_v56 = vld [vmem:[#allocation3 + $0x14] sm:$0xf]  ;;  %vm3137_vm12 = vmpackc.low %vm6483_vm6, %vm6483_vm6  ;;  %v3167_v60 = vsel %vm3135_vm10, 65537, %v6220_v34  ;;  %v1058_v37 = vadd.s32 32, %v6419_v45 }
  0xd7   : > { %v1746_v59 = vsel %vm6448_vm15, %v1714_v56, 0  ;;  %vm3139_vm13 = vmpackc.low %vm6487_vm9, %vm6487_vm9  ;;  %v3169_v1 = vsel %vm3137_vm12, 65537, %v6220_v34  ;;  %v6531_v6 = vrot.slane %v6491_v43, 4  ;;  %v3203_v7 = vrot.slane %v3167_v60, 7  ;;  %v3074_v13 = vld [vmem:[#allocation3 + $0x14] sm:$0xf] }
  0xd8   : > { %v1920_v46 = vld [vmem:[#allocation3 + $0x10] sm:$0xf]  ;;  %v1711_v51 = vld [vmem:[#allocation3 + $0x8] sm:$0xf]  ;;  %v6519_v2 = vsel %vm3139_vm13, 65537, %v6220_v34  ;;  %vm6523_vm14 = vmor %vm8650_vm0, %vm3199_vm4  ;;  %v3209_v8 = vrot.slane %v3169_v1, 7 }
  0xd9   : > { %v1713_v48 = vld [vmem:[#allocation3 + $0x10] sm:$0xf]  ;;  %v1952_v49 = vsel %vm6466_vm1, %v1920_v46, 0  ;;  %v1712_v52 = vld [vmem:[#allocation3 + $0xc] sm:$0xf]  ;;  %v1743_v54 = vsel %vm6466_vm1, %v1711_v51, 0  ;;  %v6559_v27 = vsel %vm6523_vm14, %v6531_v6, %v3203_v7 }
  0xda   : > { %v5527_v53 = vcombine.low %v1952_v49, %v1953_v50  ;;  %v1744_v55 = vsel %vm6448_vm15, %v1712_v52, 0  ;;  %v1745_v57 = vsel %vm6479_vm5, %v1713_v48, 0  ;;  %v3072_v5 = vld [vmem:[#allocation3 + $0xc] sm:$0xf]  ;;  %v3215_v9 = vrot.slane %v6519_v2, 7  ;;  %v6589_v50 = vld [vmem:[#allocation3 + $0x10] sm:$0xff]  }
  0xdb   : > { %v5511_v58 = vcombine.low %v1743_v54, %v1744_v55  ;;  %v5512_v0 = vcombine.low %v1745_v57, %v1746_v59  ;;  %v1922_v10 = vld [vmem:[#allocation3 + $0x18] sm:$0xf]  ;;  %v3071_v11 = vld [vmem:[#allocation3 + $0x8] sm:$0xf]  ;;  %v3073_v12 = vld [vmem:[#allocation3 + $0x10] sm:$0xf]  ;;  %v6544_v21 = vsel %vm6523_vm14, %v6531_v6, %v3209_v8 }
  0xdc   : > { %2064 = vrot.lane.b32.xlu1 %v5527_v53, %s6221_s14  ;;  %vm3296_vm3 = vcmp.ne.s16.totalorder %v6491_v43, 0  ;;  %v1923_v17 = vld [vmem:[#allocation3 + $0x1c] sm:$0xf]  ;;  %v1954_v18 = vsel %vm6479_vm5, %v1922_v10, 0  ;;  %v3205_v19 = vrot.slane %v3203_v7, 4  ;;  %v3211_v22 = vrot.slane %v3209_v8, 4 }
  0xdd   : > { %1855 = vrot.lane.b32.xlu0 %v5511_v58, %s6222_s0  ;;  %v1955_v24 = vsel %vm6448_vm15, %v1923_v17, 0  ;;  %v6553_v26 = vsel %vm6523_vm14, %v6531_v6, %v3215_v9  ;;  %vm3299_vm4 = vcmp.ne.s16.totalorder %v6544_v21, 0  ;;  %v3546_v28 = vld [vmem:[#allocation3 + $0x10] sm:$0xf]  ;;  %v3547_v29 = vld [vmem:[#allocation3 + $0x14] sm:$0xf] }
  0xde   : > { %v5528_v30 = vcombine.low %v1954_v18, %v1955_v24  ;;  %v3207_v31 = vsel %vm6523_vm14, %v3205_v19, %v6491_v43  ;;  %v3213_v32 = vsel %vm6523_vm14, %v3211_v22, %v6491_v43  ;;  %vm3301_vm6 = vcmp.ne.s16.totalorder %v6553_v26, 0  ;;  %v3548_v33 = vld [vmem:[#allocation3 + $0x18] sm:$0xf]  ;;  %v3549_v35 = vld [vmem:[#allocation3 + $0x1c] sm:$0xf]  ;;  %v6076_v49 = vld [vmem:[#allocation3 + $0x8] sm:$0xff]  }
  0xdf   : > { %vm6569_vm9 = vcmp.ne.s16.totalorder %v3207_v31, 0  ;;  %vm6573_vm10 = vcmp.ne.s16.totalorder %v3213_v32, 0  ;;  %v3332_v39 = vsel %vm3299_vm4, %v3072_v5, 0  ;;  %v3334_v41 = vsel %vm3301_vm6, %v3074_v13, 0  ;;  %v3544_v42 = vld [vmem:[#allocation3 + $0x8] sm:$0xe] }
  0xe0   : > { %v3545_v44 = vld [vmem:[#allocation3 + $0xc] sm:$0xf]  ;;  %2066 = vrot.lane.b32.xlu1 %v5528_v30, %s6221_s14  ;;  %v3331_v46 = vsel %vm6569_vm9, %v3071_v11, 0  ;;  %v3333_v47 = vsel %vm6573_vm10, %v3073_v12, 0  ;;  %vm3297_vm12 = vcmp.ne.s16.totalorder %v6559_v27, 0  ;;  %v3329_v48 = vsel %vm3296_vm3, %v3069_v14, 0 }
  0xe1   : > { %1857 = vrot.lane.b32.xlu0 %v5512_v0, %s6222_s0  ;;  %v5595_v51 = vcombine.low %v3331_v46, %v3332_v39  ;;  %v6591_v52 = vcombine.low %v3333_v47, %v3334_v41  ;;  %v3330_v53 = vsel %vm3297_vm12, %v3070_v23, 0  ;;  %v3579_v54 = vsel %vm6569_vm9, %v3546_v28, 0  ;;  %v6078_v55 = vld [vmem:[#allocation3] sm:$0xff]   ;;  %v6079_v60 = vld [vmem:[#allocation3 + $0x10] sm:$0xff]   ;;  %v6610_v10 = vld [vmem:[#allocation3 + $0x18] sm:$0xff]  }
  0xe2   : > { %v5594_v56 = vcombine.low %v3329_v48, %v3330_v53  ;;  %v3580_v57 = vsel %vm3299_vm4, %v3547_v29, 0  ;;  %v3581_v58 = vsel %vm6573_vm10, %v3548_v33, 0  ;;  %v3582_v59 = vsel %vm3301_vm6, %v3549_v35, 0  ;;  %v6081_v23 = vld [vmem:[#allocation3 + $0x8] sm:$0xff]   ;;  %v6627_v46 = vld [vmem:[#allocation3 + $0x18] sm:$0xff]  }
  0xe3   : > { %v3447_v62 = vrot.slane %v5595_v51, 1  ;;  %v3449_v63 = vrot.slane %v6591_v52, 1  ;;  %v5612_v0 = vcombine.low %v3579_v54, %v3580_v57  ;;  %v6604_v1 = vcombine.low %v3581_v58, %v3582_v59  ;;  %v568_v57 = vld [vmem:[#allocation2 + $0x48] sm:$0xff] }
  0xe4   : > { %v3446_v5 = vrot.slane %v5594_v56, 1  ;;  %v3577_v7 = vsel %vm3296_vm3, %v3544_v42, 0  ;;  %v3578_v8 = vsel %vm3297_vm12, %v3545_v44, 0  ;;  %vm8652_vm13 = vsmask.f32 7424 }
  0xe5   : > { %v3450_v11 = vsel %vm8651_vm2, %v3447_v62, %v3449_v63  ;;  %v3694_v12 = vrot.slane %v5612_v0, 1  ;;  %v3696_v13 = vrot.slane %v6604_v1, 1  ;;  %v5611_v14 = vcombine.low %v3577_v7, %v3578_v8  ;;  %v6084_v0 = vld [vmem:[#allocation3 + $0x10] sm:$0xff]  }
  0xe6   : > { %3481 = vrot.lane.b32.xlu1 %v3450_v11, %s6223_s27  ;;  %v3448_v17 = vsel %vm8651_vm2, %v3446_v5, %v3447_v62  ;;  %v2254_v18 = vshll.u32 %v6076_v49, 16  ;;  %v2258_v19 = vshrl.u32 %v6076_v49, 16  ;;  %v2262_v22 = vshll.u32 %v6589_v50, 16  ;;  %v3791_v5 = vld [vmem:[#allocation3 + $0x10] sm:$0xe] }
  0xe7   : > { %3479 = vrot.lane.b32.xlu0 %v3448_v17, %s6223_s27  ;;  %v3697_v24 = vsel %vm8651_vm2, %v3694_v12, %v3696_v13  ;;  %v3693_v28 = vrot.slane %v5611_v14, 1  ;;  %v2247_v29 = vshrl.u32 %v6078_v55, 16  ;;  %v2249_v30 = vshll.u32 %v6078_v55, 16 }
  0xe8   : > { %v2256_v31 = vrot.slane %v2254_v18, 1  ;;  %v6623_v32 = vrot.slane %v2262_v22, 1  ;;  %v2567_v33 = vshll.u32 %v6079_v60, 16  ;;  %v2571_v35 = vshrl.u32 %v6079_v60, 16  ;;  %v3793_v18 = vld [vmem:[#allocation3 + $0x18] sm:$0xf] }
  0xe9   : > { %v3695_v39 = vsel %vm8651_vm2, %v3693_v28, %v3694_v12  ;;  %v2251_v41 = vrot.slane %v2249_v30, 1  ;;  %v2575_v42 = vshll.u32 %v6610_v10, 16  ;;  %v2560_v44 = vshrl.u32 %v6081_v23, 16  ;;  %v3792_v12 = vld [vmem:[#allocation3 + $0x14] sm:$0xf] }
  0xea   : > { %3728 = vrot.lane.b32.xlu1 %v3697_v24, %s6224_s29  ;;  %v2260_v47 = vor.u32 %v2258_v19, %v2256_v31  ;;  %v2569_v48 = vrot.slane %v2567_v33, 1  ;;  %v2562_v49 = vshll.u32 %v6081_v23, 16  ;;  %v742_v51 = vrot.slane %v6456_v25, 4  ;;  %v3794_v19 = vld [vmem:[#allocation3 + $0x1c] sm:$0xf] }
  0xeb   : > { %3726 = vrot.lane.b32.xlu0 %v3695_v39, %s6224_s29  ;;  %v2252_v53 = vor.u32 %v2251_v41, %v2247_v29  ;;  %v6632_v54 = vrot.slane %v2575_v42, 1  ;;  %v744_v55 = vshrl.u32 %v6527_v4, 16  ;;  %v747_v56 = vshll.u32 %v6527_v4, 16 }
  0xec   : > { %v2265_v58 = vsel %vm8652_vm13, %v2260_v47, %v6623_v32  ;;  %v2573_v59 = vor.u32 %v2571_v35, %v2569_v48  ;;  %v2564_v60 = vrot.slane %v2562_v49, 1  ;;  %v753_v62 = vshrl.u32 %v6535_v15, 16  ;;  %v6655_v35 = vld [vmem:[#allocation3 + $0x1c] sm:$0xf] }
  0xed   : > { %v2257_v25 = vsel %vm8652_vm13, %v2252_v53, %v2256_v31  ;;  %v746_v7 = vrot.slane %v744_v55, 7  ;;  %v756_v8 = vshll.u32 %v6535_v15, 16  ;;  %v2880_v11 = vshll.u32 %v6627_v46, 16 }
  0xee   : > { %2380 = vrot.lane.b32.xlu1 %v2265_v58, %s6225_s8  ;;  %v2578_v4 = vsel %vm8652_vm13, %v2573_v59, %v6632_v54  ;;  %v2565_v14 = vor.u32 %v2564_v60, %v2560_v44  ;;  %v6645_v17 = vrot.slane %v753_v62, 7  ;;  %v6647_v22 = vpack.c.bf16 %v568_v57, %v568_v57  ;;  %v6680_v58 = vld [vmem:[#allocation3 + $0x18] sm:$0xff]  }
  0xef   : > { %2378 = vrot.lane.b32.xlu0 %v2257_v25, %s6225_s8  ;;  %v749_v23 = vor.u32 %v747_v56, %v746_v7  ;;  %v751_v15 = vrot.slane %v746_v7, 4  ;;  %v2884_v24 = vshrl.u32 %v6627_v46, 16  ;;  %v2873_v28 = vshrl.u32 %v6084_v0, 16  ;;  %v1715_v25 = vld [vmem:[#allocation3 + $0x18] sm:$0xf] }
  0xf0   : > { %v2570_v29 = vsel %vm8652_vm13, %v2565_v14, %v2569_v48  ;;  %v758_v30 = vor.u32 %v756_v8, %v6645_v17  ;;  %v2875_v31 = vshll.u32 %v6084_v0, 16  ;;  %v3824_v33 = vsel %vm3296_vm3, %v3791_v5, 0 }
  0xf1   : > { %v750_v39 = vsel %vm6424_vm11, %v742_v51, %v749_v23  ;;  %v2882_v41 = vrot.slane %v2880_v11, 1  ;;  %v3825_v42 = vsel %vm3297_vm12, %v3792_v12, 0  ;;  %v3826_v44 = vsel %vm6569_vm9, %v3793_v18, 0 }
  0xf2   : > { %2693 = vrot.lane.b32.xlu1 %v2578_v4, %s6226_s12  ;;  %v759_v46 = vsel %vm6424_vm11, %v751_v15, %v758_v30  ;;  %1022 = vst.msk [vmem:[#allocation3 + $0x20] sm:$0xf] %vm8653_vm8, %v750_v39  ;;  %v2877_v47 = vrot.slane %v2875_v31, 1  ;;  %v3827_v48 = vsel %vm3299_vm4, %v3794_v19, 0  ;;  %v5628_v49 = vcombine.low %v3824_v33, %v3825_v42  ;;  %v570_v42 = vld [vmem:[#allocation2 + $0x58] sm:$0xff] }
  0xf3   : > { %2691 = vrot.lane.b32.xlu0 %v2570_v29, %s6226_s12  ;;  %1023 = vst.msk [vmem:[#allocation3 + $0x24] sm:$0xf] %vm8653_vm8, %v759_v46  ;;  %v6671_v27 = vcombine.low %v3826_v44, %v3827_v48  ;;  %v1748_v51 = vsel %vm6448_vm15, %v6655_v35, 0  ;;  %v1060_v53 = vadd.s32 48, %v6419_v45  ;;  %v760_v21 = vrot.slane %v6645_v17, 4 }
  0xf4   : > { %v2878_v55 = vor.u32 %v2877_v47, %v2873_v28  ;;  %v3940_v56 = vrot.slane %v5628_v49, 1  ;;  %v762_v57 = vshrl.u32 %v6537_v16, 16  ;;  %v1118_v60 = vand.u32 15, %v1058_v37  ;;  %v569_v28 = vld [vmem:[#allocation2 + $0x50] sm:$0xff] }
  0xf5   : > { %v3941_v59 = vrot.slane %v6671_v27, 1  ;;  %v1132_v62 = vand.u32 15, %v1060_v53  ;;  %v765_v0 = vshll.u32 %v6537_v16, 16  ;;  %v771_v8 = vshrl.u32 %v6647_v22, 16 }
  0xf6   : > { %v2883_v5 = vsel %vm8652_vm13, %v2878_v55, %v2882_v41  ;;  %v764_v7 = vrot.slane %v762_v57, 7  ;;  %v774_v11 = vshll.u32 %v6647_v22, 16  ;;  %vm1506_vm3 = vcmp.ge.s32.totalorder %v1118_v60, 1 }
  0xf7   : > { %3004 = vrot.lane.b32.xlu0 %v2883_v5, %s6227_s15  ;;  %v3942_v12 = vsel %vm8651_vm2, %v3940_v56, %v3941_v59  ;;  %vm1508_vm4 = vcmp.ge.s32.totalorder %v1132_v62, 1  ;;  %v2266_v4 = vshrl.u32 %v6589_v50, 16  ;;  %vm6690_vm9 = vmpackc.low %vm1506_vm3, %vm1506_vm3  ;;  %v6694_v18 = vrot.slane %v771_v8, 7 }
  0xf8   : > { %v767_v16 = vor.u32 %v765_v0, %v764_v7  ;;  %v769_v17 = vrot.slane %v764_v7, 4  ;;  %v2270_v19 = vshll.u32 %v6680_v58, 16  ;;  %v1747_v22 = vsel %vm6690_vm9, %v1715_v25, 0  ;;  %vm6699_vm12 = vmpackc.low %vm1508_vm4, %vm1508_vm4  ;;  %v6109_v0 = vld [vmem:[%s6328_s16] sm:$0xff]  }
  0xf9   : > { %v3795_v23 = vld [vmem:[#allocation3 + $0x20] sm:$0xf]  ;;  %v2274_v50 = vshrl.u32 %v6680_v58, 16  ;;  %v776_v39 = vor.u32 %v774_v11, %v6694_v18  ;;  %v2886_v44 = vor.u32 %v2884_v24, %v2882_v41  ;;  %v5729_v62 = vpack.c.bf16 %v569_v28, %v569_v28  ;;  %5820 = vmatprep.subr.bf16.mxu0 %v6109_v0 }
  0xfa   : > { %v6704_v29 = vld [vmem:[#allocation3 + $0x20] sm:$0xff]   ;;  %v3828_v31 = vsel %vm6573_vm10, %v3795_v23, 0  ;;  %v768_v33 = vsel %vm6424_vm11, %v760_v21, %v767_v16  ;;  %v2272_v49 = vrot.slane %v2270_v19, 1  ;;  %v2268_v5 = vor.u32 %v2266_v4, %v6623_v32  ;;  %5821 = vmatpush3.bf16.msra.mxu0 %v6109_v0 }
  0xfb   : > { %v3796_v30 = vld [vmem:[#allocation3 + $0x24] sm:$0xf]  ;;  %3973 = vrot.lane.b32.xlu0 %v3942_v12, %s6228_s17  ;;  %v1717_v47 = vld [vmem:[#allocation3 + $0x20] sm:$0xf]  ;;  %1024 = vst.msk [vmem:[#allocation3 + $0x28] sm:$0xf] %vm8653_vm8, %v768_v33  ;;  %v777_v56 = vsel %vm6424_vm11, %v769_v17, %v776_v39  ;;  %v5730_v8 = vpack.c.bf16 %v570_v42, %v570_v42  ;;  %v5513_v12 = vcombine.low %v1747_v22, %v1748_v51 }
  0xfc   : > { %v3829_v46 = vsel %vm3301_vm6, %v3796_v30, 0  ;;  %v1718_v48 = vld [vmem:[#allocation3 + $0x24] sm:$0xf]  ;;  %v2888_v38 = vshll.u32 %v6704_v29, 16  ;;  %v1749_v37 = vsel %vm6699_vm12, %v1717_v47, 0  ;;  %v2579_v7 = vshrl.u32 %v6610_v10, 16 }
  0xfd   : > { %v6716_v27 = vcombine.low %v3828_v31, %v3829_v46  ;;  %v1750_v24 = vsel %vm6448_vm15, %v1718_v48, 0  ;;  %v1924_v41 = vld [vmem:[#allocation3 + $0x20] sm:$0xf]  ;;  %v1925_v26 = vld [vmem:[#allocation3 + $0x24] sm:$0xf]  ;;  %v2892_v19 = vshrl.u32 %v6704_v29, 16  ;;  %v2273_v22 = vsel %vm8652_vm13, %v2268_v5, %v2272_v49 }
  0xfe   : > { %v6722_v53 = vld [vmem:[#allocation3 + $0x20] sm:$0xff]   ;;  %v1956_v55 = vsel %vm6690_vm9, %v1924_v41, 0  ;;  %v2890_v57 = vrot.slane %v2888_v38, 1  ;;  %v1957_v60 = vsel %vm6448_vm15, %v1925_v26, 0  ;;  %1025 = vst.msk [vmem:[#allocation3 + $0x2c] sm:$0xf] %vm8653_vm8, %v777_v56  ;;  %v2581_v10 = vor.u32 %v2579_v7, %v6632_v54 }
  0xff   : > { %v6087_v21 = vld [vmem:[#allocation3 + $0x20] sm:$0xff]   ;;  %v3943_v58 = vrot.slane %v6716_v27, 1  ;;  %v2278_v25 = vshll.u32 %v6722_v53, 16  ;;  %v5529_v32 = vcombine.low %v1956_v55, %v1957_v60  ;;  %v5514_v23 = vcombine.low %v1749_v37, %v1750_v24  ;;  %v3075_v7 = vld [vmem:[#allocation3 + $0x18] sm:$0xf] }
 0x100   : > { %v2891_v11 = vsel %vm8652_vm13, %v2886_v44, %v2890_v57  ;;  %v2583_v17 = vshll.u32 %v6087_v21, 16  ;;  %v2587_v4 = vshrl.u32 %v6087_v21, 16  ;;  %v780_v51 = vshrl.u32 %v5729_v62, 16  ;;  %v571_v0 = vld [vmem:[#allocation2 + $0x60] sm:$0xff] }
 0x101   : > { %v3944_v16 = vsel %vm8651_vm2, %v3941_v59, %v3943_v58  ;;  %3006 = vrot.lane.b32.xlu1 %v2891_v11, %s6227_s15  ;;  %v2276_v59 = vor.u32 %v2274_v50, %v2272_v49  ;;  %v6749_v30 = vrot.slane %v2278_v25, 1  ;;  %v783_v31 = vshll.u32 %v5729_v62, 16 }
 0x102   : > { %3975 = vrot.lane.b32.xlu0 %v3944_v16, %s6228_s17  ;;  %v1926_v28 = vld [vmem:[#allocation3 + $0x28] sm:$0xf]  ;;  %v2585_v35 = vrot.slane %v2583_v17, 1  ;;  %v778_v39 = vrot.slane %v6694_v18, 4  ;;  %v782_v54 = vrot.slane %v780_v51, 7  ;;  %v789_v42 = vshrl.u32 %v5730_v8, 16 }
 0x103   : > { %v1958_v33 = vsel %vm6699_vm12, %v1926_v28, 0  ;;  %v2894_v47 = vor.u32 %v2892_v19, %v2890_v57  ;;  %v792_v48 = vshll.u32 %v5730_v8, 16  ;;  %v1061_v55 = vadd.s32 56, %v6419_v45  ;;  %v572_v8 = vld [vmem:[#allocation2 + $0x68] sm:$0xff] }
 0x104   : > { %v2586_v44 = vsel %vm8652_vm13, %v2581_v10, %v2585_v35  ;;  %v2589_v50 = vor.u32 %v2587_v4, %v2585_v35  ;;  %v785_v37 = vor.u32 %v783_v31, %v782_v54  ;;  %v787_v18 = vrot.slane %v782_v54, 4  ;;  %v3550_v4 = vld [vmem:[#allocation3 + $0x20] sm:$0xf]  ;;  %v6802_v51 = vld [vmem:[#allocation3 + $0x28] sm:$0xf] }
 0x105   : > { %1859 = vrot.lane.b32.xlu1 %v5513_v12, %s6222_s0  ;;  %v1927_v29 = vld [vmem:[#allocation3 + $0x2c] sm:$0xf]  ;;  %v6761_v24 = vrot.slane %v789_v42, 7  ;;  %v3217_v56 = vrot.slane %v3215_v9, 4  ;;  %v1139_v25 = vand.u32 15, %v1061_v55  ;;  %v1063_v9 = vadd.s32 72, %v6419_v45 }
 0x106   : > { %2068 = vrot.lane.b32.xlu0 %v5529_v32, %s6221_s14  ;;  %v6757_v46 = vld [vmem:[#allocation3 + $0x28] sm:$0xff]   ;;  %v1959_v49 = vsel %vm6448_vm15, %v1927_v29, 0  ;;  %v786_v57 = vsel %vm6424_vm11, %v778_v39, %v785_v37  ;;  %v1062_v17 = vadd.s32 64, %v6419_v45  ;;  %v6791_v19 = vpack.c.bf16 %v571_v0, %v571_v0  ;;  %v3078_v37 = vld [vmem:[#allocation3 + $0x24] sm:$0xf] }
 0x107   : > { %v6089_v38 = vld [vmem:[#allocation3 + $0x28] sm:$0xff]   ;;  %v5530_v41 = vcombine.low %v1958_v33, %v1959_v49  ;;  %v2591_v26 = vshll.u32 %v6757_v46, 16  ;;  %v794_v60 = vor.u32 %v792_v48, %v6761_v24  ;;  %1026 = vst.msk [vmem:[#allocation3 + $0x30] sm:$0xf] %vm8653_vm8, %v786_v57  ;;  %v3219_v2 = vsel %vm6523_vm14, %v3217_v56, %v6491_v43  ;;  %v3076_v33 = vld [vmem:[#allocation3 + $0x1c] sm:$0xf] }
 0x108   : > { %v2896_v21 = vshll.u32 %v6089_v38, 16  ;;  %v2900_v62 = vshrl.u32 %v6089_v38, 16  ;;  %vm6781_vm6 = vcmp.ne.s16.totalorder %v3219_v2, 0  ;;  %vm6787_vm10 = vcmp.le.s32.totalorder %v1139_v25, 14  ;;  %v3077_v38 = vld [vmem:[#allocation3 + $0x20] sm:$0xf] }
 0x109   : > { %1861 = vrot.lane.b32.xlu1 %v5514_v23, %s6222_s0  ;;  %v6772_v5 = vrot.slane %v2591_v26, 1  ;;  %v795_v12 = vsel %vm6424_vm11, %v787_v18, %v794_v60  ;;  %v1153_v10 = vand.u32 15, %v1063_v9  ;;  %v2281_v23 = vsel %vm8652_vm13, %v2276_v59, %v6749_v30  ;;  %vm3141_vm3 = vmpackc.low %vm6787_vm10, %vm6787_vm10  ;;  %v3553_v60 = vld [vmem:[#allocation3 + $0x2c] sm:$0xf] }
 0x10a   : > { %2382 = vrot.lane.b32.xlu0 %v2273_v22, %s6225_s8  ;;  %v2898_v11 = vrot.slane %v2896_v21, 1  ;;  %1027 = vst.msk [vmem:[#allocation3 + $0x34] sm:$0xf] %vm8653_vm8, %v795_v12  ;;  %v3335_v35 = vsel %vm6781_vm6, %v3075_v7, 0  ;;  %v6804_v22 = vld [vmem:[#allocation3 + $0x2c] sm:$0xf]  ;;  %v6806_v31 = vpack.c.bf16 %v572_v8, %v572_v8 }
 0x10b   : > { %v2594_v28 = vsel %vm8652_vm13, %v2589_v50, %v6772_v5  ;;  %v3173_v39 = vsel %vm3141_vm3, 65537, %v6220_v34  ;;  %vm3111_vm4 = vcmp.le.s32.totalorder %v1153_v10, 14  ;;  %v1146_v54 = vand.u32 15, %v1062_v17  ;;  %v3551_v50 = vld [vmem:[#allocation3 + $0x24] sm:$0xf]  ;;  %v6091_v16 = vld [vmem:[#allocation3 + $0x28] sm:$0xff]  }
 0x10c   : > { %v2899_v59 = vsel %vm8652_vm13, %v2894_v47, %v2898_v11  ;;  %v2902_v42 = vor.u32 %v2900_v62, %v2898_v11  ;;  %v3221_v29 = vrot.slane %v3173_v39, 7  ;;  %vm3143_vm10 = vmpackc.low %vm3111_vm4, %vm3111_vm4  ;;  %v3583_v48 = vsel %vm6781_vm6, %v3550_v4, 0  ;;  %v3552_v47 = vld [vmem:[#allocation3 + $0x28] sm:$0xf]  ;;  %v3798_v32 = vld [vmem:[#allocation3 + $0x2c] sm:$0xf] }
 0x10d   : > { %2070 = vrot.lane.b32.xlu1 %v5530_v41, %s6221_s14  ;;  %v1064_v49 = vadd.s32 80, %v6419_v45  ;;  %v3830_v18 = vsel %vm6781_vm6, %v6802_v51, 0  ;;  %v1752_v41 = vsel %vm6448_vm15, %v6804_v22, 0  ;;  %v798_v26 = vshrl.u32 %v6791_v19, 16 }
 0x10e   : > { %2695 = vrot.lane.b32.xlu0 %v2586_v44, %s6226_s12  ;;  %v6816_v44 = vsel %vm3143_vm10, 65537, %v6220_v34  ;;  %v3222_v55 = vsel %vm6523_vm14, %v6531_v6, %v3221_v29  ;;  %v3223_v56 = vrot.slane %v3221_v29, 4  ;;  %vm6829_vm3 = vcmp.ge.s32.totalorder %v1146_v54, 1  ;;  %v3799_v51 = vld [vmem:[#allocation3 + $0x30] sm:$0xf] }
 0x10f   : > { %v3227_v21 = vrot.slane %v6816_v44, 7  ;;  %vm3303_vm6 = vcmp.ne.s16.totalorder %v3222_v55, 0  ;;  %v1160_v62 = vand.u32 15, %v1064_v49  ;;  %v801_v0 = vshll.u32 %v6791_v19, 16  ;;  %v1719_v54 = vld [vmem:[#allocation3 + $0x28] sm:$0xf]  ;;  %vm6878_vm7 = vmpackc.low %vm6829_vm3, %vm6829_vm3 }
 0x110   : > { %v807_v25 = vshrl.u32 %v6806_v31, 16  ;;  %v3336_v2 = vsel %vm3303_vm6, %v3076_v33, 0  ;;  %v3225_v9 = vsel %vm6523_vm14, %v3223_v56, %v6491_v43  ;;  %v3584_v11 = vsel %vm3303_vm6, %v3551_v50, 0  ;;  %v573_v50 = vld [vmem:[#allocation2 + $0x70] sm:$0xff] }
 0x111   : > { %2384 = vrot.lane.b32.xlu1 %v2281_v23, %s6225_s8  ;;  %v6837_v7 = vld [vmem:[#allocation3 + $0x30] sm:$0xff]   ;;  %v3228_v8 = vsel %vm6523_vm14, %v6531_v6, %v3227_v21  ;;  %v5597_v12 = vcombine.low %v3335_v35, %v3336_v2  ;;  %vm6849_vm4 = vcmp.ne.s16.totalorder %v3225_v9, 0  ;;  %v6853_v17 = vcombine.low %v3583_v48, %v3584_v11 }
 0x112   : > { %3008 = vrot.lane.b32.xlu0 %v2899_v59, %s6227_s15  ;;  %vm3305_vm10 = vcmp.ne.s16.totalorder %v3228_v8, 0  ;;  %v2904_v10 = vshll.u32 %v6837_v7, 16  ;;  %v3337_v4 = vsel %vm6849_vm4, %v3077_v38, 0  ;;  %v3585_v23 = vsel %vm6849_vm4, %v3552_v47, 0  ;;  %v3800_v29 = vld [vmem:[#allocation3 + $0x34] sm:$0xf] }
 0x113   : > { %v3338_v19 = vsel %vm3305_vm10, %v3078_v37, 0  ;;  %v3451_v35 = vrot.slane %v5597_v12, 1  ;;  %v3698_v33 = vrot.slane %v6853_v17, 1  ;;  %v3586_v39 = vsel %vm3305_vm10, %v3553_v60, 0  ;;  %v1722_v37 = vld [vmem:[#allocation3 + $0x34] sm:$0xf] }
 0x114   : > { %v6862_v59 = vcombine.low %v3337_v4, %v3338_v19  ;;  %v6866_v48 = vrot.slane %v2904_v10, 1  ;;  %v6868_v49 = vcombine.low %v3585_v23, %v3586_v39  ;;  %v3831_v38 = vsel %vm3303_vm6, %v3798_v32, 0  ;;  %v1928_v9 = vld [vmem:[#allocation3 + $0x30] sm:$0xf] }
 0x115   : > { %2697 = vrot.lane.b32.xlu1 %v2594_v28, %s6226_s12  ;;  %v3452_v28 = vsel %vm8651_vm2, %v3449_v63, %v3451_v35  ;;  %v5631_v56 = vcombine.low %v3830_v18, %v3831_v38  ;;  %v800_v2 = vrot.slane %v798_v26, 7  ;;  %v3832_v52 = vsel %vm6849_vm4, %v3799_v51, 0  ;;  %v1929_v18 = vld [vmem:[#allocation3 + $0x34] sm:$0xf]  ;;  %v1721_v12 = vld [vmem:[#allocation3 + $0x30] sm:$0xf] }
 0x116   : > { %v3453_v47 = vrot.slane %v6862_v59, 1  ;;  %v2907_v55 = vsel %vm8652_vm13, %v2902_v42, %v6866_v48  ;;  %3483 = vrot.lane.b32.xlu0 %v3452_v28, %s6223_s27  ;;  %v3833_v63 = vsel %vm3305_vm10, %v3800_v29, 0  ;;  %v6888_v11 = vpack.c.bf16 %v573_v50, %v573_v50  ;;  %v6907_v10 = vld [vmem:[#allocation3 + $0x30] sm:$0xff]   ;;  %v6110_v51 = vld [vmem:[%s6328_s16 + $0x8] ss:$0 sps:$4 sm:$0x11]  }
 0x117   : > { %v3699_v26 = vsel %vm8651_vm2, %v3696_v13, %v3698_v33  ;;  %v3945_v57 = vrot.slane %v5631_v56, 1  ;;  %v6894_v42 = vcombine.low %v3832_v52, %v3833_v63  ;;  %vm1512_vm3 = vcmp.ge.s32.totalorder %v1160_v62, 1  ;;  %5990 = vmatprep.subr.msk.bf16.mxu0 %vm8650_vm0, %v6110_v51 }
 0x118   : > { %v3454_v8 = vsel %vm8651_vm2, %v3451_v35, %v3453_v47  ;;  %v3700_v17 = vrot.slane %v6868_v49, 1  ;;  %v1751_v32 = vsel %vm6878_vm7, %v1719_v54, 0  ;;  %vm6902_vm6 = vmpackc.low %vm1512_vm3, %vm1512_vm3  ;;  %v796_v13 = vrot.slane %v6761_v24, 4 }
 0x119   : > { %3010 = vrot.lane.b32.xlu1 %v2907_v55, %s6227_s15  ;;  %v3946_v62 = vsel %vm8651_vm2, %v3943_v58, %v3945_v57  ;;  %v1754_v4 = vsel %vm6448_vm15, %v1722_v37, 0  ;;  %v1960_v19 = vsel %vm6878_vm7, %v1928_v9, 0  ;;  %v1961_v23 = vsel %vm6448_vm15, %v1929_v18, 0  ;;  %v574_v58 = vld [vmem:[#allocation2 + $0x78] sm:$0xff]  ;;  %v6926_v37 = vld [vmem:[#allocation3 + $0x30] sm:$0xff]  }
 0x11a   : > { %3730 = vrot.lane.b32.xlu0 %v3699_v26, %s6224_s29  ;;  %v3947_v24 = vrot.slane %v6894_v42, 1  ;;  %v1753_v35 = vsel %vm6902_vm6, %v1721_v12, 0  ;;  %v803_v27 = vor.u32 %v801_v0, %v800_v2  ;;  %v809_v39 = vrot.slane %v807_v25, 7 }
 0x11b   : > { %v805_v54 = vrot.slane %v800_v2, 4  ;;  %v810_v29 = vshll.u32 %v6806_v31, 16  ;;  %v2282_v50 = vshrl.u32 %v6722_v53, 16  ;;  %v2286_v38 = vshll.u32 %v6091_v16, 16 }
 0x11c   : > { %v3701_v28 = vsel %vm8651_vm2, %v3698_v33, %v3700_v17  ;;  %v804_v0 = vsel %vm6424_vm11, %v796_v13, %v803_v27  ;;  %v2294_v25 = vshll.u32 %v6907_v10, 16  ;;  %v2595_v56 = vshrl.u32 %v6757_v46, 16 }
 0x11d   : > { %3485 = vrot.lane.b32.xlu1 %v3454_v8, %s6223_s27  ;;  %v812_v2 = vor.u32 %v810_v29, %v809_v39  ;;  %1028 = vst.msk [vmem:[#allocation3 + $0x38] sm:$0xf] %vm8653_vm8, %v804_v0  ;;  %v2288_v53 = vrot.slane %v2286_v38, 1  ;;  %v2290_v31 = vshrl.u32 %v6091_v16, 16  ;;  %v5734_v55 = vpack.c.bf16 %v574_v58, %v574_v58 }
 0x11e   : > { %3977 = vrot.lane.b32.xlu0 %v3946_v62, %s6228_s17  ;;  %v5515_v33 = vcombine.low %v1751_v32, %v1752_v41  ;;  %v3948_v52 = vsel %vm8651_vm2, %v3945_v57, %v3947_v24  ;;  %v5516_v63 = vcombine.low %v1753_v35, %v1754_v4  ;;  %v5531_v9 = vcombine.low %v1960_v19, %v1961_v23 }
 0x11f   : > { %v813_v46 = vsel %vm6424_vm11, %v805_v54, %v812_v2  ;;  %v2284_v18 = vor.u32 %v2282_v50, %v6749_v30  ;;  %v6949_v26 = vrot.slane %v2294_v25, 1  ;;  %v2599_v12 = vshll.u32 %v6926_v37, 16 }
 0x120   : > { %1029 = vst.msk [vmem:[#allocation3 + $0x3c] sm:$0xf] %vm8653_vm8, %v813_v46  ;;  %v2597_v22 = vor.u32 %v2595_v56, %v6772_v5  ;;  %v2908_v41 = vshrl.u32 %v6837_v7, 16  ;;  %v816_v57 = vshrl.u32 %v6888_v11, 16  ;;  %v819_v16 = vshll.u32 %v6888_v11, 16 }
 0x121   : > { %3732 = vrot.lane.b32.xlu1 %v3701_v28, %s6224_s29  ;;  %v2292_v8 = vor.u32 %v2290_v31, %v2288_v53  ;;  %v2603_v32 = vshrl.u32 %v6926_v37, 16  ;;  %v814_v13 = vrot.slane %v809_v39, 4  ;;  %v825_v62 = vshrl.u32 %v5734_v55, 16  ;;  %v3079_v37 = vld [vmem:[#allocation3 + $0x28] sm:$0xf] }
 0x122   : > { %3979 = vrot.lane.b32.xlu0 %v3948_v52, %s6228_s17  ;;  %v818_v30 = vrot.slane %v816_v57, 7  ;;  %v828_v4 = vshll.u32 %v5734_v55, 16  ;;  %v1065_v19 = vadd.s32 88, %v6419_v45  ;;  %v3229_v5 = vrot.slane %v3227_v21, 4 }
 0x123   : > { %v2601_v7 = vrot.slane %v2599_v12, 1  ;;  %v6963_v23 = vrot.slane %v825_v62, 7  ;;  %v1067_v11 = vadd.s32 104, %v6419_v45  ;;  %v1066_v51 = vadd.s32 96, %v6419_v45 }
 0x124   : > { %v1930_v35 = vld [vmem:[#allocation3 + $0x38] sm:$0xf]  ;;  %v2289_v27 = vsel %vm8652_vm13, %v2284_v18, %v2288_v53  ;;  %v2910_v39 = vor.u32 %v2908_v41, %v6866_v48  ;;  %v821_v58 = vor.u32 %v819_v16, %v818_v30  ;;  %v823_v54 = vrot.slane %v818_v30, 4  ;;  %v3554_v48 = vld [vmem:[#allocation3 + $0x30] sm:$0xf] }
 0x125   : > { %1863 = vrot.lane.b32.xlu1 %v5515_v33, %s6222_s0  ;;  %v830_v29 = vor.u32 %v828_v4, %v6963_v23  ;;  %v1167_v44 = vand.u32 15, %v1065_v19  ;;  %v3231_v21 = vsel %vm6523_vm14, %v3229_v5, %v6491_v43  ;;  %v1962_v50 = vsel %vm6902_vm6, %v1930_v35, 0  ;;  %v3080_v18 = vld [vmem:[#allocation3 + $0x2c] sm:$0xf]  ;;  %v3081_v4 = vld [vmem:[#allocation3 + $0x30] sm:$0xf] }
 0x126   : > { %2072 = vrot.lane.b32.xlu0 %v5531_v9, %s6221_s14  ;;  %v822_v38 = vsel %vm6424_vm11, %v814_v13, %v821_v58  ;;  %v1181_v28 = vand.u32 15, %v1067_v11  ;;  %v6979_v0 = vadd.s32 112, %v6419_v45  ;;  %v2297_v56 = vsel %vm8652_vm13, %v2292_v8, %v6949_v26  ;;  %v3555_v13 = vld [vmem:[#allocation3 + $0x34] sm:$0xf]  ;;  %v3556_v11 = vld [vmem:[#allocation3 + $0x38] sm:$0xf] }
 0x127   : > { %v1931_v25 = vld [vmem:[#allocation3 + $0x3c] sm:$0xf]  ;;  %v2602_v2 = vsel %vm8652_vm13, %v2597_v22, %v2601_v7  ;;  %v831_v31 = vsel %vm6424_vm11, %v823_v54, %v830_v29  ;;  %1030 = vst.msk [vmem:[#allocation3 + $0x40] sm:$0xf] %vm8653_vm8, %v822_v38  ;;  %vm3113_vm4 = vcmp.le.s32.totalorder %v1167_v44, 14  ;;  %v2605_v33 = vor.u32 %v2603_v32, %v2601_v7 }
 0x128   : > { %v6985_v53 = vld [vmem:[#allocation3 + $0x38] sm:$0xff]   ;;  %v1963_v55 = vsel %vm6448_vm15, %v1931_v25, 0  ;;  %1031 = vst.msk [vmem:[#allocation3 + $0x44] sm:$0xf] %vm8653_vm8, %v831_v31  ;;  %vm3145_vm10 = vmpackc.low %vm3113_vm4, %vm3113_vm4  ;;  %vm6993_vm3 = vcmp.ne.s16.totalorder %v3231_v21, 0  ;;  %vm3115_vm0 = vcmp.le.s32.totalorder %v1181_v28, 14 }
 0x129   : > { %1865 = vrot.lane.b32.xlu1 %v5516_v63, %s6222_s0  ;;  %v6095_v52 = vld [vmem:[#allocation3 + $0x38] sm:$0xff]   ;;  %v5532_v9 = vcombine.low %v1962_v50, %v1963_v55  ;;  %v2607_v46 = vshll.u32 %v6985_v53, 16  ;;  %v3177_v12 = vsel %vm3145_vm10, 65537, %v6220_v34  ;;  %vm3147_vm2 = vmpackc.low %vm3115_vm0, %vm3115_vm0  ;;  %v1174_v41 = vand.u32 15, %v1066_v51  ;;  %v3082_v19 = vld [vmem:[#allocation3 + $0x34] sm:$0xf] }
 0x12a   : > { %v6999_v22 = vld [vmem:[#allocation3 + $0x38] sm:$0xf]  ;;  %2386 = vrot.lane.b32.xlu0 %v2289_v27, %s6225_s8  ;;  %v2912_v57 = vshll.u32 %v6095_v52, 16  ;;  %v2916_v16 = vshrl.u32 %v6095_v52, 16  ;;  %v3233_v8 = vrot.slane %v3177_v12, 7  ;;  %v7003_v32 = vsel %vm3147_vm2, 65537, %v6220_v34 }
 0x12b   : > { %v7006_v62 = vrot.slane %v2607_v46, 1  ;;  %v3339_v30 = vsel %vm6993_vm3, %v3079_v37, 0  ;;  %v3239_v5 = vrot.slane %v7003_v32, 7  ;;  %v3587_v7 = vsel %vm6993_vm3, %v3554_v48, 0  ;;  %v3557_v58 = vld [vmem:[#allocation3 + $0x3c] sm:$0xf] }
 0x12c   : > { %v2914_v51 = vrot.slane %v2912_v57, 1  ;;  %v3234_v35 = vsel %vm6523_vm14, %v6531_v6, %v3233_v8  ;;  %v3235_v27 = vrot.slane %v3233_v8, 4  ;;  %v3834_v54 = vsel %vm6993_vm3, %v6999_v22, 0  ;;  %v3802_v48 = vld [vmem:[#allocation3 + $0x3c] sm:$0xf] }
 0x12d   : > { %2074 = vrot.lane.b32.xlu1 %v5532_v9, %s6221_s14  ;;  %v2610_v29 = vsel %vm8652_vm13, %v2605_v33, %v7006_v62  ;;  %vm3307_vm0 = vcmp.ne.s16.totalorder %v3234_v35, 0  ;;  %v3240_v44 = vsel %vm6523_vm14, %v6531_v6, %v3239_v5  ;;  %vm7026_vm2 = vcmp.ge.s32.totalorder %v1174_v41, 1  ;;  %v576_v9 = vld [vmem:[#allocation2 + $0x88] sm:$0xff]  ;;  %v7053_v41 = vld [vmem:[#allocation3 + $0x38] sm:$0xf] }
 0x12e   : > { %2699 = vrot.lane.b32.xlu0 %v2602_v2, %s6226_s12  ;;  %v2915_v50 = vsel %vm8652_vm13, %v2910_v39, %v2914_v51  ;;  %v2918_v38 = vor.u32 %v2916_v16, %v2914_v51  ;;  %v3340_v37 = vsel %vm3307_vm0, %v3080_v18, 0  ;;  %v3237_v28 = vsel %vm6523_vm14, %v3235_v27, %v6491_v43  ;;  %v3803_v57 = vld [vmem:[#allocation3 + $0x40] sm:$0xf]  ;;  %v577_v16 = vld [vmem:[#allocation2 + $0x90] sm:$0xff] }
 0x12f   : > { %v7037_v25 = vld [vmem:[#allocation3 + $0x40] sm:$0xff]   ;;  %v5599_v31 = vcombine.low %v3339_v30, %v3340_v37  ;;  %vm7039_vm4 = vcmp.ne.s16.totalorder %v3237_v28, 0  ;;  %vm3309_vm10 = vcmp.ne.s16.totalorder %v3240_v44, 0  ;;  %v3588_v39 = vsel %vm3307_vm0, %v3555_v13, 0 }
 0x130   : > { %v3341_v2 = vsel %vm7039_vm4, %v3081_v4, 0  ;;  %v3342_v33 = vsel %vm3309_vm10, %v3082_v19, 0  ;;  %v5616_v52 = vcombine.low %v3587_v7, %v3588_v39  ;;  %v3589_v63 = vsel %vm7039_vm4, %v3556_v11, 0  ;;  %v1724_v4 = vld [vmem:[#allocation3 + $0x3c] sm:$0xf] }
 0x131   : > { %2388 = vrot.lane.b32.xlu1 %v2297_v56, %s6225_s8  ;;  %v575_v56 = vld [vmem:[#allocation2 + $0x80] sm:$0xff]  ;;  %v2920_v46 = vshll.u32 %v7037_v25, 16  ;;  %v3455_v18 = vrot.slane %v5599_v31, 1  ;;  %v7050_v12 = vcombine.low %v3341_v2, %v3342_v33  ;;  %v3590_v22 = vsel %vm3309_vm10, %v3557_v58, 0  ;;  %v578_v11 = vld [vmem:[#allocation2 + $0x98] sm:$0xff] }
 0x132   : > { %3012 = vrot.lane.b32.xlu0 %v2915_v50, %s6227_s15  ;;  %v3702_v8 = vrot.slane %v5616_v52, 1  ;;  %v7056_v13 = vcombine.low %v3589_v63, %v3590_v22  ;;  %v3835_v30 = vsel %vm3307_vm0, %v3802_v48, 0  ;;  %v3804_v19 = vld [vmem:[#allocation3 + $0x44] sm:$0xf]  ;;  %v1188_v7 = vand.u32 15, %v6979_v0  ;;  %vm7070_vm0 = vmpackc.low %vm7026_vm2, %vm7026_vm2  ;;  %v6097_v33 = vld [vmem:[#allocation3 + $0x38] sm:$0xff]  }
 0x133   : > { %v7061_v51 = vrot.slane %v2920_v46, 1  ;;  %vm8710_vm3 = vcmask 1046528   ;;  %v3457_v58 = vrot.slane %v7050_v12, 1  ;;  %v5633_v50 = vcombine.low %v3834_v54, %v3835_v30  ;;  %v1726_v0 = vld [vmem:[#allocation3 + $0x44] sm:$0xf] }
 0x134   : > { %v3456_v27 = vsel %vm8710_vm3, %v3453_v47, %v3455_v18  ;;  %v1932_v37 = vld [vmem:[#allocation3 + $0x40] sm:$0xf]  ;;  %v3836_v28 = vsel %vm7039_vm4, %v3803_v57, 0  ;;  %v5735_v59 = vpack.c.bf16 %v575_v56, %v575_v56  ;;  %v5736_v48 = vpack.c.bf16 %v576_v9, %v576_v9  ;;  %v1933_v55 = vld [vmem:[#allocation3 + $0x44] sm:$0xf]  ;;  %vm8713_vm4 = vmmov %vm8710_vm3 }
 0x135   : > { %2701 = vrot.lane.b32.xlu1 %v2610_v29, %s6226_s12  ;;  %v3704_v29 = vrot.slane %v7056_v13, 1  ;;  %v2923_v47 = vsel %vm8652_vm13, %v2918_v38, %v7061_v51  ;;  %v3949_v54 = vrot.slane %v5633_v50, 1  ;;  %v3837_v21 = vsel %vm3309_vm10, %v3804_v19, 0  ;;  %vm8714_vm10 = vmmov %vm8710_vm3  ;;  %v7102_v9 = vld [vmem:[#allocation3 + $0x40] sm:$0xff]  }
 0x136   : > { %v7080_v31 = vpack.c.bf16 %v577_v16, %v577_v16  ;;  %3487 = vrot.lane.b32.xlu0 %v3456_v27, %s6223_s27  ;;  %v1755_v39 = vsel %vm7070_vm0, %v7053_v41, 0  ;;  %v7086_v2 = vcombine.low %v3836_v28, %v3837_v21  ;;  %vm1516_vm2 = vcmp.ge.s32.totalorder %v1188_v7, 1  ;;  %vm8715_vm13 = vmmov %vm8710_vm3  ;;  %v1725_v49 = vld [vmem:[#allocation3 + $0x40] sm:$0xf] }
 0x137   : > { %v7088_v52 = vpack.c.bf16 %v578_v11, %v578_v11  ;;  %v3458_v44 = vsel %vm8713_vm4, %v3455_v18, %v3457_v58  ;;  %v3703_v38 = vsel %vm8714_vm10, %v3700_v17, %v3702_v8  ;;  %v3705_v63 = vsel %vm8710_vm3, %v3702_v8, %v3704_v29  ;;  %vm7107_vm8 = vmpackc.low %vm1516_vm2, %vm1516_vm2  ;;  %v7117_v30 = vld [vmem:[#allocation3 + $0x40] sm:$0xff]  }
 0x138   : > { %v1756_v56 = vsel %vm6448_vm15, %v1724_v4, 0  ;;  %v3950_v46 = vsel %vm8715_vm13, %v3947_v24, %v3949_v54  ;;  %v1758_v17 = vsel %vm6448_vm15, %v1726_v0, 0  ;;  %v1964_v18 = vsel %vm7070_vm0, %v1932_v37, 0  ;;  %vm8718_vm13 = vmmov %vm8710_vm3 }
 0x139   : > { %3014 = vrot.lane.b32.xlu1 %v2923_v47, %s6227_s15  ;;  %v834_v41 = vshrl.u32 %v5735_v59, 16  ;;  %v1965_v57 = vsel %vm6448_vm15, %v1933_v55, 0  ;;  %v837_v16 = vshll.u32 %v5735_v59, 16  ;;  %v843_v8 = vshrl.u32 %v5736_v48, 16 }
 0x13a   : > { %v846_v42 = vshll.u32 %v5736_v48, 16  ;;  %3734 = vrot.lane.b32.xlu0 %v3703_v38, %s6224_s29  ;;  %v3951_v24 = vrot.slane %v7086_v2, 1  ;;  %v832_v4 = vrot.slane %v6963_v23, 4  ;;  %v2302_v7 = vshll.u32 %v6097_v33, 16 }
 0x13b   : > { %v836_v19 = vrot.slane %v834_v41, 7  ;;  %v1757_v11 = vsel %vm7107_vm8, %v1725_v49, 0  ;;  %v845_v27 = vrot.slane %v843_v8, 7  ;;  %v2298_v50 = vshrl.u32 %v6907_v10, 16  ;;  %v1470_v49 = vld [vmem:[#allocation3] sm:$0xf] }
 0x13c   : > { %v2310_v0 = vshll.u32 %v7102_v9, 16  ;;  %v2304_v59 = vrot.slane %v2302_v7, 1  ;;  %v2306_v48 = vshrl.u32 %v6097_v33, 16  ;;  %v5517_v47 = vcombine.low %v1755_v39, %v1756_v56  ;;  %v1472_v7 = vld [vmem:[#allocation3 + $0x8] sm:$0xf] }
 0x13d   : > { %3489 = vrot.lane.b32.xlu1 %v3458_v44, %s6223_s27  ;;  %v839_v37 = vor.u32 %v837_v16, %v836_v19  ;;  %v841_v28 = vrot.slane %v836_v19, 4  ;;  %v848_v21 = vor.u32 %v846_v42, %v845_v27  ;;  %v2615_v23 = vshll.u32 %v7117_v30, 16  ;;  %v1473_v42 = vld [vmem:[#allocation3 + $0xc] sm:$0xf] }
 0x13e   : > { %3981 = vrot.lane.b32.xlu0 %v3950_v46, %s6228_s17  ;;  %v3952_v55 = vsel %vm8718_vm13, %v3949_v54, %v3951_v24  ;;  %v5518_v44 = vcombine.low %v1757_v11, %v1758_v17  ;;  %v5533_v38 = vcombine.low %v1964_v18, %v1965_v57  ;;  %vm8719_vm2 = vcmask 11264   ;;  %v1471_v54 = vld [vmem:[#allocation3 + $0x4] sm:$0xf] }
 0x13f   : > { %v840_v10 = vsel %vm6424_vm11, %v832_v4, %v839_v37  ;;  %v849_v33 = vsel %vm6424_vm11, %v841_v28, %v848_v21  ;;  %v2300_v39 = vor.u32 %v2298_v50, %v6949_v26  ;;  %v7139_v56 = vrot.slane %v2310_v0, 1  ;;  %vm8720_vm4 = vmmov %vm8719_vm2 }
 0x140   : > { %1032 = vst.msk [vmem:[#allocation3 + $0x48] sm:$0xf] %vm8719_vm2, %v840_v10  ;;  %v2611_v46 = vshrl.u32 %v6985_v53, 16  ;;  %v2308_v17 = vor.u32 %v2306_v48, %v2304_v59  ;;  %v852_v18 = vshrl.u32 %v7080_v31, 16  ;;  %v861_v41 = vshrl.u32 %v7088_v52, 16  ;;  %vm8723_vm3 = vmmov %vm8719_vm2 }
 0x141   : > { %3736 = vrot.lane.b32.xlu1 %v3705_v63, %s6224_s29  ;;  %1033 = vst.msk [vmem:[#allocation3 + $0x4c] sm:$0xf] %vm8720_vm4, %v849_v33  ;;  %v855_v63 = vshll.u32 %v7080_v31, 16  ;;  %v7146_v57 = vrot.slane %v2615_v23, 1  ;;  %v2619_v16 = vshrl.u32 %v7117_v30, 16  ;;  %v850_v26 = vrot.slane %v845_v27, 4  ;;  %vm8724_vm13 = vmmov %vm8719_vm2 }
 0x142   : > { %v864_v8 = vshll.u32 %v7088_v52, 16  ;;  %3983 = vrot.lane.b32.xlu0 %v3952_v55, %s6228_s17  ;;  %v854_v53 = vrot.slane %v852_v18, 7  ;;  %v7151_v4 = vrot.slane %v861_v41, 7  ;;  %v1566_v19 = vsel %vm6466_vm1, %v1470_v49, 0  ;;  %v3558_v41 = vld [vmem:[#allocation3 + $0x40] sm:$0xf] }
 0x143   : > { %v1567_v31 = vsel %vm6448_vm15, %v1471_v54, 0  ;;  %v2924_v30 = vshrl.u32 %v7037_v25, 16  ;;  %vm8657_vm10 = vcmask 15360   ;;  %v1069_v52 = vadd.s32 120, %v6419_v45  ;;  %v3083_v54 = vld [vmem:[#allocation3 + $0x38] sm:$0xf] }
 0x144   : > { %v5495_v11 = vcombine.low %v1566_v19, %v1567_v31  ;;  %v857_v27 = vor.u32 %v855_v63, %v854_v53  ;;  %v859_v50 = vrot.slane %v854_v53, 4  ;;  %v866_v0 = vor.u32 %v864_v8, %v7151_v4  ;;  %v3084_v19 = vld [vmem:[#allocation3 + $0x3c] sm:$0xf] }
 0x145   : > { %1867 = vrot.lane.b32.xlu1 %v5517_v47, %s6222_s0  ;;  %v3241_v36 = vrot.slane %v3239_v5, 4  ;;  %v1195_v37 = vand.u32 15, %v1069_v52  ;;  %v1071_v28 = vadd.s32 136, %v6419_v45  ;;  %v1569_v48 = vsel %vm6448_vm15, %v1473_v42, 0 }
 0x146   : > { %1695 = vst.msk [vmem:[#allocation4] sm:$0xff] %vm8657_vm10, %v5495_v11  ;;  %v1568_v25 = vsel %vm6479_vm5, %v1472_v7, 0  ;;  %2076 = vrot.lane.b32.xlu0 %v5533_v38, %s6221_s14  ;;  %v858_v21 = vsel %vm6424_vm11, %v850_v26, %v857_v27  ;;  %v867_v32 = vsel %vm6424_vm11, %v859_v50, %v866_v0  ;;  %vm8721_vm1 = vsmask.f32 7424  ;;  %v3559_v7 = vld [vmem:[#allocation3 + $0x44] sm:$0xf] }
 0x147   : > { %v1934_v47 = vld [vmem:[#allocation3 + $0x48] sm:$0xf]  ;;  %v3243_v5 = vsel %vm6523_vm14, %v3241_v36, %v6491_v43  ;;  %v5496_v23 = vcombine.low %v1568_v25, %v1569_v48  ;;  %v2305_v38 = vsel %vm8721_vm1, %v2300_v39, %v2304_v59  ;;  %vm8722_vm5 = vmmov %vm8721_vm1  ;;  %v2613_v33 = vor.u32 %v2611_v46, %v7006_v62  ;;  %1034 = vst.msk [vmem:[#allocation3 + $0x50] sm:$0xf] %vm8723_vm3, %v858_v21  ;;  %v3085_v0 = vld [vmem:[#allocation3 + $0x40] sm:$0xf] }
 0x148   : > { %v1935_v55 = vld [vmem:[#allocation3 + $0x4c] sm:$0xf]  ;;  %v1966_v40 = vsel %vm7107_vm8, %v1934_v47, 0  ;;  %v2313_v10 = vsel %vm8722_vm5, %v2308_v17, %v7139_v56  ;;  %1035 = vst.msk [vmem:[#allocation3 + $0x54] sm:$0xf] %vm8724_vm13, %v867_v32  ;;  %v2621_v18 = vor.u32 %v2619_v16, %v7146_v57  ;;  %vm8654_vm2 = vcmask 31760  }
 0x149   : > { %1869 = vrot.lane.b32.xlu1 %v5518_v44, %s6222_s0  ;;  %v7184_v49 = vld [vmem:[#allocation3 + $0x48] sm:$0xff]   ;;  %v1967_v44 = vsel %vm6448_vm15, %v1935_v55, 0  ;;  %vm7191_vm4 = vcmp.le.s32.totalorder %v1195_v37, 14  ;;  %1696 = vst.msk [vmem:[#allocation4 + $0x8] sm:$0xff] %vm8657_vm10, %v5496_v23  ;;  %vm7200_vm5 = vcmp.ne.s16.totalorder %v3243_v5, 0  ;;  %v1209_v17 = vand.u32 15, %v1071_v28 }
 0x14a   : > { %v6101_v63 = vld [vmem:[#allocation3 + $0x48] sm:$0xff]   ;;  %v5534_v62 = vcombine.low %v1966_v40, %v1967_v44  ;;  %v2623_v39 = vshll.u32 %v7184_v49, 16  ;;  %vm3149_vm1 = vmpackc.low %vm7191_vm4, %vm7191_vm4  ;;  %2390 = vrot.lane.b32.xlu0 %v2305_v38, %s6225_s8  ;;  %v2926_v16 = vor.u32 %v2924_v30, %v7061_v51  ;;  %vm8729_vm3 = vsmask.f32 7424  ;;  %v3086_v59 = vld [vmem:[#allocation3 + $0x44] sm:$0xf] }
 0x14b   : > { %v2928_v26 = vshll.u32 %v6101_v63, 16  ;;  %v2932_v8 = vshrl.u32 %v6101_v63, 16  ;;  %v3181_v31 = vsel %vm3149_vm1, 65537, %v6220_v34  ;;  %v2618_v11 = vsel %vm8729_vm3, %v2613_v33, %v7146_v57  ;;  %v3805_v51 = vld [vmem:[#allocation3 + $0x48] sm:$0xf]  ;;  %vm8730_vm1 = vmmov %vm8729_vm3 }
 0x14c   : > { %v7212_v52 = vrot.slane %v2623_v39, 1  ;;  %v3245_v27 = vrot.slane %v3181_v31, 7  ;;  %vm3119_vm13 = vcmp.le.s32.totalorder %v1209_v17, 14  ;;  %v3343_v50 = vsel %vm7200_vm5, %v3083_v54, 0  ;;  %v3560_v37 = vld [vmem:[#allocation3 + $0x48] sm:$0xf]  ;;  %vm8731_vm3 = vmmov %vm8730_vm1 }
 0x14d   : > { %2078 = vrot.lane.b32.xlu1 %v5534_v62, %s6221_s14  ;;  %v2930_v30 = vrot.slane %v2928_v26, 1  ;;  %vm3151_vm4 = vmpackc.low %vm3119_vm13, %vm3119_vm13  ;;  %v3591_v36 = vsel %vm7200_vm5, %v3558_v41, 0  ;;  %v3806_v28 = vld [vmem:[#allocation3 + $0x4c] sm:$0xf]  ;;  %v1070_v57 = vadd.s32 128, %v6419_v45  ;;  %v3838_v21 = vsel %vm7200_vm5, %v3805_v51, 0 }
 0x14e   : > { %v7206_v42 = vpop.permute.xlu1 %2064  ;;  %v3246_v48 = vsel %vm6523_vm14, %v6531_v6, %v3245_v27  ;;  %v7224_v25 = vsel %vm3151_vm4, 65537, %v6220_v34  ;;  %v3247_v47 = vrot.slane %v3245_v27, 4  ;;  %2703 = vrot.lane.b32.xlu0 %v2618_v11, %s6226_s12  ;;  %v2626_v32 = vsel %vm8730_vm1, %v2621_v18, %v7212_v52  ;;  %v3561_v46 = vld [vmem:[#allocation3 + $0x4c] sm:$0xf]  ;;  %v3807_v27 = vld [vmem:[#allocation3 + $0x50] sm:$0xf] }
 0x14f   : > { %v1856_v53 = vpop.permute.xlu0 %1855  ;;  %v2931_v5 = vsel %vm8731_vm3, %v2926_v16, %v2930_v30  ;;  %v7232_v23 = vld [vmem:[#allocation3 + $0x50] sm:$0xff]   ;;  %v2934_v55 = vor.u32 %v2932_v8, %v2930_v30  ;;  %vm3311_vm13 = vcmp.ne.s16.totalorder %v3246_v48, 0  ;;  %v3251_v54 = vrot.slane %v7224_v25, 7  ;;  %v579_v8 = vld [vmem:[#allocation2 + $0xa0] sm:$0xff]  ;;  %v1728_v11 = vld [vmem:[#allocation3 + $0x4c] sm:$0xf] }
 0x150   : > { %1904 = vst.msk [vmem:[#allocation4] sm:$0xff] %vm8654_vm2, %v1856_v53  ;;  %v3344_v38 = vsel %vm3311_vm13, %v3084_v19, 0  ;;  %v3249_v33 = vsel %vm6523_vm14, %v3247_v47, %v6491_v43  ;;  %v3592_v44 = vsel %vm3311_vm13, %v3559_v7, 0  ;;  %v2936_v18 = vshll.u32 %v7232_v23, 16  ;;  %v1727_v7 = vld [vmem:[#allocation3 + $0x48] sm:$0xf] }
 0x151   : > { %2392 = vrot.lane.b32.xlu1 %v2313_v10, %s6225_s8  ;;  %v5601_v63 = vcombine.low %v3343_v50, %v3344_v38  ;;  %vm7243_vm5 = vcmp.ne.s16.totalorder %v3249_v33, 0  ;;  %v5618_v39 = vcombine.low %v3591_v36, %v3592_v44  ;;  %v3252_v17 = vsel %vm6523_vm14, %v6531_v6, %v3251_v54  ;;  %v3808_v36 = vld [vmem:[#allocation3 + $0x54] sm:$0xf]  ;;  %v582_v38 = vld [vmem:[#allocation2 + $0xb8] sm:$0xff]  ;;  %v7403_v15 = vld [vmem:[#allocation3 + $0x48] sm:$0xf] }
 0x152   : > { %v7247_v10 = vpop.permute.xlu1 %2066  ;;  %v3345_v41 = vsel %vm7243_vm5, %v3085_v0, 0  ;;  %v3593_v16 = vsel %vm7243_vm5, %v3560_v37, 0  ;;  %v3839_v26 = vsel %vm3311_vm13, %v3806_v28, 0  ;;  %3016 = vrot.lane.b32.xlu0 %v2931_v5, %s6227_s15  ;;  %v7260_v53 = vrot.slane %v2936_v18, 1  ;;  %v580_v37 = vld [vmem:[#allocation2 + $0xa8] sm:$0xff] }
 0x153   : > { %v1858_v40 = vpop.permute.xlu0 %1857  ;;  %v3459_v19 = vrot.slane %v5601_v63, 1  ;;  %vm3313_vm4 = vcmp.ne.s16.totalorder %v3252_v17, 0  ;;  %v3706_v31 = vrot.slane %v5618_v39, 1  ;;  %v5635_v50 = vcombine.low %v3838_v21, %v3839_v26  ;;  %v581_v21 = vld [vmem:[#allocation2 + $0xb0] sm:$0xff] }
 0x154   : > { %1905 = vst.msk [vmem:[#allocation4 + $0x8] sm:$0xff] %vm8654_vm2, %v1858_v40  ;;  %v3346_v51 = vsel %vm3313_vm4, %v3086_v59, 0  ;;  %v3594_v30 = vsel %vm3313_vm4, %v3561_v46, 0  ;;  %v1202_v0 = vand.u32 15, %v1070_v57  ;;  %v2939_v28 = vsel %vm8730_vm1, %v2934_v55, %v7260_v53  ;;  %v1730_v62 = vld [vmem:[#allocation3 + $0x54] sm:$0xf] }
 0x155   : > { %2705 = vrot.lane.b32.xlu1 %v2626_v32, %s6226_s12  ;;  %vm8734_vm3 = vcmask 1046528   ;;  %v7270_v47 = vcombine.low %v3345_v41, %v3346_v51  ;;  %v7272_v5 = vpack.c.bf16 %v579_v8, %v579_v8  ;;  %v7277_v40 = vcombine.low %v3593_v16, %v3594_v30  ;;  %v1936_v41 = vld [vmem:[#allocation3 + $0x50] sm:$0xf] }
 0x156   : > { %v3460_v48 = vsel %vm8734_vm3, %v3457_v58, %v3459_v19  ;;  %vm8735_vm13 = vmmov %vm8734_vm3  ;;  %v3953_v57 = vrot.slane %v5635_v50, 1  ;;  %vm1518_vm2 = vcmp.ge.s32.totalorder %v1202_v0, 1  ;;  %v3840_v13 = vsel %vm7243_vm5, %v3807_v27, 0  ;;  %v7310_v27 = vld [vmem:[#allocation3 + $0x48] sm:$0xff]  }
 0x157   : > { %v3707_v32 = vsel %vm8735_vm13, %v3704_v29, %v3706_v31  ;;  %3491 = vrot.lane.b32.xlu0 %v3460_v48, %s6223_s27  ;;  %v3461_v12 = vrot.slane %v7270_v47, 1  ;;  %vm7283_vm1 = vmpackc.low %vm1518_vm2, %vm1518_vm2  ;;  %v3841_v29 = vsel %vm3313_vm4, %v3808_v36, 0  ;;  %v1072_v33 = vadd.s32 144, %v6419_v45  ;;  %v1729_v36 = vld [vmem:[#allocation3 + $0x50] sm:$0xf] }
 0x158   : > { %v7281_v55 = vpop.permute.xlu1 %3481  ;;  %v3708_v44 = vrot.slane %v7277_v40, 1  ;;  %v1759_v63 = vsel %vm7283_vm1, %v1727_v7, 0  ;;  %v1760_v59 = vsel %vm6448_vm15, %v1728_v11, 0  ;;  %v7299_v39 = vcombine.low %v3840_v13, %v3841_v29  ;;  %vm8738_vm2 = vmmov %vm8734_vm3  ;;  %v1937_v11 = vld [vmem:[#allocation3 + $0x54] sm:$0xf] }
 0x159   : > { %3018 = vrot.lane.b32.xlu1 %v2939_v28, %s6227_s15  ;;  %v7293_v18 = vpop.permute.xlu0 %3479  ;;  %v3462_v46 = vsel %vm8738_vm2, %v3459_v19, %v3461_v12  ;;  %v1216_v17 = vand.u32 15, %v1072_v33  ;;  %v5740_v16 = vpack.c.bf16 %v580_v37, %v580_v37  ;;  %v7304_v26 = vpack.c.bf16 %v581_v21, %v581_v21  ;;  %vm8739_vm5 = vmmov %vm8738_vm2 }
 0x15a   : > { %v3954_v8 = vsel %vm8739_vm5, %v3951_v24, %v3953_v57  ;;  %v3955_v7 = vrot.slane %v7299_v39, 1  ;;  %vm8656_vm4 = vcmask 48160   ;;  %v7312_v51 = vpack.c.bf16 %v582_v38, %v582_v38  ;;  %vm8740_vm3 = vmmov %vm8738_vm2  ;;  %v7326_v24 = vld [vmem:[#allocation3 + $0x50] sm:$0xff]  }
 0x15b   : > { %3738 = vrot.lane.b32.xlu0 %v3707_v32, %s6224_s29  ;;  %v3709_v19 = vsel %vm8740_vm3, %v3706_v31, %v3708_v44  ;;  %v5519_v30 = vcombine.low %v1759_v63, %v1760_v59  ;;  %vm1520_vm13 = vcmp.ge.s32.totalorder %v1216_v17, 1  ;;  %v1762_v2 = vsel %vm6448_vm15, %v1730_v62, 0  ;;  %2114 = vst.msk [vmem:[#allocation4 + $0x8] sm:$0xff] %vm8656_vm4, %v7247_v10  ;;  %2113 = vst.msk [vmem:[#allocation4] sm:$0xff] %vm8656_vm4, %v7206_v42  ;;  %v7347_v63 = vld [vmem:[#allocation3 + $0x50] sm:$0xff]  }
 0x15c   : > { %v7318_v50 = vpop.permute.xlu1 %3728  ;;  %vm7331_vm2 = vmpackc.low %vm1520_vm13, %vm1520_vm13  ;;  %vm8655_vm5 = vcmask 64560   ;;  %v1968_v37 = vsel %vm7283_vm1, %v1936_v41, 0  ;;  %v870_v10 = vshrl.u32 %v7272_v5, 16  ;;  %v873_v28 = vshll.u32 %v7272_v5, 16 }
 0x15d   : > { %3493 = vrot.lane.b32.xlu1 %v3462_v46, %s6223_s27  ;;  %v7329_v0 = vpop.permute.xlu0 %3726  ;;  %v1969_v42 = vsel %vm6448_vm15, %v1937_v11, 0  ;;  %v868_v48 = vrot.slane %v7151_v4, 4  ;;  %v879_v32 = vshrl.u32 %v5740_v16, 16  ;;  %v882_v21 = vshll.u32 %v5740_v16, 16 }
 0x15e   : > { %v3956_v38 = vsel %vm8740_vm3, %v3953_v57, %v3955_v7  ;;  %v872_v13 = vrot.slane %v870_v10, 7  ;;  %v2314_v29 = vshrl.u32 %v7102_v9, 16  ;;  %v2318_v33 = vshll.u32 %v7310_v27, 16  ;;  %v8110_v31 = vld [vmem:[#allocation3 + $0x90] ss:$0 sps:$4 sm:$0x11]  }
 0x15f   : > { %3985 = vrot.lane.b32.xlu0 %v3954_v8, %s6228_s17  ;;  %v1761_v5 = vsel %vm7331_vm2, %v1729_v36, 0  ;;  %v7352_v4 = vrot.slane %v879_v32, 7  ;;  %v2322_v62 = vshrl.u32 %v7310_v27, 16  ;;  %v2326_v46 = vshll.u32 %v7326_v24, 16  ;;  %v1474_v36 = vld [vmem:[#allocation3 + $0x10] sm:$0xf] }
 0x160   : > { %v2381_v59 = vpop.permute.xlu1 %2380  ;;  %v875_v57 = vor.u32 %v873_v28, %v872_v13  ;;  %v877_v17 = vrot.slane %v872_v13, 4  ;;  %v2316_v41 = vor.u32 %v2314_v29, %v7139_v56  ;;  %v2320_v16 = vrot.slane %v2318_v33, 1  ;;  %v1475_v32 = vld [vmem:[#allocation3 + $0x14] sm:$0xf]  ;;  %v1476_v29 = vld [vmem:[#allocation3 + $0x18] sm:$0xf] }
 0x161   : > { %3740 = vrot.lane.b32.xlu1 %v3709_v19, %s6224_s29  ;;  %2428 = vst.msk [vmem:[#allocation4 + $0x8] sm:$0xff] %vm8655_vm5, %v2381_v59  ;;  %v2379_v9 = vpop.permute.xlu0 %2378  ;;  %v5535_v8 = vcombine.low %v1968_v37, %v1969_v42  ;;  %v884_v11 = vor.u32 %v882_v21, %v7352_v4  ;;  %v2627_v27 = vshrl.u32 %v7184_v49, 16  ;;  %v5520_v10 = vcombine.low %v1761_v5, %v1762_v2  ;;  %v1477_v59 = vld [vmem:[#allocation3 + $0x1c] sm:$0xf] }
 0x162   : > { %2427 = vst.msk [vmem:[#allocation4] sm:$0xff] %vm8655_vm5, %v2379_v9  ;;  %v876_v19 = vsel %vm6424_vm11, %v868_v48, %v875_v57  ;;  %v2631_v28 = vshll.u32 %v7347_v63, 16  ;;  %vm8743_vm5 = vcmask 11264   ;;  %vm8744_vm4 = vsmask.f32 7424 }
 0x163   : > { %3987 = vrot.lane.b32.xlu0 %v3956_v38, %s6228_s17  ;;  %v885_v56 = vsel %vm6424_vm11, %v877_v17, %v884_v11  ;;  %1036 = vst.msk [vmem:[#allocation3 + $0x58] sm:$0xf] %vm8743_vm5, %v876_v19  ;;  %v2321_v42 = vsel %vm8744_vm4, %v2316_v41, %v2320_v16  ;;  %v7370_v49 = vrot.slane %v2326_v46, 1  ;;  %vm8660_vm10 = vcmask 113760   ;;  %vm8745_vm13 = vmmov %vm8743_vm5  ;;  %v583_v17 = vld [vmem:[#allocation2 + $0xc0] sm:$0xff] }
 0x164   : > { %v2694_v37 = vpop.permute.xlu1 %2693  ;;  %1037 = vst.msk [vmem:[#allocation3 + $0x5c] sm:$0xf] %vm8745_vm13, %v885_v56  ;;  %vm8746_vm3 = vcmask 80960   ;;  %v2324_v48 = vor.u32 %v2322_v62, %v2320_v16  ;;  %v2629_v21 = vor.u32 %v2627_v27, %v7212_v52  ;;  %v2635_v38 = vshrl.u32 %v7347_v63, 16 }
 0x165   : > { %1871 = vrot.lane.b32.xlu1 %v5519_v30, %s6222_s0  ;;  %2741 = vst.msk [vmem:[#allocation4 + $0x8] sm:$0xff] %vm8746_vm3, %v2694_v37  ;;  %v2692_v2 = vpop.permute.xlu0 %2691  ;;  %v1570_v13 = vsel %vm6690_vm9, %v1474_v36, 0  ;;  %vm8747_vm4 = vmmov %vm8746_vm3  ;;  %v2633_v33 = vrot.slane %v2631_v28, 1  ;;  %vm8659_vm5 = vcmask 130160   ;;  %v1571_v30 = vsel %vm6448_vm15, %v1475_v32, 0 }
 0x166   : > { %2740 = vst.msk [vmem:[#allocation4] sm:$0xff] %vm8747_vm4, %v2692_v2  ;;  %v888_v5 = vshrl.u32 %v7304_v26, 16  ;;  %vm8658_vm13 = vcmask 146560   ;;  %v5497_v62 = vcombine.low %v1570_v13, %v1571_v30  ;;  %v2940_v52 = vshrl.u32 %v7232_v23, 16 }
 0x167   : > { %v891_v63 = vshll.u32 %v7304_v26, 16  ;;  %2080 = vrot.lane.b32.xlu0 %v5535_v8, %s6221_s14  ;;  %v886_v14 = vrot.slane %v7352_v4, 4  ;;  %v897_v9 = vshrl.u32 %v7312_v51, 16  ;;  %v900_v57 = vshll.u32 %v7312_v51, 16 }
 0x168   : > { %v890_v46 = vrot.slane %v888_v5, 7  ;;  %vm8748_vm9 = vcmask 15360   ;;  %v1572_v23 = vsel %vm6699_vm12, %v1476_v29, 0  ;;  %v1573_v26 = vsel %vm6448_vm15, %v1477_v59, 0 }
 0x169   : > { %1873 = vrot.lane.b32.xlu1 %v5520_v10, %s6222_s0  ;;  %v3005_v41 = vpop.permute.xlu0 %3004  ;;  %1697 = vst.msk [vmem:[#allocation4 + $0x10] sm:$0xff] %vm8748_vm9, %v5497_v62  ;;  %v1073_v16 = vadd.s32 152, %v6419_v45  ;;  %v3253_v4 = vrot.slane %v3251_v54, 4  ;;  %vm8749_vm3 = vcmask 97360   ;;  %v7399_v11 = vrot.slane %v897_v9, 7  ;;  %vm8751_vm4 = vmmov %vm8748_vm9 }
 0x16a   : > { %3053 = vst.msk [vmem:[#allocation4] sm:$0xff] %vm8749_vm3, %v3005_v41  ;;  %v893_v51 = vor.u32 %v891_v63, %v890_v46  ;;  %v895_v8 = vrot.slane %v890_v46, 4  ;;  %v5498_v27 = vcombine.low %v1572_v23, %v1573_v26  ;;  %v1938_v36 = vld [vmem:[#allocation3 + $0x58] sm:$0xf]  ;;  %v7408_v19 = vpack.c.bf16 %v583_v17, %v583_v17  ;;  %v3088_v23 = vld [vmem:[#allocation3 + $0x4c] sm:$0xf] }
 0x16b   : > { %3528 = vst.msk [vmem:[#allocation4] sm:$0xff] %vm8660_vm10, %v7293_v18  ;;  %v3255_v10 = vsel %vm6523_vm14, %v3253_v4, %v6491_v43  ;;  %v1939_v25 = vld [vmem:[#allocation3 + $0x5c] sm:$0xf]  ;;  %v1970_v54 = vsel %vm7331_vm2, %v1938_v36, 0  ;;  %2394 = vrot.lane.b32.xlu0 %v2321_v42, %s6225_s8  ;;  %vm8750_vm12 = vsmask.f32 7424  ;;  %v902_v56 = vor.u32 %v900_v57, %v7399_v11 }
 0x16c   : > { %v2329_v28 = vsel %vm8750_vm12, %v2324_v48, %v7370_v49  ;;  %v7415_v32 = vld [vmem:[#allocation3 + $0x58] sm:$0xff]   ;;  %3775 = vst.msk [vmem:[#allocation4] sm:$0xff] %vm8659_vm5, %v7329_v0  ;;  %v894_v18 = vsel %vm6424_vm11, %v886_v14, %v893_v51  ;;  %v1971_v37 = vsel %vm6448_vm15, %v1939_v25, 0  ;;  %vm8752_vm9 = vmmov %vm8750_vm12  ;;  %vm8753_vm3 = vcmask 11264   ;;  %v3563_v51 = vld [vmem:[#allocation3 + $0x54] sm:$0xf] }
 0x16d   : > { %1698 = vst.msk [vmem:[#allocation4 + $0x18] sm:$0xff] %vm8751_vm4, %v5498_v27  ;;  %v2634_v42 = vsel %vm8752_vm9, %v2629_v21, %v2633_v33  ;;  %v3974_v2 = vpop.permute.xlu0 %3973  ;;  %v6107_v13 = vld [vmem:[#allocation3 + $0x58] sm:$0xff]   ;;  %v1223_v48 = vand.u32 15, %v1073_v16  ;;  %vm7427_vm12 = vcmp.ne.s16.totalorder %v3255_v10, 0  ;;  %v5536_v0 = vcombine.low %v1970_v54, %v1971_v37  ;;  %vm8756_vm4 = vmmov %vm8753_vm3  ;;  %v3089_v54 = vld [vmem:[#allocation3 + $0x50] sm:$0xf] }
 0x16e   : > { %1038 = vst.msk [vmem:[#allocation3 + $0x60] sm:$0xf] %vm8753_vm3, %v894_v18  ;;  %v2637_v30 = vor.u32 %v2635_v38, %v2633_v33  ;;  %v2639_v5 = vshll.u32 %v7415_v32, 16  ;;  %v903_v59 = vsel %vm6424_vm11, %v895_v8, %v902_v56  ;;  %v2942_v21 = vor.u32 %v2940_v52, %v7260_v53  ;;  %v3562_v38 = vld [vmem:[#allocation3 + $0x50] sm:$0xf]  ;;  %v584_v33 = vld [vmem:[#allocation2 + $0xc8] sm:$0xff] }
 0x16f   : > { %4022 = vst.msk [vmem:[#allocation4] sm:$0xff] %vm8658_vm13, %v3974_v2  ;;  %v2944_v62 = vshll.u32 %v6107_v13, 16  ;;  %vm7437_vm9 = vcmp.le.s32.totalorder %v1223_v48, 14  ;;  %v1075_v14 = vadd.s32 168, %v6419_v45  ;;  %2082 = vrot.lane.b32.xlu1 %v5536_v0, %s6221_s14  ;;  %2707 = vrot.lane.b32.xlu0 %v2634_v42, %s6226_s12  ;;  %v2948_v9 = vshrl.u32 %v6107_v13, 16 }
 0x170   : > { %1039 = vst.msk [vmem:[#allocation3 + $0x64] sm:$0xf] %vm8756_vm4, %v903_v59  ;;  %v7444_v46 = vrot.slane %v2639_v5, 1  ;;  %vm3153_vm3 = vmpackc.low %vm7437_vm9, %vm7437_vm9  ;;  %v3347_v53 = vsel %vm7427_vm12, %v7403_v15, 0  ;;  %vm8759_vm4 = vcmask 1040384   ;;  %v3595_v8 = vsel %vm7427_vm12, %v3562_v38, 0 }
 0x171   : > { %v6130_v52 = vld [vmem:[%s6328_s16 + $0x8] ss:$0 sps:$4 sm:$0x11]   ;;  %v7454_v17 = vld [vmem:[#allocation3 + $0x58] sm:$0xf]  ;;  %v2946_v41 = vrot.slane %v2944_v62, 1  ;;  %v7471_v42 = vpack.c.bf16 %v584_v33, %v584_v33 }
 0x172   : > { %v4117_v57 = vsel %vm8759_vm4, %v6130_v52, 0  ;;  %v3185_v26 = vsel %vm3153_vm3, 65537, %v6220_v34  ;;  %v1237_v16 = vand.u32 15, %v1075_v14  ;;  %v1074_v27 = vadd.s32 160, %v6419_v45  ;;  %v3564_v56 = vld [vmem:[#allocation3 + $0x58] sm:$0xf] }
 0x173   : > { %5823 = vmatpush3.bf16.msra.mxu0 %v4117_v57  ;;  %v3257_v4 = vrot.slane %v3185_v26, 7  ;;  %v7461_v36 = vadd.s32 176, %v6419_v45  ;;  %v3007_v15 = vpop.permute.xlu1 %3006  ;;  %vm8760_vm9 = vsmask.f32 7424  ;;  %v3842_v37 = vsel %vm7427_vm12, %v7454_v17, 0  ;;  %2396 = vrot.lane.b32.xlu1 %v2329_v28, %s6225_s8  ;;  %s6229_s16 = smov 126  }
 0x174   : > { %v2947_v10 = vsel %vm8760_vm9, %v2942_v21, %v2946_v41  ;;  %v3976_v25 = vpop.permute.xlu0 %3975  ;;  %vm7464_vm4 = vcmp.le.s32.totalorder %v1237_v16, 14  ;;  %vm8763_vm3 = vcmask 97360   ;;  %vm8764_vm13 = vmmov %vm8760_vm9  ;;  %v2950_v13 = vor.u32 %v2948_v9, %v2946_v41  ;;  %v3810_v0 = vld [vmem:[#allocation3 + $0x5c] sm:$0xf]  ;;  %v3090_v28 = vld [vmem:[#allocation3 + $0x54] sm:$0xf] }
 0x175   : > { %3054 = vst.msk [vmem:[#allocation4 + $0x8] sm:$0xff] %vm8763_vm3, %v3007_v15  ;;  %v2642_v2 = vsel %vm8764_vm13, %v2637_v30, %v7444_v46  ;;  %3020 = vrot.lane.b32.xlu0 %v2947_v10, %s6227_s15  ;;  %v3258_v48 = vsel %vm6523_vm14, %v6531_v6, %v3257_v4  ;;  %vm3155_vm12 = vmpackc.low %vm7464_vm4, %vm7464_vm4  ;;  %v3259_v29 = vrot.slane %v3257_v4, 4  ;;  %v3565_v59 = vld [vmem:[#allocation3 + $0x5c] sm:$0xf]  ;;  %v1230_v21 = vand.u32 15, %v1074_v27 }
 0x176   : > { %3529 = vst.msk [vmem:[#allocation4 + $0x8] sm:$0xff] %vm8660_vm10, %v7281_v55  ;;  %vm3315_vm9 = vcmp.ne.s16.totalorder %v3258_v48, 0  ;;  %v7487_v30 = vsel %vm3155_vm12, 65537, %v6220_v34  ;;  %v4038_v5 = vld [vmem:[#allocation4] sm:$0xff]  ;;  %v1244_v62 = vand.u32 15, %v7461_v36  ;;  %vm8765_vm13 = vcmask 146432  }
 0x177   : > { %3776 = vst.msk [vmem:[#allocation4 + $0x8] sm:$0xff] %vm8659_vm5, %v7318_v50  ;;  %v7492_v63 = vld [vmem:[#allocation3 + $0x60] sm:$0xff]   ;;  %v3348_v14 = vsel %vm3315_vm9, %v3088_v23, 0  ;;  %v3261_v55 = vsel %vm6523_vm14, %v3259_v29, %v6491_v43  ;;  %v3263_v38 = vrot.slane %v7487_v30, 7  ;;  %5824 = vmatprep.mubr.msk.bf16.mxu0 %vm8765_vm13, %v4038_v5  ;;  %v3596_v33 = vsel %vm3315_vm9, %v3563_v51, 0  ;;  %v1860_v9 = vpop.permute.xlu1 %1859  ;;  %2709 = vrot.lane.b32.xlu1 %v2642_v2, %s6226_s12  ;;  %v6111_v50 = vld [vmem:[#allocation3 + $0x58] sm:$0xff]  }
 0x178   : > { %vm8766_vm4 = vcmask 146560   ;;  %v5603_v52 = vcombine.low %v3347_v53, %v3348_v14  ;;  %vm7502_vm3 = vcmp.ne.s16.totalorder %v3261_v55, 0  ;;  %v2069_v57 = vpop.permute.xlu0 %2068  ;;  %v5620_v17 = vcombine.low %v3595_v8, %v3596_v33  ;;  %v1731_v23 = vld [vmem:[#allocation3 + $0x58] sm:$0xf]  ;;  %v1732_v26 = vld [vmem:[#allocation3 + $0x5c] sm:$0xf] }
 0x179   : > { %4023 = vst.msk [vmem:[#allocation4 + $0x8] sm:$0xff] %vm8766_vm4, %v3976_v25  ;;  %v3843_v41 = vsel %vm3315_vm9, %v3810_v0, 0  ;;  %vm8769_vm12 = vcmask 31760   ;;  %v2952_v16 = vshll.u32 %v7492_v63, 16  ;;  %v3264_v53 = vsel %vm6523_vm14, %v6531_v6, %v3263_v38  ;;  %v3811_v8 = vld [vmem:[#allocation3 + $0x60] sm:$0xf] }
 0x17a   : > { %1906 = vst.msk [vmem:[#allocation4 + $0x10] sm:$0xff] %vm8769_vm12, %v1860_v9  ;;  %v3349_v4 = vsel %vm7502_vm3, %v3089_v54, 0  ;;  %v3597_v51 = vsel %vm7502_vm3, %v3564_v56, 0  ;;  %v3463_v27 = vrot.slane %v5603_v52, 1  ;;  %vm3317_vm9 = vcmp.ne.s16.totalorder %v3264_v53, 0  ;;  %v585_v25 = vld [vmem:[#allocation2 + $0xd0] sm:$0xff] }
 0x17b   : > { %vm8770_vm13 = vcmask 48160   ;;  %v3710_v36 = vrot.slane %v5620_v17, 1  ;;  %v7520_v15 = vcombine.low %v3842_v37, %v3843_v41  ;;  %v3812_v10 = vld [vmem:[#allocation3 + $0x64] sm:$0xf]  ;;  %v7522_v18 = vrot.slane %v2952_v16, 1  ;;  %v1862_v56 = vpop.permute.xlu1 %1861 }
 0x17c   : > { %2115 = vst.msk [vmem:[#allocation4 + $0x10] sm:$0xff] %vm8770_vm13, %v2069_v57  ;;  %v3350_v2 = vsel %vm3317_vm9, %v3090_v28, 0  ;;  %v3598_v48 = vsel %vm3317_vm9, %v3565_v59, 0  ;;  %vm1522_vm4 = vcmp.ge.s32.totalorder %v1230_v21, 1  ;;  %v7526_v54 = vld [vmem:[#allocation3 + $0x64] sm:$0xf]  ;;  %v2383_v5 = vpop.permute.xlu0 %2382 }
 0x17d   : > { %vm8771_vm12 = vcmask 1046528   ;;  %v7531_v0 = vcombine.low %v3349_v4, %v3350_v2  ;;  %v7533_v37 = vcombine.low %v3597_v51, %v3598_v48  ;;  %vm7535_vm13 = vmpackc.low %vm1522_vm4, %vm1522_vm4  ;;  %v1764_v28 = vsel %vm6448_vm15, %v1732_v26, 0  ;;  %v7541_v59 = vld [vmem:[#allocation3 + $0x60] sm:$0xf]  ;;  %v1941_v57 = vld [vmem:[#allocation3 + $0x64] sm:$0xf] }
 0x17e   : > { %v3464_v29 = vsel %vm8771_vm12, %v3461_v12, %v3463_v27  ;;  %vm8774_vm5 = vsmask.f32 7424  ;;  %vm8775_vm10 = vcmask 31760   ;;  %vm8776_vm12 = vcmask 64560   ;;  %v7598_v48 = vld [vmem:[#allocation3 + $0x60] sm:$0xff]  }
 0x17f   : > { %v2955_v21 = vsel %vm8774_vm5, %v2950_v13, %v7522_v18  ;;  %1907 = vst.msk [vmem:[#allocation4 + $0x18] sm:$0xff] %vm8775_vm10, %v1862_v56  ;;  %3495 = vrot.lane.b32.xlu0 %v3464_v29, %s6223_s27  ;;  %v3957_v47 = vrot.slane %v7520_v15, 1  ;;  %v1763_v12 = vsel %vm7535_vm13, %v1731_v23, 0  ;;  %v3844_v55 = vsel %vm7502_vm3, %v3811_v8, 0  ;;  %v1733_v23 = vld [vmem:[#allocation3 + $0x60] sm:$0xf]  ;;  %v2071_v40 = vpop.permute.xlu1 %2070 }
 0x180   : > { %2429 = vst.msk [vmem:[#allocation4 + $0x10] sm:$0xff] %vm8776_vm12, %v2383_v5  ;;  %3022 = vrot.lane.b32.xlu1 %v2955_v21, %s6227_s15  ;;  %v3465_v33 = vrot.slane %v7531_v0, 1  ;;  %vm8777_vm5 = vcmask 1046528   ;;  %v3712_v9 = vrot.slane %v7533_v37, 1  ;;  %v3845_v52 = vsel %vm3317_vm9, %v3812_v10, 0  ;;  %v4039_v17 = vld [vmem:[#allocation4 + $0x8] sm:$0xff]  ;;  %v2696_v4 = vpop.permute.xlu0 %2695 }
 0x181   : > { %v3711_v13 = vsel %vm8777_vm5, %v3708_v44, %v3710_v36  ;;  %v7560_v41 = vcombine.low %v3844_v55, %v3845_v52  ;;  %vm1524_vm10 = vcmp.ge.s32.totalorder %v1244_v62, 1  ;;  %v7562_v26 = vpack.c.bf16 %v585_v25, %v585_v25  ;;  %vm8778_vm3 = vmmov %vm8777_vm5  ;;  %v7590_v15 = vld [vmem:[#allocation3 + $0x60] sm:$0xff]  }
 0x182   : > { %v3466_v16 = vsel %vm8778_vm3, %v3463_v27, %v3465_v33  ;;  %vm8779_vm4 = vcmask 146432   ;;  %vm8780_vm12 = vmmov %vm8778_vm3  ;;  %v5521_v53 = vcombine.low %v1763_v12, %v1764_v28  ;;  %v1766_v62 = vsel %vm6448_vm15, %v7526_v54, 0 }
 0x183   : > { %5825 = vmatmul.mubr.msk.bf16.vlgmr.msra.gmra.mrb[0].mxu0 %vm8779_vm4, %v4039_v17  ;;  %v3958_v44 = vsel %vm8780_vm12, %v3955_v7, %v3957_v47  ;;  %vm7571_vm9 = vmpackc.low %vm1524_vm10, %vm1524_vm10  ;;  %vm8783_vm5 = vcmask 48160   ;;  %3742 = vrot.lane.b32.xlu0 %v3711_v13, %s6224_s29  ;;  %v3713_v39 = vsel %vm8778_vm3, %v3710_v36, %v3712_v9  ;;  %vm8784_vm4 = vcmask 80960   ;;  %v2385_v28 = vpop.permute.xlu1 %2384  ;;  %v586_v13 = vld [vmem:[#allocation2 + $0xd8] sm:$0xff] }
 0x184   : > { %2116 = vst.msk [vmem:[#allocation4 + $0x18] sm:$0xff] %vm8783_vm5, %v2071_v40  ;;  %v3959_v7 = vrot.slane %v7560_v41, 1  ;;  %v1972_v8 = vsel %vm7535_vm13, %v7541_v59, 0  ;;  %v1973_v27 = vsel %vm6448_vm15, %v1941_v57, 0  ;;  %3497 = vrot.lane.b32.xlu1 %v3466_v16, %s6223_s27  ;;  %v1765_v10 = vsel %vm7571_vm9, %v1733_v23, 0  ;;  %vm8785_vm10 = vmmov %vm8778_vm3  ;;  %v3009_v21 = vpop.permute.xlu0 %3008 }
 0x185   : > { %2742 = vst.msk [vmem:[#allocation4 + $0x10] sm:$0xff] %vm8784_vm4, %v2696_v4  ;;  %v906_v36 = vshrl.u32 %v7408_v19, 16  ;;  %v909_v25 = vshll.u32 %v7408_v19, 16  ;;  %v915_v2 = vshrl.u32 %v7471_v42, 16  ;;  %v904_v54 = vrot.slane %v7399_v11, 4  ;;  %vm8788_vm3 = vmmov %vm8784_vm4 }
 0x186   : > { %v918_v56 = vshll.u32 %v7471_v42, 16  ;;  %v2330_v29 = vshrl.u32 %v7326_v24, 16  ;;  %v2334_v5 = vshll.u32 %v6111_v50, 16  ;;  %v3960_v59 = vsel %vm8785_vm10, %v3957_v47, %v3959_v7  ;;  %v1478_v47 = vld [vmem:[#allocation3 + $0x20] sm:$0xf] }
 0x187   : > { %v908_v12 = vrot.slane %v906_v36, 7  ;;  %v7606_v55 = vrot.slane %v915_v2, 7  ;;  %v2338_v19 = vshrl.u32 %v6111_v50, 16  ;;  %vm8786_vm12 = vcmask 64560   ;;  %3989 = vrot.lane.b32.xlu0 %v3958_v44, %s6228_s17  ;;  %v1479_v16 = vld [vmem:[#allocation3 + $0x24] sm:$0xf]  ;;  %v2698_v4 = vpop.permute.xlu1 %2697 }
 0x188   : > { %2430 = vst.msk [vmem:[#allocation4 + $0x18] sm:$0xff] %vm8786_vm12, %v2385_v28  ;;  %vm8787_vm5 = vcmask 97360   ;;  %v2332_v24 = vor.u32 %v2330_v29, %v7370_v49  ;;  %v2336_v11 = vrot.slane %v2334_v5, 1  ;;  %v2342_v42 = vshll.u32 %v7590_v15, 16  ;;  %3744 = vrot.lane.b32.xlu1 %v3713_v39, %s6224_s29  ;;  %v1481_v2 = vld [vmem:[#allocation3 + $0x2c] sm:$0xf]  ;;  %v3484_v5 = vpop.permute.xlu0 %3483 }
 0x189   : > { %3055 = vst.msk [vmem:[#allocation4 + $0x10] sm:$0xff] %vm8787_vm5, %v3009_v21  ;;  %v2643_v52 = vshrl.u32 %v7415_v32, 16  ;;  %v911_v57 = vor.u32 %v909_v25, %v908_v12  ;;  %v913_v17 = vrot.slane %v908_v12, 4  ;;  %v920_v23 = vor.u32 %v918_v56, %v7606_v55  ;;  %v1480_v25 = vld [vmem:[#allocation3 + $0x28] sm:$0xf] }
 0x18a   : > { %v2647_v50 = vshll.u32 %v7598_v48, 16  ;;  %v5537_v40 = vcombine.low %v1972_v8, %v1973_v27  ;;  %v5746_v44 = vpack.c.bf16 %v586_v13, %v586_v13  ;;  %v5522_v36 = vcombine.low %v1765_v10, %v1766_v62  ;;  %2743 = vst.msk [vmem:[#allocation4 + $0x18] sm:$0xff] %vm8788_vm3, %v2698_v4 }
 0x18b   : > { %v912_v49 = vsel %vm6424_vm11, %v904_v54, %v911_v57  ;;  %v921_v32 = vsel %vm6424_vm11, %v913_v17, %v920_v23  ;;  %v1574_v39 = vsel %vm6878_vm7, %v1478_v47, 0  ;;  %3991 = vrot.lane.b32.xlu0 %v3960_v59, %s6228_s17  ;;  %vm8789_vm4 = vcmask 11264  }
 0x18c   : > { %1040 = vst.msk [vmem:[#allocation3 + $0x68] sm:$0xf] %vm8789_vm4, %v912_v49  ;;  %vm8790_vm10 = vmmov %vm8789_vm4  ;;  %vm8791_vm12 = vsmask.f32 7424  ;;  %v2340_v62 = vor.u32 %v2338_v19, %v2336_v11  ;;  %v7628_v27 = vrot.slane %v2342_v42, 1  ;;  %v1575_v10 = vsel %vm6448_vm15, %v1479_v16, 0  ;;  %1875 = vrot.lane.b32.xlu1 %v5521_v53, %s6222_s0  ;;  %v3011_v19 = vpop.permute.xlu1 %3010  ;;  %v3731_v17 = vpop.permute.xlu0 %3730 }
 0x18d   : > { %1041 = vst.msk [vmem:[#allocation3 + $0x6c] sm:$0xf] %vm8790_vm10, %v921_v32  ;;  %v2337_v8 = vsel %vm8791_vm12, %v2332_v24, %v2336_v11  ;;  %v2645_v60 = vor.u32 %v2643_v52, %v7444_v46  ;;  %v2649_v54 = vrot.slane %v2647_v50, 1  ;;  %v5499_v56 = vcombine.low %v1574_v39, %v1575_v10 }
 0x18e   : > { %v924_v29 = vshrl.u32 %v7562_v26, 16  ;;  %v922_v28 = vrot.slane %v7606_v55, 4  ;;  %v927_v59 = vshll.u32 %v7562_v26, 16  ;;  %v933_v21 = vshrl.u32 %v5746_v44, 16 }
 0x18f   : > { %v936_v12 = vshll.u32 %v5746_v44, 16  ;;  %vm8792_vm7 = vcmask 113760   ;;  %vm8793_vm5 = vcmask 15360   ;;  %v1576_v46 = vsel %vm6902_vm6, %v1480_v25, 0  ;;  %2084 = vrot.lane.b32.xlu0 %v5537_v40, %s6221_s14  ;;  %v3091_v25 = vld [vmem:[#allocation3 + $0x58] sm:$0xf] }
 0x190   : > { %3530 = vst.msk [vmem:[#allocation4 + $0x10] sm:$0xff] %vm8792_vm7, %v3484_v5  ;;  %v926_v13 = vrot.slane %v924_v29, 7  ;;  %v1577_v53 = vsel %vm6448_vm15, %v1481_v2, 0  ;;  %v1077_v24 = vadd.s32 184, %v6419_v45  ;;  %vm8794_vm3 = vcmask 97360   ;;  %1877 = vrot.lane.b32.xlu1 %v5522_v36, %s6222_s0  ;;  %vm8795_vm6 = vmmov %vm8793_vm5  ;;  %v3486_v44 = vpop.permute.xlu1 %3485  ;;  %v3978_v29 = vpop.permute.xlu0 %3977 }
 0x191   : > { %1699 = vst.msk [vmem:[#allocation4 + $0x20] sm:$0xff] %vm8793_vm5, %v5499_v56  ;;  %v7646_v26 = vrot.slane %v933_v21, 7  ;;  %v5500_v55 = vcombine.low %v1576_v46, %v1577_v53  ;;  %v3265_v11 = vrot.slane %v3263_v38, 4  ;;  %v1079_v42 = vadd.s32 200, %v6419_v45  ;;  %vm8797_vm10 = vmmov %vm8792_vm7  ;;  %v3566_v21 = vld [vmem:[#allocation3 + $0x60] sm:$0xf] }
 0x192   : > { %3056 = vst.msk [vmem:[#allocation4 + $0x18] sm:$0xff] %vm8794_vm3, %v3011_v19  ;;  %v2651_v1 = vshrl.u32 %v7598_v48, 16  ;;  %v929_v52 = vor.u32 %v927_v59, %v926_v13  ;;  %v931_v47 = vrot.slane %v926_v13, 4  ;;  %v1251_v57 = vand.u32 15, %v1077_v24  ;;  %vm8799_vm5 = vmmov %vm8791_vm12  ;;  %v3092_v19 = vld [vmem:[#allocation3 + $0x5c] sm:$0xf] }
 0x193   : > { %v2956_v23 = vshrl.u32 %v7492_v63, 16  ;;  %v938_v50 = vor.u32 %v936_v12, %v7646_v26  ;;  %1700 = vst.msk [vmem:[#allocation4 + $0x28] sm:$0xff] %vm8795_vm6, %v5500_v55  ;;  %v1265_v16 = vand.u32 15, %v1079_v42  ;;  %v1078_v30 = vadd.s32 192, %v6419_v45  ;;  %v1942_v38 = vld [vmem:[#allocation3 + $0x68] sm:$0xf]  ;;  %2398 = vrot.lane.b32.xlu0 %v2337_v8, %s6225_s8 }
 0x194   : > { %v1943_v40 = vld [vmem:[#allocation3 + $0x6c] sm:$0xf]  ;;  %vm8796_vm4 = vcmask 130160   ;;  %v930_v48 = vsel %vm6424_vm11, %v922_v28, %v929_v52  ;;  %v3267_v4 = vsel %vm6523_vm14, %v3265_v11, %v6491_v43  ;;  %v1974_v63 = vsel %vm7571_vm9, %v1942_v38, 0  ;;  %3531 = vst.msk [vmem:[#allocation4 + $0x18] sm:$0xff] %vm8797_vm10, %v3486_v44 }
 0x195   : > { %3777 = vst.msk [vmem:[#allocation4 + $0x10] sm:$0xff] %vm8796_vm4, %v3731_v17  ;;  %v1975_v36 = vsel %vm6448_vm15, %v1943_v40, 0  ;;  %v2345_v49 = vsel %vm8791_vm12, %v2340_v62, %v7628_v27  ;;  %v7671_v32 = vld [vmem:[#allocation3 + $0x68] sm:$0xff]   ;;  %v939_v10 = vsel %vm6424_vm11, %v931_v47, %v938_v50  ;;  %vm8798_vm7 = vcmask 11264   ;;  %v3567_v46 = vld [vmem:[#allocation3 + $0x64] sm:$0xf] }
 0x196   : > { %v6115_v39 = vld [vmem:[#allocation3 + $0x68] sm:$0xff]   ;;  %1042 = vst.msk [vmem:[#allocation3 + $0x70] sm:$0xf] %vm8798_vm7, %v930_v48  ;;  %v5538_v2 = vcombine.low %v1974_v63, %v1975_v36  ;;  %v2650_v56 = vsel %vm8799_vm5, %v2645_v60, %v2649_v54  ;;  %vm8800_vm3 = vmmov %vm8798_vm7  ;;  %vm3125_vm6 = vcmp.le.s32.totalorder %v1251_v57, 14  ;;  %v7679_v8 = vadd.s32 208, %v6419_v45  ;;  %v3733_v60 = vpop.permute.xlu1 %3732 }
 0x197   : > { %1043 = vst.msk [vmem:[#allocation3 + $0x74] sm:$0xf] %vm8800_vm3, %v939_v10  ;;  %v2655_v62 = vshll.u32 %v7671_v32, 16  ;;  %v2958_v5 = vor.u32 %v2956_v23, %v7522_v18  ;;  %v2960_v28 = vshll.u32 %v6115_v39, 16  ;;  %vm3157_vm4 = vmpackc.low %vm3125_vm6, %vm3125_vm6  ;;  %vm7683_vm10 = vcmp.ne.s16.totalorder %v3267_v4, 0  ;;  %2711 = vrot.lane.b32.xlu0 %v2650_v56, %s6226_s12  ;;  %v3980_v23 = vpop.permute.xlu0 %3979 }
 0x198   : > { %2086 = vrot.lane.b32.xlu1 %v5538_v2, %s6221_s14  ;;  %v2653_v12 = vor.u32 %v2651_v1, %v2649_v54  ;;  %vm8803_vm12 = vcmask 146560   ;;  %v3189_v13 = vsel %vm3157_vm4, 65537, %v6220_v34  ;;  %vm3127_vm7 = vcmp.le.s32.totalorder %v1265_v16, 14  ;;  %v3813_v42 = vld [vmem:[#allocation3 + $0x68] sm:$0xf] }
 0x199   : > { %4024 = vst.msk [vmem:[#allocation4 + $0x10] sm:$0xff] %vm8803_vm12, %v3978_v29  ;;  %v1258_v53 = vand.u32 15, %v1078_v30  ;;  %vm8804_vm5 = vcmask 130160   ;;  %v7692_v18 = vrot.slane %v2655_v62, 1  ;;  %v2962_v24 = vrot.slane %v2960_v28, 1  ;;  %vm3159_vm3 = vmpackc.low %vm3127_vm7, %vm3127_vm7 }
 0x19a   : > { %3778 = vst.msk [vmem:[#allocation4 + $0x18] sm:$0xff] %vm8804_vm5, %v3733_v60  ;;  %v2964_v55 = vshrl.u32 %v6115_v39, 16  ;;  %v3269_v11 = vrot.slane %v3189_v13, 7  ;;  %v3351_v54 = vsel %vm7683_vm10, %v3091_v25, 0  ;;  %v7697_v1 = vsel %vm3159_vm3, 65537, %v6220_v34  ;;  %v1864_v48 = vpop.permute.xlu1 %1863  ;;  %v587_v13 = vld [vmem:[#allocation2 + $0xe0] sm:$0xff] }
 0x19b   : > { %v3599_v52 = vsel %vm7683_vm10, %v3566_v21, 0  ;;  %v3814_v47 = vld [vmem:[#allocation3 + $0x6c] sm:$0xf]  ;;  %v1272_v57 = vand.u32 15, %v7679_v8  ;;  %vm8805_vm6 = vsmask.f32 7424  ;;  %v2073_v60 = vpop.permute.xlu0 %2072 }
 0x19c   : > { %v2963_v17 = vsel %vm8805_vm6, %v2958_v5, %v2962_v24  ;;  %v3270_v50 = vsel %vm6523_vm14, %v6531_v6, %v3269_v11  ;;  %v3093_v16 = vld [vmem:[#allocation3 + $0x60] sm:$0xf]  ;;  %v3094_v30 = vld [vmem:[#allocation3 + $0x64] sm:$0xf]  ;;  %v3846_v38 = vsel %vm7683_vm10, %v3813_v42, 0  ;;  %vm7708_vm4 = vcmp.ge.s32.totalorder %v1258_v53, 1  ;;  %2400 = vrot.lane.b32.xlu1 %v2345_v49, %s6225_s8  ;;  %vm8808_vm12 = vmmov %vm8805_vm6 }
 0x19d   : > { %v2658_v44 = vsel %vm8808_vm12, %v2653_v12, %v7692_v18  ;;  %vm8809_vm7 = vcmask 146560   ;;  %vm3319_vm5 = vcmp.ne.s16.totalorder %v3270_v50, 0  ;;  %v3271_v4 = vrot.slane %v3269_v11, 4  ;;  %3024 = vrot.lane.b32.xlu0 %v2963_v17, %s6227_s15  ;;  %v3568_v5 = vld [vmem:[#allocation3 + $0x68] sm:$0xf] }
 0x19e   : > { %4025 = vst.msk [vmem:[#allocation4 + $0x18] sm:$0xff] %vm8809_vm7, %v3980_v23  ;;  %v3275_v63 = vrot.slane %v7697_v1, 7  ;;  %vm8810_vm3 = vcmask 31760   ;;  %v7719_v36 = vld [vmem:[#allocation3 + $0x70] sm:$0xff]   ;;  %v2966_v39 = vor.u32 %v2964_v55, %v2962_v24  ;;  %v3352_v10 = vsel %vm3319_vm5, %v3092_v19, 0 }
 0x19f   : > { %1908 = vst.msk [vmem:[#allocation4 + $0x20] sm:$0xff] %vm8810_vm3, %v1864_v48  ;;  %v3600_v25 = vsel %vm3319_vm5, %v3567_v46, 0  ;;  %v3847_v49 = vsel %vm3319_vm5, %v3814_v47, 0  ;;  %v5605_v2 = vcombine.low %v3351_v54, %v3352_v10  ;;  %v3273_v56 = vsel %vm6523_vm14, %v3271_v4, %v6491_v43  ;;  %v3569_v28 = vld [vmem:[#allocation3 + $0x6c] sm:$0xf]  ;;  %v1866_v46 = vpop.permute.xlu1 %1865  ;;  %vm8815_vm5 = vmmov %vm8810_vm3  ;;  %v2387_v0 = vpop.permute.xlu0 %2386 }
 0x1a0   : > { %v3276_v62 = vsel %vm6523_vm14, %v6531_v6, %v3275_v63  ;;  %v7729_v29 = vcombine.low %v3599_v52, %v3600_v25  ;;  %v2968_v59 = vshll.u32 %v7719_v36, 16  ;;  %vm7732_vm10 = vcmp.ne.s16.totalorder %v3273_v56, 0  ;;  %v4040_v12 = vld [vmem:[#allocation4 + $0x10] sm:$0xff]  ;;  %2713 = vrot.lane.b32.xlu1 %v2658_v44, %s6226_s12  ;;  %v3815_v42 = vld [vmem:[#allocation3 + $0x70] sm:$0xf]  ;;  %1909 = vst.msk [vmem:[#allocation4 + $0x28] sm:$0xff] %vm8815_vm5, %v1866_v46 }
 0x1a1   : > { %vm3321_vm6 = vcmp.ne.s16.totalorder %v3276_v62, 0  ;;  %v7736_v19 = vcombine.low %v3846_v38, %v3847_v49  ;;  %v3467_v53 = vrot.slane %v5605_v2, 1  ;;  %v3353_v24 = vsel %vm7732_vm10, %v3093_v16, 0  ;;  %v7753_v23 = vld [vmem:[#allocation3 + $0x68] sm:$0xf]  ;;  %v589_v49 = vld [vmem:[#allocation2 + $0xf0] sm:$0xff] }
 0x1a2   : > { %v3354_v55 = vsel %vm3321_vm6, %v3094_v30, 0  ;;  %vm8813_vm12 = vcmask 48160   ;;  %vm8814_vm7 = vcmask 146432   ;;  %v3714_v11 = vrot.slane %v7729_v29, 1  ;;  %v7755_v50 = vld [vmem:[#allocation3 + $0x6c] sm:$0xf] }
 0x1a3   : > { %2117 = vst.msk [vmem:[#allocation4 + $0x20] sm:$0xff] %vm8813_vm12, %v2073_v60  ;;  %5828 = vmatprep.mubr.msk.bf16.mxu0 %vm8814_vm7, %v4040_v12  ;;  %v7745_v54 = vrot.slane %v2968_v59, 1  ;;  %v7748_v52 = vcombine.low %v3353_v24, %v3354_v55  ;;  %v3601_v47 = vsel %vm7732_vm10, %v3568_v5, 0  ;;  %v3602_v17 = vsel %vm3321_vm6, %v3569_v28, 0  ;;  %v3816_v16 = vld [vmem:[#allocation3 + $0x74] sm:$0xf]  ;;  %vm7774_vm7 = vmpackc.low %vm7708_vm4, %vm7708_vm4 }
 0x1a4   : > { %v588_v30 = vld [vmem:[#allocation2 + $0xe8] sm:$0xff]  ;;  %vm8816_vm3 = vcmask 1046528   ;;  %v7760_v44 = vcombine.low %v3601_v47, %v3602_v17  ;;  %v3961_v48 = vrot.slane %v7736_v19, 1  ;;  %v7763_v4 = vld [vmem:[#allocation3 + $0x74] sm:$0xf]  ;;  %v5747_v25 = vpack.c.bf16 %v587_v13, %v587_v13 }
 0x1a5   : > { %v3468_v38 = vsel %vm8816_vm3, %v3465_v33, %v3467_v53  ;;  %v7765_v10 = vld [vmem:[#allocation3 + $0x70] sm:$0xf]  ;;  %vm8817_vm12 = vsmask.f32 7424  ;;  %v3469_v56 = vrot.slane %v7748_v52, 1  ;;  %v3848_v5 = vsel %vm7732_vm10, %v3815_v42, 0  ;;  %vm8820_vm5 = vmmov %vm8816_vm3 }
 0x1a6   : > { %v2971_v2 = vsel %vm8817_vm12, %v2966_v39, %v7745_v54  ;;  %3499 = vrot.lane.b32.xlu0 %v3468_v38, %s6223_s27  ;;  %v4041_v29 = vld [vmem:[#allocation4 + $0x18] sm:$0xff]  ;;  %v940_v28 = vrot.slane %v7646_v26, 4  ;;  %v2075_v39 = vpop.permute.xlu1 %2074  ;;  %v3715_v59 = vsel %vm8820_vm5, %v3712_v9, %v3714_v11  ;;  %v3716_v60 = vrot.slane %v7760_v44, 1  ;;  %vm8823_vm10 = vmmov %vm8820_vm5 }
 0x1a7   : > { %3026 = vrot.lane.b32.xlu1 %v2971_v2, %s6227_s15  ;;  %vm8821_vm3 = vcmask 64560   ;;  %vm8822_vm4 = vcmask 146432   ;;  %v3849_v40 = vsel %vm3321_vm6, %v3816_v16, 0  ;;  %v5748_v12 = vpack.c.bf16 %v588_v30, %v588_v30  ;;  %v1737_v37 = vld [vmem:[#allocation3 + $0x70] sm:$0xf]  ;;  %v7797_v9 = vld [vmem:[#allocation3 + $0x68] sm:$0xff]   ;;  %vm8825_vm6 = vmmov %vm8823_vm10 }
 0x1a8   : > { %2431 = vst.msk [vmem:[#allocation4 + $0x20] sm:$0xff] %vm8821_vm3, %v2387_v0  ;;  %5829 = vmatmul.mubr.msk.bf16.gmra.mrb[4].mxu0 %vm8822_vm4, %v4041_v29  ;;  %v3470_v26 = vsel %vm8823_vm10, %v3467_v53, %v3469_v56  ;;  %vm8824_vm12 = vcmask 48160   ;;  %v7793_v21 = vcombine.low %v3848_v5, %v3849_v40  ;;  %vm1528_vm5 = vcmp.ge.s32.totalorder %v1272_v57, 1  ;;  %v1945_v53 = vld [vmem:[#allocation3 + $0x74] sm:$0xf]  ;;  %vm8828_vm4 = vmmov %vm8825_vm6 }
 0x1a9   : > { %2118 = vst.msk [vmem:[#allocation4 + $0x28] sm:$0xff] %vm8824_vm12, %v2075_v39  ;;  %v7799_v13 = vpack.c.bf16 %v589_v49, %v589_v49  ;;  %v3962_v62 = vsel %vm8825_vm6, %v3959_v7, %v3961_v48  ;;  %v1767_v46 = vsel %vm7774_vm7, %v7753_v23, 0  ;;  %v1768_v8 = vsel %vm6448_vm15, %v7755_v50, 0  ;;  %vm7812_vm3 = vmpackc.low %vm1528_vm5, %vm1528_vm5  ;;  %v7816_v55 = vld [vmem:[#allocation3 + $0x70] sm:$0xff]   ;;  %v2700_v7 = vpop.permute.xlu0 %2699 }
 0x1aa   : > { %v942_v24 = vshrl.u32 %v5747_v25, 16  ;;  %3746 = vrot.lane.b32.xlu0 %v3715_v59, %s6224_s29  ;;  %v3717_v41 = vsel %vm8828_vm4, %v3714_v11, %v3716_v60  ;;  %v1770_v42 = vsel %vm6448_vm15, %v7763_v4, 0  ;;  %v1976_v47 = vsel %vm7774_vm7, %v7765_v10, 0  ;;  %v2389_v23 = vpop.permute.xlu1 %2388  ;;  %v7831_v38 = vld [vmem:[#allocation3 + $0x70] sm:$0xff]   ;;  %v7843_v59 = vld [vmem:[#allocation2 + $0xf8] sm:$0xff]  ;;  %vm8831_vm5 = vmmov %vm8828_vm4 }
 0x1ab   : > { %v945_v17 = vshll.u32 %v5747_v25, 16  ;;  %3501 = vrot.lane.b32.xlu1 %v3470_v26, %s6223_s27  ;;  %vm8829_vm10 = vcmask 80960   ;;  %v3963_v50 = vrot.slane %v7793_v21, 1  ;;  %v951_v30 = vshrl.u32 %v5748_v12, 16  ;;  %v1482_v39 = vld [vmem:[#allocation3 + $0x30] sm:$0xf] }
 0x1ac   : > { %2744 = vst.msk [vmem:[#allocation4 + $0x20] sm:$0xff] %vm8829_vm10, %v2700_v7  ;;  %v944_v16 = vrot.slane %v942_v24, 7  ;;  %v954_v11 = vshll.u32 %v5748_v12, 16  ;;  %vm8830_vm12 = vcmask 64560   ;;  %v1769_v4 = vsel %vm7812_vm3, %v1737_v37, 0  ;;  %vm8833_vm4 = vmmov %vm8829_vm10 }
 0x1ad   : > { %2432 = vst.msk [vmem:[#allocation4 + $0x28] sm:$0xff] %vm8830_vm12, %v2389_v23  ;;  %v1977_v10 = vsel %vm6448_vm15, %v1945_v53, 0  ;;  %v2346_v25 = vshrl.u32 %v7590_v15, 16  ;;  %v2350_v49 = vshll.u32 %v7797_v9, 16  ;;  %v7840_v29 = vrot.slane %v951_v30, 7  ;;  %v3013_v12 = vpop.permute.xlu0 %3012 }
 0x1ae   : > { %v947_v2 = vor.u32 %v945_v17, %v944_v16  ;;  %v949_v0 = vrot.slane %v944_v16, 4  ;;  %v2358_v5 = vshll.u32 %v7816_v55, 16  ;;  %3993 = vrot.lane.b32.xlu0 %v3962_v62, %s6228_s17  ;;  %v5523_v40 = vcombine.low %v1767_v46, %v1768_v8  ;;  %v1483_v53 = vld [vmem:[#allocation3 + $0x34] sm:$0xf]  ;;  %v2702_v24 = vpop.permute.xlu1 %2701 }
 0x1af   : > { %v2352_v26 = vrot.slane %v2350_v49, 1  ;;  %v2354_v37 = vshrl.u32 %v7797_v9, 16  ;;  %v2659_v15 = vshrl.u32 %v7671_v32, 16  ;;  %3748 = vrot.lane.b32.xlu1 %v3717_v41, %s6224_s29  ;;  %v3964_v7 = vsel %vm8831_vm5, %v3961_v48, %v3963_v50  ;;  %2745 = vst.msk [vmem:[#allocation4 + $0x28] sm:$0xff] %vm8833_vm4, %v2702_v24  ;;  %v1484_v48 = vld [vmem:[#allocation3 + $0x38] sm:$0xf] }
 0x1b0   : > { %vm8832_vm6 = vcmask 97360   ;;  %v948_v62 = vsel %vm6424_vm11, %v940_v28, %v947_v2  ;;  %v956_v46 = vor.u32 %v954_v11, %v7840_v29  ;;  %v2663_v9 = vshll.u32 %v7831_v38, 16 }
 0x1b1   : > { %3057 = vst.msk [vmem:[#allocation4 + $0x20] sm:$0xff] %vm8832_vm6, %v3013_v12  ;;  %v5524_v32 = vcombine.low %v1769_v4, %v1770_v42  ;;  %v5539_v8 = vcombine.low %v1976_v47, %v1977_v10  ;;  %vm8834_vm10 = vcmask 11264   ;;  %v2348_v41 = vor.u32 %v2346_v25, %v7628_v27  ;;  %v1485_v47 = vld [vmem:[#allocation3 + $0x3c] sm:$0xf]  ;;  %v3488_v27 = vpop.permute.xlu0 %3487 }
 0x1b2   : > { %1044 = vst.msk [vmem:[#allocation3 + $0x78] sm:$0xf] %vm8834_vm10, %v948_v62  ;;  %v5750_v19 = vpack.c.bf16 %v7843_v59, %v7843_v59  ;;  %v957_v17 = vsel %vm6424_vm11, %v949_v0, %v956_v46  ;;  %v7866_v28 = vrot.slane %v2358_v5, 1  ;;  %v1578_v23 = vsel %vm7070_vm0, %v1482_v39, 0  ;;  %3995 = vrot.lane.b32.xlu0 %v3964_v7, %s6228_s17  ;;  %vm8835_vm12 = vmmov %vm8834_vm10  ;;  %v3015_v10 = vpop.permute.xlu1 %3014 }
 0x1b3   : > { %v1579_v42 = vsel %vm6448_vm15, %v1483_v53, 0  ;;  %1045 = vst.msk [vmem:[#allocation3 + $0x7c] sm:$0xf] %vm8835_vm12, %v957_v17  ;;  %v2356_v16 = vor.u32 %v2354_v37, %v2352_v26  ;;  %v2661_v30 = vor.u32 %v2659_v15, %v7692_v18  ;;  %v2667_v11 = vshrl.u32 %v7831_v38, 16  ;;  %1879 = vrot.lane.b32.xlu1 %v5523_v40, %s6222_s0  ;;  %vm8837_vm0 = vmmov %vm8832_vm6 }
 0x1b4   : > { %v5501_v4 = vcombine.low %v1578_v23, %v1579_v42  ;;  %vm8836_vm5 = vcmask 113760   ;;  %v2665_v35 = vrot.slane %v2663_v9, 1  ;;  %v958_v25 = vrot.slane %v7840_v29, 4  ;;  %3058 = vst.msk [vmem:[#allocation4 + $0x28] sm:$0xff] %vm8837_vm0, %v3015_v10 }
 0x1b5   : > { %3532 = vst.msk [vmem:[#allocation4 + $0x20] sm:$0xff] %vm8836_vm5, %v3488_v27  ;;  %v960_v49 = vshrl.u32 %v7799_v13, 16  ;;  %v963_v2 = vshll.u32 %v7799_v13, 16  ;;  %vm8838_vm6 = vcmask 15360   ;;  %v969_v18 = vshrl.u32 %v5750_v19, 16  ;;  %v3735_v13 = vpop.permute.xlu0 %3734  ;;  %vm8842_vm12 = vmmov %vm8836_vm5 }
 0x1b6   : > { %1701 = vst.msk [vmem:[#allocation4 + $0x30] sm:$0xff] %vm8838_vm6, %v5501_v4  ;;  %v972_v0 = vshll.u32 %v5750_v19, 16  ;;  %v1580_v38 = vsel %vm7107_vm8, %v1484_v48, 0  ;;  %v1581_v5 = vsel %vm6448_vm15, %v1485_v47, 0  ;;  %v1081_v29 = vadd.s32 216, %v6419_v45  ;;  %2088 = vrot.lane.b32.xlu0 %v5539_v8, %s6221_s14  ;;  %v3490_v7 = vpop.permute.xlu1 %3489  ;;  %vm8841_vm10 = vmmov %vm8838_vm6 }
 0x1b7   : > { %v962_v39 = vrot.slane %v960_v49, 7  ;;  %v5502_v40 = vcombine.low %v1580_v38, %v1581_v5  ;;  %v3277_v12 = vrot.slane %v3275_v63, 4  ;;  %v2972_v37 = vshrl.u32 %v7719_v36, 16  ;;  %1881 = vrot.lane.b32.xlu1 %v5524_v32, %s6222_s0  ;;  %3533 = vst.msk [vmem:[#allocation4 + $0x28] sm:$0xff] %vm8842_vm12, %v3490_v7  ;;  %v7907_v8 = vld [vmem:[#allocation3 + $0x68] sm:$0xf] }
 0x1b8   : > { %v7892_v15 = vrot.slane %v969_v18, 7  ;;  %v1083_v22 = vadd.s32 232, %v6419_v45  ;;  %v1082_v53 = vadd.s32 224, %v6419_v45  ;;  %vm8839_vm8 = vsmask.f32 7424 }
 0x1b9   : > { %v1946_v24 = vld [vmem:[#allocation3 + $0x78] sm:$0xf]  ;;  %v2353_v62 = vsel %vm8839_vm8, %v2348_v41, %v2352_v26  ;;  %vm8840_vm4 = vcmask 130160   ;;  %v965_v1 = vor.u32 %v963_v2, %v962_v39  ;;  %1702 = vst.msk [vmem:[#allocation4 + $0x38] sm:$0xff] %vm8841_vm10, %v5502_v40  ;;  %v3279_v63 = vsel %vm6523_vm14, %v3277_v12, %v6491_v43  ;;  %vm8843_vm5 = vmmov %vm8839_vm8  ;;  %v3982_v47 = vpop.permute.xlu0 %3981  ;;  %v3570_v49 = vld [vmem:[#allocation3 + $0x70] sm:$0xf] }
 0x1ba   : > { %3779 = vst.msk [vmem:[#allocation4 + $0x20] sm:$0xff] %vm8840_vm4, %v3735_v13  ;;  %v1978_v36 = vsel %vm7812_vm3, %v1946_v24, 0  ;;  %v967_v46 = vrot.slane %v962_v39, 4  ;;  %v974_v9 = vor.u32 %v972_v0, %v7892_v15  ;;  %v1279_v32 = vand.u32 15, %v1081_v29  ;;  %v1947_v26 = vld [vmem:[#allocation3 + $0x7c] sm:$0xf]  ;;  %vm8844_vm0 = vmmov %vm8843_vm5  ;;  %2402 = vrot.lane.b32.xlu0 %v2353_v62, %s6225_s8  ;;  %v3737_v10 = vpop.permute.xlu1 %3736 }
 0x1bb   : > { %v2361_v41 = vsel %vm8843_vm5, %v2356_v16, %v7866_v28  ;;  %v2666_v19 = vsel %vm8844_vm0, %v2661_v30, %v2665_v35  ;;  %v7912_v48 = vld [vmem:[#allocation3 + $0x78] sm:$0xff]   ;;  %v2669_v17 = vor.u32 %v2667_v11, %v2665_v35  ;;  %v966_v23 = vsel %vm6424_vm11, %v958_v25, %v965_v1  ;;  %v3096_v0 = vld [vmem:[#allocation3 + $0x6c] sm:$0xf]  ;;  %v3571_v13 = vld [vmem:[#allocation3 + $0x74] sm:$0xf] }
 0x1bc   : > { %v1979_v42 = vsel %vm6448_vm15, %v1947_v26, 0  ;;  %v6121_v27 = vld [vmem:[#allocation3 + $0x78] sm:$0xff]   ;;  %v975_v4 = vsel %vm6424_vm11, %v967_v46, %v974_v9  ;;  %vm8845_vm6 = vcmask 11264   ;;  %vm7922_vm8 = vcmp.le.s32.totalorder %v1279_v32, 14  ;;  %v3097_v24 = vld [vmem:[#allocation3 + $0x70] sm:$0xf] }
 0x1bd   : > { %1046 = vst.msk [vmem:[#allocation3 + $0x80] sm:$0xf] %vm8845_vm6, %v966_v23  ;;  %vm7926_vm4 = vcmp.ne.s16.totalorder %v3279_v63, 0  ;;  %v5540_v11 = vcombine.low %v1978_v36, %v1979_v42  ;;  %v2671_v35 = vshll.u32 %v7912_v48, 16  ;;  %vm8850_vm10 = vcmask 146560   ;;  %vm8851_vm12 = vmmov %vm8845_vm6 }
 0x1be   : > { %4026 = vst.msk [vmem:[#allocation4 + $0x20] sm:$0xff] %vm8850_vm10, %v3982_v47  ;;  %v2974_v25 = vor.u32 %v2972_v37, %v7745_v54  ;;  %vm3161_vm11 = vmpackc.low %vm7922_vm8, %vm7922_vm8  ;;  %v1293_v61 = vand.u32 15, %v1083_v22  ;;  %vm8852_vm5 = vcmask 130160   ;;  %v2976_v2 = vshll.u32 %v6121_v27, 16  ;;  %v3817_v5 = vld [vmem:[#allocation3 + $0x78] sm:$0xf]  ;;  %2715 = vrot.lane.b32.xlu0 %v2666_v19, %s6226_s12  ;;  %v3984_v22 = vpop.permute.xlu0 %3983  ;;  %v1868_v36 = vpop.permute.xlu1 %1867 }
 0x1bf   : > { %1047 = vst.msk [vmem:[#allocation3 + $0x84] sm:$0xf] %vm8851_vm12, %v975_v4  ;;  %v2980_v18 = vshrl.u32 %v6121_v27, 16  ;;  %v3193_v38 = vsel %vm3161_vm11, 65537, %v6220_v34  ;;  %v1286_v39 = vand.u32 15, %v1082_v53  ;;  %2090 = vrot.lane.b32.xlu1 %v5540_v11, %s6221_s14  ;;  %v7940_v54 = vrot.slane %v2671_v35, 1 }
 0x1c0   : > { %3780 = vst.msk [vmem:[#allocation4 + $0x28] sm:$0xff] %vm8852_vm5, %v3737_v10  ;;  %v3281_v40 = vrot.slane %v3193_v38, 7  ;;  %v3355_v29 = vsel %vm7926_vm4, %v7907_v8, 0  ;;  %vm7945_vm0 = vcmp.le.s32.totalorder %v1293_v61, 14  ;;  %v2978_v37 = vrot.slane %v2976_v2, 1 }
 0x1c1   : > { %vm3163_vm6 = vmpackc.low %vm7945_vm0, %vm7945_vm0  ;;  %v3603_v53 = vsel %vm7926_vm4, %v3570_v49, 0  ;;  %v3818_v7 = vld [vmem:[#allocation3 + $0x7c] sm:$0xf]  ;;  %v3850_v62 = vsel %vm7926_vm4, %v3817_v5, 0  ;;  %vm7957_vm8 = vcmp.ge.s32.totalorder %v1286_v39, 1  ;;  %vm8858_vm12 = vcmask 146560  }
 0x1c2   : > { %vm8857_vm10 = vsmask.f32 7424  ;;  %4027 = vst.msk [vmem:[#allocation4 + $0x28] sm:$0xff] %vm8858_vm12, %v3984_v22  ;;  %v3282_v46 = vsel %vm6523_vm14, %v6531_v6, %v3281_v40  ;;  %v3098_v9 = vld [vmem:[#allocation3 + $0x74] sm:$0xf]  ;;  %v7968_v32 = vsel %vm3163_vm6, 65537, %v6220_v34  ;;  %v2982_v19 = vor.u32 %v2980_v18, %v2978_v37  ;;  %v2077_v35 = vpop.permute.xlu0 %2076  ;;  %v1870_v49 = vpop.permute.xlu1 %1869 }
 0x1c3   : > { %v2674_v63 = vsel %vm8857_vm10, %v2669_v17, %v7940_v54  ;;  %v3283_v8 = vrot.slane %v3281_v40, 4  ;;  %vm8859_vm4 = vcmask 31760   ;;  %vm8860_vm11 = vmmov %vm8857_vm10  ;;  %vm3323_vm5 = vcmp.ne.s16.totalorder %v3282_v46, 0  ;;  %v3572_v23 = vld [vmem:[#allocation3 + $0x78] sm:$0xf]  ;;  %2404 = vrot.lane.b32.xlu1 %v2361_v41, %s6225_s8 }
 0x1c4   : > { %1910 = vst.msk [vmem:[#allocation4 + $0x30] sm:$0xff] %vm8859_vm4, %v1868_v36  ;;  %v2979_v26 = vsel %vm8860_vm11, %v2974_v25, %v2978_v37  ;;  %v3287_v17 = vrot.slane %v7968_v32, 7  ;;  %v3573_v42 = vld [vmem:[#allocation3 + $0x7c] sm:$0xf]  ;;  %v3356_v47 = vsel %vm3323_vm5, %v3096_v0, 0  ;;  %v3604_v4 = vsel %vm3323_vm5, %v3571_v13, 0 }
 0x1c5   : > { %v3285_v27 = vsel %vm6523_vm14, %v3283_v8, %v6491_v43  ;;  %v3851_v16 = vsel %vm3323_vm5, %v3818_v7, 0  ;;  %3028 = vrot.lane.b32.xlu0 %v2979_v26, %s6227_s15  ;;  %v5607_v11 = vcombine.low %v3355_v29, %v3356_v47  ;;  %v4042_v25 = vld [vmem:[#allocation4 + $0x20] sm:$0xff]  ;;  %v7989_v61 = vcombine.low %v3603_v53, %v3604_v4  ;;  %1911 = vst.msk [vmem:[#allocation4 + $0x38] sm:$0xff] %vm8859_vm4, %v1870_v49  ;;  %v3819_v29 = vld [vmem:[#allocation3 + $0x80] sm:$0xf]  ;;  %vm8018_vm5 = vmpackc.low %vm7957_vm8, %vm7957_vm8 }
 0x1c6   : > { %v7978_v30 = vld [vmem:[#allocation3 + $0x80] sm:$0xff]   ;;  %v3288_v10 = vsel %vm6523_vm14, %v6531_v6, %v3287_v17  ;;  %vm7985_vm0 = vcmp.ne.s16.totalorder %v3285_v27, 0  ;;  %vm8863_vm10 = vcmask 48160   ;;  %vm8864_vm12 = vcmask 146432   ;;  %v1739_v46 = vld [vmem:[#allocation3 + $0x78] sm:$0xf]  ;;  %v2079_v8 = vpop.permute.xlu1 %2078 }
 0x1c7   : > { %vm3325_vm6 = vcmp.ne.s16.totalorder %v3288_v10, 0  ;;  %v3357_v2 = vsel %vm7985_vm0, %v3097_v24, 0  ;;  %2119 = vst.msk [vmem:[#allocation4 + $0x30] sm:$0xff] %vm8863_vm10, %v2077_v35  ;;  %5832 = vmatprep.mubr.msk.bf16.mxu0 %vm8864_vm12, %v4042_v25  ;;  %v3605_v18 = vsel %vm7985_vm0, %v3572_v23, 0  ;;  %v7997_v0 = vcombine.low %v3850_v62, %v3851_v16  ;;  %2717 = vrot.lane.b32.xlu1 %v2674_v63, %s6226_s12  ;;  %v3820_v37 = vld [vmem:[#allocation3 + $0x84] sm:$0xf]  ;;  %v2391_v62 = vpop.permute.xlu0 %2390 }
 0x1c8   : > { %v2984_v38 = vshll.u32 %v7978_v30, 16  ;;  %v3471_v5 = vrot.slane %v5607_v11, 1  ;;  %v3358_v39 = vsel %vm3325_vm6, %v3098_v9, 0  ;;  %v3718_v40 = vrot.slane %v7989_v61, 1  ;;  %v1740_v52 = vld [vmem:[#allocation3 + $0x7c] sm:$0xf] }
 0x1c9   : > { %v8004_v12 = vcombine.low %v3357_v2, %v3358_v39  ;;  %v3606_v13 = vsel %vm3325_vm6, %v3573_v42, 0  ;;  %v1084_v22 = vadd.s32 240, %v6419_v45  ;;  %vm8865_vm11 = vcmask 1046528   ;;  %v4043_v36 = vld [vmem:[#allocation4 + $0x28] sm:$0xff]  ;;  %v1742_v47 = vld [vmem:[#allocation3 + $0x84] sm:$0xf] }
 0x1ca   : > { %v8008_v24 = vrot.slane %v2984_v38, 1  ;;  %v3472_v53 = vsel %vm8865_vm11, %v3469_v56, %v3471_v5  ;;  %v8013_v7 = vcombine.low %v3605_v18, %v3606_v13  ;;  %vm8868_vm10 = vcmask 64560   ;;  %5833 = vmatmul.mubr.msk.bf16.gmra.mrb[8].mxu0 %vm8864_vm12, %v4043_v36  ;;  %v1948_v11 = vld [vmem:[#allocation3 + $0x80] sm:$0xf]  ;;  %v1949_v41 = vld [vmem:[#allocation3 + $0x84] sm:$0xf]  ;;  %v2393_v2 = vpop.permute.xlu1 %2392 }
 0x1cb   : > { %3503 = vrot.lane.b32.xlu0 %v3472_v53, %s6223_s27  ;;  %v3473_v9 = vrot.slane %v8004_v12, 1  ;;  %2433 = vst.msk [vmem:[#allocation4 + $0x30] sm:$0xff] %vm8868_vm10, %v2391_v62  ;;  %v3852_v56 = vsel %vm7985_vm0, %v3819_v29, 0  ;;  %vm8869_vm4 = vsmask.f32 7424  ;;  %vm8870_vm8 = vcmask 48160   ;;  %vm8871_vm0 = vmmov %vm8865_vm11  ;;  %v2704_v25 = vpop.permute.xlu0 %2703 }
 0x1cc   : > { %v2987_v1 = vsel %vm8869_vm4, %v2982_v19, %v8008_v24  ;;  %2120 = vst.msk [vmem:[#allocation4 + $0x38] sm:$0xff] %vm8870_vm8, %v2079_v8  ;;  %v3719_v26 = vsel %vm8865_vm11, %v3716_v60, %v3718_v40  ;;  %v3965_v23 = vrot.slane %v7997_v0, 1  ;;  %v3853_v42 = vsel %vm3325_vm6, %v3820_v37, 0  ;;  %v1741_v19 = vld [vmem:[#allocation3 + $0x80] sm:$0xf]  ;;  %v8048_v49 = vld [vmem:[#allocation3 + $0x78] sm:$0xff]   ;;  %vm8874_vm8 = vmmov %vm8871_vm0 }
 0x1cd   : > { %3030 = vrot.lane.b32.xlu1 %v2987_v1, %s6227_s15  ;;  %v1771_v27 = vsel %vm8018_vm5, %v1739_v46, 0  ;;  %v8039_v4 = vcombine.low %v3852_v56, %v3853_v42  ;;  %v1300_v16 = vand.u32 15, %v1084_v22  ;;  %v1050_v35 = vld [vmem:[#allocation3 + $0x88] sm:$0x1]  ;;  %v3474_v44 = vsel %vm8871_vm0, %v3471_v5, %v3473_v9  ;;  %v8052_v0 = vld [vmem:[#allocation3 + $0x80] sm:$0xff]  }
 0x1ce   : > { %v3720_v60 = vrot.slane %v8013_v7, 1  ;;  %v1772_v10 = vsel %vm6448_vm15, %v1740_v52, 0  ;;  %v976_v61 = vrot.slane %v7892_v15, 4  ;;  %vm8872_vm6 = vcmask 80960   ;;  %v8067_v13 = vld [vmem:[#allocation3 + $0x8c] sm:$0xf]  ;;  %v2706_v56 = vpop.permute.xlu1 %2705 }
 0x1cf   : > { %3750 = vrot.lane.b32.xlu0 %v3719_v26, %s6224_s29  ;;  %2746 = vst.msk [vmem:[#allocation4 + $0x30] sm:$0xff] %vm8872_vm6, %v2704_v25  ;;  %vm1532_vm10 = vcmp.ge.s32.totalorder %v1300_v16, 1  ;;  %vm1048_vm12 = vcmask 8192   ;;  %v6124_v18 = vld [vmem:[#allocation3 + $0x80] ss:$0 sps:$4 sm:$0x11]   ;;  %v3966_v38 = vsel %vm8874_vm8, %v3963_v50, %v3965_v23  ;;  %v5525_v37 = vcombine.low %v1771_v27, %v1772_v10  ;;  %v3017_v36 = vpop.permute.xlu0 %3016 }
 0x1d0   : > { %vm8873_vm4 = vcmask 64560   ;;  %v3967_v15 = vrot.slane %v8039_v4, 1  ;;  %vm8059_vm11 = vmpackc.low %vm1532_vm10, %vm1532_vm10  ;;  %v1980_v39 = vsel %vm8018_vm5, %v1948_v11, 0  ;;  %v1981_v29 = vsel %vm6448_vm15, %v1949_v41, 0  ;;  %v1486_v50 = vld [vmem:[#allocation3 + $0x40] sm:$0xf] }
 0x1d1   : > { %2434 = vst.msk [vmem:[#allocation4 + $0x38] sm:$0xff] %vm8873_vm4, %v2393_v2  ;;  %3505 = vrot.lane.b32.xlu1 %v3474_v44, %s6223_s27  ;;  %v1774_v21 = vsel %vm6448_vm15, %v1742_v47, 0  ;;  %vm8877_vm0 = vsmask.f32 256  ;;  %v1487_v22 = vld [vmem:[#allocation3 + $0x44] sm:$0xf]  ;;  %vm8878_vm10 = vmmov %vm8874_vm8  ;;  %v5541_v1 = vcombine.low %v1980_v39, %v1981_v29 }
 0x1d2   : > { %vm1049_vm6 = vmand %vm1048_vm12, %vm8877_vm0  ;;  %v3721_v53 = vsel %vm8878_vm10, %v3718_v40, %v3720_v60  ;;  %v1773_v62 = vsel %vm8059_vm11, %v1741_v19, 0  ;;  %v2362_v8 = vshrl.u32 %v7816_v55, 16  ;;  %v1488_v52 = vld [vmem:[#allocation3 + $0x48] sm:$0xf]  ;;  %vm8879_vm4 = vcmask 97360  }
 0x1d3   : > { %v1051_v46 = vsel %vm1049_vm6, %v976_v61, %v1050_v35  ;;  %3997 = vrot.lane.b32.xlu0 %v3966_v38, %s6228_s17  ;;  %3059 = vst.msk [vmem:[#allocation4 + $0x30] sm:$0xff] %vm8879_vm4, %v3017_v36  ;;  %v2366_v26 = vshll.u32 %v8048_v49, 16  ;;  %v2374_v42 = vshll.u32 %v6124_v18, 16  ;;  %v2679_v40 = vshll.u32 %v8052_v0, 16  ;;  %v1489_v47 = vld [vmem:[#allocation3 + $0x4c] sm:$0xf]  ;;  %v3492_v61 = vpop.permute.xlu0 %3491 }
 0x1d4   : > { %1052 = vst [vmem:[#allocation3 + $0x88] sm:$0x1] %v1051_v46  ;;  %vm8880_vm12 = vcmask 80960   ;;  %v3968_v55 = vsel %vm8874_vm8, %v3965_v23, %v3967_v15  ;;  %v1983_v27 = vsel %vm6448_vm15, %v8067_v13, 0  ;;  %v1582_v16 = vsel %vm7283_vm1, %v1486_v50, 0 }
 0x1d5   : > { %2747 = vst.msk [vmem:[#allocation4 + $0x38] sm:$0xff] %vm8880_vm12, %v2706_v56  ;;  %v1583_v19 = vsel %vm6448_vm15, %v1487_v22, 0  ;;  %v1490_v11 = vld [vmem:[#allocation3 + $0x50] sm:$0xf]  ;;  %3752 = vrot.lane.b32.xlu1 %v3721_v53, %s6224_s29  ;;  %v5526_v41 = vcombine.low %v1773_v62, %v1774_v21  ;;  %v2370_v35 = vshrl.u32 %v8048_v49, 16  ;;  %v2675_v44 = vshrl.u32 %v7912_v48, 16  ;;  %v3019_v49 = vpop.permute.xlu1 %3018 }
 0x1d6   : > { %v5503_v10 = vcombine.low %v1582_v16, %v1583_v19  ;;  %v1491_v23 = vld [vmem:[#allocation3 + $0x54] sm:$0xf]  ;;  %v1492_v25 = vld [vmem:[#allocation3 + $0x58] sm:$0xf]  ;;  %v2364_v2 = vor.u32 %v2362_v8, %v7866_v28  ;;  %v1584_v58 = vsel %vm7331_vm2, %v1488_v52, 0  ;;  %v1585_v18 = vsel %vm6448_vm15, %v1489_v47, 0  ;;  %vm8883_vm2 = vmmov %vm8879_vm4 }
 0x1d7   : > { %v1085_v38 = vadd.s32 248, %v6419_v45  ;;  %v1493_v39 = vld [vmem:[#allocation3 + $0x5c] sm:$0xf]  ;;  %3999 = vrot.lane.b32.xlu0 %v3968_v55, %s6228_s17  ;;  %vm8881_vm1 = vcmask 113760   ;;  %v2368_v48 = vrot.slane %v2366_v26, 1  ;;  %v2376_v29 = vrot.slane %v2374_v42, 1 }
 0x1d8   : > { %3534 = vst.msk [vmem:[#allocation4 + $0x30] sm:$0xff] %vm8881_vm1, %v3492_v61  ;;  %v8105_v13 = vrot.slane %v2679_v40, 1  ;;  %v2683_v28 = vshrl.u32 %v8052_v0, 16  ;;  %vm8882_vm0 = vcmask 15360   ;;  %v5504_v21 = vcombine.low %v1584_v58, %v1585_v18  ;;  %v1494_v53 = vld [vmem:[#allocation3 + $0x60] sm:$0xf]  ;;  %vm8886_vm10 = vmmov %vm8881_vm1 }
 0x1d9   : > { %1703 = vst.msk [vmem:[#allocation4 + $0x40] sm:$0xff] %vm8882_vm0, %v5503_v10  ;;  %v1307_v45 = vand.u32 15, %v1085_v38  ;;  %v3289_v50 = vrot.slane %v3287_v17, 4  ;;  %v1586_v22 = vsel %vm7535_vm13, %v1490_v11, 0  ;;  %1883 = vrot.lane.b32.xlu1 %v5525_v37, %s6222_s0  ;;  %v2988_v62 = vshrl.u32 %v7978_v30, 16  ;;  %v3739_v17 = vpop.permute.xlu0 %3738  ;;  %vm8884_vm6 = vmmov %vm8882_vm0  ;;  %v3494_v56 = vpop.permute.xlu1 %3493 }
 0x1da   : > { %3060 = vst.msk [vmem:[#allocation4 + $0x38] sm:$0xff] %vm8883_vm2, %v3019_v49  ;;  %v1587_v36 = vsel %vm6448_vm15, %v1491_v23, 0  ;;  %v1588_v46 = vsel %vm7571_vm9, %v1492_v25, 0  ;;  %v1589_v8 = vsel %vm6448_vm15, %v1493_v39, 0  ;;  %v1495_v52 = vld [vmem:[#allocation3 + $0x64] sm:$0xf]  ;;  %v2372_v26 = vor.u32 %v2370_v35, %v2368_v48  ;;  %vm8888_vm8 = vmmov %vm8882_vm0 }
 0x1db   : > { %v1950_v32 = vld [vmem:[#allocation3 + $0x88] sm:$0xf]  ;;  %1704 = vst.msk [vmem:[#allocation4 + $0x48] sm:$0xff] %vm8884_vm6, %v5504_v21  ;;  %v3291_v14 = vsel %vm6523_vm14, %v3289_v50, %v6491_v43  ;;  %v5505_v37 = vcombine.low %v1586_v22, %v1587_v36  ;;  %v5506_v30 = vcombine.low %v1588_v46, %v1589_v8  ;;  %2092 = vrot.lane.b32.xlu0 %v5541_v1, %s6221_s14  ;;  %vm8885_vm13 = vcmask 130160   ;;  %vm8889_vm1 = vmmov %vm8882_vm0  ;;  %v3099_v19 = vld [vmem:[#allocation3 + $0x78] sm:$0xf] }
 0x1dc   : > { %v1982_v51 = vsel %vm8059_vm11, %v1950_v32, 0  ;;  %3781 = vst.msk [vmem:[#allocation4 + $0x30] sm:$0xff] %vm8885_vm13, %v3739_v17  ;;  %v2677_v42 = vor.u32 %v2675_v44, %v7940_v54  ;;  %v6126_v40 = vld [vmem:[#allocation3 + $0x88] ss:$0 sps:$4 sm:$0x11]   ;;  %vm3133_vm9 = vcmp.le.s32.totalorder %v1307_v45, 14 }
 0x1dd   : > { %v8133_v47 = vld [vmem:[#allocation3 + $0x88] sm:$0xff]   ;;  %v5542_v55 = vcombine.low %v1982_v51, %v1983_v27  ;;  %3535 = vst.msk [vmem:[#allocation4 + $0x38] sm:$0xff] %vm8886_vm10, %v3494_v56  ;;  %vm8887_vm4 = vsmask.f32 7424  ;;  %vm3165_vm12 = vmpackc.low %vm3133_vm9, %vm3133_vm9  ;;  %v1590_v1 = vsel %vm7774_vm7, %v1494_v53, 0  ;;  %v1591_v54 = vsel %vm6448_vm15, %v1495_v52, 0  ;;  %1885 = vrot.lane.b32.xlu1 %v5526_v41, %s6222_s0  ;;  %v3986_v44 = vpop.permute.xlu0 %3985  ;;  %v3741_v61 = vpop.permute.xlu1 %3740 }
 0x1de   : > { %v2369_v43 = vsel %vm8887_vm4, %v2364_v2, %v2368_v48  ;;  %1705 = vst.msk [vmem:[#allocation4 + $0x50] sm:$0xff] %vm8888_vm8, %v5505_v37  ;;  %v2687_v16 = vshll.u32 %v6126_v40, 16  ;;  %v2992_v27 = vshll.u32 %v8133_v47, 16  ;;  %v3197_v11 = vsel %vm3165_vm12, 65537, %v6220_v34  ;;  %v3574_v23 = vld [vmem:[#allocation3 + $0x80] sm:$0xf]  ;;  %vm8892_vm7 = vmmov %vm8887_vm4 }
 0x1df   : > { %1706 = vst.msk [vmem:[#allocation4 + $0x58] sm:$0xff] %vm8889_vm1, %v5506_v30  ;;  %vm8146_vm0 = vcmp.ne.s16.totalorder %v3291_v14, 0  ;;  %v3000_v10 = vshll.u32 %v8110_v31, 16  ;;  %v3293_v33 = vrot.slane %v3197_v11, 7  ;;  %v1496_v25 = vld [vmem:[#allocation3 + $0x68] sm:$0xf]  ;;  %2406 = vrot.lane.b32.xlu0 %v2369_v43, %s6225_s8  ;;  %v2377_v41 = vsel %vm8892_vm7, %v2372_v26, %v2376_v29  ;;  %vm8893_vm2 = vmmov %vm8887_vm4 }
 0x1e0   : > { %v2682_v2 = vsel %vm8893_vm2, %v2677_v42, %v8105_v13  ;;  %vm8894_vm6 = vcmask 146560   ;;  %v2990_v34 = vor.u32 %v2988_v62, %v8008_v24  ;;  %v3100_v58 = vld [vmem:[#allocation3 + $0x7c] sm:$0xf]  ;;  %v3575_v18 = vld [vmem:[#allocation3 + $0x84] sm:$0xf]  ;;  %v5507_v39 = vcombine.low %v1590_v1, %v1591_v54  ;;  %3782 = vst.msk [vmem:[#allocation4 + $0x38] sm:$0xff] %vm8885_vm13, %v3741_v61  ;;  %vm8895_vm10 = vmmov %vm8889_vm1 }
 0x1e1   : > { %4028 = vst.msk [vmem:[#allocation4 + $0x30] sm:$0xff] %vm8894_vm6, %v3986_v44  ;;  %v3822_v38 = vld [vmem:[#allocation3 + $0x8c] sm:$0xf]  ;;  %v2994_v48 = vrot.slane %v2992_v27, 1  ;;  %v3294_v29 = vsel %vm6523_vm14, %v6531_v6, %v3293_v33  ;;  %v3359_v31 = vsel %vm8146_vm0, %v3099_v19, 0  ;;  %v8163_v45 = vrot.slane %v3293_v33, 4  ;;  %2094 = vrot.lane.b32.xlu1 %v5542_v55, %s6221_s14  ;;  %v3988_v6 = vpop.permute.xlu0 %3987  ;;  %v1872_v0 = vpop.permute.xlu1 %1871  ;;  %vm8896_vm4 = vmmov %vm8894_vm6 }
 0x1e2   : > { %v1497_v49 = vld [vmem:[#allocation3 + $0x6c] sm:$0xf]  ;;  %v3101_v21 = vld [vmem:[#allocation3 + $0x80] sm:$0x1]  ;;  %v2685_v24 = vor.u32 %v2683_v28, %v8105_v13  ;;  %v2689_v50 = vrot.slane %v2687_v16, 1  ;;  %vm3327_vm9 = vcmp.ne.s16.totalorder %v3294_v29, 0  ;;  %vm8898_vm8 = vmmov %vm8893_vm2 }
 0x1e3   : > { %v3607_v22 = vsel %vm8146_vm0, %v3574_v23, 0  ;;  %v3821_v53 = vld [vmem:[#allocation3 + $0x88] sm:$0xf]  ;;  %1707 = vst.msk [vmem:[#allocation4 + $0x60] sm:$0xff] %vm8895_vm10, %v5507_v39  ;;  %v2996_v3 = vshrl.u32 %v8133_v47, 16  ;;  %v3360_v62 = vsel %vm3327_vm9, %v3100_v58, 0  ;;  %2719 = vrot.lane.b32.xlu0 %v2682_v2, %s6226_s12  ;;  %v2995_v17 = vsel %vm8898_vm8, %v2990_v34, %v2994_v48  ;;  %vm8899_vm1 = vmmov %vm8893_vm2 }
 0x1e4   : > { %vm3328_vm14 = vcmp.ne.s16.totalorder %v8163_v45, 0  ;;  %v3608_v36 = vsel %vm3327_vm9, %v3575_v18, 0  ;;  %v1498_v46 = vld [vmem:[#allocation3 + $0x70] sm:$0xf]  ;;  %4029 = vst.msk [vmem:[#allocation4 + $0x38] sm:$0xff] %vm8896_vm4, %v3988_v6  ;;  %v5609_v13 = vcombine.low %v3359_v31, %v3360_v62  ;;  %v1592_v8 = vsel %vm7812_vm3, %v1496_v25, 0  ;;  %vm8904_vm2 = vmmov %vm8895_vm10 }
 0x1e5   : > { %v3361_v28 = vsel %vm3328_vm14, %v3101_v21, 0  ;;  %v1593_v52 = vsel %vm6448_vm15, %v1497_v49, 0  ;;  %v1499_v32 = vld [vmem:[#allocation3 + $0x74] sm:$0xf]  ;;  %vm8897_vm12 = vcmask 31760   ;;  %v8186_v14 = vcombine.low %v3607_v22, %v3608_v36  ;;  %2408 = vrot.lane.b32.xlu1 %v2377_v41, %s6225_s8  ;;  %v2081_v43 = vpop.permute.xlu0 %2080  ;;  %v1874_v19 = vpop.permute.xlu1 %1873  ;;  %vm8905_vm6 = vmmov %vm8899_vm1  ;;  %v8239_v22 = vld [vmem:[#allocation2] sm:$0xff] }
 0x1e6   : > { %1912 = vst.msk [vmem:[#allocation4 + $0x40] sm:$0xff] %vm8897_vm12, %v1872_v0  ;;  %v3576_v37 = vld [vmem:[#allocation3 + $0x88] sm:$0x1]  ;;  %v3854_v30 = vsel %vm8146_vm0, %v3821_v53, 0  ;;  %v3855_v51 = vsel %vm3327_vm9, %v3822_v38, 0  ;;  %v2690_v57 = vsel %vm8899_vm1, %v2685_v24, %v2689_v50  ;;  %v3002_v56 = vrot.slane %v3000_v10, 1  ;;  %vm8906_vm13 = vmmov %vm8904_vm2 }
 0x1e7   : > { %v3475_v26 = vrot.slane %v5609_v13, 1  ;;  %v1594_v42 = vsel %vm8018_vm5, %v1498_v46, 0  ;;  %v1500_v40 = vld [vmem:[#allocation3 + $0x78] sm:$0xf]  ;;  %v2998_v47 = vor.u32 %v2996_v3, %v2994_v48  ;;  %v5610_v55 = vcombine.low %v3361_v28, %v3361_v28  ;;  %v1501_v27 = vld [vmem:[#allocation3 + $0x7c] sm:$0xf]  ;;  %3032 = vrot.lane.b32.xlu0 %v2995_v17, %s6227_s15  ;;  %vm8902_vm5 = vmmov %vm8897_vm12 }
 0x1e8   : > { %v4044_v1 = vld [vmem:[#allocation4 + $0x30] sm:$0xff]  ;;  %v5508_v54 = vcombine.low %v1592_v8, %v1593_v52  ;;  %v1595_v16 = vsel %vm6448_vm15, %v1499_v32, 0  ;;  %vm8900_vm3 = vcmask 48160   ;;  %vm8901_vm0 = vcmask 146432   ;;  %1913 = vst.msk [vmem:[#allocation4 + $0x48] sm:$0xff] %vm8902_vm5, %v1874_v19  ;;  %vm8910_vm4 = vmmov %vm8904_vm2  ;;  %v8255_v36 = vld [vmem:[#allocation2 + $0x10] sm:$0xff] }
 0x1e9   : > { %2121 = vst.msk [vmem:[#allocation4 + $0x40] sm:$0xff] %vm8900_vm3, %v2081_v43  ;;  %5836 = vmatprep.mubr.msk.bf16.mxu0 %vm8901_vm0, %v4044_v1  ;;  %v3609_v63 = vsel %vm3328_vm14, %v3576_v37, 0  ;;  %v5643_v11 = vcombine.low %v3854_v30, %v3855_v51  ;;  %vm8903_vm7 = vcmask 1046528   ;;  %v3722_v44 = vrot.slane %v8186_v14, 1  ;;  %v3823_v10 = vld [vmem:[#allocation3 + $0x90] sm:$0x1]  ;;  %2721 = vrot.lane.b32.xlu1 %v2690_v57, %s6226_s12  ;;  %vm8908_vm10 = vmmov %vm8901_vm0  ;;  %v2083_v49 = vpop.permute.xlu1 %2082 }
 0x1ea   : > { %v3476_v35 = vsel %vm8903_vm7, %v3473_v9, %v3475_v26  ;;  %1708 = vst.msk [vmem:[#allocation4 + $0x68] sm:$0xff] %vm8904_vm2, %v5508_v54  ;;  %v5509_v33 = vcombine.low %v1594_v42, %v1595_v16  ;;  %v1596_v23 = vsel %vm8059_vm11, %v1500_v40, 0  ;;  %v1597_v25 = vsel %vm6448_vm15, %v1501_v27, 0  ;;  %v2395_v9 = vpop.permute.xlu0 %2394  ;;  %vm8909_vm11 = vmmov %vm8903_vm7  ;;  %v8237_v50 = vld [vmem:[#allocation2 + $0x8] sm:$0xff]  ;;  %v8248_v3 = vld [vmem:[#allocation2 + $0x20] sm:$0xff]  ;;  %s6236_s14 = smov (!%p5713_p8), 56  }
 0x1eb   : > { %v3003_v41 = vsel %vm8905_vm6, %v2998_v47, %v3002_v56  ;;  %v3477_v12 = vrot.slane %v5610_v55, 1  ;;  %v5627_v61 = vcombine.low %v3609_v63, %v3609_v63  ;;  %v4045_v2 = vld [vmem:[#allocation4 + $0x38] sm:$0xff]  ;;  %v5510_v34 = vcombine.low %v1596_v23, %v1597_v25  ;;  %3507 = vrot.lane.b32.xlu0 %v3476_v35, %s6223_s27  ;;  %vm8911_vm12 = vmmov %vm8903_vm7  ;;  %v8257_v46 = vld [vmem:[#allocation2 + $0x18] sm:$0xff]  ;;  %s6237_s0 = smov (!%p5713_p8), 64   ;;  %s6240_s8 = smov (!%p5713_p8), 88  }
 0x1ec   : > { %1709 = vst.msk [vmem:[#allocation4 + $0x70] sm:$0xff] %vm8906_vm13, %v5509_v33  ;;  %vm8907_vm9 = vcmask 64560   ;;  %5837 = vmatmul.mubr.msk.bf16.gmra.mrb[12].mxu0 %vm8908_vm10, %v4045_v2  ;;  %v3856_v5 = vsel %vm3328_vm14, %v3823_v10, 0  ;;  %vm4379_vm15 = vcmask 1042432   ;;  %v3723_v58 = vsel %vm8909_vm11, %v3720_v60, %v3722_v44  ;;  %vm8912_vm14 = vmmov %vm8900_vm3  ;;  %v8250_v6 = vld [vmem:[#allocation2 + $0x28] sm:$0xff]  ;;  %v8263_v8 = vld [vmem:[#allocation2 + $0x40] sm:$0xff] }
 0x1ed   : > { %2435 = vst.msk [vmem:[#allocation4 + $0x40] sm:$0xff] %vm8907_vm9, %v2395_v9  ;;  %v3969_v18 = vrot.slane %v5643_v11, 1  ;;  %5991 = vmatprep.subr.msk.bf16.mxu1 %vm4379_vm15, %v4297_v20  ;;  %v4381_v38 = vsel %vm4379_vm15, %v4297_v20, 0  ;;  %3034 = vrot.lane.b32.xlu1 %v3003_v41, %s6227_s15  ;;  %v3478_v39 = vsel %vm8911_vm12, %v3475_v26, %v3477_v12  ;;  %v3724_v48 = vrot.slane %v5627_v61, 1  ;;  %vm8914_vm1 = vmmov %vm8903_vm7  ;;  %v2397_v21 = vpop.permute.xlu1 %2396  ;;  %v8265_v52 = vld [vmem:[#allocation2 + $0x48] sm:$0xff]  ;;  %v8271_v17 = vld [vmem:[#allocation2 + $0x30] sm:$0xff] }
 0x1ee   : > { %1710 = vst.msk [vmem:[#allocation4 + $0x78] sm:$0xff] %vm8910_vm4, %v5510_v34  ;;  %5857 = vmatpush3.bf16.msra.mxu1 %v4381_v38  ;;  %v5644_v29 = vcombine.low %v3856_v5, %v3856_v5  ;;  %v2708_v31 = vpop.permute.xlu0 %2707  ;;  %vm8913_vm8 = vcmask 80960   ;;  %vm8915_vm3 = vmmov %vm8914_vm1  ;;  %v591_v4 = vpack.c.bf16 %v8237_v50, %v8239_v22  ;;  %vm8917_vm5 = vcmask 97360   ;;  %v8273_v14 = vld [vmem:[#allocation2 + $0x38] sm:$0xff]  ;;  %v8279_v57 = vld [vmem:[#allocation2 + $0x60] sm:$0xff]  ;;  %s6241_s12 = smov (!%p5713_p8), 96  }
 0x1ef   : > { %2122 = vst.msk [vmem:[#allocation4 + $0x48] sm:$0xff] %vm8912_vm14, %v2083_v49  ;;  %3754 = vrot.lane.b32.xlu0 %v3723_v58, %s6224_s29  ;;  %v3970_v7 = vsel %vm8914_vm1, %v3967_v15, %v3969_v18  ;;  %v3725_v60 = vsel %vm8915_vm3, %v3722_v44, %v3724_v48  ;;  %vm8916_vm0 = vmmov %vm8907_vm9  ;;  %v593_v62 = vpack.c.bf16 %v8250_v6, %v8248_v3  ;;  %vm8920_vm6 = vcmask 113760   ;;  %v8281_v56 = vld [vmem:[#allocation2 + $0x68] sm:$0xff]  ;;  %v8287_v42 = vld [vmem:[#allocation2 + $0x50] sm:$0xff]  ;;  %s6242_s15 = smov (!%p5713_p8), 104  }
 0x1f0   : > { %2748 = vst.msk [vmem:[#allocation4 + $0x40] sm:$0xff] %vm8913_vm8, %v2708_v31  ;;  %v3971_v45 = vrot.slane %v5644_v29, 1  ;;  %vm8918_vm7 = vmmov %vm8914_vm1  ;;  %v592_v0 = vpack.c.bf16 %v8257_v46, %v8255_v36  ;;  %v595_v32 = vpack.c.bf16 %v8265_v52, %v8263_v8  ;;  %v594_v37 = vpack.c.bf16 %v8273_v14, %v8271_v17  ;;  %v8289_v40 = vld [vmem:[#allocation2 + $0x58] sm:$0xff]  ;;  %v8295_v1 = vld [vmem:[#allocation2 + $0x80] sm:$0xff] }
 0x1f1   : > { %3509 = vrot.lane.b32.xlu1 %v3478_v39, %s6223_s27  ;;  %2436 = vst.msk [vmem:[#allocation4 + $0x48] sm:$0xff] %vm8916_vm0, %v2397_v21  ;;  %v2710_v53 = vpop.permute.xlu1 %2709  ;;  %vm8919_vm2 = vmmov %vm8913_vm8  ;;  %vm8922_vm9 = vcmask 130160   ;;  %v597_v26 = vpack.c.bf16 %v8281_v56, %v8279_v57  ;;  %v596_v47 = vpack.c.bf16 %v8289_v40, %v8287_v42  ;;  %vm8924_vm15 = vcmask 146560   ;;  %v8297_v54 = vld [vmem:[#allocation2 + $0x88] sm:$0xff]  ;;  %v8303_v27 = vld [vmem:[#allocation2 + $0x70] sm:$0xff]  ;;  %s6238_s27 = smov (!%p5713_p8), 72  }
 0x1f2   : > { %v3021_v24 = vpop.permute.xlu0 %3020  ;;  %v3972_v15 = vsel %vm8918_vm7, %v3969_v18, %v3971_v45  ;;  %2749 = vst.msk [vmem:[#allocation4 + $0x48] sm:$0xff] %vm8919_vm2, %v2710_v53  ;;  %vm8921_vm13 = vmmov %vm8917_vm5  ;;  %v599_v16 = vpack.c.bf16 %v8297_v54, %v8295_v1  ;;  %v8305_v19 = vld [vmem:[#allocation2 + $0x78] sm:$0xff]  ;;  %v8311_v44 = vld [vmem:[#allocation2 + $0xa0] sm:$0xff]  ;;  %vm8927_vm12 = vcmask 31760   ;;  %vm8928_vm8 = vcmask 146432  }
 0x1f3   : > { %4001 = vrot.lane.b32.xlu0 %v3970_v7, %s6228_s17  ;;  %3061 = vst.msk [vmem:[#allocation4 + $0x40] sm:$0xff] %vm8917_vm5, %v3021_v24  ;;  %vm8923_vm10 = vmmov %vm8920_vm6  ;;  %v598_v63 = vpack.c.bf16 %v8305_v19, %v8303_v27  ;;  %v8313_v10 = vld [vmem:[#allocation2 + $0xa8] sm:$0xff]  ;;  %v8319_v23 = vld [vmem:[#allocation2 + $0x90] sm:$0xff] }
 0x1f4   : > { %vm8925_vm11 = vmmov %vm8922_vm9  ;;  %v601_v33 = vpack.c.bf16 %v8313_v10, %v8311_v44  ;;  %v8321_v25 = vld [vmem:[#allocation2 + $0x98] sm:$0xff]  ;;  %v8328_v2 = vld [vmem:[#allocation2 + $0xc0] sm:$0xff] }
 0x1f5   : > { %3756 = vrot.lane.b32.xlu1 %v3725_v60, %s6224_s29  ;;  %v3023_v28 = vpop.permute.xlu1 %3022  ;;  %vm8926_vm4 = vmmov %vm8924_vm15  ;;  %v600_v41 = vpack.c.bf16 %v8321_v25, %v8319_v23  ;;  %v8330_v34 = vld [vmem:[#allocation2 + $0xc8] sm:$0xff]  ;;  %v8336_v20 = vld [vmem:[#allocation2 + $0xb0] sm:$0xff]  ;;  %s6239_s29 = smov (!%p5713_p8), 80  }
 0x1f6   : > { %v3496_v13 = vpop.permute.xlu0 %3495  ;;  %3062 = vst.msk [vmem:[#allocation4 + $0x48] sm:$0xff] %vm8921_vm13, %v3023_v28  ;;  %v603_v5 = vpack.c.bf16 %v8330_v34, %v8328_v2  ;;  %vm8929_vm1 = vmmov %vm8927_vm12  ;;  %v8338_v58 = vld [vmem:[#allocation2 + $0xb8] sm:$0xff]  ;;  %v8345_v49 = vld [vmem:[#allocation2 + $0xe0] sm:$0xff] }
 0x1f7   : > { %4298 = vrot.lane.b32.xlu0 %v591_v4, %s6229_s16  ;;  %3536 = vst.msk [vmem:[#allocation4 + $0x40] sm:$0xff] %vm8920_vm6, %v3496_v13  ;;  %v602_v18 = vpack.c.bf16 %v8338_v58, %v8336_v20  ;;  %vm8930_vm3 = vmmov %vm8916_vm0  ;;  %v8347_v48 = vld [vmem:[#allocation2 + $0xe8] sm:$0xff]  ;;  %v8352_v7 = vld [vmem:[#allocation2 + $0xd0] sm:$0xff] }
 0x1f8   : > { %vm8931_vm0 = vmmov %vm8928_vm8  ;;  %v605_v29 = vpack.c.bf16 %v8347_v48, %v8345_v49  ;;  %v8354_v60 = vld [vmem:[#allocation2 + $0xd8] sm:$0xff]  ;;  %v8362_v4 = vld [vmem:[#allocation2 + $0xf0] sm:$0xff] }
 0x1f9   : > { %4003 = vrot.lane.b32.xlu1 %v3972_v15, %s6228_s17  ;;  %v3498_v51 = vpop.permute.xlu1 %3497  ;;  %v604_v21 = vpack.c.bf16 %v8354_v60, %v8352_v7  ;;  %vm8932_vm5 = vmmov %vm8912_vm14  ;;  %v606_v15 = vpack.c.bf16 %v7843_v59, %v8362_v4  ;;  %s6243_s17 = smov (!%p5713_p8), 112  }
 0x1fa   : > { %v3743_v30 = vpop.permute.xlu0 %3742  ;;  %3537 = vst.msk [vmem:[#allocation4 + $0x48] sm:$0xff] %vm8923_vm10, %v3498_v51  ;;  %vm8933_vm7 = vmmov %vm8919_vm2 }
 0x1fb   : > { %4302 = vrot.lane.b32.xlu0 %v593_v62, %s6229_s16  ;;  %3783 = vst.msk [vmem:[#allocation4 + $0x40] sm:$0xff] %vm8922_vm9, %v3743_v30  ;;  %vm8934_vm2 = vmmov %vm8930_vm3 }
 0x1fc   : > { %vm8935_vm6 = vmmov %vm8921_vm13 }
 0x1fd   : > { %4300 = vrot.lane.b32.xlu1 %v592_v0, %s6229_s16  ;;  %v3745_v43 = vpop.permute.xlu1 %3744  ;;  %vm8936_vm13 = vmmov %vm8933_vm7 }
 0x1fe   : > { %v3990_v55 = vpop.permute.xlu0 %3989  ;;  %3784 = vst.msk [vmem:[#allocation4 + $0x48] sm:$0xff] %vm8925_vm11, %v3745_v43  ;;  %vm8937_vm9 = vmmov %vm8923_vm10 }
 0x1ff   : > { %4306 = vrot.lane.b32.xlu0 %v595_v32, %s6229_s16  ;;  %4030 = vst.msk [vmem:[#allocation4 + $0x40] sm:$0xff] %vm8924_vm15, %v3990_v55  ;;  %vm8938_vm10 = vmmov %vm8935_vm6 }
 0x200   : > { %vm8939_vm15 = vmmov %vm8925_vm11 }
 0x201   : > { %4304 = vrot.lane.b32.xlu1 %v594_v37, %s6229_s16  ;;  %v1876_v35 = vpop.permute.xlu1 %1875  ;;  %vm8940_vm11 = vmmov %vm8937_vm9 }
 0x202   : > { %v3992_v11 = vpop.permute.xlu0 %3991  ;;  %1914 = vst.msk [vmem:[#allocation4 + $0x50] sm:$0xff] %vm8927_vm12, %v1876_v35  ;;  %vm8941_vm12 = vmmov %vm8939_vm15 }
 0x203   : > { %4310 = vrot.lane.b32.xlu0 %v597_v26, %s6229_s16  ;;  %4031 = vst.msk [vmem:[#allocation4 + $0x48] sm:$0xff] %vm8926_vm4, %v3992_v11  ;;  %v8382_v26 = vld [vmem:[%s8943_s20] sm:$0x1] }
 0x205   : > { %4308 = vrot.lane.b32.xlu1 %v596_v47, %s6229_s16  ;;  %v1878_v9 = vpop.permute.xlu1 %1877 }
 0x206   : > { %v2085_v12 = vpop.permute.xlu0 %2084  ;;  %v4046_v61 = vld [vmem:[#allocation4 + $0x40] sm:$0xff]  ;;  %1915 = vst.msk [vmem:[#allocation4 + $0x58] sm:$0xff] %vm8929_vm1, %v1878_v9 }
 0x207   : > { %4314 = vrot.lane.b32.xlu0 %v599_v16, %s6229_s16  ;;  %2123 = vst.msk [vmem:[#allocation4 + $0x50] sm:$0xff] %vm8912_vm14, %v2085_v12  ;;  %5840 = vmatprep.mubr.msk.bf16.mxu0 %vm8928_vm8, %v4046_v61  ;;  %vm8942_vm14 = vmmov %vm8926_vm4 }
 0x208   : > { %vm8944_vm8 = vmmov %vm8929_vm1  ;;  %vm8945_vm1 = vcmask 1040384  }
 0x209   : > { %4312 = vrot.lane.b32.xlu1 %v598_v63, %s6229_s16  ;;  %5992 = vmatprep.subr.msk.bf16.mxu1 %vm8945_vm1, %v8382_v26  ;;  %vm8956_vm1 = vmmov %vm8941_vm12 }
 0x20a   : > { %v2399_v38 = vpop.permute.xlu0 %2398  ;;  %v4047_v39 = vld [vmem:[#allocation4 + $0x48] sm:$0xff]  ;;  %v2087_v31 = vpop.permute.xlu1 %2086 }
 0x20b   : > { %4318 = vrot.lane.b32.xlu0 %v601_v33, %s6229_s16  ;;  %2437 = vst.msk [vmem:[#allocation4 + $0x50] sm:$0xff] %vm8930_vm3, %v2399_v38  ;;  %5841 = vmatmul.mubr.msk.bf16.gmra.mrb[16].mxu0 %vm8931_vm0, %v4047_v39  ;;  %vm8946_vm3 = vmmov %vm8932_vm5 }
 0x20c   : > { %2124 = vst.msk [vmem:[#allocation4 + $0x58] sm:$0xff] %vm8932_vm5, %v2087_v31  ;;  %vm8947_vm5 = vmmov %vm8944_vm8 }
 0x20d   : > { %4316 = vrot.lane.b32.xlu1 %v600_v41, %s6229_s16 }
 0x20e   : > { %v2712_v45 = vpop.permute.xlu0 %2711  ;;  %v2401_v24 = vpop.permute.xlu1 %2400 }
 0x20f   : > { %4322 = vrot.lane.b32.xlu0 %v603_v5, %s6229_s16  ;;  %2750 = vst.msk [vmem:[#allocation4 + $0x50] sm:$0xff] %vm8933_vm7, %v2712_v45  ;;  %vm8948_vm7 = vmmov %vm8934_vm2 }
 0x210   : > { %2438 = vst.msk [vmem:[#allocation4 + $0x58] sm:$0xff] %vm8934_vm2, %v2401_v24  ;;  %vm8949_vm2 = vmmov %vm8931_vm0 }
 0x211   : > { %4320 = vrot.lane.b32.xlu1 %v602_v18, %s6229_s16 }
 0x212   : > { %v3025_v53 = vpop.permute.xlu0 %3024  ;;  %v2714_v62 = vpop.permute.xlu1 %2713 }
 0x213   : > { %4326 = vrot.lane.b32.xlu0 %v605_v29, %s6229_s16  ;;  %3063 = vst.msk [vmem:[#allocation4 + $0x50] sm:$0xff] %vm8935_vm6, %v3025_v53  ;;  %vm8950_vm6 = vmmov %vm8946_vm3 }
 0x214   : > { %2751 = vst.msk [vmem:[#allocation4 + $0x58] sm:$0xff] %vm8936_vm13, %v2714_v62 }
 0x215   : > { %4324 = vrot.lane.b32.xlu1 %v604_v21, %s6229_s16 }
 0x218   : > { %v3500_v0 = vpop.permute.xlu0 %3499 }
 0x219   : > { %4328 = vrot.lane.b32.xlu1 %v606_v15, %s6229_s16  ;;  %v3027_v13 = vpop.permute.xlu1 %3026  ;;  %3538 = vst.msk [vmem:[#allocation4 + $0x50] sm:$0xff] %vm8937_vm9, %v3500_v0  ;;  %vm8951_vm9 = vmmov %vm8948_vm7  ;;  %s6244_s16 = smov (!%p5713_p8), 120  }
 0x21a   : > { %3064 = vst.msk [vmem:[#allocation4 + $0x58] sm:$0xff] %vm8938_vm10, %v3027_v13 }
 0x21c   : > { %v3747_v28 = vpop.permute.xlu0 %3746 }
 0x21d   : > { %v3502_v32 = vpop.permute.xlu1 %3501  ;;  %3785 = vst.msk [vmem:[#allocation4 + $0x50] sm:$0xff] %vm8939_vm15, %v3747_v28  ;;  %vm8952_vm15 = vmmov %vm8936_vm13 }
 0x21e   : > { %3539 = vst.msk [vmem:[#allocation4 + $0x58] sm:$0xff] %vm8940_vm11, %v3502_v32 }
 0x220   : > { %v3994_v59 = vpop.permute.xlu0 %3993 }
 0x221   : > { %v3749_v37 = vpop.permute.xlu1 %3748  ;;  %4032 = vst.msk [vmem:[#allocation4 + $0x50] sm:$0xff] %vm8926_vm4, %v3994_v59  ;;  %vm8953_vm4 = vmmov %vm8938_vm10 }
 0x222   : > { %3786 = vst.msk [vmem:[#allocation4 + $0x58] sm:$0xff] %vm8941_vm12, %v3749_v37 }
 0x224   : > { %v3996_v30 = vpop.permute.xlu0 %3995 }
 0x225   : > { %v1880_v51 = vpop.permute.xlu1 %1879  ;;  %4033 = vst.msk [vmem:[#allocation4 + $0x58] sm:$0xff] %vm8942_vm14, %v3996_v30  ;;  %vm8954_vm14 = vmmov %vm8940_vm11 }
 0x226   : > { %1916 = vst.msk [vmem:[#allocation4 + $0x60] sm:$0xff] %vm8944_vm8, %v1880_v51  ;;  %vm8955_vm8 = vcmask 146560  }
 0x228   : > { %v2089_v47 = vpop.permute.xlu0 %2088  ;;  %v4048_v55 = vld [vmem:[#allocation4 + $0x50] sm:$0xff] }
 0x229   : > { %v1882_v43 = vpop.permute.xlu1 %1881  ;;  %2125 = vst.msk [vmem:[#allocation4 + $0x60] sm:$0xff] %vm8946_vm3, %v2089_v47  ;;  %5844 = vmatprep.mubr.msk.bf16.mxu0 %vm8931_vm0, %v4048_v55  ;;  %vm8957_vm3 = vmmov %vm8955_vm8 }
 0x22a   : > { %1917 = vst.msk [vmem:[#allocation4 + $0x68] sm:$0xff] %vm8947_vm5, %v1882_v43  ;;  %vm8958_vm0 = vmmov %vm8947_vm5 }
 0x22b   : > { %vm8959_vm5 = vmmov %vm8950_vm6 }
 0x22c   : > { %v2403_v16 = vpop.permute.xlu0 %2402  ;;  %v4049_v63 = vld [vmem:[#allocation4 + $0x58] sm:$0xff] }
 0x22d   : > { %2439 = vst.msk [vmem:[#allocation4 + $0x60] sm:$0xff] %vm8948_vm7, %v2403_v16  ;;  %5845 = vmatmul.mubr.msk.bf16.gmra.mrb[20].mxu0 %vm8949_vm2, %v4049_v63  ;;  %vm8960_vm7 = vmmov %vm8949_vm2 }
 0x22e   : > { %vm8961_vm2 = vmmov %vm8958_vm0 }
 0x230   : > { %v2716_v35 = vpop.permute.xlu0 %2715 }
 0x231   : > { %v2091_v11 = vpop.permute.xlu1 %2090  ;;  %2752 = vst.msk [vmem:[#allocation4 + $0x60] sm:$0xff] %vm8936_vm13, %v2716_v35  ;;  %vm8963_vm13 = vmmov %vm8960_vm7 }
 0x232   : > { %2126 = vst.msk [vmem:[#allocation4 + $0x68] sm:$0xff] %vm8950_vm6, %v2091_v11  ;;  %vm8962_vm6 = vmmov %vm8951_vm9 }
 0x235   : > { %v2405_v33 = vpop.permute.xlu1 %2404 }
 0x236   : > { %2440 = vst.msk [vmem:[#allocation4 + $0x68] sm:$0xff] %vm8951_vm9, %v2405_v33  ;;  %vm8964_vm9 = vmmov %vm8959_vm5 }
 0x237   : > { %v3029_v41 = vpop.permute.xlu0 %3028 }
 0x238   : > { %3065 = vst.msk [vmem:[#allocation4 + $0x60] sm:$0xff] %vm8938_vm10, %v3029_v41  ;;  %vm8965_vm10 = vmmov %vm8952_vm15 }
 0x239   : > { %v2718_v12 = vpop.permute.xlu1 %2717 }
 0x23a   : > { %2753 = vst.msk [vmem:[#allocation4 + $0x68] sm:$0xff] %vm8952_vm15, %v2718_v12  ;;  %vm8966_vm15 = vmmov %vm8962_vm6 }
 0x23d   : > { %v3504_v61 = vpop.permute.xlu0 %3503 }
 0x23e   : > { %3540 = vst.msk [vmem:[#allocation4 + $0x60] sm:$0xff] %vm8940_vm11, %v3504_v61  ;;  %vm8967_vm11 = vmmov %vm8953_vm4 }
 0x23f   : > { %v3031_v9 = vpop.permute.xlu1 %3030 }
 0x240   : > { %3066 = vst.msk [vmem:[#allocation4 + $0x68] sm:$0xff] %vm8953_vm4, %v3031_v9  ;;  %vm8968_vm4 = vmmov %vm8965_vm10 }
 0x241   : > { %v3751_v5 = vpop.permute.xlu0 %3750 }
 0x242   : > { %3787 = vst.msk [vmem:[#allocation4 + $0x60] sm:$0xff] %vm8941_vm12, %v3751_v5  ;;  %vm8969_vm12 = vmmov %vm8954_vm14 }
 0x243   : > { %v3506_v18 = vpop.permute.xlu1 %3505 }
 0x244   : > { %3541 = vst.msk [vmem:[#allocation4 + $0x68] sm:$0xff] %vm8954_vm14, %v3506_v18  ;;  %vm8970_vm14 = vmmov %vm8967_vm11 }
 0x245   : > { %v3998_v38 = vpop.permute.xlu0 %3997 }
 0x246   : > { %4034 = vst.msk [vmem:[#allocation4 + $0x60] sm:$0xff] %vm8955_vm8, %v3998_v38  ;;  %vm8971_vm8 = vmmov %vm8956_vm1 }
 0x247   : > { %v3753_v39 = vpop.permute.xlu1 %3752 }
 0x248   : > { %3788 = vst.msk [vmem:[#allocation4 + $0x68] sm:$0xff] %vm8956_vm1, %v3753_v39  ;;  %vm8972_vm1 = vmmov %vm8969_vm12 }
 0x249   : > { %v4000_v29 = vpop.permute.xlu0 %3999 }
 0x24a   : > { %4035 = vst.msk [vmem:[#allocation4 + $0x68] sm:$0xff] %vm8957_vm3, %v4000_v29 }
 0x24b   : > { %v1884_v31 = vpop.permute.xlu1 %1883 }
 0x24c   : > { %1918 = vst.msk [vmem:[#allocation4 + $0x70] sm:$0xff] %vm8958_vm0, %v1884_v31  ;;  %vm4330_vm0 = vcmask 48128  }
 0x24d   : > { %v2093_v21 = vpop.permute.xlu0 %2092  ;;  %v4050_v45 = vld [vmem:[#allocation4 + $0x60] sm:$0xff] }
 0x24e   : > { %2127 = vst.msk [vmem:[#allocation4 + $0x70] sm:$0xff] %vm8959_vm5, %v2093_v21  ;;  %5848 = vmatprep.mubr.msk.bf16.mxu0 %vm8960_vm7, %v4050_v45  ;;  %vm8973_vm5 = vmmov %vm8971_vm8 }
 0x24f   : > { %v1886_v24 = vpop.permute.xlu1 %1885  ;;  %vm8974_vm7 = vmmov %vm8957_vm3 }
 0x250   : > { %1919 = vst.msk [vmem:[#allocation4 + $0x78] sm:$0xff] %vm8961_vm2, %v1886_v24  ;;  %vm8975_vm2 = vmmov %vm8963_vm13 }
 0x251   : > { %v2407_v15 = vpop.permute.xlu0 %2406  ;;  %v4051_v53 = vld [vmem:[#allocation4 + $0x68] sm:$0xff] }
 0x252   : > { %2441 = vst.msk [vmem:[#allocation4 + $0x70] sm:$0xff] %vm8962_vm6, %v2407_v15  ;;  %5849 = vmatmul.mubr.msk.bf16.gmra.mrb[24].mxu0 %vm8963_vm13, %v4051_v53  ;;  %vm8976_vm6 = vcmask 1040384   ;;  %vm8977_vm13 = vmmov %vm8975_vm2 }
 0x253   : > { %v2095_v62 = vpop.permute.xlu1 %2094  ;;  %v4593_v5 = vsel %vm8976_vm6, %v8382_v26, 0 }
 0x254   : > { %2128 = vst.msk [vmem:[#allocation4 + $0x78] sm:$0xff] %vm8964_vm9, %v2095_v62  ;;  %vm8978_vm9 = vcmask 15360  }
 0x255   : > { %v2720_v0 = vpop.permute.xlu0 %2719 }
 0x256   : > { %2754 = vst.msk [vmem:[#allocation4 + $0x70] sm:$0xff] %vm8965_vm10, %v2720_v0  ;;  %v8416_v37 = vpop.f32.mrb[0].mxu0  ;;  %vm8979_vm10 = vmmov %vm8978_vm9 }
 0x257   : > { %v2409_v13 = vpop.permute.xlu1 %2408  ;;  %v8418_v51 = vpop.f32.mrb[1].mxu0 }
 0x258   : > { %2442 = vst.msk [vmem:[#allocation4 + $0x78] sm:$0xff] %vm8966_vm15, %v2409_v13  ;;  %v8421_v47 = vpop.f32.mrb[2].mxu0  ;;  %vm8980_vm15 = vmmov %vm8978_vm9 }
 0x259   : > { %v3033_v28 = vpop.permute.xlu0 %3032  ;;  %v4281_v43 = vpack.c.bf16 %v8421_v47, %v8416_v37  ;;  %v8425_v16 = vpop.f32.mrb[3].mxu0 }
 0x25a   : > { %3067 = vst.msk [vmem:[#allocation4 + $0x70] sm:$0xff] %vm8967_vm11, %v3033_v28  ;;  %v4280_v63 = vpack.c.bf16 %v8425_v16, %v8418_v51  ;;  %vm8981_vm11 = vmmov %vm8978_vm9 }
 0x25b   : > { %v2722_v32 = vpop.permute.xlu1 %2721 }
 0x25c   : > { %2755 = vst.msk [vmem:[#allocation4 + $0x78] sm:$0xff] %vm8968_vm4, %v2722_v32  ;;  %vm8982_vm4 = vmmov %vm8978_vm9 }
 0x25d   : > { %v3508_v59 = vpop.permute.xlu0 %3507 }
 0x25e   : > { %3542 = vst.msk [vmem:[#allocation4 + $0x70] sm:$0xff] %vm8969_vm12, %v3508_v59  ;;  %vm8983_vm12 = vmmov %vm8982_vm4 }
 0x25f   : > { %v3035_v30 = vpop.permute.xlu1 %3034 }
 0x260   : > { %3068 = vst.msk [vmem:[#allocation4 + $0x78] sm:$0xff] %vm8970_vm14, %v3035_v30  ;;  %vm8984_vm14 = vmmov %vm8982_vm4 }
 0x261   : > { %v3755_v55 = vpop.permute.xlu0 %3754 }
 0x262   : > { %3789 = vst.msk [vmem:[#allocation4 + $0x70] sm:$0xff] %vm8971_vm8, %v3755_v55  ;;  %vm8985_vm8 = vmmov %vm8982_vm4 }
 0x263   : > { %v3510_v11 = vpop.permute.xlu1 %3509 }
 0x264   : > { %3543 = vst.msk [vmem:[#allocation4 + $0x78] sm:$0xff] %vm8972_vm1, %v3510_v11  ;;  %vm8986_vm1 = vmmov %vm8982_vm4 }
 0x265   : > { %v4002_v35 = vpop.permute.xlu0 %4001 }
 0x266   : > { %4036 = vst.msk [vmem:[#allocation4 + $0x70] sm:$0xff] %vm8957_vm3, %v4002_v35  ;;  %vm8987_vm3 = vmmov %vm8986_vm1 }
 0x267   : > { %v3757_v33 = vpop.permute.xlu1 %3756 }
 0x268   : > { %3790 = vst.msk [vmem:[#allocation4 + $0x78] sm:$0xff] %vm8973_vm5, %v3757_v33 }
 0x269   : > { %v4299_v41 = vpop.permute.xlu0 %4298 }
 0x26a   : > { %5858 = vmatprep.mubr.msk.bf16.mxu1 %vm4330_vm0, %v4299_v41 }
 0x26b   : > { %v4004_v12 = vpop.permute.xlu1 %4003 }
 0x26c   : > { %4037 = vst.msk [vmem:[#allocation4 + $0x78] sm:$0xff] %vm8974_vm7, %v4004_v12 }
 0x26d   : > { %v4052_v61 = vld [vmem:[#allocation4 + $0x70] sm:$0xff]  ;;  %v4303_v9 = vpop.permute.xlu0 %4302 }
 0x26e   : > { %5852 = vmatprep.mubr.msk.bf16.mxu0 %vm8975_vm2, %v4052_v61 }
 0x26f   : > { %v4301_v18 = vpop.permute.xlu1 %4300 }
 0x270   : > { %5859 = vmatmul.mubr.msk.bf16.vlgmr.msra.gmra.mrb[0].mxu1 %vm4330_vm0, %v4301_v18 }
 0x271   : > { %5862 = vmatprep.mubr.msk.bf16.mxu1 %vm4330_vm0, %v4303_v9  ;;  %5891 = vmatpush3.bf16.msra.mxu1 %v4593_v5  ;;  %v4307_v29 = vpop.permute.xlu0 %4306 }
 0x273   : > { %v4053_v38 = vld [vmem:[#allocation4 + $0x78] sm:$0xff]  ;;  %v4305_v39 = vpop.permute.xlu1 %4304 }
 0x274   : > { %5853 = vmatmul.mubr.msk.bf16.gmra.mrb[28].mxu0 %vm8977_vm13, %v4053_v38 }
 0x275   : > { %v4311_v21 = vpop.permute.xlu0 %4310 }
 0x277   : > { %v4309_v31 = vpop.permute.xlu1 %4308 }
 0x278   : > { %5863 = vmatmul.mubr.msk.bf16.gmra.mrb[4].mxu1 %vm4330_vm0, %v4305_v39 }
 0x279   : > { %5866 = vmatprep.mubr.msk.bf16.mxu1 %vm4330_vm0, %v4307_v29  ;;  %v4315_v13 = vpop.permute.xlu0 %4314 }
 0x27b   : > { %v5830_v45 = vpop.f32.mrb[4].mxu0  ;;  %v4313_v0 = vpop.permute.xlu1 %4312 }
 0x27c   : > { %v4169_v24 = vpop.f32.mrb[5].mxu0 }
 0x27d   : > { %v5831_v26 = vpop.f32.mrb[6].mxu0  ;;  %v4319_v32 = vpop.permute.xlu0 %4318 }
 0x27e   : > { %v4283_v15 = vpack.c.bf16 %v5831_v26, %v5830_v45  ;;  %v4172_v53 = vpop.f32.mrb[7].mxu0 }
 0x27f   : > { %v4282_v62 = vpack.c.bf16 %v4172_v53, %v4169_v24  ;;  %v4317_v28 = vpop.permute.xlu1 %4316 }
 0x280   : > { %5867 = vmatmul.mubr.msk.bf16.gmra.mrb[8].mxu1 %vm4330_vm0, %v4309_v31 }
 0x281   : > { %5870 = vmatprep.mubr.msk.bf16.mxu1 %vm4330_vm0, %v4311_v21  ;;  %v4323_v30 = vpop.permute.xlu0 %4322 }
 0x283   : > { %v4321_v59 = vpop.permute.xlu1 %4320 }
 0x285   : > { %v4327_v55 = vpop.permute.xlu0 %4326 }
 0x287   : > { %v4325_v51 = vpop.permute.xlu1 %4324 }
 0x288   : > { %5871 = vmatmul.mubr.msk.bf16.gmra.mrb[12].mxu1 %vm4330_vm0, %v4313_v0  ;;  %v6129_v0 = vld [vmem:[%s6343_s10] sm:$0xff]  }
 0x289   : > { %5874 = vmatprep.mubr.msk.bf16.mxu1 %vm4330_vm0, %v4315_v13  ;;  %5924 = vmatprep.subr.bf16.mxu0 %v6129_v0 }
 0x28a   : > { %5925 = vmatpush3.bf16.msra.mxu0 %v6129_v0 }
 0x28b   : > { %v4329_v61 = vpop.permute.xlu1 %4328 }
 0x290   : > { %5875 = vmatmul.mubr.msk.bf16.gmra.mrb[16].mxu1 %vm4330_vm0, %v4317_v28 }
 0x291   : > { %5878 = vmatprep.mubr.msk.bf16.mxu1 %vm4330_vm0, %v4319_v32 }
 0x298   : > { %5879 = vmatmul.mubr.msk.bf16.gmra.mrb[20].mxu1 %vm4330_vm0, %v4321_v59 }
 0x299   : > { %5882 = vmatprep.mubr.msk.bf16.mxu1 %vm4330_vm0, %v4323_v30 }
 0x29d   : > { %v5834_v16 = vpop.f32.mrb[8].mxu0 }
 0x29e   : > { %v4185_v11 = vpop.f32.mrb[9].mxu0 }
 0x29f   : > { %v5835_v35 = vpop.f32.mrb[10].mxu0 }
 0x2a0   : > { %5883 = vmatmul.mubr.msk.bf16.gmra.mrb[24].mxu1 %vm4330_vm0, %v4325_v51  ;;  %v4285_v33 = vpack.c.bf16 %v5835_v35, %v5834_v16  ;;  %v4188_v41 = vpop.f32.mrb[11].mxu0 }
 0x2a1   : > { %5886 = vmatprep.mubr.msk.bf16.mxu1 %vm4330_vm0, %v4327_v55  ;;  %v4284_v12 = vpack.c.bf16 %v4188_v41, %v4185_v11 }
 0x2a8   : > { %5887 = vmatmul.mubr.msk.bf16.gmra.mrb[28].mxu1 %vm4330_vm0, %v4329_v61  ;;  %vm8988_vm0 = vmmov %vm8986_vm1 }
 0x2a9   : > { %5892 = vmatprep.mubr.msk.bf16.mxu1 %vm8978_vm9, %v4280_v63  ;;  %vm8989_vm5 = vmmov %vm8988_vm0  ;;  %vm4851_vm9 = vcmask 130048  }
 0x2aa   : > { %vm8990_vm7 = vmmov %vm8988_vm0 }
 0x2ab   : > { %vm8991_vm2 = vmmov %vm8988_vm0 }
 0x2ac   : > { %vm8992_vm6 = vmmov %vm8988_vm0 }
 0x2ad   : > { %vm8993_vm13 = vmmov %vm8988_vm0 }
 0x2b0   : > { %5893 = vmatmul.mubr.msk.bf16.vlgmr.msra.gmra.mrb[0].mxu1 %vm8979_vm10, %v4281_v43  ;;  %vm5093_vm10 = vcmask 64512  }
 0x2b1   : > { %5896 = vmatprep.mubr.msk.bf16.mxu1 %vm8980_vm15, %v4282_v62  ;;  %vm5144_vm15 = vcmask (!%p5713_p8), 130112  }
 0x2b8   : > { %5897 = vmatmul.mubr.msk.bf16.gmra.mrb[4].mxu1 %vm8981_vm11, %v4283_v15  ;;  %vm5157_vm11 = vcmask (!%p5713_p8), 195712  }
 0x2b9   : > { %5900 = vmatprep.mubr.msk.bf16.mxu1 %vm8982_vm4, %v4284_v12  ;;  %v8479_v12 = vld [vmem:[%s338_s30] ss:$0 sm:$0xff]  ;;  %s6231_s30 = smov (!%p5713_p8), 8   ;;  %vm5170_vm4 = vcmask (!%p5713_p8), 261312  }
 0x2bf   : > { %v5838_v9 = vpop.f32.mrb[12].mxu0 }
 0x2c0   : > { %v4201_v5 = vpop.f32.mrb[13].mxu0  ;;  %5901 = vmatmul.mubr.msk.bf16.gmra.mrb[8].mxu1 %vm8983_vm12, %v4285_v33  ;;  %vm5183_vm12 = vcmask (!%p5713_p8), 326912  }
 0x2c1   : > { %v5839_v18 = vpop.f32.mrb[14].mxu0 }
 0x2c2   : > { %v4287_v38 = vpack.c.bf16 %v5839_v18, %v5838_v9  ;;  %v4204_v39 = vpop.f32.mrb[15].mxu0 }
 0x2c3   : > { %v4286_v29 = vpack.c.bf16 %v4204_v39, %v4201_v5 }
 0x2c5   : > { %5904 = vmatprep.mubr.msk.bf16.mxu1 %vm8984_vm14, %v4286_v29  ;;  %vm5196_vm14 = vcmask (!%p5713_p8), 392512  }
 0x2c8   : > { %5905 = vmatmul.mubr.msk.bf16.gmra.mrb[12].mxu1 %vm8985_vm8, %v4287_v38  ;;  %vm5209_vm8 = vcmask (!%p5713_p8), 458112  }
 0x2de   : > { %v5842_v37 = vpop.f32.mrb[16].mxu0 }
 0x2df   : > { %v4217_v47 = vpop.f32.mrb[17].mxu0 }
 0x2e0   : > { %v5843_v43 = vpop.f32.mrb[18].mxu0 }
 0x2e1   : > { %v4289_v63 = vpack.c.bf16 %v5843_v43, %v5842_v37  ;;  %v4220_v31 = vpop.f32.mrb[19].mxu0 }
 0x2e2   : > { %v4288_v21 = vpack.c.bf16 %v4220_v31, %v4217_v47 }
 0x2e4   : > { %5908 = vmatprep.mubr.msk.bf16.mxu1 %vm8986_vm1, %v4288_v21  ;;  %vm5222_vm1 = vcmask (!%p5713_p8), 523712  }
 0x2e5   : > { %5909 = vmatmul.mubr.msk.bf16.gmra.mrb[16].mxu1 %vm8987_vm3, %v4289_v63  ;;  %vm5235_vm3 = vcmask (!%p5713_p8), 589312  }
 0x300   : > { %v5846_v45 = vpop.f32.mrb[20].mxu0 }
 0x301   : > { %v4233_v24 = vpop.f32.mrb[21].mxu0 }
 0x302   : > { %v5847_v26 = vpop.f32.mrb[22].mxu0 }
 0x303   : > { %v4291_v15 = vpack.c.bf16 %v5847_v26, %v5846_v45  ;;  %v4236_v53 = vpop.f32.mrb[23].mxu0 }
 0x304   : > { %v4290_v62 = vpack.c.bf16 %v4236_v53, %v4233_v24 }
 0x306   : > { %5912 = vmatprep.mubr.msk.bf16.mxu1 %vm8988_vm0, %v4290_v62  ;;  %vm5248_vm0 = vcmask (!%p5713_p8), 654912  }
 0x307   : > { %5913 = vmatmul.mubr.msk.bf16.gmra.mrb[20].mxu1 %vm8989_vm5, %v4291_v15  ;;  %vm5261_vm5 = vcmask (!%p5713_p8), 720512  }
 0x325   : > { %v5850_v13 = vpop.f32.mrb[24].mxu0 }
 0x326   : > { %v4249_v28 = vpop.f32.mrb[25].mxu0 }
 0x327   : > { %v5851_v32 = vpop.f32.mrb[26].mxu0 }
 0x328   : > { %v4293_v59 = vpack.c.bf16 %v5851_v32, %v5850_v13  ;;  %v4252_v30 = vpop.f32.mrb[27].mxu0 }
 0x329   : > { %v4292_v51 = vpack.c.bf16 %v4252_v30, %v4249_v28 }
 0x32b   : > { %5916 = vmatprep.mubr.msk.bf16.mxu1 %vm8990_vm7, %v4292_v51  ;;  %vm5274_vm7 = vcmask (!%p5713_p8), 786112  }
 0x32c   : > { %5917 = vmatmul.mubr.msk.bf16.gmra.mrb[24].mxu1 %vm8991_vm2, %v4293_v59  ;;  %vm5287_vm2 = vcmask (!%p5713_p8), 851712  }
 0x347   : > { %v5854_v55 = vpop.f32.mrb[28].mxu0 }
 0x348   : > { %v4265_v16 = vpop.f32.mrb[29].mxu0 }
 0x349   : > { %v5855_v11 = vpop.f32.mrb[30].mxu0 }
 0x34a   : > { %v4295_v35 = vpack.c.bf16 %v5855_v11, %v5854_v55  ;;  %v4268_v33 = vpop.f32.mrb[31].mxu0 }
 0x34b   : > { %v4294_v41 = vpack.c.bf16 %v4268_v33, %v4265_v16 }
 0x34d   : > { %5920 = vmatprep.mubr.msk.bf16.mxu1 %vm8992_vm6, %v4294_v41  ;;  %vm5300_vm6 = vcmask (!%p5713_p8), 917312  }
 0x34e   : > { %5921 = vmatmul.mubr.msk.bf16.gmra.mrb[28].mxu1 %vm8993_vm13, %v4295_v35  ;;  %vm5313_vm13 = vcmask (!%p5713_p8), 982912  }
 0x383   : > { %v5894_v61 = vpop.f32.mrb[0].mxu1 }
 0x384   : > { %v4765_v9 = vadd.f32 %v5894_v61, %v8479_v12  ;;  %v4629_v5 = vpop.f32.mrb[1].mxu1 }
 0x385   : > { %v4763_v18 = vadd.f32 %v8479_v12, %v4629_v5  ;;  %v5895_v38 = vpop.f32.mrb[2].mxu1 }
 0x386   : > { %v4766_v39 = vadd.f32 %v5895_v38, %v8479_v12  ;;  %v4632_v29 = vpop.f32.mrb[3].mxu1  ;;  %v4797_v47 = vmax.f32 %v4765_v9, 0.0 }
 0x387   : > { %v4764_v37 = vadd.f32 %v8479_v12, %v4632_v29  ;;  %v4795_v63 = vmax.f32 %v4763_v18, 0.0 }
 0x388   : > { %v4798_v43 = vmax.f32 %v4766_v39, 0.0 }
 0x389   : > { %v4796_v31 = vmax.f32 %v4764_v37, 0.0 }
 0x38a   : > { %v4828_v21 = vpack.c.bf16 %v4798_v43, %v4797_v47 }
 0x38b   : > { %v4827_v45 = vpack.c.bf16 %v4796_v31, %v4795_v63  ;;  %v5898_v24 = vpop.f32.mrb[4].mxu1 }
 0x38c   : > { %v4769_v26 = vadd.f32 %v5898_v24, %v8479_v12  ;;  %v4645_v15 = vpop.f32.mrb[5].mxu1 }
 0x38d   : > { %v4767_v53 = vadd.f32 %v8479_v12, %v4645_v15  ;;  %v5899_v62 = vpop.f32.mrb[6].mxu1  ;;  %5926 = vmatprep.mubr.msk.bf16.mxu0 %vm4851_vm9, %v4827_v45 }
 0x38e   : > { %v4770_v0 = vadd.f32 %v5899_v62, %v8479_v12  ;;  %v4648_v13 = vpop.f32.mrb[7].mxu1  ;;  %5927 = vmatmul.mubr.msk.bf16.vlgmr.msra.gmra.mrb[32].mxu0 %vm4851_vm9, %v4828_v21  ;;  %v4801_v32 = vmax.f32 %v4769_v26, 0.0 }
 0x38f   : > { %v4768_v28 = vadd.f32 %v8479_v12, %v4648_v13  ;;  %v4799_v30 = vmax.f32 %v4767_v53, 0.0 }
 0x390   : > { %v4802_v59 = vmax.f32 %v4770_v0, 0.0 }
 0x391   : > { %v4800_v51 = vmax.f32 %v4768_v28, 0.0 }
 0x392   : > { %v4830_v55 = vpack.c.bf16 %v4802_v59, %v4801_v32 }
 0x393   : > { %v4829_v16 = vpack.c.bf16 %v4800_v51, %v4799_v30  ;;  %v5902_v11 = vpop.f32.mrb[8].mxu1 }
 0x394   : > { %v4773_v35 = vadd.f32 %v5902_v11, %v8479_v12  ;;  %v4661_v33 = vpop.f32.mrb[9].mxu1 }
 0x395   : > { %v4771_v41 = vadd.f32 %v8479_v12, %v4661_v33  ;;  %v5903_v61 = vpop.f32.mrb[10].mxu1  ;;  %5930 = vmatprep.mubr.msk.bf16.mxu0 %vm4851_vm9, %v4829_v16 }
 0x396   : > { %v4774_v9 = vadd.f32 %v5903_v61, %v8479_v12  ;;  %v4664_v5 = vpop.f32.mrb[11].mxu1  ;;  %5931 = vmatmul.mubr.msk.bf16.gmra.mrb[36].mxu0 %vm4851_vm9, %v4830_v55  ;;  %v4805_v38 = vmax.f32 %v4773_v35, 0.0 }
 0x397   : > { %v4772_v18 = vadd.f32 %v8479_v12, %v4664_v5  ;;  %v4803_v29 = vmax.f32 %v4771_v41, 0.0 }
 0x398   : > { %v4806_v39 = vmax.f32 %v4774_v9, 0.0 }
 0x399   : > { %v4804_v37 = vmax.f32 %v4772_v18, 0.0 }
 0x39a   : > { %v4832_v47 = vpack.c.bf16 %v4806_v39, %v4805_v38 }
 0x39b   : > { %v4831_v43 = vpack.c.bf16 %v4804_v37, %v4803_v29  ;;  %v5906_v63 = vpop.f32.mrb[12].mxu1 }
 0x39c   : > { %v4777_v31 = vadd.f32 %v5906_v63, %v8479_v12  ;;  %v4677_v21 = vpop.f32.mrb[13].mxu1 }
 0x39d   : > { %5934 = vmatprep.mubr.msk.bf16.mxu0 %vm4851_vm9, %v4831_v43  ;;  %v4775_v45 = vadd.f32 %v8479_v12, %v4677_v21  ;;  %v5907_v24 = vpop.f32.mrb[14].mxu1 }
 0x39e   : > { %5935 = vmatmul.mubr.msk.bf16.gmra.mrb[40].mxu0 %vm4851_vm9, %v4832_v47  ;;  %v4778_v26 = vadd.f32 %v5907_v24, %v8479_v12  ;;  %v4680_v15 = vpop.f32.mrb[15].mxu1  ;;  %v4809_v62 = vmax.f32 %v4777_v31, 0.0 }
 0x39f   : > { %v4776_v53 = vadd.f32 %v8479_v12, %v4680_v15  ;;  %v4807_v13 = vmax.f32 %v4775_v45, 0.0 }
 0x3a0   : > { %v4810_v0 = vmax.f32 %v4778_v26, 0.0 }
 0x3a1   : > { %v4808_v28 = vmax.f32 %v4776_v53, 0.0 }
 0x3a2   : > { %v4834_v32 = vpack.c.bf16 %v4810_v0, %v4809_v62 }
 0x3a3   : > { %v4833_v59 = vpack.c.bf16 %v4808_v28, %v4807_v13 }
 0x3a5   : > { %5938 = vmatprep.mubr.msk.bf16.mxu0 %vm4851_vm9, %v4833_v59 }
 0x3a6   : > { %5939 = vmatmul.mubr.msk.bf16.gmra.mrb[44].mxu0 %vm4851_vm9, %v4834_v32 }
 0x3b8   : > { %v5910_v30 = vpop.f32.mrb[16].mxu1 }
 0x3b9   : > { %v4781_v51 = vadd.f32 %v5910_v30, %v8479_v12  ;;  %v4693_v55 = vpop.f32.mrb[17].mxu1 }
 0x3ba   : > { %v4779_v16 = vadd.f32 %v8479_v12, %v4693_v55  ;;  %v5911_v11 = vpop.f32.mrb[18].mxu1 }
 0x3bb   : > { %v4782_v35 = vadd.f32 %v5911_v11, %v8479_v12  ;;  %v4696_v33 = vpop.f32.mrb[19].mxu1  ;;  %v4813_v61 = vmax.f32 %v4781_v51, 0.0 }
 0x3bc   : > { %v4780_v41 = vadd.f32 %v8479_v12, %v4696_v33  ;;  %v4811_v5 = vmax.f32 %v4779_v16, 0.0 }
 0x3bd   : > { %v4814_v9 = vmax.f32 %v4782_v35, 0.0 }
 0x3be   : > { %v4812_v18 = vmax.f32 %v4780_v41, 0.0 }
 0x3bf   : > { %v4836_v38 = vpack.c.bf16 %v4814_v9, %v4813_v61 }
 0x3c0   : > { %v4835_v39 = vpack.c.bf16 %v4812_v18, %v4811_v5 }
 0x3c2   : > { %5942 = vmatprep.mubr.msk.bf16.mxu0 %vm4851_vm9, %v4835_v39 }
 0x3c3   : > { %5943 = vmatmul.mubr.msk.bf16.gmra.mrb[48].mxu0 %vm4851_vm9, %v4836_v38 }
 0x3da   : > { %v5914_v29 = vpop.f32.mrb[20].mxu1 }
 0x3db   : > { %v4785_v37 = vadd.f32 %v5914_v29, %v8479_v12  ;;  %v4709_v47 = vpop.f32.mrb[21].mxu1 }
 0x3dc   : > { %v4783_v43 = vadd.f32 %v8479_v12, %v4709_v47  ;;  %v5915_v63 = vpop.f32.mrb[22].mxu1 }
 0x3dd   : > { %v4786_v31 = vadd.f32 %v5915_v63, %v8479_v12  ;;  %v4712_v21 = vpop.f32.mrb[23].mxu1  ;;  %v4817_v24 = vmax.f32 %v4785_v37, 0.0 }
 0x3de   : > { %v4784_v45 = vadd.f32 %v8479_v12, %v4712_v21  ;;  %v4815_v15 = vmax.f32 %v4783_v43, 0.0 }
 0x3df   : > { %v4818_v26 = vmax.f32 %v4786_v31, 0.0 }
 0x3e0   : > { %v4816_v53 = vmax.f32 %v4784_v45, 0.0 }
 0x3e1   : > { %v4838_v62 = vpack.c.bf16 %v4818_v26, %v4817_v24 }
 0x3e2   : > { %v4837_v0 = vpack.c.bf16 %v4816_v53, %v4815_v15 }
 0x3e4   : > { %5946 = vmatprep.mubr.msk.bf16.mxu0 %vm4851_vm9, %v4837_v0 }
 0x3e5   : > { %5947 = vmatmul.mubr.msk.bf16.gmra.mrb[52].mxu0 %vm4851_vm9, %v4838_v62 }
 0x3ff   : > { %v5918_v13 = vpop.f32.mrb[24].mxu1 }
 0x400   : > { %v4789_v28 = vadd.f32 %v5918_v13, %v8479_v12  ;;  %v4725_v32 = vpop.f32.mrb[25].mxu1 }
 0x401   : > { %v4787_v59 = vadd.f32 %v8479_v12, %v4725_v32  ;;  %v5919_v30 = vpop.f32.mrb[26].mxu1 }
 0x402   : > { %v4790_v51 = vadd.f32 %v5919_v30, %v8479_v12  ;;  %v4728_v55 = vpop.f32.mrb[27].mxu1  ;;  %v4821_v11 = vmax.f32 %v4789_v28, 0.0 }
 0x403   : > { %v4788_v16 = vadd.f32 %v8479_v12, %v4728_v55  ;;  %v4819_v33 = vmax.f32 %v4787_v59, 0.0 }
 0x404   : > { %v4822_v35 = vmax.f32 %v4790_v51, 0.0 }
 0x405   : > { %v4820_v41 = vmax.f32 %v4788_v16, 0.0 }
 0x406   : > { %v4840_v61 = vpack.c.bf16 %v4822_v35, %v4821_v11 }
 0x407   : > { %v4839_v9 = vpack.c.bf16 %v4820_v41, %v4819_v33 }
 0x409   : > { %5950 = vmatprep.mubr.msk.bf16.mxu0 %vm4851_vm9, %v4839_v9 }
 0x40a   : > { %5951 = vmatmul.mubr.msk.bf16.gmra.mrb[56].mxu0 %vm4851_vm9, %v4840_v61 }
 0x421   : > { %v5922_v5 = vpop.f32.mrb[28].mxu1 }
 0x422   : > { %v4793_v18 = vadd.f32 %v5922_v5, %v8479_v12  ;;  %v4741_v38 = vpop.f32.mrb[29].mxu1 }
 0x423   : > { %v4791_v39 = vadd.f32 %v8479_v12, %v4741_v38  ;;  %v5923_v29 = vpop.f32.mrb[30].mxu1 }
 0x424   : > { %v4794_v37 = vadd.f32 %v5923_v29, %v8479_v12  ;;  %v4744_v47 = vpop.f32.mrb[31].mxu1  ;;  %v4825_v63 = vmax.f32 %v4793_v18, 0.0 }
 0x425   : > { %v4792_v43 = vadd.f32 %v8479_v12, %v4744_v47  ;;  %v4823_v21 = vmax.f32 %v4791_v39, 0.0 }
 0x426   : > { %v4826_v31 = vmax.f32 %v4794_v37, 0.0 }
 0x427   : > { %v4824_v45 = vmax.f32 %v4792_v43, 0.0 }
 0x428   : > { %v4842_v24 = vpack.c.bf16 %v4826_v31, %v4825_v63 }
 0x429   : > { %v4841_v26 = vpack.c.bf16 %v4824_v45, %v4823_v21 }
 0x42b   : > { %5954 = vmatprep.mubr.msk.bf16.mxu0 %vm4851_vm9, %v4841_v26 }
 0x42c   : > { %5955 = vmatmul.mubr.msk.bf16.gmra.mrb[60].mxu0 %vm4851_vm9, %v4842_v24  ;;  %vm5326_vm9 = vcmask (!%p5713_p8), 1048512  }
 0x461   : > { %v5928_v15 = vpop.f32.mrb[32].mxu0 }
 0x462   : > { %v5063_v53 = vadd.f32 %v8255_v36, %v5928_v15  ;;  %v4934_v62 = vpop.f32.mrb[33].mxu0 }
 0x463   : > { %v5061_v0 = vadd.f32 %v8239_v22, %v4934_v62  ;;  %v5929_v13 = vpop.f32.mrb[34].mxu0  ;;  %v6162_v62 = vld [vmem:[#allocation2 + $0xf8] sm:$0xff] }
 0x464   : > { %5096 = vst.msk [vmem:[#allocation2 + $0x10] sm:$0xff] %vm5093_vm10, %v5063_v53  ;;  %v5064_v12 = vadd.f32 %v8257_v46, %v5929_v13  ;;  %v4937_v28 = vpop.f32.mrb[35].mxu0 }
 0x465   : > { %5094 = vst.msk [vmem:[#allocation2] sm:$0xff] %vm5093_vm10, %v5061_v0  ;;  %v5062_v32 = vadd.f32 %v8237_v50, %v4937_v28 }
 0x466   : > { %5097 = vst.msk [vmem:[#allocation2 + $0x18] sm:$0xff] %vm5093_vm10, %v5064_v12 }
 0x467   : > { %5095 = vst.msk [vmem:[#allocation2 + $0x8] sm:$0xff] %vm5093_vm10, %v5062_v32 }
 0x469   : > { %v5932_v59 = vpop.f32.mrb[36].mxu0 }
 0x46a   : > { %v5067_v36 = vadd.f32 %v8271_v17, %v5932_v59  ;;  %v4950_v30 = vpop.f32.mrb[37].mxu0 }
 0x46b   : > { %v5065_v22 = vadd.f32 %v8248_v3, %v4950_v30  ;;  %v5933_v51 = vpop.f32.mrb[38].mxu0  ;;  %v5134_v13 = vld [vmem:[#allocation2 + $0x10] sm:$0xff] (!%p5713_p8) }
 0x46c   : > { %5100 = vst.msk [vmem:[#allocation2 + $0x30] sm:$0xff] %vm5093_vm10, %v5067_v36  ;;  %v5068_v46 = vadd.f32 %v8273_v14, %v5933_v51  ;;  %v4953_v55 = vpop.f32.mrb[39].mxu0  ;;  %5138 = vrot.lane.b32.xlu0 (!%p5713_p8), %v5134_v13, %s6231_s30  ;;  %v5130_v36 = vld [vmem:[#allocation2] sm:$0xff] (!%p5713_p8) }
 0x46d   : > { %5098 = vst.msk [vmem:[#allocation2 + $0x20] sm:$0xff] %vm5093_vm10, %v5065_v22  ;;  %v5066_v50 = vadd.f32 %v8250_v6, %v4953_v55  ;;  %v5135_v12 = vld [vmem:[#allocation2 + $0x18] sm:$0xff] (!%p5713_p8)  ;;  %5132 = vst.msk [vmem:[%s6348_s9] sm:$0xff] (!%p5713_p8), %vm5093_vm10, %v5130_v36 }
 0x46e   : > { %5101 = vst.msk [vmem:[#allocation2 + $0x38] sm:$0xff] %vm5093_vm10, %v5068_v46  ;;  %v5131_v30 = vld [vmem:[#allocation2 + $0x8] sm:$0xff] (!%p5713_p8) }
 0x46f   : > { %5099 = vst.msk [vmem:[#allocation2 + $0x28] sm:$0xff] %vm5093_vm10, %v5066_v50  ;;  %5133 = vst.msk [vmem:[%s6348_s9 + $0x8] sm:$0xff] (!%p5713_p8), %vm5093_vm10, %v5131_v30 }
 0x470   : > { %5140 = vrot.lane.b32.xlu0 (!%p5713_p8), %v5135_v12, %s6231_s30 }
 0x471   : > { %v5936_v16 = vpop.f32.mrb[40].mxu0 }
 0x472   : > { %v5071_v17 = vadd.f32 %v8287_v42, %v5936_v16  ;;  %v4966_v11 = vpop.f32.mrb[41].mxu0 }
 0x473   : > { %v5069_v3 = vadd.f32 %v8263_v8, %v4966_v11  ;;  %v5937_v35 = vpop.f32.mrb[42].mxu0  ;;  %v5160_v28 = vld [vmem:[#allocation2 + $0x30] sm:$0xff] (!%p5713_p8) }
 0x474   : > { %5104 = vst.msk [vmem:[#allocation2 + $0x50] sm:$0xff] %vm5093_vm10, %v5071_v17  ;;  %v5072_v14 = vadd.f32 %v8289_v40, %v5937_v35  ;;  %v4969_v33 = vpop.f32.mrb[43].mxu0  ;;  %5164 = vrot.lane.b32.xlu0 (!%p5713_p8), %v5160_v28, %s6232_s7 }
 0x475   : > { %5102 = vst.msk [vmem:[#allocation2 + $0x40] sm:$0xff] %vm5093_vm10, %v5069_v3  ;;  %v5070_v6 = vadd.f32 %v8265_v52, %v4969_v33 }
 0x476   : > { %5105 = vst.msk [vmem:[#allocation2 + $0x58] sm:$0xff] %vm5093_vm10, %v5072_v14 }
 0x477   : > { %5103 = vst.msk [vmem:[#allocation2 + $0x48] sm:$0xff] %vm5093_vm10, %v5070_v6 }
 0x479   : > { %v5940_v41 = vpop.f32.mrb[44].mxu0 }
 0x47a   : > { %v5075_v42 = vadd.f32 %v8303_v27, %v5940_v41  ;;  %v4982_v61 = vpop.f32.mrb[45].mxu0 }
 0x47b   : > { %v5073_v8 = vadd.f32 %v8279_v57, %v4982_v61  ;;  %v5941_v9 = vpop.f32.mrb[46].mxu0  ;;  %v5186_v51 = vld [vmem:[#allocation2 + $0x50] sm:$0xff] (!%p5713_p8) }
 0x47c   : > { %5108 = vst.msk [vmem:[#allocation2 + $0x70] sm:$0xff] %vm5093_vm10, %v5075_v42  ;;  %v5076_v40 = vadd.f32 %v8305_v19, %v5941_v9  ;;  %v4985_v5 = vpop.f32.mrb[47].mxu0  ;;  %v5173_v59 = vld [vmem:[#allocation2 + $0x40] sm:$0xff] (!%p5713_p8) }
 0x47d   : > { %5106 = vst.msk [vmem:[#allocation2 + $0x60] sm:$0xff] %vm5093_vm10, %v5073_v8  ;;  %v5074_v52 = vadd.f32 %v8281_v56, %v4985_v5  ;;  %5177 = vrot.lane.b32.xlu0 (!%p5713_p8), %v5173_v59, %s6233_s21  ;;  %v5187_v22 = vld [vmem:[#allocation2 + $0x58] sm:$0xff] (!%p5713_p8) }
 0x47e   : > { %5109 = vst.msk [vmem:[#allocation2 + $0x78] sm:$0xff] %vm5093_vm10, %v5076_v40  ;;  %v5174_v32 = vld [vmem:[#allocation2 + $0x48] sm:$0xff] (!%p5713_p8) }
 0x47f   : > { %5107 = vst.msk [vmem:[#allocation2 + $0x68] sm:$0xff] %vm5093_vm10, %v5074_v52 }
 0x481   : > { %5190 = vrot.lane.b32.xlu0 (!%p5713_p8), %v5186_v51, %s6234_s11 }
 0x483   : > { %v5212_v16 = vld [vmem:[#allocation2 + $0x70] sm:$0xff] (!%p5713_p8) }
 0x484   : > { %v5199_v55 = vld [vmem:[#allocation2 + $0x60] sm:$0xff] (!%p5713_p8) }
 0x485   : > { %5203 = vrot.lane.b32.xlu0 (!%p5713_p8), %v5199_v55, %s6235_s13  ;;  %v5213_v50 = vld [vmem:[#allocation2 + $0x78] sm:$0xff] (!%p5713_p8) }
 0x486   : > { %v5200_v46 = vld [vmem:[#allocation2 + $0x68] sm:$0xff] (!%p5713_p8) }
 0x489   : > { %5216 = vrot.lane.b32.xlu0 (!%p5713_p8), %v5212_v16, %s6236_s14 }
 0x496   : > { %v5944_v18 = vpop.f32.mrb[48].mxu0 }
 0x497   : > { %v5079_v27 = vadd.f32 %v8319_v23, %v5944_v18  ;;  %v4998_v38 = vpop.f32.mrb[49].mxu0 }
 0x498   : > { %v5077_v57 = vadd.f32 %v8295_v1, %v4998_v38  ;;  %v5945_v39 = vpop.f32.mrb[50].mxu0 }
 0x499   : > { %5112 = vst.msk [vmem:[#allocation2 + $0x90] sm:$0xff] %vm5093_vm10, %v5079_v27  ;;  %v5080_v19 = vadd.f32 %v8321_v25, %v5945_v39  ;;  %v5001_v29 = vpop.f32.mrb[51].mxu0 }
 0x49a   : > { %5110 = vst.msk [vmem:[#allocation2 + $0x80] sm:$0xff] %vm5093_vm10, %v5077_v57  ;;  %v5078_v56 = vadd.f32 %v8297_v54, %v5001_v29 }
 0x49b   : > { %5113 = vst.msk [vmem:[#allocation2 + $0x98] sm:$0xff] %vm5093_vm10, %v5080_v19 }
 0x49c   : > { %5111 = vst.msk [vmem:[#allocation2 + $0x88] sm:$0xff] %vm5093_vm10, %v5078_v56 }
 0x4a0   : > { %v5238_v35 = vld [vmem:[#allocation2 + $0x90] sm:$0xff] (!%p5713_p8) }
 0x4a1   : > { %v5225_v11 = vld [vmem:[#allocation2 + $0x80] sm:$0xff] (!%p5713_p8) }
 0x4a2   : > { %5229 = vrot.lane.b32.xlu0 (!%p5713_p8), %v5225_v11, %s6237_s0  ;;  %v5239_v3 = vld [vmem:[#allocation2 + $0x98] sm:$0xff] (!%p5713_p8) }
 0x4a3   : > { %v5226_v17 = vld [vmem:[#allocation2 + $0x88] sm:$0xff] (!%p5713_p8) }
 0x4a6   : > { %5242 = vrot.lane.b32.xlu0 (!%p5713_p8), %v5238_v35, %s6238_s27 }
 0x4b8   : > { %v5948_v37 = vpop.f32.mrb[52].mxu0 }
 0x4b9   : > { %v5083_v23 = vadd.f32 %v8336_v20, %v5948_v37  ;;  %v5014_v47 = vpop.f32.mrb[53].mxu0 }
 0x4ba   : > { %v5081_v1 = vadd.f32 %v8311_v44, %v5014_v47  ;;  %v5949_v43 = vpop.f32.mrb[54].mxu0 }
 0x4bb   : > { %5116 = vst.msk [vmem:[#allocation2 + $0xb0] sm:$0xff] %vm5093_vm10, %v5083_v23  ;;  %v5084_v25 = vadd.f32 %v8338_v58, %v5949_v43  ;;  %v5017_v63 = vpop.f32.mrb[55].mxu0 }
 0x4bc   : > { %5114 = vst.msk [vmem:[#allocation2 + $0xa0] sm:$0xff] %vm5093_vm10, %v5081_v1  ;;  %v5082_v54 = vadd.f32 %v8313_v10, %v5017_v63 }
 0x4bd   : > { %5117 = vst.msk [vmem:[#allocation2 + $0xb8] sm:$0xff] %vm5093_vm10, %v5084_v25 }
 0x4be   : > { %5115 = vst.msk [vmem:[#allocation2 + $0xa8] sm:$0xff] %vm5093_vm10, %v5082_v54 }
 0x4c2   : > { %v5264_v41 = vld [vmem:[#allocation2 + $0xb0] sm:$0xff] (!%p5713_p8) }
 0x4c3   : > { %v5251_v33 = vld [vmem:[#allocation2 + $0xa0] sm:$0xff] (!%p5713_p8) }
 0x4c4   : > { %5255 = vrot.lane.b32.xlu0 (!%p5713_p8), %v5251_v33, %s6239_s29  ;;  %v5265_v6 = vld [vmem:[#allocation2 + $0xb8] sm:$0xff] (!%p5713_p8) }
 0x4c5   : > { %v5252_v14 = vld [vmem:[#allocation2 + $0xa8] sm:$0xff] (!%p5713_p8) }
 0x4c8   : > { %5268 = vrot.lane.b32.xlu0 (!%p5713_p8), %v5264_v41, %s6240_s8 }
 0x4dd   : > { %v5952_v31 = vpop.f32.mrb[56].mxu0 }
 0x4de   : > { %v5087_v20 = vadd.f32 %v8352_v7, %v5952_v31  ;;  %v5030_v21 = vpop.f32.mrb[57].mxu0  ;;  %v5139_v38 = vpop.permute.xlu0 (!%p5713_p8), %5138 }
 0x4df   : > { %v5085_v44 = vadd.f32 %v8328_v2, %v5030_v21  ;;  %v5953_v45 = vpop.f32.mrb[58].mxu0  ;;  %5145 = vst.msk [vmem:[%s6348_s9] sm:$0xff] (!%p5713_p8), %vm5144_vm15, %v5139_v38 }
 0x4e0   : > { %5120 = vst.msk [vmem:[#allocation2 + $0xd0] sm:$0xff] %vm5093_vm10, %v5087_v20  ;;  %v5088_v58 = vadd.f32 %v8354_v60, %v5953_v45  ;;  %v5033_v24 = vpop.f32.mrb[59].mxu0 }
 0x4e1   : > { %5118 = vst.msk [vmem:[#allocation2 + $0xc0] sm:$0xff] %vm5093_vm10, %v5085_v44  ;;  %v5086_v10 = vadd.f32 %v8330_v34, %v5033_v24 }
 0x4e2   : > { %5121 = vst.msk [vmem:[#allocation2 + $0xd8] sm:$0xff] %vm5093_vm10, %v5088_v58  ;;  %v5141_v39 = vpop.permute.xlu0 (!%p5713_p8), %5140 }
 0x4e3   : > { %5119 = vst.msk [vmem:[#allocation2 + $0xc8] sm:$0xff] %vm5093_vm10, %v5086_v10 }
 0x4e4   : > { %5146 = vst.msk [vmem:[%s6348_s9 + $0x8] sm:$0xff] (!%p5713_p8), %vm5144_vm15, %v5141_v39 }
 0x4e6   : > { %v5165_v29 = vpop.permute.xlu0 (!%p5713_p8), %5164 }
 0x4e7   : > { %v5290_v9 = vld [vmem:[#allocation2 + $0xd0] sm:$0xff] (!%p5713_p8) }
 0x4e8   : > { %v5277_v61 = vld [vmem:[#allocation2 + $0xc0] sm:$0xff] (!%p5713_p8) }
 0x4e9   : > { %5281 = vrot.lane.b32.xlu0 (!%p5713_p8), %v5277_v61, %s6241_s12  ;;  %v5291_v8 = vld [vmem:[#allocation2 + $0xd8] sm:$0xff] (!%p5713_p8) }
 0x4ea   : > { %v5278_v42 = vld [vmem:[#allocation2 + $0xc8] sm:$0xff] (!%p5713_p8) }
 0x4ed   : > { %5294 = vrot.lane.b32.xlu0 (!%p5713_p8), %v5290_v9, %s6242_s15 }
 0x4ef   : > { %v5178_v37 = vpop.permute.xlu0 (!%p5713_p8), %5177 }
 0x4f3   : > { %v5191_v47 = vpop.permute.xlu0 (!%p5713_p8), %5190 }
 0x4f7   : > { %v5204_v43 = vpop.permute.xlu0 (!%p5713_p8), %5203 }
 0x4fb   : > { %v5217_v63 = vpop.permute.xlu0 (!%p5713_p8), %5216 }
 0x4ff   : > { %v5956_v26 = vpop.f32.mrb[60].mxu0  ;;  %5129 = sbr.rel (%p5713_p8) target bundleno = 1453 (0x5ad), region = 52 }
 0x500   : > { %v5091_v7 = vadd.f32 %v8362_v4, %v5956_v26  ;;  %v5046_v15 = vpop.f32.mrb[61].mxu0  ;;  %v5147_v4 = vld [vmem:[#allocation2 + $0x20] sm:$0xff] (!%p5713_p8) }
 0x501   : > { %v5089_v2 = vadd.f32 %v8345_v49, %v5046_v15  ;;  %v5957_v53 = vpop.f32.mrb[62].mxu0  ;;  %5151 = vrot.lane.b32.xlu1 (!%p5713_p8), %v5147_v4, %s6230_s28  ;;  %v5148_v49 = vld [vmem:[#allocation2 + $0x28] sm:$0xff] (!%p5713_p8) }
 0x502   : > { %5124 = vst.msk [vmem:[#allocation2 + $0xf0] sm:$0xff] %vm5093_vm10, %v5091_v7  ;;  %v5092_v60 = vadd.f32 %v6162_v62, %v5957_v53  ;;  %v5049_v0 = vpop.f32.mrb[63].mxu0 }
 0x503   : > { %5122 = vst.msk [vmem:[#allocation2 + $0xe0] sm:$0xff] %vm5093_vm10, %v5089_v2  ;;  %v5090_v34 = vadd.f32 %v8347_v48, %v5049_v0  ;;  %v5161_v48 = vld [vmem:[#allocation2 + $0x38] sm:$0xff] (!%p5713_p8) }
 0x504   : > { %5125 = vst.msk [vmem:[#allocation2 + $0xf8] sm:$0xff] %vm5093_vm10, %v5092_v60 }
 0x505   : > { %5123 = vst.msk [vmem:[#allocation2 + $0xe8] sm:$0xff] %vm5093_vm10, %v5090_v34  ;;  %5153 = vrot.lane.b32.xlu1 (!%p5713_p8), %v5148_v49, %s6230_s28 }
 0x509   : > { %5166 = vrot.lane.b32.xlu1 %v5161_v48, %s6232_s7  ;;  %v5316_v18 = vld [vmem:[#allocation2 + $0xf0] sm:$0xff] }
 0x50a   : > { %v5303_v5 = vld [vmem:[#allocation2 + $0xe0] sm:$0xff] }
 0x50b   : > { %5307 = vrot.lane.b32.xlu0 %v5303_v5, %s6243_s17  ;;  %v5317_v52 = vld [vmem:[#allocation2 + $0xf8] sm:$0xff] }
 0x50c   : > { %v5304_v40 = vld [vmem:[#allocation2 + $0xe8] sm:$0xff] }
 0x50d   : > { %5179 = vrot.lane.b32.xlu1 %v5174_v32, %s6233_s21 }
 0x50f   : > { %5320 = vrot.lane.b32.xlu0 %v5316_v18, %s6244_s16 }
 0x511   : > { %5192 = vrot.lane.b32.xlu1 %v5187_v22, %s6234_s11 }
 0x514   : > { %v5230_v31 = vpop.permute.xlu0 %5229 }
 0x515   : > { %5205 = vrot.lane.b32.xlu1 %v5200_v46, %s6235_s13 }
 0x518   : > { %v5243_v21 = vpop.permute.xlu0 %5242 }
 0x519   : > { %5218 = vrot.lane.b32.xlu1 %v5213_v50, %s6236_s14 }
 0x51d   : > { %5231 = vrot.lane.b32.xlu1 %v5226_v17, %s6237_s0 }
 0x521   : > { %5244 = vrot.lane.b32.xlu1 %v5239_v3, %s6238_s27 }
 0x525   : > { %5257 = vrot.lane.b32.xlu1 %v5252_v14, %s6239_s29 }
 0x529   : > { %5270 = vrot.lane.b32.xlu1 %v5265_v6, %s6240_s8 }
 0x52d   : > { %5283 = vrot.lane.b32.xlu1 %v5278_v42, %s6241_s12 }
 0x531   : > { %5296 = vrot.lane.b32.xlu1 %v5291_v8, %s6242_s15 }
 0x535   : > { %5309 = vrot.lane.b32.xlu1 %v5304_v40, %s6243_s17 }
 0x536   : > { %v5256_v45 = vpop.permute.xlu0 %5255 }
 0x539   : > { %5322 = vrot.lane.b32.xlu1 %v5317_v52, %s6244_s16 }
 0x53a   : > { %v5269_v24 = vpop.permute.xlu0 %5268 }
 0x55b   : > { %v5282_v26 = vpop.permute.xlu0 %5281 }
 0x55f   : > { %v5295_v15 = vpop.permute.xlu0 %5294 }
 0x573   : > { %v5152_v27 = vpop.permute.xlu1 %5151 }
 0x574   : > { %5158 = vst.msk [vmem:[%s6348_s9] sm:$0xff] %vm5157_vm11, %v5152_v27 }
 0x575   : > { %5171 = vst.msk [vmem:[%s6348_s9] sm:$0xff] %vm5170_vm4, %v5165_v29 }
 0x576   : > { %5184 = vst.msk [vmem:[%s6348_s9] sm:$0xff] %vm5183_vm12, %v5178_v37 }
 0x577   : > { %v5154_v57 = vpop.permute.xlu1 %5153  ;;  %5197 = vst.msk [vmem:[%s6348_s9] sm:$0xff] %vm5196_vm14, %v5191_v47 }
 0x578   : > { %5159 = vst.msk [vmem:[%s6348_s9 + $0x8] sm:$0xff] %vm5157_vm11, %v5154_v57 }
 0x579   : > { %5210 = vst.msk [vmem:[%s6348_s9] sm:$0xff] %vm5209_vm8, %v5204_v43 }
 0x57a   : > { %5223 = vst.msk [vmem:[%s6348_s9] sm:$0xff] %vm5222_vm1, %v5217_v63 }
 0x57b   : > { %v5167_v19 = vpop.permute.xlu1 %5166  ;;  %5236 = vst.msk [vmem:[%s6348_s9] sm:$0xff] %vm5235_vm3, %v5230_v31 }
 0x57c   : > { %5172 = vst.msk [vmem:[%s6348_s9 + $0x8] sm:$0xff] %vm5170_vm4, %v5167_v19 }
 0x57d   : > { %5249 = vst.msk [vmem:[%s6348_s9] sm:$0xff] %vm5248_vm0, %v5243_v21  ;;  %v5308_v53 = vpop.permute.xlu0 %5307 }
 0x57e   : > { %5262 = vst.msk [vmem:[%s6348_s9] sm:$0xff] %vm5261_vm5, %v5256_v45 }
 0x57f   : > { %v5180_v56 = vpop.permute.xlu1 %5179  ;;  %5275 = vst.msk [vmem:[%s6348_s9] sm:$0xff] %vm5274_vm7, %v5269_v24 }
 0x580   : > { %5185 = vst.msk [vmem:[%s6348_s9 + $0x8] sm:$0xff] %vm5183_vm12, %v5180_v56 }
 0x581   : > { %5288 = vst.msk [vmem:[%s6348_s9] sm:$0xff] %vm5287_vm2, %v5282_v26  ;;  %v5321_v60 = vpop.permute.xlu0 %5320 }
 0x582   : > { %5301 = vst.msk [vmem:[%s6348_s9] sm:$0xff] %vm5300_vm6, %v5295_v15 }
 0x583   : > { %v5193_v23 = vpop.permute.xlu1 %5192  ;;  %5314 = vst.msk [vmem:[%s6348_s9] sm:$0xff] %vm5313_vm13, %v5308_v53 }
 0x584   : > { %5198 = vst.msk [vmem:[%s6348_s9 + $0x8] sm:$0xff] %vm5196_vm14, %v5193_v23 }
 0x585   : > { %5327 = vst.msk [vmem:[%s6348_s9] sm:$0xff] %vm5326_vm9, %v5321_v60 }
 0x587   : > { %v5206_v1 = vpop.permute.xlu1 %5205 }
 0x588   : > { %5211 = vst.msk [vmem:[%s6348_s9 + $0x8] sm:$0xff] %vm5209_vm8, %v5206_v1 }
 0x58b   : > { %v5219_v25 = vpop.permute.xlu1 %5218 }
 0x58c   : > { %5224 = vst.msk [vmem:[%s6348_s9 + $0x8] sm:$0xff] %vm5222_vm1, %v5219_v25 }
 0x58f   : > { %v5232_v54 = vpop.permute.xlu1 %5231 }
 0x590   : > { %5237 = vst.msk [vmem:[%s6348_s9 + $0x8] sm:$0xff] %vm5235_vm3, %v5232_v54 }
 0x593   : > { %v5245_v20 = vpop.permute.xlu1 %5244 }
 0x594   : > { %5250 = vst.msk [vmem:[%s6348_s9 + $0x8] sm:$0xff] %vm5248_vm0, %v5245_v20 }
 0x597   : > { %v5258_v44 = vpop.permute.xlu1 %5257 }
 0x598   : > { %5263 = vst.msk [vmem:[%s6348_s9 + $0x8] sm:$0xff] %vm5261_vm5, %v5258_v44 }
 0x59b   : > { %v5271_v58 = vpop.permute.xlu1 %5270 }
 0x59c   : > { %5276 = vst.msk [vmem:[%s6348_s9 + $0x8] sm:$0xff] %vm5274_vm7, %v5271_v58 }
 0x59f   : > { %v5284_v10 = vpop.permute.xlu1 %5283 }
 0x5a0   : > { %5289 = vst.msk [vmem:[%s6348_s9 + $0x8] sm:$0xff] %vm5287_vm2, %v5284_v10 }
 0x5a3   : > { %v5297_v7 = vpop.permute.xlu1 %5296 }
 0x5a4   : > { %5302 = vst.msk [vmem:[%s6348_s9 + $0x8] sm:$0xff] %vm5300_vm6, %v5297_v7 }
 0x5a7   : > { %v5310_v2 = vpop.permute.xlu1 %5309 }
 0x5a8   : > { %5315 = vst.msk [vmem:[%s6348_s9 + $0x8] sm:$0xff] %vm5313_vm13, %v5310_v2 }
 0x5ab   : > { %v5323_v62 = vpop.permute.xlu1 %5322 }
 0x5ac   : > { %5328 = vst.msk [vmem:[%s6348_s9 + $0x8] sm:$0xff] %vm5326_vm9, %v5323_v62 }
 0x5ad PF: > { %s16_s25 = sadd.s32 1, %s6201_s25   ;;  %s8994_s19 = sld [smem:[#allocation5_spill]] }
 0x5ae   : > { %p13_p9 = scmp.ge.s32.totalorder %s16_s25, 6   ;;  %s8995_s21 = smov %s6193_s23 }
 0x5af   : > { %s8996_s22 = smov %s6197_s24  ;;  %s8997_s23 = smov %s9000_s26 }
 0x5b0   :  { %15 = sbr.rel (!%p13_p9) target bundleno = 3 (0x3), region = 97 }
 0x5b3   : > { %s8998_s24 = smov %s8994_s19 }

</bundles_post_ra>
